<compile_context>
chip_gen: v5e
topology: v5e:2x2
jax: 0.10.0
libtpu: 0.0.40
codegen_flags: <defaults>
</compile_context>

<pallas_src>
import functools
import math

import jax
import jax.numpy as jnp
from jax.experimental import pallas as pl
from jax.experimental.pallas import tpu as pltpu


def _round_up(x, m):
    return ((x + m - 1) // m) * m


# ----------------------------- Pallas kernels -----------------------------

def _matmul_kernel(*refs, pre_bn, has_bias, post_relu):
    """out = [relu]( [relu(A*scale+shift)] @ B [+ bias] ); A/B hit the MXU in bf16."""
    a_ref, b_ref = refs[0], refs[1]
    i = 2
    if pre_bn:
        scale_ref, shift_ref = refs[i], refs[i + 1]
        i += 2
    if has_bias:
        bias_ref = refs[i]
        i += 1
    o_ref = refs[i]

    a = a_ref[...]
    if pre_bn:
        a = jnp.maximum(a.astype(jnp.float32) * scale_ref[...] + shift_ref[...], 0.0)
    acc = jnp.dot(a.astype(jnp.bfloat16), b_ref[...],
                  preferred_element_type=jnp.float32)
    if has_bias:
        acc = acc + bias_ref[...]
    if post_relu:
        acc = jnp.maximum(acc, 0.0)
    o_ref[...] = acc.astype(o_ref.dtype)


def _conv3x3_bn_relu_kernel(x_ref, w_ref, mask_ref, scale_ref, shift_ref,
                            o_ref, acc_ref, *, Wp):
    """Direct 3x3x3 / stride-1 / pad-1 conv of relu(bn(x)).

    Grid = (N, D, 3); grid axis 2 is the depth tap (kd) and accumulates into a VMEM
    scratch.  Each step gets one spatially-padded depth plane flattened to (L, Cin)
    (L = (H+2)*(W+2)); the 9 in-plane taps are full-plane MXU dots whose results are
    aligned with pltpu.roll along the flattened spatial axis.  BN+ReLU is applied
    in-kernel; the conv's zero halo is re-created post-BN with `mask`."""
    d = pl.program_id(1)
    kd = pl.program_id(2)
    n_d = pl.num_programs(1)
    L = acc_ref.shape[0]

    @pl.when(kd == 0)
    def _init():
        acc_ref[...] = jnp.zeros_like(acc_ref)

    src = d + kd - 1                                   # input depth plane for this tap
    in_range = jnp.logical_and(src >= 0, src <= n_d - 1)

    @pl.when(in_range)
    def _accumulate():
        a = x_ref[0, 0].astype(jnp.float32)            # (L, Cin)
        a = jnp.maximum(a * scale_ref[...] + shift_ref[...], 0.0)
        a = (a * mask_ref[...]).astype(jnp.bfloat16)   # re-create the zero halo post-BN
        acc = acc_ref[...]
        for t in range(9):
            kh, kw = divmod(t, 3)
            yk = jnp.dot(a, w_ref[0, t], preferred_element_type=jnp.float32)
            shift = ((1 - kh) * Wp + (1 - kw)) % L
            if shift:
                yk = pltpu.roll(yk, shift=shift, axis=0)
            acc = acc + yk
        acc_ref[...] = acc

    @pl.when(kd == 2)
    def _store():
        o_ref[0, 0] = acc_ref[...].astype(o_ref.dtype)


def _pool_bn_relu_kernel(w_ref, scale_ref, shift_ref, o_ref, *, mode, K):
    """Reduce K window taps (leading axis) of relu(x*scale+shift); max or avg."""
    def slab(k):
        return jnp.maximum(
            w_ref[k].astype(jnp.float32) * scale_ref[...] + shift_ref[...], 0.0)

    acc = slab(0)
    for k in range(1, K):
        s = slab(k)
        acc = jnp.maximum(acc, s) if mode == "max" else acc + s
    if mode == "avg":
        acc = acc * (1.0 / K)
    o_ref[...] = acc.astype(o_ref.dtype)


def _bn_relu_kernel(x_ref, scale_ref, shift_ref, o_ref):
    x = x_ref[...].astype(jnp.float32)
    o_ref[...] = jnp.maximum(x * scale_ref[...] + shift_ref[...], 0.0).astype(o_ref.dtype)


# ----------------------------- Pallas wrappers -----------------------------

def pallas_matmul(a, b, bias=None, scale=None, shift=None, relu=False,
                  out_dtype=jnp.bfloat16, tm=512):
    """(M,K)@(K,N); optional fused pre-BN+ReLU on A and bias / ReLU epilogue.
    Only M is tiled/padded (K and N stay full-extent blocks -> no extra HBM copies).
    Small M (e.g. the batch-2 heads) only pads up to 16 rows."""
    M, K = a.shape
    K2, N = b.shape
    assert K == K2
    pre_bn = scale is not None
    tm_eff = min(tm, _round_up(M, 16))
    Mp = _round_up(M, tm_eff)
    a_p = a if Mp == M else jnp.pad(a, ((0, Mp - M), (0, 0)))

    inputs = [a_p, b.astype(jnp.bfloat16)]
    in_specs = [pl.BlockSpec((tm_eff, K), lambda i: (i, 0)),
                pl.BlockSpec((K, N), lambda i: (0, 0))]
    if pre_bn:
        inputs += [scale.astype(jnp.float32).reshape(1, K),
                   shift.astype(jnp.float32).reshape(1, K)]
        in_specs += [pl.BlockSpec((1, K), lambda i: (0, 0)),
                     pl.BlockSpec((1, K), lambda i: (0, 0))]
    if bias is not None:
        inputs.append(bias.astype(jnp.float32).reshape(1, N))
        in_specs.append(pl.BlockSpec((1, N), lambda i: (0, 0)))

    out = pl.pallas_call(
        functools.partial(_matmul_kernel, pre_bn=pre_bn,
                          has_bias=bias is not None, post_relu=relu),
        out_shape=jax.ShapeDtypeStruct((Mp, N), out_dtype),
        grid_spec=pltpu.PrefetchScalarGridSpec(
            num_scalar_prefetch=0,
            grid=(Mp // tm_eff,),
            in_specs=in_specs,
            out_specs=pl.BlockSpec((tm_eff, N), lambda i: (i, 0)),
        ),
        compiler_params=pltpu.CompilerParams(dimension_semantics=("parallel",)),
    )(*inputs)
    return out[:M] if Mp != M else out


def conv3x3_bn_relu(x, w, scale, shift):
    """y = conv3x3x3(pad=1, stride=1)(relu(bn(x))), BN+ReLU fused in-kernel.
    x: (N,D,H,W,Cin) bf16, w: (3, 9, Cin, Cout)."""
    N, D, H, W, Cin = x.shape
    Cout = w.shape[-1]
    Hp, Wp = H + 2, W + 2
    L = Hp * Wp
    xp = jnp.pad(x, ((0, 0), (0, 0), (1, 1), (1, 1), (0, 0))).reshape(N, D, L, Cin)

    # interior mask of the spatially padded plane, flattened -> (L, 1)
    ih = jnp.arange(Hp).reshape(Hp, 1)
    iw = jnp.arange(Wp).reshape(1, Wp)
    mask = ((ih >= 1) & (ih <= H) & (iw >= 1) & (iw <= W)).astype(jnp.float32)
    mask = mask.reshape(L, 1)

    out = pl.pallas_call(
        functools.partial(_conv3x3_bn_relu_kernel, Wp=Wp),
        out_shape=jax.ShapeDtypeStruct((N, D, L, Cout), jnp.bfloat16),
        grid_spec=pltpu.PrefetchScalarGridSpec(
            num_scalar_prefetch=0,
            grid=(N, D, 3),
            in_specs=[
                pl.BlockSpec(
                    (1, 1, L, Cin),
                    lambda n, d, kd: (n, jnp.maximum(jnp.minimum(d + kd - 1, D - 1), 0),
                                      0, 0)),
                pl.BlockSpec((1, 9, Cin, Cout), lambda n, d, kd: (kd, 0, 0, 0)),
                pl.BlockSpec((L, 1), lambda n, d, kd: (0, 0)),
                pl.BlockSpec((1, Cin), lambda n, d, kd: (0, 0)),
                pl.BlockSpec((1, Cin), lambda n, d, kd: (0, 0)),
            ],
            out_specs=pl.BlockSpec((1, 1, L, Cout), lambda n, d, kd: (n, d, 0, 0)),
            scratch_shapes=[pltpu.VMEM((L, Cout), jnp.float32)],
        ),
        compiler_params=pltpu.CompilerParams(
            dimension_semantics=("parallel", "parallel", "arbitrary")),
    )(xp, w.astype(jnp.bfloat16), mask,
      scale.astype(jnp.float32).reshape(1, Cin),
      shift.astype(jnp.float32).reshape(1, Cin))

    out = out.reshape(N, D, Hp, Wp, Cout)[:, :, 1:1 + H, 1:1 + W, :]
    return out


def pallas_pool_bn_relu(windows, scale, shift, mode, tp=512):
    """windows: (K, P, C) raw window taps; returns reduce_k(relu(win*scale+shift))."""
    K, P, C = windows.shape
    tp_eff = min(tp, _round_up(P, 16))
    Pp = _round_up(P, tp_eff)
    w_p = windows if Pp == P else jnp.pad(windows, ((0, 0), (0, Pp - P), (0, 0)))
    out = pl.pallas_call(
        functools.partial(_pool_bn_relu_kernel, mode=mode, K=K),
        out_shape=jax.ShapeDtypeStruct((Pp, C), jnp.bfloat16),
        grid_spec=pltpu.PrefetchScalarGridSpec(
            num_scalar_prefetch=0,
            grid=(Pp // tp_eff,),
            in_specs=[pl.BlockSpec((K, tp_eff, C), lambda i: (0, i, 0)),
                      pl.BlockSpec((1, C), lambda i: (0, 0)),
                      pl.BlockSpec((1, C), lambda i: (0, 0))],
            out_specs=pl.BlockSpec((tp_eff, C), lambda i: (i, 0)),
        ),
        compiler_params=pltpu.CompilerParams(dimension_semantics=("parallel",)),
    )(w_p, scale.astype(jnp.float32).reshape(1, C),
      shift.astype(jnp.float32).reshape(1, C))
    return out[:P] if Pp != P else out


def pallas_bn_relu(x2, scale, shift, tp=1024):
    """relu(x*scale + shift) on a (P, C) slab; lane-densified (rows folded into lanes)."""
    P, C = x2.shape
    g = max(1, 128 // C)
    while g > 1 and P % g:
        g -= 1
    Pg, Cg = P // g, g * C
    xg = x2.reshape(Pg, Cg)
    sg = jnp.tile(scale.astype(jnp.float32), g).reshape(1, Cg)
    hg = jnp.tile(shift.astype(jnp.float32), g).reshape(1, Cg)
    tp_eff = min(tp, _round_up(Pg, 16))
    Pp = _round_up(Pg, tp_eff)
    x_p = xg if Pp == Pg else jnp.pad(xg, ((0, Pp - Pg), (0, 0)))
    out = pl.pallas_call(
        _bn_relu_kernel,
        out_shape=jax.ShapeDtypeStruct((Pp, Cg), jnp.bfloat16),
        grid_spec=pltpu.PrefetchScalarGridSpec(
            num_scalar_prefetch=0,
            grid=(Pp // tp_eff,),
            in_specs=[pl.BlockSpec((tp_eff, Cg), lambda i: (i, 0)),
                      pl.BlockSpec((1, Cg), lambda i: (0, 0)),
                      pl.BlockSpec((1, Cg), lambda i: (0, 0))],
            out_specs=pl.BlockSpec((tp_eff, Cg), lambda i: (i, 0)),
        ),
        compiler_params=pltpu.CompilerParams(dimension_semantics=("parallel",)),
    )(x_p, sg, hg)
    out = out[:Pg] if Pp != Pg else out
    return out.reshape(P, C)


# ----------------------------- JAX glue (stats / windows / layout) -----------------------------

def bn_scale_shift(x2, gamma, beta, eps=1e-5):
    """Training-mode BatchNorm batch stats -> per-channel scale/shift (f32)."""
    xf = x2.astype(jnp.float32)
    mean = jnp.mean(xf, axis=0)
    var = jnp.var(xf, axis=0)          # biased, like PyTorch training-mode normalization
    scale = gamma * jax.lax.rsqrt(var + eps)
    shift = beta - mean * scale
    return scale, shift


def _extract_windows_leading(x, ksize, stride):
    """x: (N,D,H,W,C) -> (k^3, N*Do*Ho*Wo, C) window taps (valid, floor)."""
    N, D, H, W, C = x.shape
    Do = (D - ksize) // stride + 1
    Ho = (H - ksize) // stride + 1
    Wo = (W - ksize) // stride + 1
    cols = []
    for kd in range(ksize):
        for kh in range(ksize):
            for kw in range(ksize):
                sl = x[:, kd:kd + stride * (Do - 1) + 1:stride,
                          kh:kh + stride * (Ho - 1) + 1:stride,
                          kw:kw + stride * (Wo - 1) + 1:stride, :]
                cols.append(sl.reshape(-1, C))
    return jnp.stack(cols, axis=0), (N, Do, Ho, Wo)


def pool_bn_relu(x, ksize, stride, mode, gamma, beta):
    """pool(relu(bn(x))); the BN+ReLU is applied per window tap inside the kernel."""
    C = x.shape[-1]
    scale, shift = bn_scale_shift(x.reshape(-1, C), gamma, beta)
    win, (N, Do, Ho, Wo) = _extract_windows_leading(x, ksize, stride)
    y = pallas_pool_bn_relu(win, scale, shift, mode)
    return y.reshape(N, Do, Ho, Wo, C)


def conv0_im2col(x, w_mat, ksize=7, stride=2):
    """conv0: 7x7x7 / stride 2 / pad 0 on the 1-channel input via bf16 im2col + matmul."""
    N, D, H, W, C = x.shape
    Do = (D - ksize) // stride + 1
    Ho = (H - ksize) // stride + 1
    Wo = (W - ksize) // stride + 1
    cols = []
    for kd in range(ksize):
        for kh in range(ksize):
            for kw in range(ksize):
                sl = x[:, kd:kd + stride * (Do - 1) + 1:stride,
                          kh:kh + stride * (Ho - 1) + 1:stride,
                          kw:kw + stride * (Wo - 1) + 1:stride, :]
                cols.append(sl.reshape(-1, C))
    patches = jnp.concatenate(cols, axis=-1)          # (P, k^3 * C), tap-major columns
    y = pallas_matmul(patches, w_mat)
    return y.reshape(N, Do, Ho, Wo, -1)


# ----------------------------- DenseNet forward -----------------------------

def densenet_forward(x_ncdhw, params, block_config, tgt_modalities):
    x = jnp.transpose(x_ncdhw, (0, 2, 3, 4, 1)).astype(jnp.bfloat16)   # NCDHW -> NDHWC

    h = conv0_im2col(x, params["conv0_w"])                     # conv0
    h = pool_bn_relu(h, 3, 2, "max", *params["norm0"])         # norm0+relu0 fused into pool0

    for bi, _ in enumerate(block_config):
        feats = [h]
        for lp in params["blocks"][bi]:
            c = jnp.concatenate(feats, axis=-1)
            N_, D_, H_, W_, Cin = c.shape
            c2 = c.reshape(-1, Cin)
            s1, t1 = bn_scale_shift(c2, *lp["norm1"])
            # norm1 + relu1 fused into the bottleneck 1x1x1 conv (pre-scale on A)
            b2 = pallas_matmul(c2, lp["conv1_w"], scale=s1, shift=t1)
            s2, t2 = bn_scale_shift(b2, *lp["norm2"])
            bott = b2.reshape(N_, D_, H_, W_, -1)
            # norm2 + relu2 fused into the direct 3x3x3 conv kernel
            nf = conv3x3_bn_relu(bott, lp["conv2_w"], s2, t2)
            feats.append(nf)                                   # drop_rate == 0 -> identity
        h = jnp.concatenate(feats, axis=-1)

        tr = params["transitions"][bi]
        # transition: norm+relu fused into the avgpool; 1x1 conv and avgpool commute,
        # so the conv runs on the 8x smaller pooled map.
        pooled = pool_bn_relu(h, 2, 2, "avg", *tr["norm"])
        Np_, Dp_, Hp_, Wp_, Cf = pooled.shape
        h = pallas_matmul(pooled.reshape(-1, Cf), tr["conv_w"]).reshape(
            Np_, Dp_, Hp_, Wp_, -1)

    Cn = h.shape[-1]
    sF, tF = bn_scale_shift(h.reshape(-1, Cn), *params["norm_final"])
    hf = pallas_bn_relu(h.reshape(-1, Cn), sF, tF).reshape(h.shape)    # norm_final + F.relu

    n = hf.shape[0]
    flat = jnp.transpose(hf, (0, 4, 1, 2, 3)).reshape(n, -1)   # PyTorch C-major flatten

    logits = []
    for m in tgt_modalities:
        hp = params["heads"][m]
        z = pallas_matmul(flat, hp["w1"], bias=hp["b1"], relu=True, out_dtype=jnp.float32)
        z = pallas_matmul(z, hp["w2"], bias=hp["b2"], relu=False, out_dtype=jnp.float32)
        logits.append(z[:, 0])                                 # .squeeze(1)
    out = jnp.stack(logits, axis=0)                            # (num_tgt, N), shap=True
    return out.T                                               # (N, num_tgt)


# ----------------------------- Parameter init -----------------------------

def init_params(key, tgt_modalities, growth_rate, block_config, compression,
                num_init_features, bn_size, flat_features):
    keys = iter(jax.random.split(key, 512))

    def conv_init(k, shape, n):        # PyTorch: normal * sqrt(2/n), n = Cout * kD*kH*kW
        return (jax.random.normal(k, shape, jnp.float32)
                * math.sqrt(2.0 / n)).astype(jnp.bfloat16)

    params = {
        "conv0_w": conv_init(next(keys), (7 * 7 * 7 * 1, num_init_features),
                             num_init_features * 343),
        "norm0": (jnp.ones((num_init_features,), jnp.float32),
                  jnp.zeros((num_init_features,), jnp.float32)),
    }
    num_features = num_init_features
    blocks, transitions = [], []
    for num_layers in block_config:
        layers = []
        for i in range(num_layers):
            cin = num_features + i * growth_rate
            mid = bn_size * growth_rate
            layers.append({
                "norm1": (jnp.ones((cin,), jnp.float32), jnp.zeros((cin,), jnp.float32)),
                "conv1_w": conv_init(next(keys), (cin, mid), mid * 1),
                "norm2": (jnp.ones((mid,), jnp.float32), jnp.zeros((mid,), jnp.float32)),
                # layout (kd, kh*3+kw, Cin, Cout) used by the direct conv kernel
                "conv2_w": conv_init(next(keys), (3, 9, mid, growth_rate),
                                     growth_rate * 27),
            })
        blocks.append(layers)
        num_features += num_layers * growth_rate
        cout = int(num_features * compression)
        transitions.append({
            "norm": (jnp.ones((num_features,), jnp.float32),
                     jnp.zeros((num_features,), jnp.float32)),
            "conv_w": conv_init(next(keys), (num_features, cout), cout * 1),
        })
        num_features = cout
    params["blocks"] = blocks
    params["transitions"] = transitions
    params["norm_final"] = (jnp.ones((num_features,), jnp.float32),
                            jnp.zeros((num_features,), jnp.float32))

    heads = {}
    for m in tgt_modalities:
        heads[m] = {
            "w1": (jax.random.normal(next(keys), (flat_features, 256), jnp.float32)
                   / math.sqrt(flat_features)).astype(jnp.bfloat16),
            "b1": jnp.zeros((256,), jnp.float32),              # tgt biases filled with 0
            "w2": (jax.random.normal(next(keys), (256, 1), jnp.float32)
                   / math.sqrt(256)).astype(jnp.bfloat16),
            "b2": jnp.zeros((1,), jnp.float32),
        }
    params["heads"] = heads
    return params


# ----------------------------- main -----------------------------

if __name__ == "__main__":
    key = jax.random.PRNGKey(0)
    kx, kp = jax.random.split(key)

    # Small, consistent DenseNet configuration (constructor args of the module).
    tgt_modalities = ("amyloid", "tau", "nc")
    growth_rate = 8
    block_config = (2, 2)
    compression = 0.5
    num_init_features = 16
    bn_size = 2

    N, S = 2, 23                                    # batch, cubic spatial size
    x = jax.random.normal(kx, (N, 1, S, S, S), jnp.float32)    # NCDHW like PyTorch

    # Trace spatial size through conv0 / maxpool / per-transition avgpool (valid, floor).
    s = (S - 7) // 2 + 1
    s = (s - 3) // 2 + 1
    nf = num_init_features
    for nl in block_config:
        nf = int((nf + nl * growth_rate) * compression)
        s = s // 2
    flat_features = nf * s ** 3                     # == self.test_size() for this input

    params = init_params(kp, tgt_modalities, growth_rate, block_config, compression,
                         num_init_features, bn_size, flat_features)

    fwd = jax.jit(lambda xx, pp: densenet_forward(xx, pp, block_config, tgt_modalities))
    out = jax.block_until_ready(fwd(x, params))

    assert out.shape == (N, len(tgt_modalities)), out.shape
    assert jnp.all(jnp.isfinite(out))
    print("KERNEL_OK")
</pallas_src>

<mosaic_0001>
module attributes {stable_mosaic.version = 11 : i64} {
  func.func @_matmul_kernel(%arg0: i32, %arg1: memref<512x343xbf16, #tpu.memory_space<vmem>>, %arg2: memref<343x16xbf16, #tpu.memory_space<vmem>>, %arg3: memref<512x16xbf16, #tpu.memory_space<vmem>>) attributes {dimension_semantics = [#tpu.dimension_semantics<parallel>], iteration_bounds = array<i64: 3>, scalar_prefetch = 0 : i64, scratch_operands = 0 : i64, tpu.core_type = #tpu.core_type<tc>, window_params = [{transform_indices = @transform_0, window_bounds = array<i64: 512, 343>}, {pipeline_mode = #tpu.pipeline_mode<synchronous>, transform_indices = @transform_1, window_bounds = array<i64: 343, 16>}, {transform_indices = @transform_2, window_bounds = array<i64: 512, 16>}]} {
    %c0 = arith.constant 0 : index
    %c0_0 = arith.constant 0 : index
    %0 = vector.load %arg1[%c0, %c0_0] : memref<512x343xbf16, #tpu.memory_space<vmem>>, vector<512x343xbf16>
    %c0_1 = arith.constant 0 : index
    %c0_2 = arith.constant 0 : index
    %1 = vector.load %arg2[%c0_1, %c0_2] : memref<343x16xbf16, #tpu.memory_space<vmem>>, vector<343x16xbf16>
    %cst = arith.constant dense<0.000000e+00> : vector<512x16xf32>
    %2 = tpu.matmul %0, %1, %cst {dimension_numbers = #tpu.dot_dimension_numbers<[1], [0], [0], [1], [0, 0, 1, 1], [], []>} : vector<512x343xbf16>, vector<343x16xbf16>, vector<512x16xf32> -> vector<512x16xf32>
    %3 = arith.truncf %2 : vector<512x16xf32> to vector<512x16xbf16>
    %c0_3 = arith.constant 0 : index
    %c0_4 = arith.constant 0 : index
    %4 = vector.load %arg3[%c0_3, %c0_4] : memref<512x16xbf16, #tpu.memory_space<vmem>>, vector<512x16xbf16>
    tpu.vector_store %arg3[%c0_3, %c0_4], %3 {strides = array<i32>} : memref<512x16xbf16, #tpu.memory_space<vmem>>, vector<512x16xbf16>,
    return
  }
  func.func @transform_0(%arg0: i32) -> (i32, i32) {
    %c0_i32 = arith.constant 0 : i32
    %c0_i32_0 = arith.constant 0 : i32
    return %arg0, %c0_i32 : i32, i32
  }
  func.func @transform_1(%arg0: i32) -> (i32, i32) {
    %c0_i32 = arith.constant 0 : i32
    %c0_i32_0 = arith.constant 0 : i32
    %c0_i32_1 = arith.constant 0 : i32
    return %c0_i32, %c0_i32_0 : i32, i32
  }
  func.func @transform_2(%arg0: i32) -> (i32, i32) {
    %c0_i32 = arith.constant 0 : i32
    %c0_i32_0 = arith.constant 0 : i32
    return %arg0, %c0_i32 : i32, i32
  }
}

module attributes {stable_mosaic.version = 11 : i64} {
  func.func @_pool_bn_relu_kernel(%arg0: i32, %arg1: memref<27x128x16xbf16, #tpu.memory_space<vmem>>, %arg2: memref<1x16xf32, #tpu.memory_space<vmem>>, %arg3: memref<1x16xf32, #tpu.memory_space<vmem>>, %arg4: memref<128x16xbf16, #tpu.memory_space<vmem>>) attributes {dimension_semantics = [#tpu.dimension_semantics<parallel>], iteration_bounds = array<i64: 1>, scalar_prefetch = 0 : i64, scratch_operands = 0 : i64, tpu.core_type = #tpu.core_type<tc>, window_params = [{transform_indices = @transform_0, window_bounds = array<i64: 27, 128, 16>}, {pipeline_mode = #tpu.pipeline_mode<synchronous>, transform_indices = @transform_1, window_bounds = array<i64: 1, 16>}, {pipeline_mode = #tpu.pipeline_mode<synchronous>, transform_indices = @transform_2, window_bounds = array<i64: 1, 16>}, {transform_indices = @transform_3, window_bounds = array<i64: 128, 16>}]} {
    %c0 = arith.constant 0 : index
    %c0_0 = arith.constant 0 : index
    %c0_1 = arith.constant 0 : index
    %0 = vector.load %arg1[%c0, %c0_0, %c0_1] : memref<27x128x16xbf16, #tpu.memory_space<vmem>>, vector<1x128x16xbf16>
    %1 = vector.shape_cast %0 : vector<1x128x16xbf16> to vector<128x16xbf16>
    %2 = arith.extf %1 : vector<128x16xbf16> to vector<128x16xf32>
    %c0_2 = arith.constant 0 : index
    %c0_3 = arith.constant 0 : index
    %3 = vector.load %arg2[%c0_2, %c0_3] : memref<1x16xf32, #tpu.memory_space<vmem>>, vector<1x16xf32>
    %4 = vector.broadcast %3 : vector<1x16xf32> to vector<128x16xf32>
    %5 = arith.mulf %2, %4 : vector<128x16xf32>
    %c0_4 = arith.constant 0 : index
    %c0_5 = arith.constant 0 : index
    %6 = vector.load %arg3[%c0_4, %c0_5] : memref<1x16xf32, #tpu.memory_space<vmem>>, vector<1x16xf32>
    %7 = vector.broadcast %6 : vector<1x16xf32> to vector<128x16xf32>
    %8 = arith.addf %5, %7 : vector<128x16xf32>
    %cst = arith.constant 0.000000e+00 : f32
    %9 = vector.broadcast %cst : f32 to vector<128x16xf32>
    %10 = arith.maximumf %8, %9 : vector<128x16xf32>
    %c1 = arith.constant 1 : index
    %c0_6 = arith.constant 0 : index
    %c0_7 = arith.constant 0 : index
    %11 = vector.load %arg1[%c1, %c0_6, %c0_7] : memref<27x128x16xbf16, #tpu.memory_space<vmem>>, vector<1x128x16xbf16>
    %12 = vector.shape_cast %11 : vector<1x128x16xbf16> to vector<128x16xbf16>
    %13 = arith.extf %12 : vector<128x16xbf16> to vector<128x16xf32>
    %c0_8 = arith.constant 0 : index
    %c0_9 = arith.constant 0 : index
    %14 = vector.load %arg2[%c0_8, %c0_9] : memref<1x16xf32, #tpu.memory_space<vmem>>, vector<1x16xf32>
    %15 = vector.broadcast %14 : vector<1x16xf32> to vector<128x16xf32>
    %16 = arith.mulf %13, %15 : vector<128x16xf32>
    %c0_10 = arith.constant 0 : index
    %c0_11 = arith.constant 0 : index
    %17 = vector.load %arg3[%c0_10, %c0_11] : memref<1x16xf32, #tpu.memory_space<vmem>>, vector<1x16xf32>
    %18 = vector.broadcast %17 : vector<1x16xf32> to vector<128x16xf32>
    %19 = arith.addf %16, %18 : vector<128x16xf32>
    %cst_12 = arith.constant 0.000000e+00 : f32
    %20 = vector.broadcast %cst_12 : f32 to vector<128x16xf32>
    %21 = arith.maximumf %19, %20 : vector<128x16xf32>
    %22 = arith.maximumf %10, %21 : vector<128x16xf32>
    %c2 = arith.constant 2 : index
    %c0_13 = arith.constant 0 : index
    %c0_14 = arith.constant 0 : index
    %23 = vector.load %arg1[%c2, %c0_13, %c0_14] : memref<27x128x16xbf16, #tpu.memory_space<vmem>>, vector<1x128x16xbf16>
    %24 = vector.shape_cast %23 : vector<1x128x16xbf16> to vector<128x16xbf16>
    %25 = arith.extf %24 : vector<128x16xbf16> to vector<128x16xf32>
    %c0_15 = arith.constant 0 : index
    %c0_16 = arith.constant 0 : index
    %26 = vector.load %arg2[%c0_15, %c0_16] : memref<1x16xf32, #tpu.memory_space<vmem>>, vector<1x16xf32>
    %27 = vector.broadcast %26 : vector<1x16xf32> to vector<128x16xf32>
    %28 = arith.mulf %25, %27 : vector<128x16xf32>
    %c0_17 = arith.constant 0 : index
    %c0_18 = arith.constant 0 : index
    %29 = vector.load %arg3[%c0_17, %c0_18] : memref<1x16xf32, #tpu.memory_space<vmem>>, vector<1x16xf32>
    %30 = vector.broadcast %29 : vector<1x16xf32> to vector<128x16xf32>
    %31 = arith.addf %28, %30 : vector<128x16xf32>
    %cst_19 = arith.constant 0.000000e+00 : f32
    %32 = vector.broadcast %cst_19 : f32 to vector<128x16xf32>
    %33 = arith.maximumf %31, %32 : vector<128x16xf32>
    %34 = arith.maximumf %22, %33 : vector<128x16xf32>
    %c3 = arith.constant 3 : index
    %c0_20 = arith.constant 0 : index
    %c0_21 = arith.constant 0 : index
    %35 = vector.load %arg1[%c3, %c0_20, %c0_21] : memref<27x128x16xbf16, #tpu.memory_space<vmem>>, vector<1x128x16xbf16>
    %36 = vector.shape_cast %35 : vector<1x128x16xbf16> to vector<128x16xbf16>
    %37 = arith.extf %36 : vector<128x16xbf16> to vector<128x16xf32>
    %c0_22 = arith.constant 0 : index
    %c0_23 = arith.constant 0 : index
    %38 = vector.load %arg2[%c0_22, %c0_23] : memref<1x16xf32, #tpu.memory_space<vmem>>, vector<1x16xf32>
    %39 = vector.broadcast %38 : vector<1x16xf32> to vector<128x16xf32>
    %40 = arith.mulf %37, %39 : vector<128x16xf32>
    %c0_24 = arith.constant 0 : index
    %c0_25 = arith.constant 0 : index
    %41 = vector.load %arg3[%c0_24, %c0_25] : memref<1x16xf32, #tpu.memory_space<vmem>>, vector<1x16xf32>
    %42 = vector.broadcast %41 : vector<1x16xf32> to vector<128x16xf32>
    %43 = arith.addf %40, %42 : vector<128x16xf32>
    %cst_26 = arith.constant 0.000000e+00 : f32
    %44 = vector.broadcast %cst_26 : f32 to vector<128x16xf32>
    %45 = arith.maximumf %43, %44 : vector<128x16xf32>
    %46 = arith.maximumf %34, %45 : vector<128x16xf32>
    %c4 = arith.constant 4 : index
    %c0_27 = arith.constant 0 : index
    %c0_28 = arith.constant 0 : index
    %47 = vector.load %arg1[%c4, %c0_27, %c0_28] : memref<27x128x16xbf16, #tpu.memory_space<vmem>>, vector<1x128x16xbf16>
    %48 = vector.shape_cast %47 : vector<1x128x16xbf16> to vector<128x16xbf16>
    %49 = arith.extf %48 : vector<128x16xbf16> to vector<128x16xf32>
    %c0_29 = arith.constant 0 : index
    %c0_30 = arith.constant 0 : index
    %50 = vector.load %arg2[%c0_29, %c0_30] : memref<1x16xf32, #tpu.memory_space<vmem>>, vector<1x16xf32>
    %51 = vector.broadcast %50 : vector<1x16xf32> to vector<128x16xf32>
    %52 = arith.mulf %49, %51 : vector<128x16xf32>
    %c0_31 = arith.constant 0 : index
    %c0_32 = arith.constant 0 : index
    %53 = vector.load %arg3[%c0_31, %c0_32] : memref<1x16xf32, #tpu.memory_space<vmem>>, vector<1x16xf32>
    %54 = vector.broadcast %53 : vector<1x16xf32> to vector<128x16xf32>
    %55 = arith.addf %52, %54 : vector<128x16xf32>
    %cst_33 = arith.constant 0.000000e+00 : f32
    %56 = vector.broadcast %cst_33 : f32 to vector<128x16xf32>
    %57 = arith.maximumf %55, %56 : vector<128x16xf32>
    %58 = arith.maximumf %46, %57 : vector<128x16xf32>
    %c5 = arith.constant 5 : index
    %c0_34 = arith.constant 0 : index
    %c0_35 = arith.constant 0 : index
    %59 = vector.load %arg1[%c5, %c0_34, %c0_35] : memref<27x128x16xbf16, #tpu.memory_space<vmem>>, vector<1x128x16xbf16>
    %60 = vector.shape_cast %59 : vector<1x128x16xbf16> to vector<128x16xbf16>
    %61 = arith.extf %60 : vector<128x16xbf16> to vector<128x16xf32>
    %c0_36 = arith.constant 0 : index
    %c0_37 = arith.constant 0 : index
    %62 = vector.load %arg2[%c0_36, %c0_37] : memref<1x16xf32, #tpu.memory_space<vmem>>, vector<1x16xf32>
    %63 = vector.broadcast %62 : vector<1x16xf32> to vector<128x16xf32>
    %64 = arith.mulf %61, %63 : vector<128x16xf32>
    %c0_38 = arith.constant 0 : index
    %c0_39 = arith.constant 0 : index
    %65 = vector.load %arg3[%c0_38, %c0_39] : memref<1x16xf32, #tpu.memory_space<vmem>>, vector<1x16xf32>
    %66 = vector.broadcast %65 : vector<1x16xf32> to vector<128x16xf32>
    %67 = arith.addf %64, %66 : vector<128x16xf32>
    %cst_40 = arith.constant 0.000000e+00 : f32
    %68 = vector.broadcast %cst_40 : f32 to vector<128x16xf32>
    %69 = arith.maximumf %67, %68 : vector<128x16xf32>
    %70 = arith.maximumf %58, %69 : vector<128x16xf32>
    %c6 = arith.constant 6 : index
    %c0_41 = arith.constant 0 : index
    %c0_42 = arith.constant 0 : index
    %71 = vector.load %arg1[%c6, %c0_41, %c0_42] : memref<27x128x16xbf16, #tpu.memory_space<vmem>>, vector<1x128x16xbf16>
    %72 = vector.shape_cast %71 : vector<1x128x16xbf16> to vector<128x16xbf16>
    %73 = arith.extf %72 : vector<128x16xbf16> to vector<128x16xf32>
    %c0_43 = arith.constant 0 : index
    %c0_44 = arith.constant 0 : index
    %74 = vector.load %arg2[%c0_43, %c0_44] : memref<1x16xf32, #tpu.memory_space<vmem>>, vector<1x16xf32>
    %75 = vector.broadcast %74 : vector<1x16xf32> to vector<128x16xf32>
    %76 = arith.mulf %73, %75 : vector<128x16xf32>
    %c0_45 = arith.constant 0 : index
    %c0_46 = arith.constant 0 : index
    %77 = vector.load %arg3[%c0_45, %c0_46] : memref<1x16xf32, #tpu.memory_space<vmem>>, vector<1x16xf32>
    %78 = vector.broadcast %77 : vector<1x16xf32> to vector<128x16xf32>
    %79 = arith.addf %76, %78 : vector<128x16xf32>
    %cst_47 = arith.constant 0.000000e+00 : f32
    %80 = vector.broadcast %cst_47 : f32 to vector<128x16xf32>
    %81 = arith.maximumf %79, %80 : vector<128x16xf32>
    %82 = arith.maximumf %70, %81 : vector<128x16xf32>
    %c7 = arith.constant 7 : index
    %c0_48 = arith.constant 0 : index
    %c0_49 = arith.constant 0 : index
    %83 = vector.load %arg1[%c7, %c0_48, %c0_49] : memref<27x128x16xbf16, #tpu.memory_space<vmem>>, vector<1x128x16xbf16>
    %84 = vector.shape_cast %83 : vector<1x128x16xbf16> to vector<128x16xbf16>
    %85 = arith.extf %84 : vector<128x16xbf16> to vector<128x16xf32>
    %c0_50 = arith.constant 0 : index
    %c0_51 = arith.constant 0 : index
    %86 = vector.load %arg2[%c0_50, %c0_51] : memref<1x16xf32, #tpu.memory_space<vmem>>, vector<1x16xf32>
    %87 = vector.broadcast %86 : vector<1x16xf32> to vector<128x16xf32>
    %88 = arith.mulf %85, %87 : vector<128x16xf32>
    %c0_52 = arith.constant 0 : index
    %c0_53 = arith.constant 0 : index
    %89 = vector.load %arg3[%c0_52, %c0_53] : memref<1x16xf32, #tpu.memory_space<vmem>>, vector<1x16xf32>
    %90 = vector.broadcast %89 : vector<1x16xf32> to vector<128x16xf32>
    %91 = arith.addf %88, %90 : vector<128x16xf32>
    %cst_54 = arith.constant 0.000000e+00 : f32
    %92 = vector.broadcast %cst_54 : f32 to vector<128x16xf32>
    %93 = arith.maximumf %91, %92 : vector<128x16xf32>
    %94 = arith.maximumf %82, %93 : vector<128x16xf32>
    %c8 = arith.constant 8 : index
    %c0_55 = arith.constant 0 : index
    %c0_56 = arith.constant 0 : index
    %95 = vector.load %arg1[%c8, %c0_55, %c0_56] : memref<27x128x16xbf16, #tpu.memory_space<vmem>>, vector<1x128x16xbf16>
    %96 = vector.shape_cast %95 : vector<1x128x16xbf16> to vector<128x16xbf16>
    %97 = arith.extf %96 : vector<128x16xbf16> to vector<128x16xf32>
    %c0_57 = arith.constant 0 : index
    %c0_58 = arith.constant 0 : index
    %98 = vector.load %arg2[%c0_57, %c0_58] : memref<1x16xf32, #tpu.memory_space<vmem>>, vector<1x16xf32>
    %99 = vector.broadcast %98 : vector<1x16xf32> to vector<128x16xf32>
    %100 = arith.mulf %97, %99 : vector<128x16xf32>
    %c0_59 = arith.constant 0 : index
    %c0_60 = arith.constant 0 : index
    %101 = vector.load %arg3[%c0_59, %c0_60] : memref<1x16xf32, #tpu.memory_space<vmem>>, vector<1x16xf32>
    %102 = vector.broadcast %101 : vector<1x16xf32> to vector<128x16xf32>
    %103 = arith.addf %100, %102 : vector<128x16xf32>
    %cst_61 = arith.constant 0.000000e+00 : f32
    %104 = vector.broadcast %cst_61 : f32 to vector<128x16xf32>
    %105 = arith.maximumf %103, %104 : vector<128x16xf32>
    %106 = arith.maximumf %94, %105 : vector<128x16xf32>
    %c9 = arith.constant 9 : index
    %c0_62 = arith.constant 0 : index
    %c0_63 = arith.constant 0 : index
    %107 = vector.load %arg1[%c9, %c0_62, %c0_63] : memref<27x128x16xbf16, #tpu.memory_space<vmem>>, vector<1x128x16xbf16>
    %108 = vector.shape_cast %107 : vector<1x128x16xbf16> to vector<128x16xbf16>
    %109 = arith.extf %108 : vector<128x16xbf16> to vector<128x16xf32>
    %c0_64 = arith.constant 0 : index
    %c0_65 = arith.constant 0 : index
    %110 = vector.load %arg2[%c0_64, %c0_65] : memref<1x16xf32, #tpu.memory_space<vmem>>, vector<1x16xf32>
    %111 = vector.broadcast %110 : vector<1x16xf32> to vector<128x16xf32>
    %112 = arith.mulf %109, %111 : vector<128x16xf32>
    %c0_66 = arith.constant 0 : index
    %c0_67 = arith.constant 0 : index
    %113 = vector.load %arg3[%c0_66, %c0_67] : memref<1x16xf32, #tpu.memory_space<vmem>>, vector<1x16xf32>
    %114 = vector.broadcast %113 : vector<1x16xf32> to vector<128x16xf32>
    %115 = arith.addf %112, %114 : vector<128x16xf32>
    %cst_68 = arith.constant 0.000000e+00 : f32
    %116 = vector.broadcast %cst_68 : f32 to vector<128x16xf32>
    %117 = arith.maximumf %115, %116 : vector<128x16xf32>
    %118 = arith.maximumf %106, %117 : vector<128x16xf32>
    %c10 = arith.constant 10 : index
    %c0_69 = arith.constant 0 : index
    %c0_70 = arith.constant 0 : index
    %119 = vector.load %arg1[%c10, %c0_69, %c0_70] : memref<27x128x16xbf16, #tpu.memory_space<vmem>>, vector<1x128x16xbf16>
    %120 = vector.shape_cast %119 : vector<1x128x16xbf16> to vector<128x16xbf16>
    %121 = arith.extf %120 : vector<128x16xbf16> to vector<128x16xf32>
    %c0_71 = arith.constant 0 : index
    %c0_72 = arith.constant 0 : index
    %122 = vector.load %arg2[%c0_71, %c0_72] : memref<1x16xf32, #tpu.memory_space<vmem>>, vector<1x16xf32>
    %123 = vector.broadcast %122 : vector<1x16xf32> to vector<128x16xf32>
    %124 = arith.mulf %121, %123 : vector<128x16xf32>
    %c0_73 = arith.constant 0 : index
    %c0_74 = arith.constant 0 : index
    %125 = vector.load %arg3[%c0_73, %c0_74] : memref<1x16xf32, #tpu.memory_space<vmem>>, vector<1x16xf32>
    %126 = vector.broadcast %125 : vector<1x16xf32> to vector<128x16xf32>
    %127 = arith.addf %124, %126 : vector<128x16xf32>
    %cst_75 = arith.constant 0.000000e+00 : f32
    %128 = vector.broadcast %cst_75 : f32 to vector<128x16xf32>
    %129 = arith.maximumf %127, %128 : vector<128x16xf32>
    %130 = arith.maximumf %118, %129 : vector<128x16xf32>
    %c11 = arith.constant 11 : index
    %c0_76 = arith.constant 0 : index
    %c0_77 = arith.constant 0 : index
    %131 = vector.load %arg1[%c11, %c0_76, %c0_77] : memref<27x128x16xbf16, #tpu.memory_space<vmem>>, vector<1x128x16xbf16>
    %132 = vector.shape_cast %131 : vector<1x128x16xbf16> to vector<128x16xbf16>
    %133 = arith.extf %132 : vector<128x16xbf16> to vector<128x16xf32>
    %c0_78 = arith.constant 0 : index
    %c0_79 = arith.constant 0 : index
    %134 = vector.load %arg2[%c0_78, %c0_79] : memref<1x16xf32, #tpu.memory_space<vmem>>, vector<1x16xf32>
    %135 = vector.broadcast %134 : vector<1x16xf32> to vector<128x16xf32>
    %136 = arith.mulf %133, %135 : vector<128x16xf32>
    %c0_80 = arith.constant 0 : index
    %c0_81 = arith.constant 0 : index
    %137 = vector.load %arg3[%c0_80, %c0_81] : memref<1x16xf32, #tpu.memory_space<vmem>>, vector<1x16xf32>
    %138 = vector.broadcast %137 : vector<1x16xf32> to vector<128x16xf32>
    %139 = arith.addf %136, %138 : vector<128x16xf32>
    %cst_82 = arith.constant 0.000000e+00 : f32
    %140 = vector.broadcast %cst_82 : f32 to vector<128x16xf32>
    %141 = arith.maximumf %139, %140 : vector<128x16xf32>
    %142 = arith.maximumf %130, %141 : vector<128x16xf32>
    %c12 = arith.constant 12 : index
    %c0_83 = arith.constant 0 : index
    %c0_84 = arith.constant 0 : index
    %143 = vector.load %arg1[%c12, %c0_83, %c0_84] : memref<27x128x16xbf16, #tpu.memory_space<vmem>>, vector<1x128x16xbf16>
    %144 = vector.shape_cast %143 : vector<1x128x16xbf16> to vector<128x16xbf16>
    %145 = arith.extf %144 : vector<128x16xbf16> to vector<128x16xf32>
    %c0_85 = arith.constant 0 : index
    %c0_86 = arith.constant 0 : index
    %146 = vector.load %arg2[%c0_85, %c0_86] : memref<1x16xf32, #tpu.memory_space<vmem>>, vector<1x16xf32>
    %147 = vector.broadcast %146 : vector<1x16xf32> to vector<128x16xf32>
    %148 = arith.mulf %145, %147 : vector<128x16xf32>
    %c0_87 = arith.constant 0 : index
    %c0_88 = arith.constant 0 : index
    %149 = vector.load %arg3[%c0_87, %c0_88] : memref<1x16xf32, #tpu.memory_space<vmem>>, vector<1x16xf32>
    %150 = vector.broadcast %149 : vector<1x16xf32> to vector<128x16xf32>
    %151 = arith.addf %148, %150 : vector<128x16xf32>
    %cst_89 = arith.constant 0.000000e+00 : f32
    %152 = vector.broadcast %cst_89 : f32 to vector<128x16xf32>
    %153 = arith.maximumf %151, %152 : vector<128x16xf32>
    %154 = arith.maximumf %142, %153 : vector<128x16xf32>
    %c13 = arith.constant 13 : index
    %c0_90 = arith.constant 0 : index
    %c0_91 = arith.constant 0 : index
    %155 = vector.load %arg1[%c13, %c0_90, %c0_91] : memref<27x128x16xbf16, #tpu.memory_space<vmem>>, vector<1x128x16xbf16>
    %156 = vector.shape_cast %155 : vector<1x128x16xbf16> to vector<128x16xbf16>
    %157 = arith.extf %156 : vector<128x16xbf16> to vector<128x16xf32>
    %c0_92 = arith.constant 0 : index
    %c0_93 = arith.constant 0 : index
    %158 = vector.load %arg2[%c0_92, %c0_93] : memref<1x16xf32, #tpu.memory_space<vmem>>, vector<1x16xf32>
    %159 = vector.broadcast %158 : vector<1x16xf32> to vector<128x16xf32>
    %160 = arith.mulf %157, %159 : vector<128x16xf32>
    %c0_94 = arith.constant 0 : index
    %c0_95 = arith.constant 0 : index
    %161 = vector.load %arg3[%c0_94, %c0_95] : memref<1x16xf32, #tpu.memory_space<vmem>>, vector<1x16xf32>
    %162 = vector.broadcast %161 : vector<1x16xf32> to vector<128x16xf32>
    %163 = arith.addf %160, %162 : vector<128x16xf32>
    %cst_96 = arith.constant 0.000000e+00 : f32
    %164 = vector.broadcast %cst_96 : f32 to vector<128x16xf32>
    %165 = arith.maximumf %163, %164 : vector<128x16xf32>
    %166 = arith.maximumf %154, %165 : vector<128x16xf32>
    %c14 = arith.constant 14 : index
    %c0_97 = arith.constant 0 : index
    %c0_98 = arith.constant 0 : index
    %167 = vector.load %arg1[%c14, %c0_97, %c0_98] : memref<27x128x16xbf16, #tpu.memory_space<vmem>>, vector<1x128x16xbf16>
    %168 = vector.shape_cast %167 : vector<1x128x16xbf16> to vector<128x16xbf16>
    %169 = arith.extf %168 : vector<128x16xbf16> to vector<128x16xf32>
    %c0_99 = arith.constant 0 : index
    %c0_100 = arith.constant 0 : index
    %170 = vector.load %arg2[%c0_99, %c0_100] : memref<1x16xf32, #tpu.memory_space<vmem>>, vector<1x16xf32>
    %171 = vector.broadcast %170 : vector<1x16xf32> to vector<128x16xf32>
    %172 = arith.mulf %169, %171 : vector<128x16xf32>
    %c0_101 = arith.constant 0 : index
    %c0_102 = arith.constant 0 : index
    %173 = vector.load %arg3[%c0_101, %c0_102] : memref<1x16xf32, #tpu.memory_space<vmem>>, vector<1x16xf32>
    %174 = vector.broadcast %173 : vector<1x16xf32> to vector<128x16xf32>
    %175 = arith.addf %172, %174 : vector<128x16xf32>
    %cst_103 = arith.constant 0.000000e+00 : f32
    %176 = vector.broadcast %cst_103 : f32 to vector<128x16xf32>
    %177 = arith.maximumf %175, %176 : vector<128x16xf32>
    %178 = arith.maximumf %166, %177 : vector<128x16xf32>
    %c15 = arith.constant 15 : index
    %c0_104 = arith.constant 0 : index
    %c0_105 = arith.constant 0 : index
    %179 = vector.load %arg1[%c15, %c0_104, %c0_105] : memref<27x128x16xbf16, #tpu.memory_space<vmem>>, vector<1x128x16xbf16>
    %180 = vector.shape_cast %179 : vector<1x128x16xbf16> to vector<128x16xbf16>
    %181 = arith.extf %180 : vector<128x16xbf16> to vector<128x16xf32>
    %c0_106 = arith.constant 0 : index
    %c0_107 = arith.constant 0 : index
    %182 = vector.load %arg2[%c0_106, %c0_107] : memref<1x16xf32, #tpu.memory_space<vmem>>, vector<1x16xf32>
    %183 = vector.broadcast %182 : vector<1x16xf32> to vector<128x16xf32>
    %184 = arith.mulf %181, %183 : vector<128x16xf32>
    %c0_108 = arith.constant 0 : index
    %c0_109 = arith.constant 0 : index
    %185 = vector.load %arg3[%c0_108, %c0_109] : memref<1x16xf32, #tpu.memory_space<vmem>>, vector<1x16xf32>
    %186 = vector.broadcast %185 : vector<1x16xf32> to vector<128x16xf32>
    %187 = arith.addf %184, %186 : vector<128x16xf32>
    %cst_110 = arith.constant 0.000000e+00 : f32
    %188 = vector.broadcast %cst_110 : f32 to vector<128x16xf32>
    %189 = arith.maximumf %187, %188 : vector<128x16xf32>
    %190 = arith.maximumf %178, %189 : vector<128x16xf32>
    %c16 = arith.constant 16 : index
    %c0_111 = arith.constant 0 : index
    %c0_112 = arith.constant 0 : index
    %191 = vector.load %arg1[%c16, %c0_111, %c0_112] : memref<27x128x16xbf16, #tpu.memory_space<vmem>>, vector<1x128x16xbf16>
    %192 = vector.shape_cast %191 : vector<1x128x16xbf16> to vector<128x16xbf16>
    %193 = arith.extf %192 : vector<128x16xbf16> to vector<128x16xf32>
    %c0_113 = arith.constant 0 : index
    %c0_114 = arith.constant 0 : index
    %194 = vector.load %arg2[%c0_113, %c0_114] : memref<1x16xf32, #tpu.memory_space<vmem>>, vector<1x16xf32>
    %195 = vector.broadcast %194 : vector<1x16xf32> to vector<128x16xf32>
    %196 = arith.mulf %193, %195 : vector<128x16xf32>
    %c0_115 = arith.constant 0 : index
    %c0_116 = arith.constant 0 : index
    %197 = vector.load %arg3[%c0_115, %c0_116] : memref<1x16xf32, #tpu.memory_space<vmem>>, vector<1x16xf32>
    %198 = vector.broadcast %197 : vector<1x16xf32> to vector<128x16xf32>
    %199 = arith.addf %196, %198 : vector<128x16xf32>
    %cst_117 = arith.constant 0.000000e+00 : f32
    %200 = vector.broadcast %cst_117 : f32 to vector<128x16xf32>
    %201 = arith.maximumf %199, %200 : vector<128x16xf32>
    %202 = arith.maximumf %190, %201 : vector<128x16xf32>
    %c17 = arith.constant 17 : index
    %c0_118 = arith.constant 0 : index
    %c0_119 = arith.constant 0 : index
    %203 = vector.load %arg1[%c17, %c0_118, %c0_119] : memref<27x128x16xbf16, #tpu.memory_space<vmem>>, vector<1x128x16xbf16>
    %204 = vector.shape_cast %203 : vector<1x128x16xbf16> to vector<128x16xbf16>
    %205 = arith.extf %204 : vector<128x16xbf16> to vector<128x16xf32>
    %c0_120 = arith.constant 0 : index
    %c0_121 = arith.constant 0 : index
    %206 = vector.load %arg2[%c0_120, %c0_121] : memref<1x16xf32, #tpu.memory_space<vmem>>, vector<1x16xf32>
    %207 = vector.broadcast %206 : vector<1x16xf32> to vector<128x16xf32>
    %208 = arith.mulf %205, %207 : vector<128x16xf32>
    %c0_122 = arith.constant 0 : index
    %c0_123 = arith.constant 0 : index
    %209 = vector.load %arg3[%c0_122, %c0_123] : memref<1x16xf32, #tpu.memory_space<vmem>>, vector<1x16xf32>
    %210 = vector.broadcast %209 : vector<1x16xf32> to vector<128x16xf32>
    %211 = arith.addf %208, %210 : vector<128x16xf32>
    %cst_124 = arith.constant 0.000000e+00 : f32
    %212 = vector.broadcast %cst_124 : f32 to vector<128x16xf32>
    %213 = arith.maximumf %211, %212 : vector<128x16xf32>
    %214 = arith.maximumf %202, %213 : vector<128x16xf32>
    %c18 = arith.constant 18 : index
    %c0_125 = arith.constant 0 : index
    %c0_126 = arith.constant 0 : index
    %215 = vector.load %arg1[%c18, %c0_125, %c0_126] : memref<27x128x16xbf16, #tpu.memory_space<vmem>>, vector<1x128x16xbf16>
    %216 = vector.shape_cast %215 : vector<1x128x16xbf16> to vector<128x16xbf16>
    %217 = arith.extf %216 : vector<128x16xbf16> to vector<128x16xf32>
    %c0_127 = arith.constant 0 : index
    %c0_128 = arith.constant 0 : index
    %218 = vector.load %arg2[%c0_127, %c0_128] : memref<1x16xf32, #tpu.memory_space<vmem>>, vector<1x16xf32>
    %219 = vector.broadcast %218 : vector<1x16xf32> to vector<128x16xf32>
    %220 = arith.mulf %217, %219 : vector<128x16xf32>
    %c0_129 = arith.constant 0 : index
    %c0_130 = arith.constant 0 : index
    %221 = vector.load %arg3[%c0_129, %c0_130] : memref<1x16xf32, #tpu.memory_space<vmem>>, vector<1x16xf32>
    %222 = vector.broadcast %221 : vector<1x16xf32> to vector<128x16xf32>
    %223 = arith.addf %220, %222 : vector<128x16xf32>
    %cst_131 = arith.constant 0.000000e+00 : f32
    %224 = vector.broadcast %cst_131 : f32 to vector<128x16xf32>
    %225 = arith.maximumf %223, %224 : vector<128x16xf32>
    %226 = arith.maximumf %214, %225 : vector<128x16xf32>
    %c19 = arith.constant 19 : index
    %c0_132 = arith.constant 0 : index
    %c0_133 = arith.constant 0 : index
    %227 = vector.load %arg1[%c19, %c0_132, %c0_133] : memref<27x128x16xbf16, #tpu.memory_space<vmem>>, vector<1x128x16xbf16>
    %228 = vector.shape_cast %227 : vector<1x128x16xbf16> to vector<128x16xbf16>
    %229 = arith.extf %228 : vector<128x16xbf16> to vector<128x16xf32>
    %c0_134 = arith.constant 0 : index
    %c0_135 = arith.constant 0 : index
    %230 = vector.load %arg2[%c0_134, %c0_135] : memref<1x16xf32, #tpu.memory_space<vmem>>, vector<1x16xf32>
    %231 = vector.broadcast %230 : vector<1x16xf32> to vector<128x16xf32>
    %232 = arith.mulf %229, %231 : vector<128x16xf32>
    %c0_136 = arith.constant 0 : index
    %c0_137 = arith.constant 0 : index
    %233 = vector.load %arg3[%c0_136, %c0_137] : memref<1x16xf32, #tpu.memory_space<vmem>>, vector<1x16xf32>
    %234 = vector.broadcast %233 : vector<1x16xf32> to vector<128x16xf32>
    %235 = arith.addf %232, %234 : vector<128x16xf32>
    %cst_138 = arith.constant 0.000000e+00 : f32
    %236 = vector.broadcast %cst_138 : f32 to vector<128x16xf32>
    %237 = arith.maximumf %235, %236 : vector<128x16xf32>
    %238 = arith.maximumf %226, %237 : vector<128x16xf32>
    %c20 = arith.constant 20 : index
    %c0_139 = arith.constant 0 : index
    %c0_140 = arith.constant 0 : index
    %239 = vector.load %arg1[%c20, %c0_139, %c0_140] : memref<27x128x16xbf16, #tpu.memory_space<vmem>>, vector<1x128x16xbf16>
    %240 = vector.shape_cast %239 : vector<1x128x16xbf16> to vector<128x16xbf16>
    %241 = arith.extf %240 : vector<128x16xbf16> to vector<128x16xf32>
    %c0_141 = arith.constant 0 : index
    %c0_142 = arith.constant 0 : index
    %242 = vector.load %arg2[%c0_141, %c0_142] : memref<1x16xf32, #tpu.memory_space<vmem>>, vector<1x16xf32>
    %243 = vector.broadcast %242 : vector<1x16xf32> to vector<128x16xf32>
    %244 = arith.mulf %241, %243 : vector<128x16xf32>
    %c0_143 = arith.constant 0 : index
    %c0_144 = arith.constant 0 : index
    %245 = vector.load %arg3[%c0_143, %c0_144] : memref<1x16xf32, #tpu.memory_space<vmem>>, vector<1x16xf32>
    %246 = vector.broadcast %245 : vector<1x16xf32> to vector<128x16xf32>
    %247 = arith.addf %244, %246 : vector<128x16xf32>
    %cst_145 = arith.constant 0.000000e+00 : f32
    %248 = vector.broadcast %cst_145 : f32 to vector<128x16xf32>
    %249 = arith.maximumf %247, %248 : vector<128x16xf32>
    %250 = arith.maximumf %238, %249 : vector<128x16xf32>
    %c21 = arith.constant 21 : index
    %c0_146 = arith.constant 0 : index
    %c0_147 = arith.constant 0 : index
    %251 = vector.load %arg1[%c21, %c0_146, %c0_147] : memref<27x128x16xbf16, #tpu.memory_space<vmem>>, vector<1x128x16xbf16>
    %252 = vector.shape_cast %251 : vector<1x128x16xbf16> to vector<128x16xbf16>
    %253 = arith.extf %252 : vector<128x16xbf16> to vector<128x16xf32>
    %c0_148 = arith.constant 0 : index
    %c0_149 = arith.constant 0 : index
    %254 = vector.load %arg2[%c0_148, %c0_149] : memref<1x16xf32, #tpu.memory_space<vmem>>, vector<1x16xf32>
    %255 = vector.broadcast %254 : vector<1x16xf32> to vector<128x16xf32>
    %256 = arith.mulf %253, %255 : vector<128x16xf32>
    %c0_150 = arith.constant 0 : index
    %c0_151 = arith.constant 0 : index
    %257 = vector.load %arg3[%c0_150, %c0_151] : memref<1x16xf32, #tpu.memory_space<vmem>>, vector<1x16xf32>
    %258 = vector.broadcast %257 : vector<1x16xf32> to vector<128x16xf32>
    %259 = arith.addf %256, %258 : vector<128x16xf32>
    %cst_152 = arith.constant 0.000000e+00 : f32
    %260 = vector.broadcast %cst_152 : f32 to vector<128x16xf32>
    %261 = arith.maximumf %259, %260 : vector<128x16xf32>
    %262 = arith.maximumf %250, %261 : vector<128x16xf32>
    %c22 = arith.constant 22 : index
    %c0_153 = arith.constant 0 : index
    %c0_154 = arith.constant 0 : index
    %263 = vector.load %arg1[%c22, %c0_153, %c0_154] : memref<27x128x16xbf16, #tpu.memory_space<vmem>>, vector<1x128x16xbf16>
    %264 = vector.shape_cast %263 : vector<1x128x16xbf16> to vector<128x16xbf16>
    %265 = arith.extf %264 : vector<128x16xbf16> to vector<128x16xf32>
    %c0_155 = arith.constant 0 : index
    %c0_156 = arith.constant 0 : index
    %266 = vector.load %arg2[%c0_155, %c0_156] : memref<1x16xf32, #tpu.memory_space<vmem>>, vector<1x16xf32>
    %267 = vector.broadcast %266 : vector<1x16xf32> to vector<128x16xf32>
    %268 = arith.mulf %265, %267 : vector<128x16xf32>
    %c0_157 = arith.constant 0 : index
    %c0_158 = arith.constant 0 : index
    %269 = vector.load %arg3[%c0_157, %c0_158] : memref<1x16xf32, #tpu.memory_space<vmem>>, vector<1x16xf32>
    %270 = vector.broadcast %269 : vector<1x16xf32> to vector<128x16xf32>
    %271 = arith.addf %268, %270 : vector<128x16xf32>
    %cst_159 = arith.constant 0.000000e+00 : f32
    %272 = vector.broadcast %cst_159 : f32 to vector<128x16xf32>
    %273 = arith.maximumf %271, %272 : vector<128x16xf32>
    %274 = arith.maximumf %262, %273 : vector<128x16xf32>
    %c23 = arith.constant 23 : index
    %c0_160 = arith.constant 0 : index
    %c0_161 = arith.constant 0 : index
    %275 = vector.load %arg1[%c23, %c0_160, %c0_161] : memref<27x128x16xbf16, #tpu.memory_space<vmem>>, vector<1x128x16xbf16>
    %276 = vector.shape_cast %275 : vector<1x128x16xbf16> to vector<128x16xbf16>
    %277 = arith.extf %276 : vector<128x16xbf16> to vector<128x16xf32>
    %c0_162 = arith.constant 0 : index
    %c0_163 = arith.constant 0 : index
    %278 = vector.load %arg2[%c0_162, %c0_163] : memref<1x16xf32, #tpu.memory_space<vmem>>, vector<1x16xf32>
    %279 = vector.broadcast %278 : vector<1x16xf32> to vector<128x16xf32>
    %280 = arith.mulf %277, %279 : vector<128x16xf32>
    %c0_164 = arith.constant 0 : index
    %c0_165 = arith.constant 0 : index
    %281 = vector.load %arg3[%c0_164, %c0_165] : memref<1x16xf32, #tpu.memory_space<vmem>>, vector<1x16xf32>
    %282 = vector.broadcast %281 : vector<1x16xf32> to vector<128x16xf32>
    %283 = arith.addf %280, %282 : vector<128x16xf32>
    %cst_166 = arith.constant 0.000000e+00 : f32
    %284 = vector.broadcast %cst_166 : f32 to vector<128x16xf32>
    %285 = arith.maximumf %283, %284 : vector<128x16xf32>
    %286 = arith.maximumf %274, %285 : vector<128x16xf32>
    %c24 = arith.constant 24 : index
    %c0_167 = arith.constant 0 : index
    %c0_168 = arith.constant 0 : index
    %287 = vector.load %arg1[%c24, %c0_167, %c0_168] : memref<27x128x16xbf16, #tpu.memory_space<vmem>>, vector<1x128x16xbf16>
    %288 = vector.shape_cast %287 : vector<1x128x16xbf16> to vector<128x16xbf16>
    %289 = arith.extf %288 : vector<128x16xbf16> to vector<128x16xf32>
    %c0_169 = arith.constant 0 : index
    %c0_170 = arith.constant 0 : index
    %290 = vector.load %arg2[%c0_169, %c0_170] : memref<1x16xf32, #tpu.memory_space<vmem>>, vector<1x16xf32>
    %291 = vector.broadcast %290 : vector<1x16xf32> to vector<128x16xf32>
    %292 = arith.mulf %289, %291 : vector<128x16xf32>
    %c0_171 = arith.constant 0 : index
    %c0_172 = arith.constant 0 : index
    %293 = vector.load %arg3[%c0_171, %c0_172] : memref<1x16xf32, #tpu.memory_space<vmem>>, vector<1x16xf32>
    %294 = vector.broadcast %293 : vector<1x16xf32> to vector<128x16xf32>
    %295 = arith.addf %292, %294 : vector<128x16xf32>
    %cst_173 = arith.constant 0.000000e+00 : f32
    %296 = vector.broadcast %cst_173 : f32 to vector<128x16xf32>
    %297 = arith.maximumf %295, %296 : vector<128x16xf32>
    %298 = arith.maximumf %286, %297 : vector<128x16xf32>
    %c25 = arith.constant 25 : index
    %c0_174 = arith.constant 0 : index
    %c0_175 = arith.constant 0 : index
    %299 = vector.load %arg1[%c25, %c0_174, %c0_175] : memref<27x128x16xbf16, #tpu.memory_space<vmem>>, vector<1x128x16xbf16>
    %300 = vector.shape_cast %299 : vector<1x128x16xbf16> to vector<128x16xbf16>
    %301 = arith.extf %300 : vector<128x16xbf16> to vector<128x16xf32>
    %c0_176 = arith.constant 0 : index
    %c0_177 = arith.constant 0 : index
    %302 = vector.load %arg2[%c0_176, %c0_177] : memref<1x16xf32, #tpu.memory_space<vmem>>, vector<1x16xf32>
    %303 = vector.broadcast %302 : vector<1x16xf32> to vector<128x16xf32>
    %304 = arith.mulf %301, %303 : vector<128x16xf32>
    %c0_178 = arith.constant 0 : index
    %c0_179 = arith.constant 0 : index
    %305 = vector.load %arg3[%c0_178, %c0_179] : memref<1x16xf32, #tpu.memory_space<vmem>>, vector<1x16xf32>
    %306 = vector.broadcast %305 : vector<1x16xf32> to vector<128x16xf32>
    %307 = arith.addf %304, %306 : vector<128x16xf32>
    %cst_180 = arith.constant 0.000000e+00 : f32
    %308 = vector.broadcast %cst_180 : f32 to vector<128x16xf32>
    %309 = arith.maximumf %307, %308 : vector<128x16xf32>
    %310 = arith.maximumf %298, %309 : vector<128x16xf32>
    %c26 = arith.constant 26 : index
    %c0_181 = arith.constant 0 : index
    %c0_182 = arith.constant 0 : index
    %311 = vector.load %arg1[%c26, %c0_181, %c0_182] : memref<27x128x16xbf16, #tpu.memory_space<vmem>>, vector<1x128x16xbf16>
    %312 = vector.shape_cast %311 : vector<1x128x16xbf16> to vector<128x16xbf16>
    %313 = arith.extf %312 : vector<128x16xbf16> to vector<128x16xf32>
    %c0_183 = arith.constant 0 : index
    %c0_184 = arith.constant 0 : index
    %314 = vector.load %arg2[%c0_183, %c0_184] : memref<1x16xf32, #tpu.memory_space<vmem>>, vector<1x16xf32>
    %315 = vector.broadcast %314 : vector<1x16xf32> to vector<128x16xf32>
    %316 = arith.mulf %313, %315 : vector<128x16xf32>
    %c0_185 = arith.constant 0 : index
    %c0_186 = arith.constant 0 : index
    %317 = vector.load %arg3[%c0_185, %c0_186] : memref<1x16xf32, #tpu.memory_space<vmem>>, vector<1x16xf32>
    %318 = vector.broadcast %317 : vector<1x16xf32> to vector<128x16xf32>
    %319 = arith.addf %316, %318 : vector<128x16xf32>
    %cst_187 = arith.constant 0.000000e+00 : f32
    %320 = vector.broadcast %cst_187 : f32 to vector<128x16xf32>
    %321 = arith.maximumf %319, %320 : vector<128x16xf32>
    %322 = arith.maximumf %310, %321 : vector<128x16xf32>
    %323 = arith.truncf %322 : vector<128x16xf32> to vector<128x16xbf16>
    %c0_188 = arith.constant 0 : index
    %c0_189 = arith.constant 0 : index
    %324 = vector.load %arg4[%c0_188, %c0_189] : memref<128x16xbf16, #tpu.memory_space<vmem>>, vector<128x16xbf16>
    tpu.vector_store %arg4[%c0_188, %c0_189], %323 {strides = array<i32>} : memref<128x16xbf16, #tpu.memory_space<vmem>>, vector<128x16xbf16>,
    return
  }
  func.func @transform_0(%arg0: i32) -> (i32, i32, i32) {
    %c0_i32 = arith.constant 0 : i32
    %c0_i32_0 = arith.constant 0 : i32
    %c0_i32_1 = arith.constant 0 : i32
    return %c0_i32, %arg0, %c0_i32_0 : i32, i32, i32
  }
  func.func @transform_1(%arg0: i32) -> (i32, i32) {
    %c0_i32 = arith.constant 0 : i32
    %c0_i32_0 = arith.constant 0 : i32
    %c0_i32_1 = arith.constant 0 : i32
    return %c0_i32, %c0_i32_0 : i32, i32
  }
  func.func @transform_2(%arg0: i32) -> (i32, i32) {
    %c0_i32 = arith.constant 0 : i32
    %c0_i32_0 = arith.constant 0 : i32
    %c0_i32_1 = arith.constant 0 : i32
    return %c0_i32, %c0_i32_0 : i32, i32
  }
  func.func @transform_3(%arg0: i32) -> (i32, i32) {
    %c0_i32 = arith.constant 0 : i32
    %c0_i32_0 = arith.constant 0 : i32
    return %arg0, %c0_i32 : i32, i32
  }
}

module attributes {stable_mosaic.version = 11 : i64} {
  func.func @_matmul_kernel(%arg0: i32, %arg1: memref<128x16xbf16, #tpu.memory_space<vmem>>, %arg2: memref<16x16xbf16, #tpu.memory_space<vmem>>, %arg3: memref<1x16xf32, #tpu.memory_space<vmem>>, %arg4: memref<1x16xf32, #tpu.memory_space<vmem>>, %arg5: memref<128x16xbf16, #tpu.memory_space<vmem>>) attributes {dimension_semantics = [#tpu.dimension_semantics<parallel>], iteration_bounds = array<i64: 1>, scalar_prefetch = 0 : i64, scratch_operands = 0 : i64, tpu.core_type = #tpu.core_type<tc>, window_params = [{transform_indices = @transform_0, window_bounds = array<i64: 128, 16>}, {pipeline_mode = #tpu.pipeline_mode<synchronous>, transform_indices = @transform_1, window_bounds = array<i64: 16, 16>}, {pipeline_mode = #tpu.pipeline_mode<synchronous>, transform_indices = @transform_2, window_bounds = array<i64: 1, 16>}, {pipeline_mode = #tpu.pipeline_mode<synchronous>, transform_indices = @transform_3, window_bounds = array<i64: 1, 16>}, {transform_indices = @transform_4, window_bounds = array<i64: 128, 16>}]} {
    %c0 = arith.constant 0 : index
    %c0_0 = arith.constant 0 : index
    %0 = vector.load %arg1[%c0, %c0_0] : memref<128x16xbf16, #tpu.memory_space<vmem>>, vector<128x16xbf16>
    %1 = arith.extf %0 : vector<128x16xbf16> to vector<128x16xf32>
    %c0_1 = arith.constant 0 : index
    %c0_2 = arith.constant 0 : index
    %2 = vector.load %arg3[%c0_1, %c0_2] : memref<1x16xf32, #tpu.memory_space<vmem>>, vector<1x16xf32>
    %3 = vector.broadcast %2 : vector<1x16xf32> to vector<128x16xf32>
    %4 = arith.mulf %1, %3 : vector<128x16xf32>
    %c0_3 = arith.constant 0 : index
    %c0_4 = arith.constant 0 : index
    %5 = vector.load %arg4[%c0_3, %c0_4] : memref<1x16xf32, #tpu.memory_space<vmem>>, vector<1x16xf32>
    %6 = vector.broadcast %5 : vector<1x16xf32> to vector<128x16xf32>
    %7 = arith.addf %4, %6 : vector<128x16xf32>
    %cst = arith.constant 0.000000e+00 : f32
    %8 = vector.broadcast %cst : f32 to vector<128x16xf32>
    %9 = arith.maximumf %7, %8 : vector<128x16xf32>
    %10 = arith.truncf %9 : vector<128x16xf32> to vector<128x16xbf16>
    %c0_5 = arith.constant 0 : index
    %c0_6 = arith.constant 0 : index
    %11 = vector.load %arg2[%c0_5, %c0_6] : memref<16x16xbf16, #tpu.memory_space<vmem>>, vector<16x16xbf16>
    %cst_7 = arith.constant dense<0.000000e+00> : vector<128x16xf32>
    %12 = tpu.matmul %10, %11, %cst_7 {dimension_numbers = #tpu.dot_dimension_numbers<[1], [0], [0], [1], [0, 0, 1, 1], [], []>} : vector<128x16xbf16>, vector<16x16xbf16>, vector<128x16xf32> -> vector<128x16xf32>
    %13 = arith.truncf %12 : vector<128x16xf32> to vector<128x16xbf16>
    %c0_8 = arith.constant 0 : index
    %c0_9 = arith.constant 0 : index
    %14 = vector.load %arg5[%c0_8, %c0_9] : memref<128x16xbf16, #tpu.memory_space<vmem>>, vector<128x16xbf16>
    tpu.vector_store %arg5[%c0_8, %c0_9], %13 {strides = array<i32>} : memref<128x16xbf16, #tpu.memory_space<vmem>>, vector<128x16xbf16>,
    return
  }
  func.func @transform_0(%arg0: i32) -> (i32, i32) {
    %c0_i32 = arith.constant 0 : i32
    %c0_i32_0 = arith.constant 0 : i32
    return %arg0, %c0_i32 : i32, i32
  }
  func.func @transform_1(%arg0: i32) -> (i32, i32) {
    %c0_i32 = arith.constant 0 : i32
    %c0_i32_0 = arith.constant 0 : i32
    %c0_i32_1 = arith.constant 0 : i32
    return %c0_i32, %c0_i32_0 : i32, i32
  }
  func.func @transform_2(%arg0: i32) -> (i32, i32) {
    %c0_i32 = arith.constant 0 : i32
    %c0_i32_0 = arith.constant 0 : i32
    %c0_i32_1 = arith.constant 0 : i32
    return %c0_i32, %c0_i32_0 : i32, i32
  }
  func.func @transform_3(%arg0: i32) -> (i32, i32) {
    %c0_i32 = arith.constant 0 : i32
    %c0_i32_0 = arith.constant 0 : i32
    %c0_i32_1 = arith.constant 0 : i32
    return %c0_i32, %c0_i32_0 : i32, i32
  }
  func.func @transform_4(%arg0: i32) -> (i32, i32) {
    %c0_i32 = arith.constant 0 : i32
    %c0_i32_0 = arith.constant 0 : i32
    return %arg0, %c0_i32 : i32, i32
  }
}

module attributes {stable_mosaic.version = 11 : i64} {
  func.func @_conv3x3_bn_relu_kernel(%arg0: i32, %arg1: i32, %arg2: i32, %arg3: memref<1x1x36x16xbf16, #tpu.memory_space<vmem>>, %arg4: memref<1x9x16x8xbf16, #tpu.memory_space<vmem>>, %arg5: memref<36x1xf32, #tpu.memory_space<vmem>>, %arg6: memref<1x16xf32, #tpu.memory_space<vmem>>, %arg7: memref<1x16xf32, #tpu.memory_space<vmem>>, %arg8: memref<1x1x36x8xbf16, #tpu.memory_space<vmem>>, %arg9: memref<36x8xf32, #tpu.memory_space<vmem>>) attributes {dimension_semantics = [#tpu.dimension_semantics<parallel>, #tpu.dimension_semantics<parallel>, #tpu.dimension_semantics<arbitrary>], iteration_bounds = array<i64: 2, 4, 3>, scalar_prefetch = 0 : i64, scratch_operands = 1 : i64, tpu.core_type = #tpu.core_type<tc>, window_params = [{transform_indices = @transform_0, window_bounds = array<i64: 1, 1, 36, 16>}, {transform_indices = @transform_1, window_bounds = array<i64: 1, 9, 16, 8>}, {pipeline_mode = #tpu.pipeline_mode<synchronous>, transform_indices = @transform_2, window_bounds = array<i64: 36, 1>}, {pipeline_mode = #tpu.pipeline_mode<synchronous>, transform_indices = @transform_3, window_bounds = array<i64: 1, 16>}, {pipeline_mode = #tpu.pipeline_mode<synchronous>, transform_indices = @transform_4, window_bounds = array<i64: 1, 16>}, {transform_indices = @transform_5, window_bounds = array<i64: 1, 1, 36, 8>}]} {
    %c0_i32 = arith.constant 0 : i32
    %0 = arith.cmpi eq, %arg2, %c0_i32 : i32
    %1 = arith.extui %0 : i1 to i32
    %c0_i32_0 = arith.constant 0 : i32
    %2 = arith.cmpi ne, %1, %c0_i32_0 : i32
    scf.if %2 {
      %cst = arith.constant 0.000000e+00 : f32
      %13 = vector.broadcast %cst : f32 to vector<36x8xf32>
      %c0 = arith.constant 0 : index
      %c0_4 = arith.constant 0 : index
      %14 = vector.load %arg9[%c0, %c0_4] : memref<36x8xf32, #tpu.memory_space<vmem>>, vector<36x8xf32>
      tpu.vector_store %arg9[%c0, %c0_4], %13 {strides = array<i32>} : memref<36x8xf32, #tpu.memory_space<vmem>>, vector<36x8xf32>,
    } else {
    }
    %3 = arith.addi %arg1, %arg2 : i32
    %c1_i32 = arith.constant 1 : i32
    %4 = arith.subi %3, %c1_i32 : i32
    %c0_i32_1 = arith.constant 0 : i32
    %5 = arith.cmpi sge, %4, %c0_i32_1 : i32
    %c3_i32 = arith.constant 3 : i32
    %6 = arith.cmpi sle, %4, %c3_i32 : i32
    %7 = arith.andi %5, %6 : i1
    %8 = arith.extui %7 : i1 to i32
    %c0_i32_2 = arith.constant 0 : i32
    %9 = arith.cmpi ne, %8, %c0_i32_2 : i32
    scf.if %9 {
      %c0 = arith.constant 0 : index
      %c0_4 = arith.constant 0 : index
      %c0_5 = arith.constant 0 : index
      %c0_6 = arith.constant 0 : index
      %13 = vector.load %arg3[%c0, %c0_4, %c0_5, %c0_6] : memref<1x1x36x16xbf16, #tpu.memory_space<vmem>>, vector<1x1x36x16xbf16>
      %14 = vector.shape_cast %13 : vector<1x1x36x16xbf16> to vector<36x16xbf16>
      %15 = arith.extf %14 : vector<36x16xbf16> to vector<36x16xf32>
      %c0_7 = arith.constant 0 : index
      %c0_8 = arith.constant 0 : index
      %16 = vector.load %arg6[%c0_7, %c0_8] : memref<1x16xf32, #tpu.memory_space<vmem>>, vector<1x16xf32>
      %17 = vector.broadcast %16 : vector<1x16xf32> to vector<36x16xf32>
      %18 = arith.mulf %15, %17 : vector<36x16xf32>
      %c0_9 = arith.constant 0 : index
      %c0_10 = arith.constant 0 : index
      %19 = vector.load %arg7[%c0_9, %c0_10] : memref<1x16xf32, #tpu.memory_space<vmem>>, vector<1x16xf32>
      %20 = vector.broadcast %19 : vector<1x16xf32> to vector<36x16xf32>
      %21 = arith.addf %18, %20 : vector<36x16xf32>
      %cst = arith.constant 0.000000e+00 : f32
      %22 = vector.broadcast %cst : f32 to vector<36x16xf32>
      %23 = arith.maximumf %21, %22 : vector<36x16xf32>
      %c0_11 = arith.constant 0 : index
      %c0_12 = arith.constant 0 : index
      %24 = vector.load %arg5[%c0_11, %c0_12] : memref<36x1xf32, #tpu.memory_space<vmem>>, vector<36x1xf32>
      %25 = vector.broadcast %24 : vector<36x1xf32> to vector<36x16xf32>
      %26 = arith.mulf %23, %25 : vector<36x16xf32>
      %27 = arith.truncf %26 : vector<36x16xf32> to vector<36x16xbf16>
      %c0_13 = arith.constant 0 : index
      %c0_14 = arith.constant 0 : index
      %28 = vector.load %arg9[%c0_13, %c0_14] : memref<36x8xf32, #tpu.memory_space<vmem>>, vector<36x8xf32>
      %c0_15 = arith.constant 0 : index
      %c0_16 = arith.constant 0 : index
      %c0_17 = arith.constant 0 : index
      %c0_18 = arith.constant 0 : index
      %29 = vector.load %arg4[%c0_15, %c0_16, %c0_17, %c0_18] : memref<1x9x16x8xbf16, #tpu.memory_space<vmem>>, vector<1x1x16x8xbf16>
      %30 = vector.shape_cast %29 : vector<1x1x16x8xbf16> to vector<16x8xbf16>
      %cst_19 = arith.constant dense<0.000000e+00> : vector<36x8xf32>
      %31 = tpu.matmul %27, %30, %cst_19 {dimension_numbers = #tpu.dot_dimension_numbers<[1], [0], [0], [1], [0, 0, 1, 1], [], []>} : vector<36x16xbf16>, vector<16x8xbf16>, vector<36x8xf32> -> vector<36x8xf32>
      %c7_i32 = arith.constant 7 : i32
      %32 = tpu.dynamic_rotate %31 by %c7_i32 dim 0 : vector<36x8xf32>, i32 -> vector<36x8xf32>
      %33 = arith.addf %28, %32 : vector<36x8xf32>
      %c0_20 = arith.constant 0 : index
      %c1 = arith.constant 1 : index
      %c0_21 = arith.constant 0 : index
      %c0_22 = arith.constant 0 : index
      %34 = vector.load %arg4[%c0_20, %c1, %c0_21, %c0_22] : memref<1x9x16x8xbf16, #tpu.memory_space<vmem>>, vector<1x1x16x8xbf16>
      %35 = vector.shape_cast %34 : vector<1x1x16x8xbf16> to vector<16x8xbf16>
      %cst_23 = arith.constant dense<0.000000e+00> : vector<36x8xf32>
      %36 = tpu.matmul %27, %35, %cst_23 {dimension_numbers = #tpu.dot_dimension_numbers<[1], [0], [0], [1], [0, 0, 1, 1], [], []>} : vector<36x16xbf16>, vector<16x8xbf16>, vector<36x8xf32> -> vector<36x8xf32>
      %c6_i32 = arith.constant 6 : i32
      %37 = tpu.dynamic_rotate %36 by %c6_i32 dim 0 : vector<36x8xf32>, i32 -> vector<36x8xf32>
      %38 = arith.addf %33, %37 : vector<36x8xf32>
      %c0_24 = arith.constant 0 : index
      %c2 = arith.constant 2 : index
      %c0_25 = arith.constant 0 : index
      %c0_26 = arith.constant 0 : index
      %39 = vector.load %arg4[%c0_24, %c2, %c0_25, %c0_26] : memref<1x9x16x8xbf16, #tpu.memory_space<vmem>>, vector<1x1x16x8xbf16>
      %40 = vector.shape_cast %39 : vector<1x1x16x8xbf16> to vector<16x8xbf16>
      %cst_27 = arith.constant dense<0.000000e+00> : vector<36x8xf32>
      %41 = tpu.matmul %27, %40, %cst_27 {dimension_numbers = #tpu.dot_dimension_numbers<[1], [0], [0], [1], [0, 0, 1, 1], [], []>} : vector<36x16xbf16>, vector<16x8xbf16>, vector<36x8xf32> -> vector<36x8xf32>
      %c5_i32 = arith.constant 5 : i32
      %42 = tpu.dynamic_rotate %41 by %c5_i32 dim 0 : vector<36x8xf32>, i32 -> vector<36x8xf32>
      %43 = arith.addf %38, %42 : vector<36x8xf32>
      %c0_28 = arith.constant 0 : index
      %c3 = arith.constant 3 : index
      %c0_29 = arith.constant 0 : index
      %c0_30 = arith.constant 0 : index
      %44 = vector.load %arg4[%c0_28, %c3, %c0_29, %c0_30] : memref<1x9x16x8xbf16, #tpu.memory_space<vmem>>, vector<1x1x16x8xbf16>
      %45 = vector.shape_cast %44 : vector<1x1x16x8xbf16> to vector<16x8xbf16>
      %cst_31 = arith.constant dense<0.000000e+00> : vector<36x8xf32>
      %46 = tpu.matmul %27, %45, %cst_31 {dimension_numbers = #tpu.dot_dimension_numbers<[1], [0], [0], [1], [0, 0, 1, 1], [], []>} : vector<36x16xbf16>, vector<16x8xbf16>, vector<36x8xf32> -> vector<36x8xf32>
      %c1_i32_32 = arith.constant 1 : i32
      %47 = tpu.dynamic_rotate %46 by %c1_i32_32 dim 0 : vector<36x8xf32>, i32 -> vector<36x8xf32>
      %48 = arith.addf %43, %47 : vector<36x8xf32>
      %c0_33 = arith.constant 0 : index
      %c4 = arith.constant 4 : index
      %c0_34 = arith.constant 0 : index
      %c0_35 = arith.constant 0 : index
      %49 = vector.load %arg4[%c0_33, %c4, %c0_34, %c0_35] : memref<1x9x16x8xbf16, #tpu.memory_space<vmem>>, vector<1x1x16x8xbf16>
      %50 = vector.shape_cast %49 : vector<1x1x16x8xbf16> to vector<16x8xbf16>
      %cst_36 = arith.constant dense<0.000000e+00> : vector<36x8xf32>
      %51 = tpu.matmul %27, %50, %cst_36 {dimension_numbers = #tpu.dot_dimension_numbers<[1], [0], [0], [1], [0, 0, 1, 1], [], []>} : vector<36x16xbf16>, vector<16x8xbf16>, vector<36x8xf32> -> vector<36x8xf32>
      %52 = arith.addf %48, %51 : vector<36x8xf32>
      %c0_37 = arith.constant 0 : index
      %c5 = arith.constant 5 : index
      %c0_38 = arith.constant 0 : index
      %c0_39 = arith.constant 0 : index
      %53 = vector.load %arg4[%c0_37, %c5, %c0_38, %c0_39] : memref<1x9x16x8xbf16, #tpu.memory_space<vmem>>, vector<1x1x16x8xbf16>
      %54 = vector.shape_cast %53 : vector<1x1x16x8xbf16> to vector<16x8xbf16>
      %cst_40 = arith.constant dense<0.000000e+00> : vector<36x8xf32>
      %55 = tpu.matmul %27, %54, %cst_40 {dimension_numbers = #tpu.dot_dimension_numbers<[1], [0], [0], [1], [0, 0, 1, 1], [], []>} : vector<36x16xbf16>, vector<16x8xbf16>, vector<36x8xf32> -> vector<36x8xf32>
      %c35_i32 = arith.constant 35 : i32
      %56 = tpu.dynamic_rotate %55 by %c35_i32 dim 0 : vector<36x8xf32>, i32 -> vector<36x8xf32>
      %57 = arith.addf %52, %56 : vector<36x8xf32>
      %c0_41 = arith.constant 0 : index
      %c6 = arith.constant 6 : index
      %c0_42 = arith.constant 0 : index
      %c0_43 = arith.constant 0 : index
      %58 = vector.load %arg4[%c0_41, %c6, %c0_42, %c0_43] : memref<1x9x16x8xbf16, #tpu.memory_space<vmem>>, vector<1x1x16x8xbf16>
      %59 = vector.shape_cast %58 : vector<1x1x16x8xbf16> to vector<16x8xbf16>
      %cst_44 = arith.constant dense<0.000000e+00> : vector<36x8xf32>
      %60 = tpu.matmul %27, %59, %cst_44 {dimension_numbers = #tpu.dot_dimension_numbers<[1], [0], [0], [1], [0, 0, 1, 1], [], []>} : vector<36x16xbf16>, vector<16x8xbf16>, vector<36x8xf32> -> vector<36x8xf32>
      %c31_i32 = arith.constant 31 : i32
      %61 = tpu.dynamic_rotate %60 by %c31_i32 dim 0 : vector<36x8xf32>, i32 -> vector<36x8xf32>
      %62 = arith.addf %57, %61 : vector<36x8xf32>
      %c0_45 = arith.constant 0 : index
      %c7 = arith.constant 7 : index
      %c0_46 = arith.constant 0 : index
      %c0_47 = arith.constant 0 : index
      %63 = vector.load %arg4[%c0_45, %c7, %c0_46, %c0_47] : memref<1x9x16x8xbf16, #tpu.memory_space<vmem>>, vector<1x1x16x8xbf16>
      %64 = vector.shape_cast %63 : vector<1x1x16x8xbf16> to vector<16x8xbf16>
      %cst_48 = arith.constant dense<0.000000e+00> : vector<36x8xf32>
      %65 = tpu.matmul %27, %64, %cst_48 {dimension_numbers = #tpu.dot_dimension_numbers<[1], [0], [0], [1], [0, 0, 1, 1], [], []>} : vector<36x16xbf16>, vector<16x8xbf16>, vector<36x8xf32> -> vector<36x8xf32>
      %c30_i32 = arith.constant 30 : i32
      %66 = tpu.dynamic_rotate %65 by %c30_i32 dim 0 : vector<36x8xf32>, i32 -> vector<36x8xf32>
      %67 = arith.addf %62, %66 : vector<36x8xf32>
      %c0_49 = arith.constant 0 : index
      %c8 = arith.constant 8 : index
      %c0_50 = arith.constant 0 : index
      %c0_51 = arith.constant 0 : index
      %68 = vector.load %arg4[%c0_49, %c8, %c0_50, %c0_51] : memref<1x9x16x8xbf16, #tpu.memory_space<vmem>>, vector<1x1x16x8xbf16>
      %69 = vector.shape_cast %68 : vector<1x1x16x8xbf16> to vector<16x8xbf16>
      %cst_52 = arith.constant dense<0.000000e+00> : vector<36x8xf32>
      %70 = tpu.matmul %27, %69, %cst_52 {dimension_numbers = #tpu.dot_dimension_numbers<[1], [0], [0], [1], [0, 0, 1, 1], [], []>} : vector<36x16xbf16>, vector<16x8xbf16>, vector<36x8xf32> -> vector<36x8xf32>
      %c29_i32 = arith.constant 29 : i32
      %71 = tpu.dynamic_rotate %70 by %c29_i32 dim 0 : vector<36x8xf32>, i32 -> vector<36x8xf32>
      %72 = arith.addf %67, %71 : vector<36x8xf32>
      %c0_53 = arith.constant 0 : index
      %c0_54 = arith.constant 0 : index
      %73 = vector.load %arg9[%c0_53, %c0_54] : memref<36x8xf32, #tpu.memory_space<vmem>>, vector<36x8xf32>
      tpu.vector_store %arg9[%c0_53, %c0_54], %72 {strides = array<i32>} : memref<36x8xf32, #tpu.memory_space<vmem>>, vector<36x8xf32>,
    } else {
    }
    %c2_i32 = arith.constant 2 : i32
    %10 = arith.cmpi eq, %arg2, %c2_i32 : i32
    %11 = arith.extui %10 : i1 to i32
    %c0_i32_3 = arith.constant 0 : i32
    %12 = arith.cmpi ne, %11, %c0_i32_3 : i32
    scf.if %12 {
      %c0 = arith.constant 0 : index
      %c0_4 = arith.constant 0 : index
      %13 = vector.load %arg9[%c0, %c0_4] : memref<36x8xf32, #tpu.memory_space<vmem>>, vector<36x8xf32>
      %14 = arith.truncf %13 : vector<36x8xf32> to vector<36x8xbf16>
      %c0_5 = arith.constant 0 : index
      %c0_6 = arith.constant 0 : index
      %c0_7 = arith.constant 0 : index
      %c0_8 = arith.constant 0 : index
      %15 = vector.load %arg8[%c0_5, %c0_6, %c0_7, %c0_8] : memref<1x1x36x8xbf16, #tpu.memory_space<vmem>>, vector<1x1x36x8xbf16>
      %16 = vector.shape_cast %15 : vector<1x1x36x8xbf16> to vector<36x8xbf16>
      %17 = vector.shape_cast %14 : vector<36x8xbf16> to vector<1x1x36x8xbf16>
      tpu.vector_store %arg8[%c0_5, %c0_6, %c0_7, %c0_8], %17 {strides = array<i32>} : memref<1x1x36x8xbf16, #tpu.memory_space<vmem>>, vector<1x1x36x8xbf16>,
    } else {
    }
    return
  }
  func.func @transform_0(%arg0: i32, %arg1: i32, %arg2: i32) -> (i32, i32, i32, i32) {
    %0 = arith.addi %arg1, %arg2 : i32
    %c1_i32 = arith.constant 1 : i32
    %1 = arith.subi %0, %c1_i32 : i32
    %c3_i32 = arith.constant 3 : i32
    %2 = arith.minsi %1, %c3_i32 : i32
    %c0_i32 = arith.constant 0 : i32
    %3 = arith.maxsi %2, %c0_i32 : i32
    %c0_i32_0 = arith.constant 0 : i32
    %c0_i32_1 = arith.constant 0 : i32
    %c0_i32_2 = arith.constant 0 : i32
    return %arg0, %3, %c0_i32_0, %c0_i32_1 : i32, i32, i32, i32
  }
  func.func @transform_1(%arg0: i32, %arg1: i32, %arg2: i32) -> (i32, i32, i32, i32) {
    %c0_i32 = arith.constant 0 : i32
    %c0_i32_0 = arith.constant 0 : i32
    %c0_i32_1 = arith.constant 0 : i32
    %c0_i32_2 = arith.constant 0 : i32
    return %arg2, %c0_i32, %c0_i32_0, %c0_i32_1 : i32, i32, i32, i32
  }
  func.func @transform_2(%arg0: i32, %arg1: i32, %arg2: i32) -> (i32, i32) {
    %c0_i32 = arith.constant 0 : i32
    %c0_i32_0 = arith.constant 0 : i32
    %c0_i32_1 = arith.constant 0 : i32
    return %c0_i32, %c0_i32_0 : i32, i32
  }
  func.func @transform_3(%arg0: i32, %arg1: i32, %arg2: i32) -> (i32, i32) {
    %c0_i32 = arith.constant 0 : i32
    %c0_i32_0 = arith.constant 0 : i32
    %c0_i32_1 = arith.constant 0 : i32
    return %c0_i32, %c0_i32_0 : i32, i32
  }
  func.func @transform_4(%arg0: i32, %arg1: i32, %arg2: i32) -> (i32, i32) {
    %c0_i32 = arith.constant 0 : i32
    %c0_i32_0 = arith.constant 0 : i32
    %c0_i32_1 = arith.constant 0 : i32
    return %c0_i32, %c0_i32_0 : i32, i32
  }
  func.func @transform_5(%arg0: i32, %arg1: i32, %arg2: i32) -> (i32, i32, i32, i32) {
    %c0_i32 = arith.constant 0 : i32
    %c0_i32_0 = arith.constant 0 : i32
    %c0_i32_1 = arith.constant 0 : i32
    return %arg0, %arg1, %c0_i32, %c0_i32_0 : i32, i32, i32, i32
  }
}

module attributes {stable_mosaic.version = 11 : i64} {
  func.func @_matmul_kernel(%arg0: i32, %arg1: memref<128x24xbf16, #tpu.memory_space<vmem>>, %arg2: memref<24x16xbf16, #tpu.memory_space<vmem>>, %arg3: memref<1x24xf32, #tpu.memory_space<vmem>>, %arg4: memref<1x24xf32, #tpu.memory_space<vmem>>, %arg5: memref<128x16xbf16, #tpu.memory_space<vmem>>) attributes {dimension_semantics = [#tpu.dimension_semantics<parallel>], iteration_bounds = array<i64: 1>, scalar_prefetch = 0 : i64, scratch_operands = 0 : i64, tpu.core_type = #tpu.core_type<tc>, window_params = [{transform_indices = @transform_0, window_bounds = array<i64: 128, 24>}, {pipeline_mode = #tpu.pipeline_mode<synchronous>, transform_indices = @transform_1, window_bounds = array<i64: 24, 16>}, {pipeline_mode = #tpu.pipeline_mode<synchronous>, transform_indices = @transform_2, window_bounds = array<i64: 1, 24>}, {pipeline_mode = #tpu.pipeline_mode<synchronous>, transform_indices = @transform_3, window_bounds = array<i64: 1, 24>}, {transform_indices = @transform_4, window_bounds = array<i64: 128, 16>}]} {
    %c0 = arith.constant 0 : index
    %c0_0 = arith.constant 0 : index
    %0 = vector.load %arg1[%c0, %c0_0] : memref<128x24xbf16, #tpu.memory_space<vmem>>, vector<128x24xbf16>
    %1 = arith.extf %0 : vector<128x24xbf16> to vector<128x24xf32>
    %c0_1 = arith.constant 0 : index
    %c0_2 = arith.constant 0 : index
    %2 = vector.load %arg3[%c0_1, %c0_2] : memref<1x24xf32, #tpu.memory_space<vmem>>, vector<1x24xf32>
    %3 = vector.broadcast %2 : vector<1x24xf32> to vector<128x24xf32>
    %4 = arith.mulf %1, %3 : vector<128x24xf32>
    %c0_3 = arith.constant 0 : index
    %c0_4 = arith.constant 0 : index
    %5 = vector.load %arg4[%c0_3, %c0_4] : memref<1x24xf32, #tpu.memory_space<vmem>>, vector<1x24xf32>
    %6 = vector.broadcast %5 : vector<1x24xf32> to vector<128x24xf32>
    %7 = arith.addf %4, %6 : vector<128x24xf32>
    %cst = arith.constant 0.000000e+00 : f32
    %8 = vector.broadcast %cst : f32 to vector<128x24xf32>
    %9 = arith.maximumf %7, %8 : vector<128x24xf32>
    %10 = arith.truncf %9 : vector<128x24xf32> to vector<128x24xbf16>
    %c0_5 = arith.constant 0 : index
    %c0_6 = arith.constant 0 : index
    %11 = vector.load %arg2[%c0_5, %c0_6] : memref<24x16xbf16, #tpu.memory_space<vmem>>, vector<24x16xbf16>
    %cst_7 = arith.constant dense<0.000000e+00> : vector<128x16xf32>
    %12 = tpu.matmul %10, %11, %cst_7 {dimension_numbers = #tpu.dot_dimension_numbers<[1], [0], [0], [1], [0, 0, 1, 1], [], []>} : vector<128x24xbf16>, vector<24x16xbf16>, vector<128x16xf32> -> vector<128x16xf32>
    %13 = arith.truncf %12 : vector<128x16xf32> to vector<128x16xbf16>
    %c0_8 = arith.constant 0 : index
    %c0_9 = arith.constant 0 : index
    %14 = vector.load %arg5[%c0_8, %c0_9] : memref<128x16xbf16, #tpu.memory_space<vmem>>, vector<128x16xbf16>
    tpu.vector_store %arg5[%c0_8, %c0_9], %13 {strides = array<i32>} : memref<128x16xbf16, #tpu.memory_space<vmem>>, vector<128x16xbf16>,
    return
  }
  func.func @transform_0(%arg0: i32) -> (i32, i32) {
    %c0_i32 = arith.constant 0 : i32
    %c0_i32_0 = arith.constant 0 : i32
    return %arg0, %c0_i32 : i32, i32
  }
  func.func @transform_1(%arg0: i32) -> (i32, i32) {
    %c0_i32 = arith.constant 0 : i32
    %c0_i32_0 = arith.constant 0 : i32
    %c0_i32_1 = arith.constant 0 : i32
    return %c0_i32, %c0_i32_0 : i32, i32
  }
  func.func @transform_2(%arg0: i32) -> (i32, i32) {
    %c0_i32 = arith.constant 0 : i32
    %c0_i32_0 = arith.constant 0 : i32
    %c0_i32_1 = arith.constant 0 : i32
    return %c0_i32, %c0_i32_0 : i32, i32
  }
  func.func @transform_3(%arg0: i32) -> (i32, i32) {
    %c0_i32 = arith.constant 0 : i32
    %c0_i32_0 = arith.constant 0 : i32
    %c0_i32_1 = arith.constant 0 : i32
    return %c0_i32, %c0_i32_0 : i32, i32
  }
  func.func @transform_4(%arg0: i32) -> (i32, i32) {
    %c0_i32 = arith.constant 0 : i32
    %c0_i32_0 = arith.constant 0 : i32
    return %arg0, %c0_i32 : i32, i32
  }
}

module attributes {stable_mosaic.version = 11 : i64} {
  func.func @_matmul_kernel(%arg0: i32, %arg1: memref<16x32xbf16, #tpu.memory_space<vmem>>, %arg2: memref<32x16xbf16, #tpu.memory_space<vmem>>, %arg3: memref<16x16xbf16, #tpu.memory_space<vmem>>) attributes {dimension_semantics = [#tpu.dimension_semantics<parallel>], iteration_bounds = array<i64: 1>, scalar_prefetch = 0 : i64, scratch_operands = 0 : i64, tpu.core_type = #tpu.core_type<tc>, window_params = [{transform_indices = @transform_0, window_bounds = array<i64: 16, 32>}, {pipeline_mode = #tpu.pipeline_mode<synchronous>, transform_indices = @transform_1, window_bounds = array<i64: 32, 16>}, {transform_indices = @transform_2, window_bounds = array<i64: 16, 16>}]} {
    %c0 = arith.constant 0 : index
    %c0_0 = arith.constant 0 : index
    %0 = vector.load %arg1[%c0, %c0_0] : memref<16x32xbf16, #tpu.memory_space<vmem>>, vector<16x32xbf16>
    %c0_1 = arith.constant 0 : index
    %c0_2 = arith.constant 0 : index
    %1 = vector.load %arg2[%c0_1, %c0_2] : memref<32x16xbf16, #tpu.memory_space<vmem>>, vector<32x16xbf16>
    %cst = arith.constant dense<0.000000e+00> : vector<16x16xf32>
    %2 = tpu.matmul %0, %1, %cst {dimension_numbers = #tpu.dot_dimension_numbers<[1], [0], [0], [1], [0, 0, 1, 1], [], []>} : vector<16x32xbf16>, vector<32x16xbf16>, vector<16x16xf32> -> vector<16x16xf32>
    %3 = arith.truncf %2 : vector<16x16xf32> to vector<16x16xbf16>
    %c0_3 = arith.constant 0 : index
    %c0_4 = arith.constant 0 : index
    %4 = vector.load %arg3[%c0_3, %c0_4] : memref<16x16xbf16, #tpu.memory_space<vmem>>, vector<16x16xbf16>
    tpu.vector_store %arg3[%c0_3, %c0_4], %3 {strides = array<i32>} : memref<16x16xbf16, #tpu.memory_space<vmem>>, vector<16x16xbf16>,
    return
  }
  func.func @transform_0(%arg0: i32) -> (i32, i32) {
    %c0_i32 = arith.constant 0 : i32
    %c0_i32_0 = arith.constant 0 : i32
    return %arg0, %c0_i32 : i32, i32
  }
  func.func @transform_1(%arg0: i32) -> (i32, i32) {
    %c0_i32 = arith.constant 0 : i32
    %c0_i32_0 = arith.constant 0 : i32
    %c0_i32_1 = arith.constant 0 : i32
    return %c0_i32, %c0_i32_0 : i32, i32
  }
  func.func @transform_2(%arg0: i32) -> (i32, i32) {
    %c0_i32 = arith.constant 0 : i32
    %c0_i32_0 = arith.constant 0 : i32
    return %arg0, %c0_i32 : i32, i32
  }
}

module attributes {stable_mosaic.version = 11 : i64} {
  func.func @_pool_bn_relu_kernel(%arg0: i32, %arg1: memref<8x16x32xbf16, #tpu.memory_space<vmem>>, %arg2: memref<1x32xf32, #tpu.memory_space<vmem>>, %arg3: memref<1x32xf32, #tpu.memory_space<vmem>>, %arg4: memref<16x32xbf16, #tpu.memory_space<vmem>>) attributes {dimension_semantics = [#tpu.dimension_semantics<parallel>], iteration_bounds = array<i64: 1>, scalar_prefetch = 0 : i64, scratch_operands = 0 : i64, tpu.core_type = #tpu.core_type<tc>, window_params = [{transform_indices = @transform_0, window_bounds = array<i64: 8, 16, 32>}, {pipeline_mode = #tpu.pipeline_mode<synchronous>, transform_indices = @transform_1, window_bounds = array<i64: 1, 32>}, {pipeline_mode = #tpu.pipeline_mode<synchronous>, transform_indices = @transform_2, window_bounds = array<i64: 1, 32>}, {transform_indices = @transform_3, window_bounds = array<i64: 16, 32>}]} {
    %c0 = arith.constant 0 : index
    %c0_0 = arith.constant 0 : index
    %c0_1 = arith.constant 0 : index
    %0 = vector.load %arg1[%c0, %c0_0, %c0_1] : memref<8x16x32xbf16, #tpu.memory_space<vmem>>, vector<1x16x32xbf16>
    %1 = vector.shape_cast %0 : vector<1x16x32xbf16> to vector<16x32xbf16>
    %2 = arith.extf %1 : vector<16x32xbf16> to vector<16x32xf32>
    %c0_2 = arith.constant 0 : index
    %c0_3 = arith.constant 0 : index
    %3 = vector.load %arg2[%c0_2, %c0_3] : memref<1x32xf32, #tpu.memory_space<vmem>>, vector<1x32xf32>
    %4 = vector.broadcast %3 : vector<1x32xf32> to vector<16x32xf32>
    %5 = arith.mulf %2, %4 : vector<16x32xf32>
    %c0_4 = arith.constant 0 : index
    %c0_5 = arith.constant 0 : index
    %6 = vector.load %arg3[%c0_4, %c0_5] : memref<1x32xf32, #tpu.memory_space<vmem>>, vector<1x32xf32>
    %7 = vector.broadcast %6 : vector<1x32xf32> to vector<16x32xf32>
    %8 = arith.addf %5, %7 : vector<16x32xf32>
    %cst = arith.constant 0.000000e+00 : f32
    %9 = vector.broadcast %cst : f32 to vector<16x32xf32>
    %10 = arith.maximumf %8, %9 : vector<16x32xf32>
    %c1 = arith.constant 1 : index
    %c0_6 = arith.constant 0 : index
    %c0_7 = arith.constant 0 : index
    %11 = vector.load %arg1[%c1, %c0_6, %c0_7] : memref<8x16x32xbf16, #tpu.memory_space<vmem>>, vector<1x16x32xbf16>
    %12 = vector.shape_cast %11 : vector<1x16x32xbf16> to vector<16x32xbf16>
    %13 = arith.extf %12 : vector<16x32xbf16> to vector<16x32xf32>
    %c0_8 = arith.constant 0 : index
    %c0_9 = arith.constant 0 : index
    %14 = vector.load %arg2[%c0_8, %c0_9] : memref<1x32xf32, #tpu.memory_space<vmem>>, vector<1x32xf32>
    %15 = vector.broadcast %14 : vector<1x32xf32> to vector<16x32xf32>
    %16 = arith.mulf %13, %15 : vector<16x32xf32>
    %c0_10 = arith.constant 0 : index
    %c0_11 = arith.constant 0 : index
    %17 = vector.load %arg3[%c0_10, %c0_11] : memref<1x32xf32, #tpu.memory_space<vmem>>, vector<1x32xf32>
    %18 = vector.broadcast %17 : vector<1x32xf32> to vector<16x32xf32>
    %19 = arith.addf %16, %18 : vector<16x32xf32>
    %cst_12 = arith.constant 0.000000e+00 : f32
    %20 = vector.broadcast %cst_12 : f32 to vector<16x32xf32>
    %21 = arith.maximumf %19, %20 : vector<16x32xf32>
    %22 = arith.addf %10, %21 : vector<16x32xf32>
    %c2 = arith.constant 2 : index
    %c0_13 = arith.constant 0 : index
    %c0_14 = arith.constant 0 : index
    %23 = vector.load %arg1[%c2, %c0_13, %c0_14] : memref<8x16x32xbf16, #tpu.memory_space<vmem>>, vector<1x16x32xbf16>
    %24 = vector.shape_cast %23 : vector<1x16x32xbf16> to vector<16x32xbf16>
    %25 = arith.extf %24 : vector<16x32xbf16> to vector<16x32xf32>
    %c0_15 = arith.constant 0 : index
    %c0_16 = arith.constant 0 : index
    %26 = vector.load %arg2[%c0_15, %c0_16] : memref<1x32xf32, #tpu.memory_space<vmem>>, vector<1x32xf32>
    %27 = vector.broadcast %26 : vector<1x32xf32> to vector<16x32xf32>
    %28 = arith.mulf %25, %27 : vector<16x32xf32>
    %c0_17 = arith.constant 0 : index
    %c0_18 = arith.constant 0 : index
    %29 = vector.load %arg3[%c0_17, %c0_18] : memref<1x32xf32, #tpu.memory_space<vmem>>, vector<1x32xf32>
    %30 = vector.broadcast %29 : vector<1x32xf32> to vector<16x32xf32>
    %31 = arith.addf %28, %30 : vector<16x32xf32>
    %cst_19 = arith.constant 0.000000e+00 : f32
    %32 = vector.broadcast %cst_19 : f32 to vector<16x32xf32>
    %33 = arith.maximumf %31, %32 : vector<16x32xf32>
    %34 = arith.addf %22, %33 : vector<16x32xf32>
    %c3 = arith.constant 3 : index
    %c0_20 = arith.constant 0 : index
    %c0_21 = arith.constant 0 : index
    %35 = vector.load %arg1[%c3, %c0_20, %c0_21] : memref<8x16x32xbf16, #tpu.memory_space<vmem>>, vector<1x16x32xbf16>
    %36 = vector.shape_cast %35 : vector<1x16x32xbf16> to vector<16x32xbf16>
    %37 = arith.extf %36 : vector<16x32xbf16> to vector<16x32xf32>
    %c0_22 = arith.constant 0 : index
    %c0_23 = arith.constant 0 : index
    %38 = vector.load %arg2[%c0_22, %c0_23] : memref<1x32xf32, #tpu.memory_space<vmem>>, vector<1x32xf32>
    %39 = vector.broadcast %38 : vector<1x32xf32> to vector<16x32xf32>
    %40 = arith.mulf %37, %39 : vector<16x32xf32>
    %c0_24 = arith.constant 0 : index
    %c0_25 = arith.constant 0 : index
    %41 = vector.load %arg3[%c0_24, %c0_25] : memref<1x32xf32, #tpu.memory_space<vmem>>, vector<1x32xf32>
    %42 = vector.broadcast %41 : vector<1x32xf32> to vector<16x32xf32>
    %43 = arith.addf %40, %42 : vector<16x32xf32>
    %cst_26 = arith.constant 0.000000e+00 : f32
    %44 = vector.broadcast %cst_26 : f32 to vector<16x32xf32>
    %45 = arith.maximumf %43, %44 : vector<16x32xf32>
    %46 = arith.addf %34, %45 : vector<16x32xf32>
    %c4 = arith.constant 4 : index
    %c0_27 = arith.constant 0 : index
    %c0_28 = arith.constant 0 : index
    %47 = vector.load %arg1[%c4, %c0_27, %c0_28] : memref<8x16x32xbf16, #tpu.memory_space<vmem>>, vector<1x16x32xbf16>
    %48 = vector.shape_cast %47 : vector<1x16x32xbf16> to vector<16x32xbf16>
    %49 = arith.extf %48 : vector<16x32xbf16> to vector<16x32xf32>
    %c0_29 = arith.constant 0 : index
    %c0_30 = arith.constant 0 : index
    %50 = vector.load %arg2[%c0_29, %c0_30] : memref<1x32xf32, #tpu.memory_space<vmem>>, vector<1x32xf32>
    %51 = vector.broadcast %50 : vector<1x32xf32> to vector<16x32xf32>
    %52 = arith.mulf %49, %51 : vector<16x32xf32>
    %c0_31 = arith.constant 0 : index
    %c0_32 = arith.constant 0 : index
    %53 = vector.load %arg3[%c0_31, %c0_32] : memref<1x32xf32, #tpu.memory_space<vmem>>, vector<1x32xf32>
    %54 = vector.broadcast %53 : vector<1x32xf32> to vector<16x32xf32>
    %55 = arith.addf %52, %54 : vector<16x32xf32>
    %cst_33 = arith.constant 0.000000e+00 : f32
    %56 = vector.broadcast %cst_33 : f32 to vector<16x32xf32>
    %57 = arith.maximumf %55, %56 : vector<16x32xf32>
    %58 = arith.addf %46, %57 : vector<16x32xf32>
    %c5 = arith.constant 5 : index
    %c0_34 = arith.constant 0 : index
    %c0_35 = arith.constant 0 : index
    %59 = vector.load %arg1[%c5, %c0_34, %c0_35] : memref<8x16x32xbf16, #tpu.memory_space<vmem>>, vector<1x16x32xbf16>
    %60 = vector.shape_cast %59 : vector<1x16x32xbf16> to vector<16x32xbf16>
    %61 = arith.extf %60 : vector<16x32xbf16> to vector<16x32xf32>
    %c0_36 = arith.constant 0 : index
    %c0_37 = arith.constant 0 : index
    %62 = vector.load %arg2[%c0_36, %c0_37] : memref<1x32xf32, #tpu.memory_space<vmem>>, vector<1x32xf32>
    %63 = vector.broadcast %62 : vector<1x32xf32> to vector<16x32xf32>
    %64 = arith.mulf %61, %63 : vector<16x32xf32>
    %c0_38 = arith.constant 0 : index
    %c0_39 = arith.constant 0 : index
    %65 = vector.load %arg3[%c0_38, %c0_39] : memref<1x32xf32, #tpu.memory_space<vmem>>, vector<1x32xf32>
    %66 = vector.broadcast %65 : vector<1x32xf32> to vector<16x32xf32>
    %67 = arith.addf %64, %66 : vector<16x32xf32>
    %cst_40 = arith.constant 0.000000e+00 : f32
    %68 = vector.broadcast %cst_40 : f32 to vector<16x32xf32>
    %69 = arith.maximumf %67, %68 : vector<16x32xf32>
    %70 = arith.addf %58, %69 : vector<16x32xf32>
    %c6 = arith.constant 6 : index
    %c0_41 = arith.constant 0 : index
    %c0_42 = arith.constant 0 : index
    %71 = vector.load %arg1[%c6, %c0_41, %c0_42] : memref<8x16x32xbf16, #tpu.memory_space<vmem>>, vector<1x16x32xbf16>
    %72 = vector.shape_cast %71 : vector<1x16x32xbf16> to vector<16x32xbf16>
    %73 = arith.extf %72 : vector<16x32xbf16> to vector<16x32xf32>
    %c0_43 = arith.constant 0 : index
    %c0_44 = arith.constant 0 : index
    %74 = vector.load %arg2[%c0_43, %c0_44] : memref<1x32xf32, #tpu.memory_space<vmem>>, vector<1x32xf32>
    %75 = vector.broadcast %74 : vector<1x32xf32> to vector<16x32xf32>
    %76 = arith.mulf %73, %75 : vector<16x32xf32>
    %c0_45 = arith.constant 0 : index
    %c0_46 = arith.constant 0 : index
    %77 = vector.load %arg3[%c0_45, %c0_46] : memref<1x32xf32, #tpu.memory_space<vmem>>, vector<1x32xf32>
    %78 = vector.broadcast %77 : vector<1x32xf32> to vector<16x32xf32>
    %79 = arith.addf %76, %78 : vector<16x32xf32>
    %cst_47 = arith.constant 0.000000e+00 : f32
    %80 = vector.broadcast %cst_47 : f32 to vector<16x32xf32>
    %81 = arith.maximumf %79, %80 : vector<16x32xf32>
    %82 = arith.addf %70, %81 : vector<16x32xf32>
    %c7 = arith.constant 7 : index
    %c0_48 = arith.constant 0 : index
    %c0_49 = arith.constant 0 : index
    %83 = vector.load %arg1[%c7, %c0_48, %c0_49] : memref<8x16x32xbf16, #tpu.memory_space<vmem>>, vector<1x16x32xbf16>
    %84 = vector.shape_cast %83 : vector<1x16x32xbf16> to vector<16x32xbf16>
    %85 = arith.extf %84 : vector<16x32xbf16> to vector<16x32xf32>
    %c0_50 = arith.constant 0 : index
    %c0_51 = arith.constant 0 : index
    %86 = vector.load %arg2[%c0_50, %c0_51] : memref<1x32xf32, #tpu.memory_space<vmem>>, vector<1x32xf32>
    %87 = vector.broadcast %86 : vector<1x32xf32> to vector<16x32xf32>
    %88 = arith.mulf %85, %87 : vector<16x32xf32>
    %c0_52 = arith.constant 0 : index
    %c0_53 = arith.constant 0 : index
    %89 = vector.load %arg3[%c0_52, %c0_53] : memref<1x32xf32, #tpu.memory_space<vmem>>, vector<1x32xf32>
    %90 = vector.broadcast %89 : vector<1x32xf32> to vector<16x32xf32>
    %91 = arith.addf %88, %90 : vector<16x32xf32>
    %cst_54 = arith.constant 0.000000e+00 : f32
    %92 = vector.broadcast %cst_54 : f32 to vector<16x32xf32>
    %93 = arith.maximumf %91, %92 : vector<16x32xf32>
    %94 = arith.addf %82, %93 : vector<16x32xf32>
    %cst_55 = arith.constant 1.250000e-01 : f32
    %95 = vector.broadcast %cst_55 : f32 to vector<16x32xf32>
    %96 = arith.mulf %94, %95 : vector<16x32xf32>
    %97 = arith.truncf %96 : vector<16x32xf32> to vector<16x32xbf16>
    %c0_56 = arith.constant 0 : index
    %c0_57 = arith.constant 0 : index
    %98 = vector.load %arg4[%c0_56, %c0_57] : memref<16x32xbf16, #tpu.memory_space<vmem>>, vector<16x32xbf16>
    tpu.vector_store %arg4[%c0_56, %c0_57], %97 {strides = array<i32>} : memref<16x32xbf16, #tpu.memory_space<vmem>>, vector<16x32xbf16>,
    return
  }
  func.func @transform_0(%arg0: i32) -> (i32, i32, i32) {
    %c0_i32 = arith.constant 0 : i32
    %c0_i32_0 = arith.constant 0 : i32
    %c0_i32_1 = arith.constant 0 : i32
    return %c0_i32, %arg0, %c0_i32_0 : i32, i32, i32
  }
  func.func @transform_1(%arg0: i32) -> (i32, i32) {
    %c0_i32 = arith.constant 0 : i32
    %c0_i32_0 = arith.constant 0 : i32
    %c0_i32_1 = arith.constant 0 : i32
    return %c0_i32, %c0_i32_0 : i32, i32
  }
  func.func @transform_2(%arg0: i32) -> (i32, i32) {
    %c0_i32 = arith.constant 0 : i32
    %c0_i32_0 = arith.constant 0 : i32
    %c0_i32_1 = arith.constant 0 : i32
    return %c0_i32, %c0_i32_0 : i32, i32
  }
  func.func @transform_3(%arg0: i32) -> (i32, i32) {
    %c0_i32 = arith.constant 0 : i32
    %c0_i32_0 = arith.constant 0 : i32
    return %arg0, %c0_i32 : i32, i32
  }
}

module attributes {stable_mosaic.version = 11 : i64} {
  func.func @_matmul_kernel(%arg0: i32, %arg1: memref<16x16xbf16, #tpu.memory_space<vmem>>, %arg2: memref<16x16xbf16, #tpu.memory_space<vmem>>, %arg3: memref<1x16xf32, #tpu.memory_space<vmem>>, %arg4: memref<1x16xf32, #tpu.memory_space<vmem>>, %arg5: memref<16x16xbf16, #tpu.memory_space<vmem>>) attributes {dimension_semantics = [#tpu.dimension_semantics<parallel>], iteration_bounds = array<i64: 1>, scalar_prefetch = 0 : i64, scratch_operands = 0 : i64, tpu.core_type = #tpu.core_type<tc>, window_params = [{transform_indices = @transform_0, window_bounds = array<i64: 16, 16>}, {pipeline_mode = #tpu.pipeline_mode<synchronous>, transform_indices = @transform_1, window_bounds = array<i64: 16, 16>}, {pipeline_mode = #tpu.pipeline_mode<synchronous>, transform_indices = @transform_2, window_bounds = array<i64: 1, 16>}, {pipeline_mode = #tpu.pipeline_mode<synchronous>, transform_indices = @transform_3, window_bounds = array<i64: 1, 16>}, {transform_indices = @transform_4, window_bounds = array<i64: 16, 16>}]} {
    %c0 = arith.constant 0 : index
    %c0_0 = arith.constant 0 : index
    %0 = vector.load %arg1[%c0, %c0_0] : memref<16x16xbf16, #tpu.memory_space<vmem>>, vector<16x16xbf16>
    %1 = arith.extf %0 : vector<16x16xbf16> to vector<16x16xf32>
    %c0_1 = arith.constant 0 : index
    %c0_2 = arith.constant 0 : index
    %2 = vector.load %arg3[%c0_1, %c0_2] : memref<1x16xf32, #tpu.memory_space<vmem>>, vector<1x16xf32>
    %3 = vector.broadcast %2 : vector<1x16xf32> to vector<16x16xf32>
    %4 = arith.mulf %1, %3 : vector<16x16xf32>
    %c0_3 = arith.constant 0 : index
    %c0_4 = arith.constant 0 : index
    %5 = vector.load %arg4[%c0_3, %c0_4] : memref<1x16xf32, #tpu.memory_space<vmem>>, vector<1x16xf32>
    %6 = vector.broadcast %5 : vector<1x16xf32> to vector<16x16xf32>
    %7 = arith.addf %4, %6 : vector<16x16xf32>
    %cst = arith.constant 0.000000e+00 : f32
    %8 = vector.broadcast %cst : f32 to vector<16x16xf32>
    %9 = arith.maximumf %7, %8 : vector<16x16xf32>
    %10 = arith.truncf %9 : vector<16x16xf32> to vector<16x16xbf16>
    %c0_5 = arith.constant 0 : index
    %c0_6 = arith.constant 0 : index
    %11 = vector.load %arg2[%c0_5, %c0_6] : memref<16x16xbf16, #tpu.memory_space<vmem>>, vector<16x16xbf16>
    %cst_7 = arith.constant dense<0.000000e+00> : vector<16x16xf32>
    %12 = tpu.matmul %10, %11, %cst_7 {dimension_numbers = #tpu.dot_dimension_numbers<[1], [0], [0], [1], [0, 0, 1, 1], [], []>} : vector<16x16xbf16>, vector<16x16xbf16>, vector<16x16xf32> -> vector<16x16xf32>
    %13 = arith.truncf %12 : vector<16x16xf32> to vector<16x16xbf16>
    %c0_8 = arith.constant 0 : index
    %c0_9 = arith.constant 0 : index
    %14 = vector.load %arg5[%c0_8, %c0_9] : memref<16x16xbf16, #tpu.memory_space<vmem>>, vector<16x16xbf16>
    tpu.vector_store %arg5[%c0_8, %c0_9], %13 {strides = array<i32>} : memref<16x16xbf16, #tpu.memory_space<vmem>>, vector<16x16xbf16>,
    return
  }
  func.func @transform_0(%arg0: i32) -> (i32, i32) {
    %c0_i32 = arith.constant 0 : i32
    %c0_i32_0 = arith.constant 0 : i32
    return %arg0, %c0_i32 : i32, i32
  }
  func.func @transform_1(%arg0: i32) -> (i32, i32) {
    %c0_i32 = arith.constant 0 : i32
    %c0_i32_0 = arith.constant 0 : i32
    %c0_i32_1 = arith.constant 0 : i32
    return %c0_i32, %c0_i32_0 : i32, i32
  }
  func.func @transform_2(%arg0: i32) -> (i32, i32) {
    %c0_i32 = arith.constant 0 : i32
    %c0_i32_0 = arith.constant 0 : i32
    %c0_i32_1 = arith.constant 0 : i32
    return %c0_i32, %c0_i32_0 : i32, i32
  }
  func.func @transform_3(%arg0: i32) -> (i32, i32) {
    %c0_i32 = arith.constant 0 : i32
    %c0_i32_0 = arith.constant 0 : i32
    %c0_i32_1 = arith.constant 0 : i32
    return %c0_i32, %c0_i32_0 : i32, i32
  }
  func.func @transform_4(%arg0: i32) -> (i32, i32) {
    %c0_i32 = arith.constant 0 : i32
    %c0_i32_0 = arith.constant 0 : i32
    return %arg0, %c0_i32 : i32, i32
  }
}

module attributes {stable_mosaic.version = 11 : i64} {
  func.func @_conv3x3_bn_relu_kernel(%arg0: i32, %arg1: i32, %arg2: i32, %arg3: memref<1x1x16x16xbf16, #tpu.memory_space<vmem>>, %arg4: memref<1x9x16x8xbf16, #tpu.memory_space<vmem>>, %arg5: memref<16x1xf32, #tpu.memory_space<vmem>>, %arg6: memref<1x16xf32, #tpu.memory_space<vmem>>, %arg7: memref<1x16xf32, #tpu.memory_space<vmem>>, %arg8: memref<1x1x16x8xbf16, #tpu.memory_space<vmem>>, %arg9: memref<16x8xf32, #tpu.memory_space<vmem>>) attributes {dimension_semantics = [#tpu.dimension_semantics<parallel>, #tpu.dimension_semantics<parallel>, #tpu.dimension_semantics<arbitrary>], iteration_bounds = array<i64: 2, 2, 3>, scalar_prefetch = 0 : i64, scratch_operands = 1 : i64, tpu.core_type = #tpu.core_type<tc>, window_params = [{transform_indices = @transform_0, window_bounds = array<i64: 1, 1, 16, 16>}, {transform_indices = @transform_1, window_bounds = array<i64: 1, 9, 16, 8>}, {pipeline_mode = #tpu.pipeline_mode<synchronous>, transform_indices = @transform_2, window_bounds = array<i64: 16, 1>}, {pipeline_mode = #tpu.pipeline_mode<synchronous>, transform_indices = @transform_3, window_bounds = array<i64: 1, 16>}, {pipeline_mode = #tpu.pipeline_mode<synchronous>, transform_indices = @transform_4, window_bounds = array<i64: 1, 16>}, {transform_indices = @transform_5, window_bounds = array<i64: 1, 1, 16, 8>}]} {
    %c0_i32 = arith.constant 0 : i32
    %0 = arith.cmpi eq, %arg2, %c0_i32 : i32
    %1 = arith.extui %0 : i1 to i32
    %c0_i32_0 = arith.constant 0 : i32
    %2 = arith.cmpi ne, %1, %c0_i32_0 : i32
    scf.if %2 {
      %cst = arith.constant 0.000000e+00 : f32
      %13 = vector.broadcast %cst : f32 to vector<16x8xf32>
      %c0 = arith.constant 0 : index
      %c0_5 = arith.constant 0 : index
      %14 = vector.load %arg9[%c0, %c0_5] : memref<16x8xf32, #tpu.memory_space<vmem>>, vector<16x8xf32>
      tpu.vector_store %arg9[%c0, %c0_5], %13 {strides = array<i32>} : memref<16x8xf32, #tpu.memory_space<vmem>>, vector<16x8xf32>,
    } else {
    }
    %3 = arith.addi %arg1, %arg2 : i32
    %c1_i32 = arith.constant 1 : i32
    %4 = arith.subi %3, %c1_i32 : i32
    %c0_i32_1 = arith.constant 0 : i32
    %5 = arith.cmpi sge, %4, %c0_i32_1 : i32
    %c1_i32_2 = arith.constant 1 : i32
    %6 = arith.cmpi sle, %4, %c1_i32_2 : i32
    %7 = arith.andi %5, %6 : i1
    %8 = arith.extui %7 : i1 to i32
    %c0_i32_3 = arith.constant 0 : i32
    %9 = arith.cmpi ne, %8, %c0_i32_3 : i32
    scf.if %9 {
      %c0 = arith.constant 0 : index
      %c0_5 = arith.constant 0 : index
      %c0_6 = arith.constant 0 : index
      %c0_7 = arith.constant 0 : index
      %13 = vector.load %arg3[%c0, %c0_5, %c0_6, %c0_7] : memref<1x1x16x16xbf16, #tpu.memory_space<vmem>>, vector<1x1x16x16xbf16>
      %14 = vector.shape_cast %13 : vector<1x1x16x16xbf16> to vector<16x16xbf16>
      %15 = arith.extf %14 : vector<16x16xbf16> to vector<16x16xf32>
      %c0_8 = arith.constant 0 : index
      %c0_9 = arith.constant 0 : index
      %16 = vector.load %arg6[%c0_8, %c0_9] : memref<1x16xf32, #tpu.memory_space<vmem>>, vector<1x16xf32>
      %17 = vector.broadcast %16 : vector<1x16xf32> to vector<16x16xf32>
      %18 = arith.mulf %15, %17 : vector<16x16xf32>
      %c0_10 = arith.constant 0 : index
      %c0_11 = arith.constant 0 : index
      %19 = vector.load %arg7[%c0_10, %c0_11] : memref<1x16xf32, #tpu.memory_space<vmem>>, vector<1x16xf32>
      %20 = vector.broadcast %19 : vector<1x16xf32> to vector<16x16xf32>
      %21 = arith.addf %18, %20 : vector<16x16xf32>
      %cst = arith.constant 0.000000e+00 : f32
      %22 = vector.broadcast %cst : f32 to vector<16x16xf32>
      %23 = arith.maximumf %21, %22 : vector<16x16xf32>
      %c0_12 = arith.constant 0 : index
      %c0_13 = arith.constant 0 : index
      %24 = vector.load %arg5[%c0_12, %c0_13] : memref<16x1xf32, #tpu.memory_space<vmem>>, vector<16x1xf32>
      %25 = vector.broadcast %24 : vector<16x1xf32> to vector<16x16xf32>
      %26 = arith.mulf %23, %25 : vector<16x16xf32>
      %27 = arith.truncf %26 : vector<16x16xf32> to vector<16x16xbf16>
      %c0_14 = arith.constant 0 : index
      %c0_15 = arith.constant 0 : index
      %28 = vector.load %arg9[%c0_14, %c0_15] : memref<16x8xf32, #tpu.memory_space<vmem>>, vector<16x8xf32>
      %c0_16 = arith.constant 0 : index
      %c0_17 = arith.constant 0 : index
      %c0_18 = arith.constant 0 : index
      %c0_19 = arith.constant 0 : index
      %29 = vector.load %arg4[%c0_16, %c0_17, %c0_18, %c0_19] : memref<1x9x16x8xbf16, #tpu.memory_space<vmem>>, vector<1x1x16x8xbf16>
      %30 = vector.shape_cast %29 : vector<1x1x16x8xbf16> to vector<16x8xbf16>
      %cst_20 = arith.constant dense<0.000000e+00> : vector<16x8xf32>
      %31 = tpu.matmul %27, %30, %cst_20 {dimension_numbers = #tpu.dot_dimension_numbers<[1], [0], [0], [1], [0, 0, 1, 1], [], []>} : vector<16x16xbf16>, vector<16x8xbf16>, vector<16x8xf32> -> vector<16x8xf32>
      %c5_i32 = arith.constant 5 : i32
      %32 = tpu.dynamic_rotate %31 by %c5_i32 dim 0 : vector<16x8xf32>, i32 -> vector<16x8xf32>
      %33 = arith.addf %28, %32 : vector<16x8xf32>
      %c0_21 = arith.constant 0 : index
      %c1 = arith.constant 1 : index
      %c0_22 = arith.constant 0 : index
      %c0_23 = arith.constant 0 : index
      %34 = vector.load %arg4[%c0_21, %c1, %c0_22, %c0_23] : memref<1x9x16x8xbf16, #tpu.memory_space<vmem>>, vector<1x1x16x8xbf16>
      %35 = vector.shape_cast %34 : vector<1x1x16x8xbf16> to vector<16x8xbf16>
      %cst_24 = arith.constant dense<0.000000e+00> : vector<16x8xf32>
      %36 = tpu.matmul %27, %35, %cst_24 {dimension_numbers = #tpu.dot_dimension_numbers<[1], [0], [0], [1], [0, 0, 1, 1], [], []>} : vector<16x16xbf16>, vector<16x8xbf16>, vector<16x8xf32> -> vector<16x8xf32>
      %c4_i32 = arith.constant 4 : i32
      %37 = tpu.dynamic_rotate %36 by %c4_i32 dim 0 : vector<16x8xf32>, i32 -> vector<16x8xf32>
      %38 = arith.addf %33, %37 : vector<16x8xf32>
      %c0_25 = arith.constant 0 : index
      %c2 = arith.constant 2 : index
      %c0_26 = arith.constant 0 : index
      %c0_27 = arith.constant 0 : index
      %39 = vector.load %arg4[%c0_25, %c2, %c0_26, %c0_27] : memref<1x9x16x8xbf16, #tpu.memory_space<vmem>>, vector<1x1x16x8xbf16>
      %40 = vector.shape_cast %39 : vector<1x1x16x8xbf16> to vector<16x8xbf16>
      %cst_28 = arith.constant dense<0.000000e+00> : vector<16x8xf32>
      %41 = tpu.matmul %27, %40, %cst_28 {dimension_numbers = #tpu.dot_dimension_numbers<[1], [0], [0], [1], [0, 0, 1, 1], [], []>} : vector<16x16xbf16>, vector<16x8xbf16>, vector<16x8xf32> -> vector<16x8xf32>
      %c3_i32 = arith.constant 3 : i32
      %42 = tpu.dynamic_rotate %41 by %c3_i32 dim 0 : vector<16x8xf32>, i32 -> vector<16x8xf32>
      %43 = arith.addf %38, %42 : vector<16x8xf32>
      %c0_29 = arith.constant 0 : index
      %c3 = arith.constant 3 : index
      %c0_30 = arith.constant 0 : index
      %c0_31 = arith.constant 0 : index
      %44 = vector.load %arg4[%c0_29, %c3, %c0_30, %c0_31] : memref<1x9x16x8xbf16, #tpu.memory_space<vmem>>, vector<1x1x16x8xbf16>
      %45 = vector.shape_cast %44 : vector<1x1x16x8xbf16> to vector<16x8xbf16>
      %cst_32 = arith.constant dense<0.000000e+00> : vector<16x8xf32>
      %46 = tpu.matmul %27, %45, %cst_32 {dimension_numbers = #tpu.dot_dimension_numbers<[1], [0], [0], [1], [0, 0, 1, 1], [], []>} : vector<16x16xbf16>, vector<16x8xbf16>, vector<16x8xf32> -> vector<16x8xf32>
      %c1_i32_33 = arith.constant 1 : i32
      %47 = tpu.dynamic_rotate %46 by %c1_i32_33 dim 0 : vector<16x8xf32>, i32 -> vector<16x8xf32>
      %48 = arith.addf %43, %47 : vector<16x8xf32>
      %c0_34 = arith.constant 0 : index
      %c4 = arith.constant 4 : index
      %c0_35 = arith.constant 0 : index
      %c0_36 = arith.constant 0 : index
      %49 = vector.load %arg4[%c0_34, %c4, %c0_35, %c0_36] : memref<1x9x16x8xbf16, #tpu.memory_space<vmem>>, vector<1x1x16x8xbf16>
      %50 = vector.shape_cast %49 : vector<1x1x16x8xbf16> to vector<16x8xbf16>
      %cst_37 = arith.constant dense<0.000000e+00> : vector<16x8xf32>
      %51 = tpu.matmul %27, %50, %cst_37 {dimension_numbers = #tpu.dot_dimension_numbers<[1], [0], [0], [1], [0, 0, 1, 1], [], []>} : vector<16x16xbf16>, vector<16x8xbf16>, vector<16x8xf32> -> vector<16x8xf32>
      %52 = arith.addf %48, %51 : vector<16x8xf32>
      %c0_38 = arith.constant 0 : index
      %c5 = arith.constant 5 : index
      %c0_39 = arith.constant 0 : index
      %c0_40 = arith.constant 0 : index
      %53 = vector.load %arg4[%c0_38, %c5, %c0_39, %c0_40] : memref<1x9x16x8xbf16, #tpu.memory_space<vmem>>, vector<1x1x16x8xbf16>
      %54 = vector.shape_cast %53 : vector<1x1x16x8xbf16> to vector<16x8xbf16>
      %cst_41 = arith.constant dense<0.000000e+00> : vector<16x8xf32>
      %55 = tpu.matmul %27, %54, %cst_41 {dimension_numbers = #tpu.dot_dimension_numbers<[1], [0], [0], [1], [0, 0, 1, 1], [], []>} : vector<16x16xbf16>, vector<16x8xbf16>, vector<16x8xf32> -> vector<16x8xf32>
      %c15_i32 = arith.constant 15 : i32
      %56 = tpu.dynamic_rotate %55 by %c15_i32 dim 0 : vector<16x8xf32>, i32 -> vector<16x8xf32>
      %57 = arith.addf %52, %56 : vector<16x8xf32>
      %c0_42 = arith.constant 0 : index
      %c6 = arith.constant 6 : index
      %c0_43 = arith.constant 0 : index
      %c0_44 = arith.constant 0 : index
      %58 = vector.load %arg4[%c0_42, %c6, %c0_43, %c0_44] : memref<1x9x16x8xbf16, #tpu.memory_space<vmem>>, vector<1x1x16x8xbf16>
      %59 = vector.shape_cast %58 : vector<1x1x16x8xbf16> to vector<16x8xbf16>
      %cst_45 = arith.constant dense<0.000000e+00> : vector<16x8xf32>
      %60 = tpu.matmul %27, %59, %cst_45 {dimension_numbers = #tpu.dot_dimension_numbers<[1], [0], [0], [1], [0, 0, 1, 1], [], []>} : vector<16x16xbf16>, vector<16x8xbf16>, vector<16x8xf32> -> vector<16x8xf32>
      %c13_i32 = arith.constant 13 : i32
      %61 = tpu.dynamic_rotate %60 by %c13_i32 dim 0 : vector<16x8xf32>, i32 -> vector<16x8xf32>
      %62 = arith.addf %57, %61 : vector<16x8xf32>
      %c0_46 = arith.constant 0 : index
      %c7 = arith.constant 7 : index
      %c0_47 = arith.constant 0 : index
      %c0_48 = arith.constant 0 : index
      %63 = vector.load %arg4[%c0_46, %c7, %c0_47, %c0_48] : memref<1x9x16x8xbf16, #tpu.memory_space<vmem>>, vector<1x1x16x8xbf16>
      %64 = vector.shape_cast %63 : vector<1x1x16x8xbf16> to vector<16x8xbf16>
      %cst_49 = arith.constant dense<0.000000e+00> : vector<16x8xf32>
      %65 = tpu.matmul %27, %64, %cst_49 {dimension_numbers = #tpu.dot_dimension_numbers<[1], [0], [0], [1], [0, 0, 1, 1], [], []>} : vector<16x16xbf16>, vector<16x8xbf16>, vector<16x8xf32> -> vector<16x8xf32>
      %c12_i32 = arith.constant 12 : i32
      %66 = tpu.dynamic_rotate %65 by %c12_i32 dim 0 : vector<16x8xf32>, i32 -> vector<16x8xf32>
      %67 = arith.addf %62, %66 : vector<16x8xf32>
      %c0_50 = arith.constant 0 : index
      %c8 = arith.constant 8 : index
      %c0_51 = arith.constant 0 : index
      %c0_52 = arith.constant 0 : index
      %68 = vector.load %arg4[%c0_50, %c8, %c0_51, %c0_52] : memref<1x9x16x8xbf16, #tpu.memory_space<vmem>>, vector<1x1x16x8xbf16>
      %69 = vector.shape_cast %68 : vector<1x1x16x8xbf16> to vector<16x8xbf16>
      %cst_53 = arith.constant dense<0.000000e+00> : vector<16x8xf32>
      %70 = tpu.matmul %27, %69, %cst_53 {dimension_numbers = #tpu.dot_dimension_numbers<[1], [0], [0], [1], [0, 0, 1, 1], [], []>} : vector<16x16xbf16>, vector<16x8xbf16>, vector<16x8xf32> -> vector<16x8xf32>
      %c11_i32 = arith.constant 11 : i32
      %71 = tpu.dynamic_rotate %70 by %c11_i32 dim 0 : vector<16x8xf32>, i32 -> vector<16x8xf32>
      %72 = arith.addf %67, %71 : vector<16x8xf32>
      %c0_54 = arith.constant 0 : index
      %c0_55 = arith.constant 0 : index
      %73 = vector.load %arg9[%c0_54, %c0_55] : memref<16x8xf32, #tpu.memory_space<vmem>>, vector<16x8xf32>
      tpu.vector_store %arg9[%c0_54, %c0_55], %72 {strides = array<i32>} : memref<16x8xf32, #tpu.memory_space<vmem>>, vector<16x8xf32>,
    } else {
    }
    %c2_i32 = arith.constant 2 : i32
    %10 = arith.cmpi eq, %arg2, %c2_i32 : i32
    %11 = arith.extui %10 : i1 to i32
    %c0_i32_4 = arith.constant 0 : i32
    %12 = arith.cmpi ne, %11, %c0_i32_4 : i32
    scf.if %12 {
      %c0 = arith.constant 0 : index
      %c0_5 = arith.constant 0 : index
      %13 = vector.load %arg9[%c0, %c0_5] : memref<16x8xf32, #tpu.memory_space<vmem>>, vector<16x8xf32>
      %14 = arith.truncf %13 : vector<16x8xf32> to vector<16x8xbf16>
      %c0_6 = arith.constant 0 : index
      %c0_7 = arith.constant 0 : index
      %c0_8 = arith.constant 0 : index
      %c0_9 = arith.constant 0 : index
      %15 = vector.load %arg8[%c0_6, %c0_7, %c0_8, %c0_9] : memref<1x1x16x8xbf16, #tpu.memory_space<vmem>>, vector<1x1x16x8xbf16>
      %16 = vector.shape_cast %15 : vector<1x1x16x8xbf16> to vector<16x8xbf16>
      %17 = vector.shape_cast %14 : vector<16x8xbf16> to vector<1x1x16x8xbf16>
      tpu.vector_store %arg8[%c0_6, %c0_7, %c0_8, %c0_9], %17 {strides = array<i32>} : memref<1x1x16x8xbf16, #tpu.memory_space<vmem>>, vector<1x1x16x8xbf16>,
    } else {
    }
    return
  }
  func.func @transform_0(%arg0: i32, %arg1: i32, %arg2: i32) -> (i32, i32, i32, i32) {
    %0 = arith.addi %arg1, %arg2 : i32
    %c1_i32 = arith.constant 1 : i32
    %1 = arith.subi %0, %c1_i32 : i32
    %c1_i32_0 = arith.constant 1 : i32
    %2 = arith.minsi %1, %c1_i32_0 : i32
    %c0_i32 = arith.constant 0 : i32
    %3 = arith.maxsi %2, %c0_i32 : i32
    %c0_i32_1 = arith.constant 0 : i32
    %c0_i32_2 = arith.constant 0 : i32
    %c0_i32_3 = arith.constant 0 : i32
    return %arg0, %3, %c0_i32_1, %c0_i32_2 : i32, i32, i32, i32
  }
  func.func @transform_1(%arg0: i32, %arg1: i32, %arg2: i32) -> (i32, i32, i32, i32) {
    %c0_i32 = arith.constant 0 : i32
    %c0_i32_0 = arith.constant 0 : i32
    %c0_i32_1 = arith.constant 0 : i32
    %c0_i32_2 = arith.constant 0 : i32
    return %arg2, %c0_i32, %c0_i32_0, %c0_i32_1 : i32, i32, i32, i32
  }
  func.func @transform_2(%arg0: i32, %arg1: i32, %arg2: i32) -> (i32, i32) {
    %c0_i32 = arith.constant 0 : i32
    %c0_i32_0 = arith.constant 0 : i32
    %c0_i32_1 = arith.constant 0 : i32
    return %c0_i32, %c0_i32_0 : i32, i32
  }
  func.func @transform_3(%arg0: i32, %arg1: i32, %arg2: i32) -> (i32, i32) {
    %c0_i32 = arith.constant 0 : i32
    %c0_i32_0 = arith.constant 0 : i32
    %c0_i32_1 = arith.constant 0 : i32
    return %c0_i32, %c0_i32_0 : i32, i32
  }
  func.func @transform_4(%arg0: i32, %arg1: i32, %arg2: i32) -> (i32, i32) {
    %c0_i32 = arith.constant 0 : i32
    %c0_i32_0 = arith.constant 0 : i32
    %c0_i32_1 = arith.constant 0 : i32
    return %c0_i32, %c0_i32_0 : i32, i32
  }
  func.func @transform_5(%arg0: i32, %arg1: i32, %arg2: i32) -> (i32, i32, i32, i32) {
    %c0_i32 = arith.constant 0 : i32
    %c0_i32_0 = arith.constant 0 : i32
    %c0_i32_1 = arith.constant 0 : i32
    return %arg0, %arg1, %c0_i32, %c0_i32_0 : i32, i32, i32, i32
  }
}

module attributes {stable_mosaic.version = 11 : i64} {
  func.func @_matmul_kernel(%arg0: i32, %arg1: memref<16x24xbf16, #tpu.memory_space<vmem>>, %arg2: memref<24x16xbf16, #tpu.memory_space<vmem>>, %arg3: memref<1x24xf32, #tpu.memory_space<vmem>>, %arg4: memref<1x24xf32, #tpu.memory_space<vmem>>, %arg5: memref<16x16xbf16, #tpu.memory_space<vmem>>) attributes {dimension_semantics = [#tpu.dimension_semantics<parallel>], iteration_bounds = array<i64: 1>, scalar_prefetch = 0 : i64, scratch_operands = 0 : i64, tpu.core_type = #tpu.core_type<tc>, window_params = [{transform_indices = @transform_0, window_bounds = array<i64: 16, 24>}, {pipeline_mode = #tpu.pipeline_mode<synchronous>, transform_indices = @transform_1, window_bounds = array<i64: 24, 16>}, {pipeline_mode = #tpu.pipeline_mode<synchronous>, transform_indices = @transform_2, window_bounds = array<i64: 1, 24>}, {pipeline_mode = #tpu.pipeline_mode<synchronous>, transform_indices = @transform_3, window_bounds = array<i64: 1, 24>}, {transform_indices = @transform_4, window_bounds = array<i64: 16, 16>}]} {
    %c0 = arith.constant 0 : index
    %c0_0 = arith.constant 0 : index
    %0 = vector.load %arg1[%c0, %c0_0] : memref<16x24xbf16, #tpu.memory_space<vmem>>, vector<16x24xbf16>
    %1 = arith.extf %0 : vector<16x24xbf16> to vector<16x24xf32>
    %c0_1 = arith.constant 0 : index
    %c0_2 = arith.constant 0 : index
    %2 = vector.load %arg3[%c0_1, %c0_2] : memref<1x24xf32, #tpu.memory_space<vmem>>, vector<1x24xf32>
    %3 = vector.broadcast %2 : vector<1x24xf32> to vector<16x24xf32>
    %4 = arith.mulf %1, %3 : vector<16x24xf32>
    %c0_3 = arith.constant 0 : index
    %c0_4 = arith.constant 0 : index
    %5 = vector.load %arg4[%c0_3, %c0_4] : memref<1x24xf32, #tpu.memory_space<vmem>>, vector<1x24xf32>
    %6 = vector.broadcast %5 : vector<1x24xf32> to vector<16x24xf32>
    %7 = arith.addf %4, %6 : vector<16x24xf32>
    %cst = arith.constant 0.000000e+00 : f32
    %8 = vector.broadcast %cst : f32 to vector<16x24xf32>
    %9 = arith.maximumf %7, %8 : vector<16x24xf32>
    %10 = arith.truncf %9 : vector<16x24xf32> to vector<16x24xbf16>
    %c0_5 = arith.constant 0 : index
    %c0_6 = arith.constant 0 : index
    %11 = vector.load %arg2[%c0_5, %c0_6] : memref<24x16xbf16, #tpu.memory_space<vmem>>, vector<24x16xbf16>
    %cst_7 = arith.constant dense<0.000000e+00> : vector<16x16xf32>
    %12 = tpu.matmul %10, %11, %cst_7 {dimension_numbers = #tpu.dot_dimension_numbers<[1], [0], [0], [1], [0, 0, 1, 1], [], []>} : vector<16x24xbf16>, vector<24x16xbf16>, vector<16x16xf32> -> vector<16x16xf32>
    %13 = arith.truncf %12 : vector<16x16xf32> to vector<16x16xbf16>
    %c0_8 = arith.constant 0 : index
    %c0_9 = arith.constant 0 : index
    %14 = vector.load %arg5[%c0_8, %c0_9] : memref<16x16xbf16, #tpu.memory_space<vmem>>, vector<16x16xbf16>
    tpu.vector_store %arg5[%c0_8, %c0_9], %13 {strides = array<i32>} : memref<16x16xbf16, #tpu.memory_space<vmem>>, vector<16x16xbf16>,
    return
  }
  func.func @transform_0(%arg0: i32) -> (i32, i32) {
    %c0_i32 = arith.constant 0 : i32
    %c0_i32_0 = arith.constant 0 : i32
    return %arg0, %c0_i32 : i32, i32
  }
  func.func @transform_1(%arg0: i32) -> (i32, i32) {
    %c0_i32 = arith.constant 0 : i32
    %c0_i32_0 = arith.constant 0 : i32
    %c0_i32_1 = arith.constant 0 : i32
    return %c0_i32, %c0_i32_0 : i32, i32
  }
  func.func @transform_2(%arg0: i32) -> (i32, i32) {
    %c0_i32 = arith.constant 0 : i32
    %c0_i32_0 = arith.constant 0 : i32
    %c0_i32_1 = arith.constant 0 : i32
    return %c0_i32, %c0_i32_0 : i32, i32
  }
  func.func @transform_3(%arg0: i32) -> (i32, i32) {
    %c0_i32 = arith.constant 0 : i32
    %c0_i32_0 = arith.constant 0 : i32
    %c0_i32_1 = arith.constant 0 : i32
    return %c0_i32, %c0_i32_0 : i32, i32
  }
  func.func @transform_4(%arg0: i32) -> (i32, i32) {
    %c0_i32 = arith.constant 0 : i32
    %c0_i32_0 = arith.constant 0 : i32
    return %arg0, %c0_i32 : i32, i32
  }
}

module attributes {stable_mosaic.version = 11 : i64} {
  func.func @_bn_relu_kernel(%arg0: i32, %arg1: memref<16x32xbf16, #tpu.memory_space<vmem>>, %arg2: memref<1x32xf32, #tpu.memory_space<vmem>>, %arg3: memref<1x32xf32, #tpu.memory_space<vmem>>, %arg4: memref<16x32xbf16, #tpu.memory_space<vmem>>) attributes {dimension_semantics = [#tpu.dimension_semantics<parallel>], iteration_bounds = array<i64: 1>, scalar_prefetch = 0 : i64, scratch_operands = 0 : i64, tpu.core_type = #tpu.core_type<tc>, window_params = [{transform_indices = @transform_0, window_bounds = array<i64: 16, 32>}, {pipeline_mode = #tpu.pipeline_mode<synchronous>, transform_indices = @transform_1, window_bounds = array<i64: 1, 32>}, {pipeline_mode = #tpu.pipeline_mode<synchronous>, transform_indices = @transform_2, window_bounds = array<i64: 1, 32>}, {transform_indices = @transform_3, window_bounds = array<i64: 16, 32>}]} {
    %c0 = arith.constant 0 : index
    %c0_0 = arith.constant 0 : index
    %0 = vector.load %arg1[%c0, %c0_0] : memref<16x32xbf16, #tpu.memory_space<vmem>>, vector<16x32xbf16>
    %1 = arith.extf %0 : vector<16x32xbf16> to vector<16x32xf32>
    %c0_1 = arith.constant 0 : index
    %c0_2 = arith.constant 0 : index
    %2 = vector.load %arg2[%c0_1, %c0_2] : memref<1x32xf32, #tpu.memory_space<vmem>>, vector<1x32xf32>
    %3 = vector.broadcast %2 : vector<1x32xf32> to vector<16x32xf32>
    %4 = arith.mulf %1, %3 : vector<16x32xf32>
    %c0_3 = arith.constant 0 : index
    %c0_4 = arith.constant 0 : index
    %5 = vector.load %arg3[%c0_3, %c0_4] : memref<1x32xf32, #tpu.memory_space<vmem>>, vector<1x32xf32>
    %6 = vector.broadcast %5 : vector<1x32xf32> to vector<16x32xf32>
    %7 = arith.addf %4, %6 : vector<16x32xf32>
    %cst = arith.constant 0.000000e+00 : f32
    %8 = vector.broadcast %cst : f32 to vector<16x32xf32>
    %9 = arith.maximumf %7, %8 : vector<16x32xf32>
    %10 = arith.truncf %9 : vector<16x32xf32> to vector<16x32xbf16>
    %c0_5 = arith.constant 0 : index
    %c0_6 = arith.constant 0 : index
    %11 = vector.load %arg4[%c0_5, %c0_6] : memref<16x32xbf16, #tpu.memory_space<vmem>>, vector<16x32xbf16>
    tpu.vector_store %arg4[%c0_5, %c0_6], %10 {strides = array<i32>} : memref<16x32xbf16, #tpu.memory_space<vmem>>, vector<16x32xbf16>,
    return
  }
  func.func @transform_0(%arg0: i32) -> (i32, i32) {
    %c0_i32 = arith.constant 0 : i32
    %c0_i32_0 = arith.constant 0 : i32
    return %arg0, %c0_i32 : i32, i32
  }
  func.func @transform_1(%arg0: i32) -> (i32, i32) {
    %c0_i32 = arith.constant 0 : i32
    %c0_i32_0 = arith.constant 0 : i32
    %c0_i32_1 = arith.constant 0 : i32
    return %c0_i32, %c0_i32_0 : i32, i32
  }
  func.func @transform_2(%arg0: i32) -> (i32, i32) {
    %c0_i32 = arith.constant 0 : i32
    %c0_i32_0 = arith.constant 0 : i32
    %c0_i32_1 = arith.constant 0 : i32
    return %c0_i32, %c0_i32_0 : i32, i32
  }
  func.func @transform_3(%arg0: i32) -> (i32, i32) {
    %c0_i32 = arith.constant 0 : i32
    %c0_i32_0 = arith.constant 0 : i32
    return %arg0, %c0_i32 : i32, i32
  }
}

module attributes {stable_mosaic.version = 11 : i64} {
  func.func @_matmul_kernel(%arg0: i32, %arg1: memref<16x16xbf16, #tpu.memory_space<vmem>>, %arg2: memref<16x256xbf16, #tpu.memory_space<vmem>>, %arg3: memref<1x256xf32, #tpu.memory_space<vmem>>, %arg4: memref<16x256xf32, #tpu.memory_space<vmem>>) attributes {dimension_semantics = [#tpu.dimension_semantics<parallel>], iteration_bounds = array<i64: 1>, scalar_prefetch = 0 : i64, scratch_operands = 0 : i64, tpu.core_type = #tpu.core_type<tc>, window_params = [{transform_indices = @transform_0, window_bounds = array<i64: 16, 16>}, {pipeline_mode = #tpu.pipeline_mode<synchronous>, transform_indices = @transform_1, window_bounds = array<i64: 16, 256>}, {pipeline_mode = #tpu.pipeline_mode<synchronous>, transform_indices = @transform_2, window_bounds = array<i64: 1, 256>}, {transform_indices = @transform_3, window_bounds = array<i64: 16, 256>}]} {
    %c0 = arith.constant 0 : index
    %c0_0 = arith.constant 0 : index
    %0 = vector.load %arg1[%c0, %c0_0] : memref<16x16xbf16, #tpu.memory_space<vmem>>, vector<16x16xbf16>
    %c0_1 = arith.constant 0 : index
    %c0_2 = arith.constant 0 : index
    %1 = vector.load %arg2[%c0_1, %c0_2] : memref<16x256xbf16, #tpu.memory_space<vmem>>, vector<16x256xbf16>
    %cst = arith.constant dense<0.000000e+00> : vector<16x256xf32>
    %2 = tpu.matmul %0, %1, %cst {dimension_numbers = #tpu.dot_dimension_numbers<[1], [0], [0], [1], [0, 0, 1, 1], [], []>} : vector<16x16xbf16>, vector<16x256xbf16>, vector<16x256xf32> -> vector<16x256xf32>
    %c0_3 = arith.constant 0 : index
    %c0_4 = arith.constant 0 : index
    %3 = vector.load %arg3[%c0_3, %c0_4] : memref<1x256xf32, #tpu.memory_space<vmem>>, vector<1x256xf32>
    %4 = vector.broadcast %3 : vector<1x256xf32> to vector<16x256xf32>
    %5 = arith.addf %2, %4 : vector<16x256xf32>
    %cst_5 = arith.constant 0.000000e+00 : f32
    %6 = vector.broadcast %cst_5 : f32 to vector<16x256xf32>
    %7 = arith.maximumf %5, %6 : vector<16x256xf32>
    %c0_6 = arith.constant 0 : index
    %c0_7 = arith.constant 0 : index
    %8 = vector.load %arg4[%c0_6, %c0_7] : memref<16x256xf32, #tpu.memory_space<vmem>>, vector<16x256xf32>
    tpu.vector_store %arg4[%c0_6, %c0_7], %7 {strides = array<i32>} : memref<16x256xf32, #tpu.memory_space<vmem>>, vector<16x256xf32>,
    return
  }
  func.func @transform_0(%arg0: i32) -> (i32, i32) {
    %c0_i32 = arith.constant 0 : i32
    %c0_i32_0 = arith.constant 0 : i32
    return %arg0, %c0_i32 : i32, i32
  }
  func.func @transform_1(%arg0: i32) -> (i32, i32) {
    %c0_i32 = arith.constant 0 : i32
    %c0_i32_0 = arith.constant 0 : i32
    %c0_i32_1 = arith.constant 0 : i32
    return %c0_i32, %c0_i32_0 : i32, i32
  }
  func.func @transform_2(%arg0: i32) -> (i32, i32) {
    %c0_i32 = arith.constant 0 : i32
    %c0_i32_0 = arith.constant 0 : i32
    %c0_i32_1 = arith.constant 0 : i32
    return %c0_i32, %c0_i32_0 : i32, i32
  }
  func.func @transform_3(%arg0: i32) -> (i32, i32) {
    %c0_i32 = arith.constant 0 : i32
    %c0_i32_0 = arith.constant 0 : i32
    return %arg0, %c0_i32 : i32, i32
  }
}

module attributes {stable_mosaic.version = 11 : i64} {
  func.func @_matmul_kernel(%arg0: i32, %arg1: memref<16x256xf32, #tpu.memory_space<vmem>>, %arg2: memref<256x1xbf16, #tpu.memory_space<vmem>>, %arg3: memref<1x1xf32, #tpu.memory_space<vmem>>, %arg4: memref<16x1xf32, #tpu.memory_space<vmem>>) attributes {dimension_semantics = [#tpu.dimension_semantics<parallel>], iteration_bounds = array<i64: 1>, scalar_prefetch = 0 : i64, scratch_operands = 0 : i64, tpu.core_type = #tpu.core_type<tc>, window_params = [{transform_indices = @transform_0, window_bounds = array<i64: 16, 256>}, {pipeline_mode = #tpu.pipeline_mode<synchronous>, transform_indices = @transform_1, window_bounds = array<i64: 256, 1>}, {pipeline_mode = #tpu.pipeline_mode<synchronous>, transform_indices = @transform_2, window_bounds = array<i64: 1, 1>}, {transform_indices = @transform_3, window_bounds = array<i64: 16, 1>}]} {
    %c0 = arith.constant 0 : index
    %c0_0 = arith.constant 0 : index
    %0 = vector.load %arg1[%c0, %c0_0] : memref<16x256xf32, #tpu.memory_space<vmem>>, vector<16x256xf32>
    %1 = arith.truncf %0 : vector<16x256xf32> to vector<16x256xbf16>
    %c0_1 = arith.constant 0 : index
    %c0_2 = arith.constant 0 : index
    %2 = vector.load %arg2[%c0_1, %c0_2] : memref<256x1xbf16, #tpu.memory_space<vmem>>, vector<256x1xbf16>
    %cst = arith.constant dense<0.000000e+00> : vector<16x1xf32>
    %3 = tpu.matmul %1, %2, %cst {dimension_numbers = #tpu.dot_dimension_numbers<[1], [0], [0], [1], [0, 0, 1, 1], [], []>} : vector<16x256xbf16>, vector<256x1xbf16>, vector<16x1xf32> -> vector<16x1xf32>
    %c0_3 = arith.constant 0 : index
    %c0_4 = arith.constant 0 : index
    %4 = vector.load %arg3[%c0_3, %c0_4] : memref<1x1xf32, #tpu.memory_space<vmem>>, vector<1x1xf32>
    %5 = vector.broadcast %4 : vector<1x1xf32> to vector<16x1xf32>
    %6 = arith.addf %3, %5 : vector<16x1xf32>
    %c0_5 = arith.constant 0 : index
    %c0_6 = arith.constant 0 : index
    %7 = vector.load %arg4[%c0_5, %c0_6] : memref<16x1xf32, #tpu.memory_space<vmem>>, vector<16x1xf32>
    tpu.vector_store %arg4[%c0_5, %c0_6], %6 {strides = array<i32>} : memref<16x1xf32, #tpu.memory_space<vmem>>, vector<16x1xf32>,
    return
  }
  func.func @transform_0(%arg0: i32) -> (i32, i32) {
    %c0_i32 = arith.constant 0 : i32
    %c0_i32_0 = arith.constant 0 : i32
    return %arg0, %c0_i32 : i32, i32
  }
  func.func @transform_1(%arg0: i32) -> (i32, i32) {
    %c0_i32 = arith.constant 0 : i32
    %c0_i32_0 = arith.constant 0 : i32
    %c0_i32_1 = arith.constant 0 : i32
    return %c0_i32, %c0_i32_0 : i32, i32
  }
  func.func @transform_2(%arg0: i32) -> (i32, i32) {
    %c0_i32 = arith.constant 0 : i32
    %c0_i32_0 = arith.constant 0 : i32
    %c0_i32_1 = arith.constant 0 : i32
    return %c0_i32, %c0_i32_0 : i32, i32
  }
  func.func @transform_3(%arg0: i32) -> (i32, i32) {
    %c0_i32 = arith.constant 0 : i32
    %c0_i32_0 = arith.constant 0 : i32
    return %arg0, %c0_i32 : i32, i32
  }
}

</mosaic_0001>

<bundles_post_ra>
// kernel: _lambda_.21
= control target key start
LH: loop header
LB: loop body
LE: loop exit
PB: predicated region body
PF: predicated region fallthrough
CT: control target
= control target key end

     0   :  { %s2411_s9 = smov 0   ;;  %s2990_s0 = inlined_call_operand.vmem [shape: bf16[1536,343], index: 0, kind: input, shape index: {}]   ;;  %s2991_s1 = inlined_call_operand.vmem [shape: bf16[343,16], index: 1, kind: input, shape index: {}]   ;;  %s2992_s2 = inlined_call_operand.vmem [shape: bf16[1536,16], index: 2, kind: output, shape index: {}]  }
   0x1 LB: > { %s1727_s10 = sadd.s32 4294967295, %s2393_s9   ;;  %p1731_p0 = scmp.ge.s32.totalorder %s2393_s9, 1  ;;  %s2393_s9 = sphi %s2411_s9, %s12_s9  }
   0x2   : > { %p114_p1 = scmp.lt.s32.totalorder %s2393_s9, 4 }
   0x4   : > { %p115_p2 = pnand %p1731_p0, %p114_p1 }
   0x5   : > { %s1732_s23 = sshll.u32 (!%p115_p2), %s1727_s10, 6 }
   0x6   : > { %118 = sbr.rel (%p115_p2) target bundleno = 570 (0x23a), region = 28  ;;  %p138_p3 = scmp.lt.s32.totalorder (!%p115_p2), %s1732_s23, 191 }
   0xb   : > { %v2341_v0 = vld [vmem:[%s2991_s1 + $0x38] sm:$0xff]  ;;  %vm1028_vm0 = vcmask 1042432   ;;  %vm1029_vm1 = vcmask 1043456   ;;  %v321_v2 = vld [vmem:[%s2991_s1 + $0xa8] sm:$0xf]  ;;  %v2395_v3 = vmov 65535  }
   0xc   : > { %v2425_v1 = vld [vmem:[%s2991_s1 + $0x78] sm:$0xff]  ;;  %v1030_v4 = vsel %vm1028_vm0, 4294967295, %v2395_v3  ;;  %1035 = vmatpush.bf16.msra.mxu0 %v2341_v0  ;;  %2355 = vmatpush.bf16.msra.mxu3 %v2341_v0  ;;  %v2340_v5 = vld [vmem:[%s2991_s1 + $0x30] sm:$0xff]  ;;  %v887_v6 = vunpack.c.l.b16 %v321_v2  ;;  %v2339_v11 = vld [vmem:[%s2991_s1 + $0x28] sm:$0xff]  ;;  %s2994_s23 = smov (!%p138_p3, %s1732_s23), 191  ;;  %vm931_vm2 = vcmask 711680  }
   0xd   : > { %1204 = vmatpush.bf16.msra.mxu1 %v2425_v1  ;;  %v2437_v7 = vld [vmem:[%s2991_s1 + $0x70] sm:$0xff]  ;;  %v1031_v8 = vsel %vm1029_vm1, %v1030_v4, 0  ;;  %v2448_v12 = vld [vmem:[%s2991_s1 + $0x68] sm:$0xff]  ;;  %v2454_v13 = vld [vmem:[%s2991_s1 + $0xa0] sm:$0xff]  ;;  %s2377_s13 = smul.u32 12, %s2994_s23  ;;  %s1735_s6 = sshll.u32 %s2994_s23, 2 }
   0xe   : > { %v909_v9 = vpack.c.b16 %v887_v6, %v887_v6  ;;  %v2338_v14 = vld [vmem:[%s2991_s1 + $0x20] sm:$0xff]  ;;  %v2469_v16 = vld [vmem:[%s2991_s1 + $0x98] sm:$0xff]  ;;  %v2484_v19 = vld [vmem:[%s2991_s1 + $0x90] sm:$0xff]  ;;  %s2618_s10 = scalar_lea.vmem %s2992_s2, %s1735_s6  ;;  %vm1606_vm3 = vcmask 125952  }
   0xf   : > { %v2463_v15 = vld [vmem:[%s2991_s1 + $0x60] sm:$0xff]  ;;  %v2337_v17 = vld [vmem:[%s2991_s1 + $0x18] sm:$0xff]  ;;  %v2336_v20 = vld [vmem:[%s2991_s1 + $0x10] sm:$0xff]  ;;  %s2502_s22 = scalar_lea.vmem %s2990_s0, %s2377_s13 }
  0x10   : > { %1036 = vmatpush.bf16.msra.mxu0 %v2340_v5  ;;  %2356 = vmatpush.bf16.msra.mxu3 %v2340_v5  ;;  %v2439_v10 = vand.u32 %v1031_v8, %v909_v9  ;;  %v2345_v18 = vld [vmem:[%s2991_s1 + $0x58] sm:$0xff]  ;;  %v2344_v21 = vld [vmem:[%s2991_s1 + $0x50] sm:$0xff]  ;;  %v2497_v22 = vld [vmem:[%s2991_s1 + $0x88] sm:$0xff] }
  0x11   : > { %1205 = vmatpush.bf16.msra.mxu1 %v2437_v7  ;;  %v2335_v23 = vld [vmem:[%s2991_s1 + $0x8] sm:$0xff]  ;;  %v2514_v25 = vld [vmem:[%s2991_s1 + $0x80] sm:$0xff]  ;;  %v2240_v27 = vld [vmem:[%s2502_s22 + $0x10] sm:$0xf0] }
  0x12   : > { %1375 = vmatpush.bf16.msra.mxu2 %v2439_v10  ;;  %v2343_v24 = vld [vmem:[%s2991_s1 + $0x48] sm:$0xff]  ;;  %v2334_v28 = vld [vmem:[%s2991_s1] sm:$0xff]  ;;  %v1740_v36 = vld [vmem:[%s2502_s22 + $0xc] sm:$0xf0] }
  0x13   : > { %v1746_v26 = vld [vmem:[%s2502_s22 + $0x8] sm:$0xf]  ;;  %v1738_v29 = vld [vmem:[%s2502_s22] sm:$0xf]  ;;  %v2239_v30 = vld [vmem:[%s2502_s22 + $0x8] sm:$0xf0] }
  0x14   : > { %1037 = vmatpush.bf16.msra.mxu0 %v2339_v11  ;;  %2357 = vmatpush.bf16.msra.mxu3 %v2339_v11  ;;  %v2026_v31 = vld [vmem:[%s2502_s22 + $0x240] sm:$0xf]  ;;  %v2311_v32 = vld [vmem:[%s2502_s22 + $0x248] sm:$0xf0]  ;;  %v1747_v33 = vor.u32 %v2240_v27, %v1746_v26  ;;  %v2238_v35 = vld [vmem:[%s2502_s22 + $0x4] sm:$0xf]  ;;  %v1739_v37 = vor.u32 %v2239_v30, %v1738_v29 }
  0x15   : > { %1206 = vmatpush.bf16.msra.mxu1 %v2448_v12  ;;  %v2342_v34 = vld [vmem:[%s2991_s1 + $0x40] sm:$0xff]  ;;  %v2027_v38 = vor.u32 %v2311_v32, %v2026_v31  ;;  %v1743_v39 = vor.u32 %v2238_v35, %v1740_v36  ;;  %v2243_v41 = vld [vmem:[%s2502_s22 + $0x28] sm:$0xf0]  ;;  %v1750_v42 = vld [vmem:[%s2502_s22 + $0x18] sm:$0xf] }
  0x16   : > { %1376 = vmatpush.bf16.msra.mxu2 %v2454_v13  ;;  %v1758_v40 = vld [vmem:[%s2502_s22 + $0x20] sm:$0xf]  ;;  %v2242_v43 = vld [vmem:[%s2502_s22 + $0x20] sm:$0xf0]  ;;  %v2038_v44 = vld [vmem:[%s2502_s22 + $0x258] sm:$0xf] }
  0x17   : > { %v2314_v45 = vld [vmem:[%s2502_s22 + $0x260] sm:$0xf0]  ;;  %v1759_v46 = vor.u32 %v2243_v41, %v1758_v40  ;;  %v2241_v47 = vld [vmem:[%s2502_s22 + $0x1c] sm:$0xf]  ;;  %v1752_v48 = vld [vmem:[%s2502_s22 + $0x24] sm:$0xf0]  ;;  %v1751_v49 = vor.u32 %v2242_v43, %v1750_v42 }
  0x18   : > { %1038 = vmatpush.bf16.msra.mxu0 %v2338_v14  ;;  %2358 = vmatpush.bf16.msra.mxu3 %v2338_v14  ;;  %v2039_v50 = vor.u32 %v2314_v45, %v2038_v44  ;;  %v1755_v51 = vor.u32 %v2241_v47, %v1752_v48  ;;  %v1770_v52 = vld [vmem:[%s2502_s22 + $0x38] sm:$0xf]  ;;  %v2246_v53 = vld [vmem:[%s2502_s22 + $0x40] sm:$0xf0]  ;;  %v1762_v54 = vld [vmem:[%s2502_s22 + $0x30] sm:$0xf] }
  0x19   : > { %1207 = vmatpush.bf16.msra.mxu1 %v2463_v15  ;;  %v2245_v55 = vld [vmem:[%s2502_s22 + $0x38] sm:$0xf0]  ;;  %v2050_v56 = vld [vmem:[%s2502_s22 + $0x270] sm:$0xf]  ;;  %v1771_v58 = vor.u32 %v2246_v53, %v1770_v52  ;;  %v2244_v59 = vld [vmem:[%s2502_s22 + $0x34] sm:$0xf] }
  0x1a   : > { %1377 = vmatpush.bf16.msra.mxu2 %v2469_v16  ;;  %v2317_v57 = vld [vmem:[%s2502_s22 + $0x278] sm:$0xf0]  ;;  %v1764_v60 = vld [vmem:[%s2502_s22 + $0x3c] sm:$0xf0]  ;;  %v1763_v61 = vor.u32 %v2245_v55, %v1762_v54  ;;  %v1782_v0 = vld [vmem:[%s2502_s22 + $0x50] sm:$0xf] }
  0x1b   : > { %v2051_v62 = vor.u32 %v2317_v57, %v2050_v56  ;;  %v1767_v63 = vor.u32 %v2244_v59, %v1764_v60  ;;  %v1774_v2 = vld [vmem:[%s2502_s22 + $0x48] sm:$0xf]  ;;  %v2248_v3 = vld [vmem:[%s2502_s22 + $0x50] sm:$0xf0]  ;;  %v1776_v8 = vld [vmem:[%s2502_s22 + $0x54] sm:$0xf0] }
  0x1c   : > { %1039 = vmatpush.bf16.msra.mxu0 %v2337_v17  ;;  %2359 = vmatpush.bf16.msra.mxu3 %v2337_v17  ;;  %v2062_v4 = vld [vmem:[%s2502_s22 + $0x288] sm:$0xf]  ;;  %v2320_v5 = vld [vmem:[%s2502_s22 + $0x290] sm:$0xf0]  ;;  %v1775_v9 = vor.u32 %v2248_v3, %v1774_v2  ;;  %v1786_v14 = vld [vmem:[%s2502_s22 + $0x60] sm:$0xf] }
  0x1d   : > { %1208 = vmatpush.bf16.msra.mxu1 %v2345_v18  ;;  %v2323_v17 = vld [vmem:[%s2502_s22 + $0x2a8] sm:$0xf0]  ;;  %v1798_v26 = vld [vmem:[%s2502_s22 + $0x78] sm:$0xf]  ;;  %v2254_v27 = vld [vmem:[%s2502_s22 + $0x80] sm:$0xf0] }
  0x1e   : > { %1378 = vmatpush.bf16.msra.mxu2 %v2484_v19  ;;  %v2326_v29 = vld [vmem:[%s2502_s22 + $0x2c0] sm:$0xf0]  ;;  %v2253_v31 = vld [vmem:[%s2502_s22 + $0x7c] sm:$0xf]  ;;  %v1800_v32 = vld [vmem:[%s2502_s22 + $0x84] sm:$0xf0] }
  0x1f   : > { %v1803_v35 = vor.u32 %v2253_v31, %v1800_v32  ;;  %v1818_v36 = vld [vmem:[%s2502_s22 + $0x98] sm:$0xf]  ;;  %v2098_v40 = vld [vmem:[%s2502_s22 + $0x2d0] sm:$0xf]  ;;  %v2329_v41 = vld [vmem:[%s2502_s22 + $0x2d8] sm:$0xf0] }
  0x20   : > { %1040 = vmatpush.bf16.msra.mxu0 %v2336_v20  ;;  %2360 = vmatpush.bf16.msra.mxu3 %v2336_v20  ;;  %v1788_v20 = vld [vmem:[%s2502_s22 + $0x6c] sm:$0xf0]  ;;  %v2256_v43 = vld [vmem:[%s2502_s22 + $0x94] sm:$0xf]  ;;  %v1812_v44 = vld [vmem:[%s2502_s22 + $0x9c] sm:$0xf0] }
  0x21   : > { %1209 = vmatpush.bf16.msra.mxu1 %v2344_v21  ;;  %v1815_v47 = vor.u32 %v2256_v43, %v1812_v44  ;;  %v1830_v48 = vld [vmem:[%s2502_s22 + $0xb0] sm:$0xf]  ;;  %v2110_v52 = vld [vmem:[%s2502_s22 + $0x2e8] sm:$0xf]  ;;  %v2332_v53 = vld [vmem:[%s2502_s22 + $0x2f0] sm:$0xf0] }
  0x22   : > { %1379 = vmatpush.bf16.msra.mxu2 %v2497_v22  ;;  %v2259_v55 = vld [vmem:[%s2502_s22 + $0xac] sm:$0xf]  ;;  %v1824_v56 = vld [vmem:[%s2502_s22 + $0xb4] sm:$0xf0]  ;;  %v1842_v60 = vld [vmem:[%s2502_s22 + $0xc8] sm:$0xf] }
  0x23   : > { %v1827_v59 = vor.u32 %v2259_v55, %v1824_v56  ;;  %v2262_v3 = vld [vmem:[%s2502_s22 + $0xc4] sm:$0xf]  ;;  %v1866_v44 = vld [vmem:[%s2502_s22 + $0xf8] sm:$0xf] }
  0x24   : > { %1041 = vmatpush.bf16.msra.mxu0 %v2335_v23  ;;  %2361 = vmatpush.bf16.msra.mxu3 %v2335_v23 }
  0x25   : > { %1210 = vmatpush.bf16.msra.mxu1 %v2343_v24 }
  0x26   : > { %1380 = vmatpush.bf16.msra.mxu2 %v2514_v25 }
  0x28   : > { %1042 = vmatpush.bf16.msra.mxu0 %v2334_v28  ;;  %2362 = vmatpush.bf16.msra.mxu3 %v2334_v28  ;;  %v2086_v28 = vld [vmem:[%s2502_s22 + $0x2b8] sm:$0xf] }
  0x29   : > { %2204 = vmatmul.msk.bf16.vlgmr.msra.gmra.mxu2 %vm931_vm2, %v1747_v33  ;;  %1211 = vmatpush.bf16.msra.mxu1 %v2342_v34  ;;  %v1799_v33 = vor.u32 %v2254_v27, %v1798_v26  ;;  %v2265_v27 = vld [vmem:[%s2502_s22 + $0xdc] sm:$0xf] }
  0x2b   : > { %1043 = vmatmul.bf16.vlgmr.msra.gmra.mxu0 %v1739_v37  ;;  %1163 = vmatmul.bf16.vlgmr.msra.gmra.mxu3 %v2027_v38  ;;  %v2258_v37 = vld [vmem:[%s2502_s22 + $0xa0] sm:$0xf0]  ;;  %v1810_v38 = vld [vmem:[%s2502_s22 + $0x90] sm:$0xf] }
  0x2c   : > { %2363 = vmatpush.bf16.msrb.mxu3 %v2425_v1  ;;  %1212 = vmatmul.bf16.vlgmr.msra.gmra.mxu1 %v1743_v39  ;;  %v2249_v1 = vld [vmem:[%s2502_s22 + $0x58] sm:$0xf0]  ;;  %v1819_v42 = vor.u32 %v2258_v37, %v1818_v36 }
  0x2d   : > { %v1783_v6 = vor.u32 %v2249_v1, %v1782_v0  ;;  %v2257_v39 = vld [vmem:[%s2502_s22 + $0x98] sm:$0xf0]  ;;  %v2263_v0 = vld [vmem:[%s2502_s22 + $0xc8] sm:$0xf0]  ;;  %v2028_v1 = vld [vmem:[%s2502_s22 + $0x24c] sm:$0xf0] }
  0x2e   : > { %v1811_v45 = vor.u32 %v2257_v39, %v1810_v38 }
  0x30   : > { %2364 = vmatpush.bf16.msrb.mxu3 %v2437_v7  ;;  %v2247_v7 = vld [vmem:[%s2502_s22 + $0x4c] sm:$0xf] }
  0x31   : > { %v1779_v11 = vor.u32 %v2247_v7, %v1776_v8 }
  0x34   : > { %2365 = vmatpush.bf16.msrb.mxu3 %v2448_v12  ;;  %v1794_v12 = vld [vmem:[%s2502_s22 + $0x68] sm:$0xf] }
  0x38   : > { %2366 = vmatpush.bf16.msrb.mxu3 %v2463_v15  ;;  %v2251_v15 = vld [vmem:[%s2502_s22 + $0x68] sm:$0xf0] }
  0x39   : > { %2205 = vmatmul.msk.bf16.gmra.mxu2 %vm931_vm2, %v1759_v46  ;;  %v2099_v46 = vor.u32 %v2329_v41, %v2098_v40 }
  0x3b   : > { %1048 = vmatmul.bf16.gmra.mxu0 %v1751_v49  ;;  %1168 = vmatmul.bf16.gmra.mxu3 %v2039_v50  ;;  %v2261_v49 = vld [vmem:[%s2502_s22 + $0xb8] sm:$0xf0]  ;;  %v1822_v50 = vld [vmem:[%s2502_s22 + $0xa8] sm:$0xf] }
  0x3c   : > { %2367 = vmatpush.bf16.msrb.mxu3 %v2345_v18  ;;  %1217 = vmatmul.bf16.gmra.mxu1 %v1755_v51  ;;  %v2260_v51 = vld [vmem:[%s2502_s22 + $0xb0] sm:$0xf0]  ;;  %v1831_v54 = vor.u32 %v2261_v49, %v1830_v48  ;;  %v1858_v48 = vld [vmem:[%s2502_s22 + $0xf0] sm:$0xf]  ;;  %v2269_v49 = vld [vmem:[%s2502_s22 + $0xf8] sm:$0xf0] }
  0x3d   : > { %v1823_v57 = vor.u32 %v2260_v51, %v1822_v50  ;;  %v2052_v50 = vld [vmem:[%s2502_s22 + $0x27c] sm:$0xf0] }
  0x40   : > { %2368 = vmatpush.bf16.msrb.mxu3 %v2344_v21  ;;  %v1787_v21 = vor.u32 %v2251_v15, %v1786_v14 }
  0x44   : > { %2369 = vmatpush.bf16.msrb.mxu3 %v2343_v24  ;;  %v1806_v24 = vld [vmem:[%s2502_s22 + $0x80] sm:$0xf] }
  0x48   : > { %2370 = vmatpush.bf16.msrb.mxu3 %v2342_v34  ;;  %v2087_v34 = vor.u32 %v2326_v29, %v2086_v28  ;;  %v1848_v28 = vld [vmem:[%s2502_s22 + $0xe4] sm:$0xf0] }
  0x49   : > { %2206 = vmatmul.msk.bf16.gmra.mxu2 %vm931_vm2, %v1771_v58  ;;  %v2111_v58 = vor.u32 %v2332_v53, %v2110_v52  ;;  %v2268_v53 = vld [vmem:[%s2502_s22 + $0xf4] sm:$0xf] }
  0x4b   : > { %1053 = vmatmul.bf16.gmra.mxu0 %v1763_v61  ;;  %1173 = vmatmul.bf16.gmra.mxu3 %v2051_v62  ;;  %v2264_v61 = vld [vmem:[%s2502_s22 + $0xd0] sm:$0xf0]  ;;  %v2310_v62 = vld [vmem:[%s2502_s22 + $0x244] sm:$0xf] }
  0x4c   : > { %2371 = vmatpush.bf16.msra.mxu3 %v2439_v10  ;;  %1222 = vmatmul.bf16.gmra.mxu1 %v1767_v63  ;;  %v2063_v10 = vor.u32 %v2320_v5, %v2062_v4  ;;  %v1834_v63 = vld [vmem:[%s2502_s22 + $0xc0] sm:$0xf]  ;;  %v1843_v2 = vor.u32 %v2264_v61, %v1842_v60  ;;  %v1836_v4 = vld [vmem:[%s2502_s22 + $0xcc] sm:$0xf0] }
  0x4d   : > { %v1835_v5 = vor.u32 %v2263_v0, %v1834_v63  ;;  %v1839_v8 = vor.u32 %v2262_v3, %v1836_v4 }
  0x50   : > { %2372 = vmatpush.bf16.msra.mxu3 %v2454_v13  ;;  %v2252_v13 = vld [vmem:[%s2502_s22 + $0x70] sm:$0xf0] }
  0x51   : > { %v1795_v18 = vor.u32 %v2252_v13, %v1794_v12 }
  0x54   : > { %2373 = vmatpush.bf16.msra.mxu3 %v2469_v16  ;;  %v2074_v16 = vld [vmem:[%s2502_s22 + $0x2a0] sm:$0xf] }
  0x58   : > { %2374 = vmatpush.bf16.msra.mxu3 %v2484_v19  ;;  %v2250_v19 = vld [vmem:[%s2502_s22 + $0x64] sm:$0xf] }
  0x59   : > { %2207 = vmatmul.msk.bf16.gmra.mxu2 %vm931_vm2, %v1783_v6  ;;  %v1791_v23 = vor.u32 %v2250_v19, %v1788_v20  ;;  %v2031_v6 = vor.u32 %v2310_v62, %v2028_v1  ;;  %v2267_v19 = vld [vmem:[%s2502_s22 + $0xe8] sm:$0xf0]  ;;  %v2313_v20 = vld [vmem:[%s2502_s22 + $0x25c] sm:$0xf] }
  0x5b   : > { %1058 = vmatmul.bf16.gmra.mxu0 %v1775_v9  ;;  %1178 = vmatmul.bf16.gmra.mxu3 %v2063_v10 }
  0x5c   : > { %2375 = vmatpush.bf16.msra.mxu3 %v2497_v22  ;;  %1227 = vmatmul.bf16.gmra.mxu1 %v1779_v11  ;;  %v2075_v22 = vor.u32 %v2323_v17, %v2074_v16 }
  0x60   : > { %2376 = vmatpush.bf16.msra.mxu3 %v2514_v25  ;;  %v2255_v25 = vld [vmem:[%s2502_s22 + $0x88] sm:$0xf0] }
  0x61   : > { %v1807_v30 = vor.u32 %v2255_v25, %v1806_v24  ;;  %v2040_v24 = vld [vmem:[%s2502_s22 + $0x264] sm:$0xf0] }
  0x62   : > { %v2043_v32 = vor.u32 %v2313_v20, %v2040_v24 }
  0x69   : > { %2208 = vmatmul.msk.bf16.gmra.mxu2 %vm931_vm2, %v1795_v18  ;;  %v1854_v18 = vld [vmem:[%s2502_s22 + $0xe0] sm:$0xf] }
  0x6a   : > { %v1855_v26 = vor.u32 %v2267_v19, %v1854_v18 }
  0x6b   : > { %1063 = vmatmul.bf16.gmra.mxu0 %v1787_v21  ;;  %1183 = vmatmul.bf16.gmra.mxu3 %v2075_v22  ;;  %v1846_v22 = vld [vmem:[%s2502_s22 + $0xd8] sm:$0xf] }
  0x6c   : > { %1232 = vmatmul.bf16.gmra.mxu1 %v1791_v23  ;;  %v2266_v23 = vld [vmem:[%s2502_s22 + $0xe0] sm:$0xf0] }
  0x6d   : > { %v1847_v31 = vor.u32 %v2266_v23, %v1846_v22 }
  0x79   : > { %2209 = vmatmul.msk.bf16.gmra.mxu2 %vm931_vm2, %v1807_v30 }
  0x7b   : > { %1068 = vmatmul.bf16.gmra.mxu0 %v1799_v33  ;;  %1188 = vmatmul.bf16.gmra.mxu3 %v2087_v34  ;;  %v1851_v34 = vor.u32 %v2265_v27, %v1848_v28 }
  0x7c   : > { %1237 = vmatmul.bf16.gmra.mxu1 %v1803_v35 }
  0x89   : > { %2210 = vmatmul.msk.bf16.gmra.mxu2 %vm931_vm2, %v1819_v42 }
  0x8b   : > { %1073 = vmatmul.bf16.gmra.mxu0 %v1811_v45  ;;  %1193 = vmatmul.bf16.gmra.mxu3 %v2099_v46  ;;  %v2270_v45 = vld [vmem:[%s2502_s22 + $0x100] sm:$0xf0]  ;;  %v2316_v46 = vld [vmem:[%s2502_s22 + $0x274] sm:$0xf] }
  0x8c   : > { %1242 = vmatmul.bf16.gmra.mxu1 %v1815_v47  ;;  %v1867_v52 = vor.u32 %v2270_v45, %v1866_v44  ;;  %v2274_v44 = vld [vmem:[%s2502_s22 + $0x124] sm:$0xf]  ;;  %v1884_v45 = vld [vmem:[%s2502_s22 + $0x12c] sm:$0xf0] }
  0x99   : > { %2211 = vmatmul.msk.bf16.gmra.mxu2 %vm931_vm2, %v1831_v54  ;;  %v1860_v54 = vld [vmem:[%s2502_s22 + $0xfc] sm:$0xf0] }
  0x9a   : > { %v1863_v60 = vor.u32 %v2268_v53, %v1860_v54 }
  0x9b   : > { %1078 = vmatmul.bf16.gmra.mxu0 %v1823_v57  ;;  %1198 = vmatmul.bf16.gmra.mxu3 %v2111_v58  ;;  %v1859_v57 = vor.u32 %v2269_v49, %v1858_v48  ;;  %v2055_v58 = vor.u32 %v2316_v46, %v2052_v50 }
  0x9c   : > { %1247 = vmatmul.bf16.gmra.mxu1 %v1827_v59 }
  0xa8   : > { %v1044_v7 = vpop.f32.mrf.mxu0 }
  0xa9   : > { %2212 = vmatmul.msk.bf16.gmra.mxu2 %vm931_vm2, %v1843_v2  ;;  %v1213_v9 = vpop.f32.mrf.mxu1 }
  0xaa   : > { %v1214_v10 = vadd.f32 %v1213_v9, %v1044_v7  ;;  %v2273_v7 = vld [vmem:[%s2502_s22 + $0x118] sm:$0xf0] }
  0xab   : > { %1083 = vmatmul.bf16.gmra.mxu0 %v1835_v5  ;;  %1332 = vmatmul.bf16.vlgmr.msrb.gmra.mxu3 %v2031_v6  ;;  %v1878_v6 = vld [vmem:[%s2502_s22 + $0x110] sm:$0xf] }
  0xac   : > { %v1382_v11 = vpop.f32.mrf.mxu2  ;;  %1252 = vmatmul.bf16.gmra.mxu1 %v1839_v8  ;;  %v2319_v8 = vld [vmem:[%s2502_s22 + $0x28c] sm:$0xf] }
  0xad   : > { %v1383_v12 = vadd.f32 %v1382_v11, %v1214_v10  ;;  %v1870_v10 = vld [vmem:[%s2502_s22 + $0x108] sm:$0xf]  ;;  %v2272_v11 = vld [vmem:[%s2502_s22 + $0x110] sm:$0xf0] }
  0xae   : > { %v2620_v13 = vpop.f32.mrf.mxu3  ;;  %v1871_v20 = vor.u32 %v2272_v11, %v1870_v10 }
  0xaf   : > { %v1542_v14 = vpack.c.bf16 %v1383_v12, %v1383_v12  ;;  %v2064_v12 = vld [vmem:[%s2502_s22 + $0x294] sm:$0xf0] }
  0xb0   : > { %v1046_v15 = vpop.f32.mrf.mxu0 }
  0xb1   : > { %1607 = vst.msk [vmem:[%s2618_s10] sm:$0xf] %vm1606_vm3, %v1542_v14  ;;  %v1215_v16 = vpop.f32.mrf.mxu1 }
  0xb2   : > { %v1216_v17 = vadd.f32 %v1215_v16, %v1046_v15  ;;  %v1879_v15 = vor.u32 %v2273_v7, %v1878_v6  ;;  %v2271_v16 = vld [vmem:[%s2502_s22 + $0x10c] sm:$0xf] }
  0xb4   : > { %v1384_v21 = vpop.f32.mrf.mxu2 }
  0xb5   : > { %v1385_v25 = vadd.f32 %v1384_v21, %v1216_v17  ;;  %v1872_v17 = vld [vmem:[%s2502_s22 + $0x114] sm:$0xf0]  ;;  %v2067_v21 = vor.u32 %v2319_v8, %v2064_v12  ;;  %v2277_v8 = vld [vmem:[%s2502_s22 + $0x13c] sm:$0xf] }
  0xb6   : > { %v2632_v29 = vpop.f32.mrf.mxu3  ;;  %v1875_v23 = vor.u32 %v2271_v16, %v1872_v17 }
  0xb7   : > { %v1543_v30 = vpack.c.bf16 %v1385_v25, %v1385_v25 }
  0xb8   : > { %v1049_v33 = vpop.f32.mrf.mxu0 }
  0xb9   : > { %1608 = vst.msk [vmem:[%s2618_s10 + $0x4] sm:$0xf] %vm1606_vm3, %v1543_v30  ;;  %2213 = vmatmul.msk.bf16.gmra.mxu2 %vm931_vm2, %v1855_v26  ;;  %v1218_v35 = vpop.f32.mrf.mxu1 }
  0xba   : > { %v1219_v36 = vadd.f32 %v1218_v35, %v1049_v33  ;;  %v2276_v35 = vld [vmem:[%s2502_s22 + $0x130] sm:$0xf0] }
  0xbb   : > { %1088 = vmatmul.bf16.gmra.mxu0 %v1847_v31  ;;  %1337 = vmatmul.bf16.gmra.mxu3 %v2043_v32 }
  0xbc   : > { %v1387_v37 = vpop.f32.mrf.mxu2  ;;  %1257 = vmatmul.bf16.gmra.mxu1 %v1851_v34  ;;  %v1890_v34 = vld [vmem:[%s2502_s22 + $0x128] sm:$0xf] }
  0xbd   : > { %v1388_v38 = vadd.f32 %v1387_v37, %v1219_v36  ;;  %v2322_v36 = vld [vmem:[%s2502_s22 + $0x2a4] sm:$0xf] }
  0xbe   : > { %v2637_v39 = vpop.f32.mrf.mxu3 }
  0xbf   : > { %v1544_v40 = vpack.c.bf16 %v1388_v38, %v1388_v38  ;;  %v1882_v38 = vld [vmem:[%s2502_s22 + $0x120] sm:$0xf] }
  0xc0   : > { %v1051_v41 = vpop.f32.mrf.mxu0 }
  0xc1   : > { %1609 = vst.msk [vmem:[%s2618_s10 + $0x8] sm:$0xf] %vm1606_vm3, %v1544_v40  ;;  %v1220_v42 = vpop.f32.mrf.mxu1  ;;  %v2275_v40 = vld [vmem:[%s2502_s22 + $0x128] sm:$0xf0] }
  0xc2   : > { %v1221_v43 = vadd.f32 %v1220_v42, %v1051_v41  ;;  %v2076_v41 = vld [vmem:[%s2502_s22 + $0x2ac] sm:$0xf0]  ;;  %v1883_v48 = vor.u32 %v2275_v40, %v1882_v38  ;;  %v2280_v38 = vld [vmem:[%s2502_s22 + $0x154] sm:$0xf]  ;;  %v1908_v40 = vld [vmem:[%s2502_s22 + $0x15c] sm:$0xf0] }
  0xc3   : > { %v2079_v49 = vor.u32 %v2322_v36, %v2076_v41 }
  0xc4   : > { %v1389_v47 = vpop.f32.mrf.mxu2 }
  0xc5   : > { %v1390_v51 = vadd.f32 %v1389_v47, %v1221_v43  ;;  %v1891_v43 = vor.u32 %v2276_v35, %v1890_v34  ;;  %v2281_v34 = vld [vmem:[%s2502_s22 + $0x158] sm:$0xf0]  ;;  %v2100_v35 = vld [vmem:[%s2502_s22 + $0x2dc] sm:$0xf0] }
  0xc6   : > { %v2649_v55 = vpop.f32.mrf.mxu3 }
  0xc7   : > { %v1545_v56 = vpack.c.bf16 %v1390_v51, %v1390_v51  ;;  %v1887_v51 = vor.u32 %v2274_v44, %v1884_v45 }
  0xc8   : > { %v1054_v59 = vpop.f32.mrf.mxu0 }
  0xc9   : > { %1610 = vst.msk [vmem:[%s2618_s10 + $0xc] sm:$0xf] %vm1606_vm3, %v1545_v56  ;;  %2214 = vmatmul.msk.bf16.gmra.mxu2 %vm931_vm2, %v1867_v52  ;;  %v1223_v61 = vpop.f32.mrf.mxu1 }
  0xca   : > { %v1224_v62 = vadd.f32 %v1223_v61, %v1054_v59 }
  0xcb   : > { %1093 = vmatmul.bf16.gmra.mxu0 %v1859_v57  ;;  %1342 = vmatmul.bf16.gmra.mxu3 %v2055_v58 }
  0xcc   : > { %v1392_v63 = vpop.f32.mrf.mxu2  ;;  %1262 = vmatmul.bf16.gmra.mxu1 %v1863_v60 }
  0xcd   : > { %v1393_v0 = vadd.f32 %v1392_v63, %v1224_v62  ;;  %v1902_v62 = vld [vmem:[%s2502_s22 + $0x140] sm:$0xf]  ;;  %v2279_v63 = vld [vmem:[%s2502_s22 + $0x148] sm:$0xf0] }
  0xce   : > { %v2654_v1 = vpop.f32.mrf.mxu3  ;;  %v1903_v7 = vor.u32 %v2279_v63, %v1902_v62  ;;  %v1918_v63 = vld [vmem:[%s2502_s22 + $0x168] sm:$0xf] }
  0xcf   : > { %v1546_v2 = vpack.c.bf16 %v1393_v0, %v1393_v0  ;;  %v2325_v0 = vld [vmem:[%s2502_s22 + $0x2bc] sm:$0xf] }
  0xd0   : > { %v1056_v3 = vpop.f32.mrf.mxu0 }
  0xd1   : > { %1611 = vst.msk [vmem:[%s2618_s10 + $0x10] sm:$0xf] %vm1606_vm3, %v1546_v2  ;;  %v1225_v4 = vpop.f32.mrf.mxu1 }
  0xd2   : > { %v1226_v5 = vadd.f32 %v1225_v4, %v1056_v3  ;;  %v1894_v3 = vld [vmem:[%s2502_s22 + $0x138] sm:$0xf]  ;;  %v2278_v4 = vld [vmem:[%s2502_s22 + $0x140] sm:$0xf0] }
  0xd3   : > { %v1895_v12 = vor.u32 %v2278_v4, %v1894_v3 }
  0xd4   : > { %v1394_v9 = vpop.f32.mrf.mxu2 }
  0xd5   : > { %v1395_v14 = vadd.f32 %v1394_v9, %v1226_v5  ;;  %v2088_v5 = vld [vmem:[%s2502_s22 + $0x2c4] sm:$0xf0] }
  0xd6   : > { %v2666_v18 = vpop.f32.mrf.mxu3  ;;  %v1896_v9 = vld [vmem:[%s2502_s22 + $0x144] sm:$0xf0] }
  0xd7   : > { %v1547_v19 = vpack.c.bf16 %v1395_v14, %v1395_v14  ;;  %v2091_v14 = vor.u32 %v2325_v0, %v2088_v5  ;;  %v1899_v16 = vor.u32 %v2277_v8, %v1896_v9  ;;  %v2284_v0 = vld [vmem:[%s2502_s22 + $0x170] sm:$0xf0]  ;;  %v2283_v5 = vld [vmem:[%s2502_s22 + $0x16c] sm:$0xf] }
  0xd8   : > { %v1059_v22 = vpop.f32.mrf.mxu0  ;;  %v1919_v9 = vor.u32 %v2284_v0, %v1918_v63  ;;  %v1942_v0 = vld [vmem:[%s2502_s22 + $0x198] sm:$0xf] }
  0xd9   : > { %1612 = vst.msk [vmem:[%s2618_s10 + $0x14] sm:$0xf] %vm1606_vm3, %v1547_v19  ;;  %2215 = vmatmul.msk.bf16.gmra.mxu2 %vm931_vm2, %v1879_v15  ;;  %v1228_v24 = vpop.f32.mrf.mxu1 }
  0xda   : > { %v1229_v25 = vadd.f32 %v1228_v24, %v1059_v22 }
  0xdb   : > { %1098 = vmatmul.bf16.gmra.mxu0 %v1871_v20  ;;  %1347 = vmatmul.bf16.gmra.mxu3 %v2067_v21 }
  0xdc   : > { %v1397_v26 = vpop.f32.mrf.mxu2  ;;  %1267 = vmatmul.bf16.gmra.mxu1 %v1875_v23 }
  0xdd   : > { %v1398_v27 = vadd.f32 %v1397_v26, %v1229_v25 }
  0xde   : > { %v2671_v28 = vpop.f32.mrf.mxu3 }
  0xdf   : > { %v1548_v30 = vpack.c.bf16 %v1398_v27, %v1398_v27  ;;  %v1914_v27 = vld [vmem:[%s2502_s22 + $0x158] sm:$0xf] }
  0xe0   : > { %v1061_v31 = vpop.f32.mrf.mxu0 }
  0xe1   : > { %1613 = vst.msk [vmem:[%s2618_s10 + $0x18] sm:$0xf] %vm1606_vm3, %v1548_v30  ;;  %v1230_v32 = vpop.f32.mrf.mxu1  ;;  %v2282_v30 = vld [vmem:[%s2502_s22 + $0x160] sm:$0xf0] }
  0xe2   : > { %v1231_v33 = vadd.f32 %v1230_v32, %v1061_v31  ;;  %v2328_v31 = vld [vmem:[%s2502_s22 + $0x2d4] sm:$0xf] }
  0xe3   : > { %v2103_v44 = vor.u32 %v2328_v31, %v2100_v35 }
  0xe4   : > { %v1399_v37 = vpop.f32.mrf.mxu2 }
  0xe5   : > { %v1400_v42 = vadd.f32 %v1399_v37, %v1231_v33  ;;  %v1906_v33 = vld [vmem:[%s2502_s22 + $0x150] sm:$0xf]  ;;  %v1915_v37 = vor.u32 %v2282_v30, %v1914_v27  ;;  %v2288_v27 = vld [vmem:[%s2502_s22 + $0x190] sm:$0xf0]  ;;  %v2046_v30 = vld [vmem:[%s2502_s22 + $0x260] sm:$0xf] }
  0xe6   : > { %v2683_v46 = vpop.f32.mrf.mxu3 }
  0xe7   : > { %v1549_v47 = vpack.c.bf16 %v1400_v42, %v1400_v42 }
  0xe8   : > { %v1064_v50 = vpop.f32.mrf.mxu0 }
  0xe9   : > { %1614 = vst.msk [vmem:[%s2618_s10 + $0x1c] sm:$0xf] %vm1606_vm3, %v1549_v47  ;;  %2216 = vmatmul.msk.bf16.gmra.mxu2 %vm931_vm2, %v1891_v43  ;;  %v1233_v52 = vpop.f32.mrf.mxu1  ;;  %v1907_v43 = vor.u32 %v2281_v34, %v1906_v33  ;;  %v1911_v47 = vor.u32 %v2280_v38, %v1908_v40  ;;  %v2287_v33 = vld [vmem:[%s2502_s22 + $0x188] sm:$0xf0]  ;;  %v1932_v38 = vld [vmem:[%s2502_s22 + $0x18c] sm:$0xf0] }
  0xea   : > { %v1234_v53 = vadd.f32 %v1233_v52, %v1064_v50  ;;  %v2315_v34 = vld [vmem:[%s2502_s22 + $0x268] sm:$0xf0] }
  0xeb   : > { %1103 = vmatmul.bf16.gmra.mxu0 %v1883_v48  ;;  %1352 = vmatmul.bf16.gmra.mxu3 %v2079_v49 }
  0xec   : > { %v1402_v54 = vpop.f32.mrf.mxu2  ;;  %1272 = vmatmul.bf16.gmra.mxu1 %v1887_v51 }
  0xed   : > { %v1403_v56 = vadd.f32 %v1402_v54, %v1234_v53 }
  0xee   : > { %v2688_v57 = vpop.f32.mrf.mxu3 }
  0xef   : > { %v1550_v58 = vpack.c.bf16 %v1403_v56, %v1403_v56 }
  0xf0   : > { %v1066_v59 = vpop.f32.mrf.mxu0 }
  0xf1   : > { %1615 = vst.msk [vmem:[%s2618_s10 + $0x20] sm:$0xf] %vm1606_vm3, %v1550_v58  ;;  %v1235_v60 = vpop.f32.mrf.mxu1 }
  0xf2   : > { %v1236_v61 = vadd.f32 %v1235_v60, %v1066_v59  ;;  %v1926_v59 = vld [vmem:[%s2502_s22 + $0x170] sm:$0xf]  ;;  %v2285_v60 = vld [vmem:[%s2502_s22 + $0x178] sm:$0xf0] }
  0xf3   : > { %v1927_v4 = vor.u32 %v2285_v60, %v1926_v59  ;;  %v1950_v60 = vld [vmem:[%s2502_s22 + $0x1a0] sm:$0xf] }
  0xf4   : > { %v1404_v2 = vpop.f32.mrf.mxu2 }
  0xf5   : > { %v1405_v6 = vadd.f32 %v1404_v2, %v1236_v61  ;;  %v2331_v61 = vld [vmem:[%s2502_s22 + $0x2ec] sm:$0xf]  ;;  %v2112_v2 = vld [vmem:[%s2502_s22 + $0x2f4] sm:$0xf0] }
  0xf6   : > { %v2700_v10 = vpop.f32.mrf.mxu3 }
  0xf7   : > { %v1551_v11 = vpack.c.bf16 %v1405_v6, %v1405_v6  ;;  %v1920_v6 = vld [vmem:[%s2502_s22 + $0x174] sm:$0xf0] }
  0xf8   : > { %v1069_v15 = vpop.f32.mrf.mxu0 }
  0xf9   : > { %1616 = vst.msk [vmem:[%s2618_s10 + $0x24] sm:$0xf] %vm1606_vm3, %v1551_v11  ;;  %2217 = vmatmul.msk.bf16.gmra.mxu2 %vm931_vm2, %v1903_v7  ;;  %v1238_v17 = vpop.f32.mrf.mxu1  ;;  %v2115_v11 = vor.u32 %v2331_v61, %v2112_v2  ;;  %v2291_v61 = vld [vmem:[%s2502_s22 + $0x1a8] sm:$0xf0]  ;;  %v2290_v2 = vld [vmem:[%s2502_s22 + $0x1a0] sm:$0xf0] }
  0xfa   : > { %v1239_v19 = vadd.f32 %v1238_v17, %v1069_v15 }
  0xfb   : > { %1108 = vmatmul.bf16.gmra.mxu0 %v1895_v12  ;;  %1357 = vmatmul.bf16.gmra.mxu3 %v2091_v14  ;;  %v1923_v14 = vor.u32 %v2283_v5, %v1920_v6  ;;  %v1951_v5 = vor.u32 %v2291_v61, %v1950_v60  ;;  %v2289_v6 = vld [vmem:[%s2502_s22 + $0x19c] sm:$0xf] }
  0xfc   : > { %v1407_v20 = vpop.f32.mrf.mxu2  ;;  %1277 = vmatmul.bf16.gmra.mxu1 %v1899_v16 }
  0xfd   : > { %v1408_v21 = vadd.f32 %v1407_v20, %v1239_v19 }
  0xfe   : > { %v2705_v22 = vpop.f32.mrf.mxu3 }
  0xff   : > { %v1552_v23 = vpack.c.bf16 %v1408_v21, %v1408_v21 }
 0x100   : > { %v1071_v24 = vpop.f32.mrf.mxu0 }
 0x101   : > { %1617 = vst.msk [vmem:[%s2618_s10 + $0x28] sm:$0xf] %vm1606_vm3, %v1552_v23  ;;  %v1240_v25 = vpop.f32.mrf.mxu1 }
 0x102   : > { %v1241_v26 = vadd.f32 %v1240_v25, %v1071_v24 }
 0x104   : > { %v1409_v32 = vpop.f32.mrf.mxu2 }
 0x105   : > { %v1410_v36 = vadd.f32 %v1409_v32, %v1241_v26  ;;  %v1938_v26 = vld [vmem:[%s2502_s22 + $0x188] sm:$0xf]  ;;  %v1930_v32 = vld [vmem:[%s2502_s22 + $0x180] sm:$0xf] }
 0x106   : > { %v2717_v41 = vpop.f32.mrf.mxu3 }
 0x107   : > { %v1553_v42 = vpack.c.bf16 %v1410_v36, %v1410_v36  ;;  %v1939_v36 = vor.u32 %v2288_v27, %v1938_v26 }
 0x108   : > { %v1074_v45 = vpop.f32.mrf.mxu0 }
 0x109   : > { %1618 = vst.msk [vmem:[%s2618_s10 + $0x2c] sm:$0xf] %vm1606_vm3, %v1553_v42  ;;  %2218 = vmatmul.msk.bf16.gmra.mxu2 %vm931_vm2, %v1915_v37  ;;  %v1243_v48 = vpop.f32.mrf.mxu1  ;;  %v2286_v37 = vld [vmem:[%s2502_s22 + $0x184] sm:$0xf] }
 0x10a   : > { %v1244_v49 = vadd.f32 %v1243_v48, %v1074_v45 }
 0x10b   : > { %1113 = vmatmul.bf16.gmra.mxu0 %v1907_v43  ;;  %1362 = vmatmul.bf16.gmra.mxu3 %v2103_v44  ;;  %v1931_v43 = vor.u32 %v2287_v33, %v1930_v32  ;;  %v2047_v44 = vor.u32 %v2315_v34, %v2046_v30  ;;  %v2294_v32 = vld [vmem:[%s2502_s22 + $0x1c0] sm:$0xf0]  ;;  %v2070_v33 = vld [vmem:[%s2502_s22 + $0x290] sm:$0xf] }
 0x10c   : > { %v1412_v50 = vpop.f32.mrf.mxu2  ;;  %1282 = vmatmul.bf16.gmra.mxu1 %v1911_v47  ;;  %v1935_v47 = vor.u32 %v2286_v37, %v1932_v38  ;;  %v2321_v37 = vld [vmem:[%s2502_s22 + $0x298] sm:$0xf0] }
 0x10d   : > { %v1413_v51 = vadd.f32 %v1412_v50, %v1244_v49 }
 0x10e   : > { %v2722_v52 = vpop.f32.mrf.mxu3 }
 0x10f   : > { %v1554_v53 = vpack.c.bf16 %v1413_v51, %v1413_v51 }
 0x110   : > { %v1076_v54 = vpop.f32.mrf.mxu0 }
 0x111   : > { %1619 = vst.msk [vmem:[%s2618_s10 + $0x30] sm:$0xf] %vm1606_vm3, %v1554_v53  ;;  %v1245_v56 = vpop.f32.mrf.mxu1 }
 0x112   : > { %v1246_v58 = vadd.f32 %v1245_v56, %v1076_v54 }
 0x114   : > { %v1414_v62 = vpop.f32.mrf.mxu2 }
 0x115   : > { %v1415_v3 = vadd.f32 %v1414_v62, %v1246_v58  ;;  %v2058_v62 = vld [vmem:[%s2502_s22 + $0x278] sm:$0xf] }
 0x116   : > { %v2734_v7 = vpop.f32.mrf.mxu3 }
 0x117   : > { %v1555_v8 = vpack.c.bf16 %v1415_v3, %v1415_v3  ;;  %v2318_v3 = vld [vmem:[%s2502_s22 + $0x280] sm:$0xf0] }
 0x118   : > { %v1079_v12 = vpop.f32.mrf.mxu0 }
 0x119   : > { %1620 = vst.msk [vmem:[%s2618_s10 + $0x34] sm:$0xf] %vm1606_vm3, %v1555_v8  ;;  %2219 = vmatmul.msk.bf16.gmra.mxu2 %vm931_vm2, %v1927_v4  ;;  %v1248_v15 = vpop.f32.mrf.mxu1  ;;  %v1944_v8 = vld [vmem:[%s2502_s22 + $0x1a4] sm:$0xf0] }
 0x11a   : > { %v1249_v16 = vadd.f32 %v1248_v15, %v1079_v12  ;;  %v1943_v12 = vor.u32 %v2290_v2, %v1942_v0  ;;  %v1974_v2 = vld [vmem:[%s2502_s22 + $0x1d0] sm:$0xf] }
 0x11b   : > { %1118 = vmatmul.bf16.gmra.mxu0 %v1919_v9  ;;  %1367 = vmatmul.bf16.gmra.mxu3 %v2115_v11 }
 0x11c   : > { %v1417_v17 = vpop.f32.mrf.mxu2  ;;  %1287 = vmatmul.bf16.gmra.mxu1 %v1923_v14  ;;  %v2059_v14 = vor.u32 %v2318_v3, %v2058_v62  ;;  %v2297_v3 = vld [vmem:[%s2502_s22 + $0x1d8] sm:$0xf0] }
 0x11d   : > { %v1418_v19 = vadd.f32 %v1417_v17, %v1249_v16  ;;  %v1947_v16 = vor.u32 %v2289_v6, %v1944_v8  ;;  %v1966_v6 = vld [vmem:[%s2502_s22 + $0x1c8] sm:$0xf]  ;;  %v2296_v8 = vld [vmem:[%s2502_s22 + $0x1d0] sm:$0xf0] }
 0x11e   : > { %v2739_v20 = vpop.f32.mrf.mxu3 }
 0x11f   : > { %v1556_v21 = vpack.c.bf16 %v1418_v19, %v1418_v19 }
 0x120   : > { %v1081_v23 = vpop.f32.mrf.mxu0 }
 0x121   : > { %1621 = vst.msk [vmem:[%s2618_s10 + $0x38] sm:$0xf] %vm1606_vm3, %v1556_v21  ;;  %v1250_v24 = vpop.f32.mrf.mxu1 }
 0x122   : > { %v1251_v25 = vadd.f32 %v1250_v24, %v1081_v23 }
 0x124   : > { %v1419_v31 = vpop.f32.mrf.mxu2 }
 0x125   : > { %v1420_v35 = vadd.f32 %v1419_v31, %v1251_v25  ;;  %v1962_v31 = vld [vmem:[%s2502_s22 + $0x1b8] sm:$0xf] }
 0x126   : > { %v2751_v40 = vpop.f32.mrf.mxu3 }
 0x127   : > { %v1557_v42 = vpack.c.bf16 %v1420_v35, %v1420_v35  ;;  %v1954_v35 = vld [vmem:[%s2502_s22 + $0x1b0] sm:$0xf] }
 0x128   : > { %v1084_v45 = vpop.f32.mrf.mxu0 }
 0x129   : > { %1622 = vst.msk [vmem:[%s2618_s10 + $0x3c] sm:$0xf] %vm1606_vm3, %v1557_v42  ;;  %2220 = vmatmul.msk.bf16.gmra.mxu2 %vm931_vm2, %v1939_v36  ;;  %v1253_v48 = vpop.f32.mrf.mxu1  ;;  %v2293_v36 = vld [vmem:[%s2502_s22 + $0x1b8] sm:$0xf0]  ;;  %v1963_v42 = vor.u32 %v2294_v32, %v1962_v31 }
 0x12a   : > { %v1254_v49 = vadd.f32 %v1253_v48, %v1084_v45  ;;  %v1955_v48 = vor.u32 %v2293_v36, %v1954_v35 }
 0x12b   : > { %1123 = vmatmul.bf16.gmra.mxu0 %v1931_v43  ;;  %2229 = vmatmul.msk.bf16.vlgmr.msra.gmra.mxu3 %vm931_vm2, %v2047_v44  ;;  %v2292_v43 = vld [vmem:[%s2502_s22 + $0x1b4] sm:$0xf]  ;;  %v1956_v44 = vld [vmem:[%s2502_s22 + $0x1bc] sm:$0xf0] }
 0x12c   : > { %v1422_v50 = vpop.f32.mrf.mxu2  ;;  %1292 = vmatmul.bf16.gmra.mxu1 %v1935_v47 }
 0x12d   : > { %v1423_v51 = vadd.f32 %v1422_v50, %v1254_v49  ;;  %v2071_v49 = vor.u32 %v2321_v37, %v2070_v33 }
 0x12e   : > { %v2757_v53 = vpop.f32.mrf.mxu3 }
 0x12f   : > { %v1558_v54 = vpack.c.bf16 %v1423_v51, %v1423_v51  ;;  %v1959_v51 = vor.u32 %v2292_v43, %v1956_v44  ;;  %v2094_v43 = vld [vmem:[%s2502_s22 + $0x2c0] sm:$0xf] }
 0x130   : > { %v1086_v56 = vpop.f32.mrf.mxu0 }
 0x131   : > { %1623 = vst.msk [vmem:[%s2618_s10 + $0x40] sm:$0xf] %vm1606_vm3, %v1558_v54  ;;  %v1255_v58 = vpop.f32.mrf.mxu1 }
 0x132   : > { %v1256_v59 = vadd.f32 %v1255_v58, %v1086_v56 }
 0x134   : > { %v1424_v63 = vpop.f32.mrf.mxu2 }
 0x135   : > { %v1425_v4 = vadd.f32 %v1424_v63, %v1256_v59 }
 0x136   : > { %v2769_v9 = vpop.f32.mrf.mxu3 }
 0x137   : > { %v1559_v11 = vpack.c.bf16 %v1425_v4, %v1425_v4  ;;  %v2082_v4 = vld [vmem:[%s2502_s22 + $0x2a8] sm:$0xf] }
 0x138   : > { %v1089_v15 = vpop.f32.mrf.mxu0 }
 0x139   : > { %1624 = vst.msk [vmem:[%s2618_s10 + $0x44] sm:$0xf] %vm1606_vm3, %v1559_v11  ;;  %2221 = vmatmul.msk.bf16.gmra.mxu2 %vm931_vm2, %v1951_v5  ;;  %v1258_v17 = vpop.f32.mrf.mxu1  ;;  %v2324_v11 = vld [vmem:[%s2502_s22 + $0x2b0] sm:$0xf0] }
 0x13a   : > { %v1259_v19 = vadd.f32 %v1258_v17, %v1089_v15  ;;  %v2295_v15 = vld [vmem:[%s2502_s22 + $0x1cc] sm:$0xf] }
 0x13b   : > { %1128 = vmatmul.bf16.gmra.mxu0 %v1943_v12  ;;  %2230 = vmatmul.msk.bf16.gmra.mxu3 %vm931_vm2, %v2059_v14  ;;  %v1975_v14 = vor.u32 %v2297_v3, %v1974_v2 }
 0x13c   : > { %v1427_v21 = vpop.f32.mrf.mxu2  ;;  %1297 = vmatmul.bf16.gmra.mxu1 %v1947_v16  ;;  %v1968_v16 = vld [vmem:[%s2502_s22 + $0x1d4] sm:$0xf0] }
 0x13d   : > { %v1428_v23 = vadd.f32 %v1427_v21, %v1259_v19  ;;  %v1967_v21 = vor.u32 %v2296_v8, %v1966_v6 }
 0x13e   : > { %v2775_v24 = vpop.f32.mrf.mxu3 }
 0x13f   : > { %v1560_v25 = vpack.c.bf16 %v1428_v23, %v1428_v23  ;;  %v2083_v23 = vor.u32 %v2324_v11, %v2082_v4 }
 0x140   : > { %v1091_v26 = vpop.f32.mrf.mxu0 }
 0x141   : > { %1625 = vst.msk [vmem:[%s2618_s10 + $0x48] sm:$0xf] %vm1606_vm3, %v1560_v25  ;;  %v1260_v27 = vpop.f32.mrf.mxu1 }
 0x142   : > { %v1261_v30 = vadd.f32 %v1260_v27, %v1091_v26  ;;  %v1971_v26 = vor.u32 %v2295_v15, %v1968_v16  ;;  %v1998_v15 = vld [vmem:[%s2502_s22 + $0x200] sm:$0xf]  ;;  %v2303_v16 = vld [vmem:[%s2502_s22 + $0x208] sm:$0xf0] }
 0x144   : > { %v1429_v34 = vpop.f32.mrf.mxu2 }
 0x145   : > { %v1430_v38 = vadd.f32 %v1429_v34, %v1261_v30 }
 0x146   : > { %v2787_v45 = vpop.f32.mrf.mxu3 }
 0x147   : > { %v1561_v47 = vpack.c.bf16 %v1430_v38, %v1430_v38  ;;  %v1986_v38 = vld [vmem:[%s2502_s22 + $0x1e8] sm:$0xf] }
 0x148   : > { %v1094_v50 = vpop.f32.mrf.mxu0 }
 0x149   : > { %1626 = vst.msk [vmem:[%s2618_s10 + $0x4c] sm:$0xf] %vm1606_vm3, %v1561_v47  ;;  %2222 = vmatmul.msk.bf16.gmra.mxu2 %vm931_vm2, %v1963_v42  ;;  %v1263_v54 = vpop.f32.mrf.mxu1  ;;  %v2300_v42 = vld [vmem:[%s2502_s22 + $0x1f0] sm:$0xf0]  ;;  %v1978_v47 = vld [vmem:[%s2502_s22 + $0x1e0] sm:$0xf] }
 0x14a   : > { %v1264_v56 = vadd.f32 %v1263_v54, %v1094_v50  ;;  %v2298_v54 = vld [vmem:[%s2502_s22 + $0x1e4] sm:$0xf] }
 0x14b   : > { %1133 = vmatmul.bf16.gmra.mxu0 %v1955_v48  ;;  %2231 = vmatmul.msk.bf16.gmra.mxu3 %vm931_vm2, %v2071_v49  ;;  %v2299_v48 = vld [vmem:[%s2502_s22 + $0x1e8] sm:$0xf0] }
 0x14c   : > { %v1432_v58 = vpop.f32.mrf.mxu2  ;;  %1302 = vmatmul.bf16.gmra.mxu1 %v1959_v51  ;;  %v2327_v49 = vld [vmem:[%s2502_s22 + $0x2c8] sm:$0xf0]  ;;  %v1987_v51 = vor.u32 %v2300_v42, %v1986_v38 }
 0x14d   : > { %v1433_v59 = vadd.f32 %v1432_v58, %v1264_v56  ;;  %v1980_v56 = vld [vmem:[%s2502_s22 + $0x1ec] sm:$0xf0] }
 0x14e   : > { %v2793_v60 = vpop.f32.mrf.mxu3 }
 0x14f   : > { %v1562_v61 = vpack.c.bf16 %v1433_v59, %v1433_v59 }
 0x150   : > { %v1096_v62 = vpop.f32.mrf.mxu0 }
 0x151   : > { %1627 = vst.msk [vmem:[%s2618_s10 + $0x50] sm:$0xf] %vm1606_vm3, %v1562_v61  ;;  %v1265_v63 = vpop.f32.mrf.mxu1  ;;  %v1979_v61 = vor.u32 %v2299_v48, %v1978_v47 }
 0x152   : > { %v1266_v0 = vadd.f32 %v1265_v63, %v1096_v62  ;;  %v2095_v62 = vor.u32 %v2327_v49, %v2094_v43 }
 0x154   : > { %v1434_v5 = vpop.f32.mrf.mxu2 }
 0x155   : > { %v1435_v12 = vadd.f32 %v1434_v5, %v1266_v0  ;;  %v1983_v0 = vor.u32 %v2298_v54, %v1980_v56 }
 0x156   : > { %v2805_v17 = vpop.f32.mrf.mxu3 }
 0x157   : > { %v1563_v19 = vpack.c.bf16 %v1435_v12, %v1435_v12 }
 0x158   : > { %v1099_v25 = vpop.f32.mrf.mxu0 }
 0x159   : > { %1628 = vst.msk [vmem:[%s2618_s10 + $0x54] sm:$0xf] %vm1606_vm3, %v1563_v19  ;;  %2223 = vmatmul.msk.bf16.gmra.mxu2 %vm931_vm2, %v1975_v14  ;;  %v1268_v27 = vpop.f32.mrf.mxu1  ;;  %v2106_v19 = vld [vmem:[%s2502_s22 + $0x2d8] sm:$0xf] }
 0x15a   : > { %v1269_v30 = vadd.f32 %v1268_v27, %v1099_v25  ;;  %v2302_v25 = vld [vmem:[%s2502_s22 + $0x200] sm:$0xf0] }
 0x15b   : > { %1138 = vmatmul.bf16.gmra.mxu0 %v1967_v21  ;;  %2232 = vmatmul.msk.bf16.gmra.mxu3 %vm931_vm2, %v2083_v23  ;;  %v1990_v23 = vld [vmem:[%s2502_s22 + $0x1f8] sm:$0xf] }
 0x15c   : > { %v1437_v31 = vpop.f32.mrf.mxu2  ;;  %1307 = vmatmul.bf16.gmra.mxu1 %v1971_v26  ;;  %v2330_v26 = vld [vmem:[%s2502_s22 + $0x2e0] sm:$0xf0] }
 0x15d   : > { %v1438_v32 = vadd.f32 %v1437_v31, %v1269_v30  ;;  %v1999_v30 = vor.u32 %v2303_v16, %v1998_v15  ;;  %v2301_v31 = vld [vmem:[%s2502_s22 + $0x1fc] sm:$0xf] }
 0x15e   : > { %v2811_v33 = vpop.f32.mrf.mxu3 }
 0x15f   : > { %v1564_v34 = vpack.c.bf16 %v1438_v32, %v1438_v32  ;;  %v1992_v32 = vld [vmem:[%s2502_s22 + $0x204] sm:$0xf0] }
 0x160   : > { %v1101_v35 = vpop.f32.mrf.mxu0  ;;  %v1995_v42 = vor.u32 %v2301_v31, %v1992_v32 }
 0x161   : > { %1629 = vst.msk [vmem:[%s2618_s10 + $0x58] sm:$0xf] %vm1606_vm3, %v1564_v34  ;;  %v1270_v36 = vpop.f32.mrf.mxu1 }
 0x162   : > { %v1271_v37 = vadd.f32 %v1270_v36, %v1101_v35  ;;  %v1991_v36 = vor.u32 %v2302_v25, %v1990_v23 }
 0x164   : > { %v1439_v44 = vpop.f32.mrf.mxu2 }
 0x165   : > { %v1440_v50 = vadd.f32 %v1439_v44, %v1271_v37  ;;  %v2107_v37 = vor.u32 %v2330_v26, %v2106_v19 }
 0x166   : > { %v2823_v58 = vpop.f32.mrf.mxu3 }
 0x167   : > { %v1565_v59 = vpack.c.bf16 %v1440_v50, %v1440_v50 }
 0x168   : > { %v1104_v63 = vpop.f32.mrf.mxu0 }
 0x169   : > { %1630 = vst.msk [vmem:[%s2618_s10 + $0x5c] sm:$0xf] %vm1606_vm3, %v1565_v59  ;;  %2224 = vmatmul.msk.bf16.gmra.mxu2 %vm931_vm2, %v1987_v51  ;;  %v1273_v2 = vpop.f32.mrf.mxu1  ;;  %v2010_v59 = vld [vmem:[%s2502_s22 + $0x218] sm:$0xf] }
 0x16a   : > { %v1274_v3 = vadd.f32 %v1273_v2, %v1104_v63  ;;  %v2305_v2 = vld [vmem:[%s2502_s22 + $0x218] sm:$0xf0] }
 0x16b   : > { %1143 = vmatmul.bf16.gmra.mxu0 %v1979_v61  ;;  %2233 = vmatmul.msk.bf16.gmra.mxu3 %vm931_vm2, %v2095_v62  ;;  %v2306_v61 = vld [vmem:[%s2502_s22 + $0x220] sm:$0xf0]  ;;  %v2118_v62 = vld [vmem:[%s2502_s22 + $0x2f0] sm:$0xf] }
 0x16c   : > { %v1442_v4 = vpop.f32.mrf.mxu2  ;;  %1312 = vmatmul.bf16.gmra.mxu1 %v1983_v0  ;;  %v2002_v0 = vld [vmem:[%s2502_s22 + $0x210] sm:$0xf] }
 0x16d   : > { %v1443_v5 = vadd.f32 %v1442_v4, %v1274_v3  ;;  %v2333_v3 = vld [vmem:[%s2502_s22 + $0x2f8] sm:$0xf0]  ;;  %v2003_v15 = vor.u32 %v2305_v2, %v2002_v0 }
 0x16e   : > { %v2829_v6 = vpop.f32.mrf.mxu3  ;;  %v2119_v16 = vor.u32 %v2333_v3, %v2118_v62 }
 0x16f   : > { %v1566_v8 = vpack.c.bf16 %v1443_v5, %v1443_v5  ;;  %v2011_v5 = vor.u32 %v2306_v61, %v2010_v59 }
 0x170   : > { %v1106_v11 = vpop.f32.mrf.mxu0 }
 0x171   : > { %1631 = vst.msk [vmem:[%s2618_s10 + $0x60] sm:$0xf] %vm1606_vm3, %v1566_v8  ;;  %v1275_v12 = vpop.f32.mrf.mxu1  ;;  %v2304_v8 = vld [vmem:[%s2502_s22 + $0x214] sm:$0xf] }
 0x172   : > { %v1276_v14 = vadd.f32 %v1275_v12, %v1106_v11  ;;  %v2004_v11 = vld [vmem:[%s2502_s22 + $0x21c] sm:$0xf0] }
 0x174   : > { %v1444_v21 = vpop.f32.mrf.mxu2 }
 0x175   : > { %v1445_v27 = vadd.f32 %v1444_v21, %v1276_v14  ;;  %v2007_v21 = vor.u32 %v2304_v8, %v2004_v11 }
 0x176   : > { %v2841_v34 = vpop.f32.mrf.mxu3 }
 0x177   : > { %v1567_v35 = vpack.c.bf16 %v1445_v27, %v1445_v27 }
 0x178   : > { %v1109_v38 = vpop.f32.mrf.mxu0 }
 0x179   : > { %1632 = vst.msk [vmem:[%s2618_s10 + $0x64] sm:$0xf] %vm1606_vm3, %v1567_v35  ;;  %2225 = vmatmul.msk.bf16.gmra.mxu2 %vm931_vm2, %v1999_v30  ;;  %v1278_v43 = vpop.f32.mrf.mxu1 }
 0x17a   : > { %v1279_v44 = vadd.f32 %v1278_v43, %v1109_v38  ;;  %v2309_v38 = vld [vmem:[%s2502_s22 + $0x238] sm:$0xf0]  ;;  %v2014_v43 = vld [vmem:[%s2502_s22 + $0x228] sm:$0xf] }
 0x17b   : > { %1148 = vmatmul.bf16.gmra.mxu0 %v1991_v36  ;;  %2234 = vmatmul.msk.bf16.gmra.mxu3 %vm931_vm2, %v2107_v37  ;;  %v2022_v37 = vld [vmem:[%s2502_s22 + $0x230] sm:$0xf] }
 0x17c   : > { %v1447_v47 = vpop.f32.mrf.mxu2  ;;  %1317 = vmatmul.bf16.gmra.mxu1 %v1995_v42 }
 0x17d   : > { %v1448_v48 = vadd.f32 %v1447_v47, %v1279_v44  ;;  %v2308_v44 = vld [vmem:[%s2502_s22 + $0x230] sm:$0xf0] }
 0x17e   : > { %v2847_v49 = vpop.f32.mrf.mxu3  ;;  %v2015_v59 = vor.u32 %v2308_v44, %v2014_v43 }
 0x17f   : > { %v1568_v50 = vpack.c.bf16 %v1448_v48, %v1448_v48  ;;  %v2023_v48 = vor.u32 %v2309_v38, %v2022_v37 }
 0x180   : > { %v1111_v51 = vpop.f32.mrf.mxu0 }
 0x181   : > { %1633 = vst.msk [vmem:[%s2618_s10 + $0x68] sm:$0xf] %vm1606_vm3, %v1568_v50  ;;  %v1280_v54 = vpop.f32.mrf.mxu1  ;;  %v2307_v50 = vld [vmem:[%s2502_s22 + $0x22c] sm:$0xf] }
 0x182   : > { %v1281_v56 = vadd.f32 %v1280_v54, %v1111_v51  ;;  %v2016_v51 = vld [vmem:[%s2502_s22 + $0x234] sm:$0xf0] }
 0x183   : > { %v2019_v62 = vor.u32 %v2307_v50, %v2016_v51 }
 0x184   : > { %v1449_v63 = vpop.f32.mrf.mxu2 }
 0x185   : > { %v1450_v4 = vadd.f32 %v1449_v63, %v1281_v56 }
 0x186   : > { %v2859_v12 = vpop.f32.mrf.mxu3 }
 0x187   : > { %v1569_v14 = vpack.c.bf16 %v1450_v4, %v1450_v4 }
 0x188   : > { %v1114_v19 = vpop.f32.mrf.mxu0 }
 0x189   : > { %1634 = vst.msk [vmem:[%s2618_s10 + $0x6c] sm:$0xf] %vm1606_vm3, %v1569_v14  ;;  %2226 = vmatmul.msk.bf16.gmra.mxu2 %vm931_vm2, %v2011_v5  ;;  %v1283_v23 = vpop.f32.mrf.mxu1 }
 0x18a   : > { %v1284_v25 = vadd.f32 %v1283_v23, %v1114_v19 }
 0x18b   : > { %1153 = vmatmul.bf16.gmra.mxu0 %v2003_v15  ;;  %2235 = vmatmul.msk.bf16.gmra.mxu3 %vm931_vm2, %v2119_v16  ;;  %v2034_v15 = vld [vmem:[%s2502_s22 + $0x248] sm:$0xf]  ;;  %v2312_v16 = vld [vmem:[%s2502_s22 + $0x250] sm:$0xf0] }
 0x18c   : > { %v1452_v26 = vpop.f32.mrf.mxu2  ;;  %1322 = vmatmul.bf16.gmra.mxu1 %v2007_v21  ;;  %v2035_v23 = vor.u32 %v2312_v16, %v2034_v15 }
 0x18d   : > { %v1453_v27 = vadd.f32 %v1452_v26, %v1284_v25 }
 0x18e   : > { %v2865_v30 = vpop.f32.mrf.mxu3 }
 0x18f   : > { %v1570_v31 = vpack.c.bf16 %v1453_v27, %v1453_v27 }
 0x190   : > { %v1116_v32 = vpop.f32.mrf.mxu0 }
 0x191   : > { %1635 = vst.msk [vmem:[%s2618_s10 + $0x70] sm:$0xf] %vm1606_vm3, %v1570_v31  ;;  %v1285_v35 = vpop.f32.mrf.mxu1 }
 0x192   : > { %v1286_v36 = vadd.f32 %v1285_v35, %v1116_v32 }
 0x194   : > { %v1454_v42 = vpop.f32.mrf.mxu2 }
 0x195   : > { %v1455_v47 = vadd.f32 %v1454_v42, %v1286_v36  ;;  %v1339_v36 = vadd.f32 %v2775_v24, %v2637_v39 }
 0x196   : > { %v2875_v54 = vpop.f32.mrf.mxu3 }
 0x197   : > { %v1571_v56 = vpack.c.bf16 %v1455_v47, %v1455_v47 }
 0x198   : > { %v1119_v61 = vpop.f32.mrf.mxu0 }
 0x199   : > { %1636 = vst.msk [vmem:[%s2618_s10 + $0x74] sm:$0xf] %vm1606_vm3, %v1571_v56  ;;  %2227 = vmatmul.msk.bf16.gmra.mxu2 %vm931_vm2, %v2023_v48  ;;  %v1288_v63 = vpop.f32.mrf.mxu1  ;;  %v1341_v56 = vadd.f32 %v2787_v45, %v2649_v55 }
 0x19a   : > { %v1289_v0 = vadd.f32 %v1288_v63, %v1119_v61 }
 0x19b   : > { %1158 = vmatmul.bf16.gmra.mxu0 %v2015_v59 }
 0x19c   : > { %v1457_v2 = vpop.f32.mrf.mxu2  ;;  %1327 = vmatmul.bf16.gmra.mxu1 %v2019_v62 }
 0x19d   : > { %v1458_v3 = vadd.f32 %v1457_v2, %v1289_v0 }
 0x19e   : > { %v2880_v4 = vpop.f32.mrf.mxu3 }
 0x19f   : > { %v1572_v5 = vpack.c.bf16 %v1458_v3, %v1458_v3 }
 0x1a0   : > { %v1121_v8 = vpop.f32.mrf.mxu0 }
 0x1a1   : > { %1637 = vst.msk [vmem:[%s2618_s10 + $0x78] sm:$0xf] %vm1606_vm3, %v1572_v5  ;;  %v1290_v11 = vpop.f32.mrf.mxu1  ;;  %v1344_v5 = vadd.f32 %v2793_v60, %v2654_v1 }
 0x1a2   : > { %v1291_v14 = vadd.f32 %v1290_v11, %v1121_v8 }
 0x1a4   : > { %v1459_v19 = vpop.f32.mrf.mxu2 }
 0x1a5   : > { %v1460_v21 = vadd.f32 %v1459_v19, %v1291_v14 }
 0x1a6   : > { %v2886_v25 = vpop.f32.mrf.mxu3 }
 0x1a7   : > { %v1573_v26 = vpack.c.bf16 %v1460_v21, %v1460_v21 }
 0x1a8   : > { %v1124_v27 = vpop.f32.mrf.mxu0 }
 0x1a9   : > { %1638 = vst.msk [vmem:[%s2618_s10 + $0x7c] sm:$0xf] %vm1606_vm3, %v1573_v26  ;;  %2228 = vmatmul.msk.bf16.gmra.mxu2 %vm931_vm2, %v2035_v23  ;;  %v1293_v31 = vpop.f32.mrf.mxu1  ;;  %v1346_v23 = vadd.f32 %v2805_v17, %v2666_v18 }
 0x1aa   : > { %v1294_v32 = vadd.f32 %v1293_v31, %v1124_v27 }
 0x1ac   : > { %v1462_v35 = vpop.f32.mrf.mxu2 }
 0x1ad   : > { %v1463_v37 = vadd.f32 %v1462_v35, %v1294_v32 }
 0x1ae   : > { %v1507_v38 = vpop.f32.mrf.mxu3 }
 0x1af   : > { %v1574_v42 = vpack.c.bf16 %v1463_v37, %v1463_v37  ;;  %v1508_v43 = vadd.f32 %v1507_v38, %v1339_v36  ;;  %v1349_v38 = vadd.f32 %v2811_v33, %v2671_v28 }
 0x1b0   : > { %v1126_v44 = vpop.f32.mrf.mxu0 }
 0x1b1   : > { %1639 = vst.msk [vmem:[%s2618_s10 + $0x80] sm:$0xf] %vm1606_vm3, %v1574_v42  ;;  %v1592_v47 = vpack.c.bf16 %v1508_v43, %v1508_v43  ;;  %v1295_v48 = vpop.f32.mrf.mxu1 }
 0x1b2   : > { %v1296_v50 = vadd.f32 %v1295_v48, %v1126_v44 }
 0x1b3   : > { %1657 = vst.msk [vmem:[%s2618_s10 + $0xc8] sm:$0xf] %vm1606_vm3, %v1592_v47 }
 0x1b4   : > { %v1464_v51 = vpop.f32.mrf.mxu2 }
 0x1b5   : > { %v1465_v59 = vadd.f32 %v1464_v51, %v1296_v50 }
 0x1b6   : > { %v1509_v39 = vpop.f32.mrf.mxu3 }
 0x1b7   : > { %v1575_v24 = vpack.c.bf16 %v1465_v59, %v1465_v59  ;;  %v1510_v61 = vadd.f32 %v1509_v39, %v1341_v56  ;;  %v1351_v56 = vadd.f32 %v2823_v58, %v2683_v46 }
 0x1b8   : > { %v1129_v62 = vpop.f32.mrf.mxu0 }
 0x1b9   : > { %1640 = vst.msk [vmem:[%s2618_s10 + $0x84] sm:$0xf] %vm1606_vm3, %v1575_v24  ;;  %v1593_v63 = vpack.c.bf16 %v1510_v61, %v1510_v61  ;;  %v1298_v0 = vpop.f32.mrf.mxu1 }
 0x1ba   : > { %v1299_v2 = vadd.f32 %v1298_v0, %v1129_v62 }
 0x1bb   : > { %1658 = vst.msk [vmem:[%s2618_s10 + $0xcc] sm:$0xf] %vm1606_vm3, %v1593_v63 }
 0x1bc   : > { %v1467_v3 = vpop.f32.mrf.mxu2 }
 0x1bd   : > { %v1468_v8 = vadd.f32 %v1467_v3, %v1299_v2  ;;  %v1354_v2 = vadd.f32 %v2829_v6, %v2688_v57 }
 0x1be   : > { %v1512_v55 = vpop.f32.mrf.mxu3 }
 0x1bf   : > { %v1576_v45 = vpack.c.bf16 %v1468_v8, %v1468_v8  ;;  %v1513_v11 = vadd.f32 %v1512_v55, %v1344_v5 }
 0x1c0   : > { %v1131_v14 = vpop.f32.mrf.mxu0 }
 0x1c1   : > { %1641 = vst.msk [vmem:[%s2618_s10 + $0x88] sm:$0xf] %vm1606_vm3, %v1576_v45  ;;  %v1594_v15 = vpack.c.bf16 %v1513_v11, %v1513_v11  ;;  %v1300_v16 = vpop.f32.mrf.mxu1 }
 0x1c2   : > { %v1301_v19 = vadd.f32 %v1300_v16, %v1131_v14 }
 0x1c3   : > { %1659 = vst.msk [vmem:[%s2618_s10 + $0xd0] sm:$0xf] %vm1606_vm3, %v1594_v15  ;;  %v1356_v15 = vadd.f32 %v2841_v34, %v2700_v10 }
 0x1c4   : > { %v1469_v21 = vpop.f32.mrf.mxu2 }
 0x1c5   : > { %v1470_v26 = vadd.f32 %v1469_v21, %v1301_v19 }
 0x1c6   : > { %v1514_v1 = vpop.f32.mrf.mxu3 }
 0x1c7   : > { %v1577_v60 = vpack.c.bf16 %v1470_v26, %v1470_v26  ;;  %v1515_v27 = vadd.f32 %v1514_v1, %v1346_v23 }
 0x1c8   : > { %v1134_v31 = vpop.f32.mrf.mxu0 }
 0x1c9   : > { %1642 = vst.msk [vmem:[%s2618_s10 + $0x8c] sm:$0xf] %vm1606_vm3, %v1577_v60  ;;  %v1595_v32 = vpack.c.bf16 %v1515_v27, %v1515_v27  ;;  %v1303_v35 = vpop.f32.mrf.mxu1  ;;  %v1359_v27 = vadd.f32 %v2847_v49, %v2705_v22 }
 0x1ca   : > { %v1304_v36 = vadd.f32 %v1303_v35, %v1134_v31 }
 0x1cb   : > { %1660 = vst.msk [vmem:[%s2618_s10 + $0xd4] sm:$0xf] %vm1606_vm3, %v1595_v32 }
 0x1cc   : > { %v1472_v37 = vpop.f32.mrf.mxu2 }
 0x1cd   : > { %v1473_v42 = vadd.f32 %v1472_v37, %v1304_v36 }
 0x1ce   : > { %v1517_v18 = vpop.f32.mrf.mxu3 }
 0x1cf   : > { %v1578_v17 = vpack.c.bf16 %v1473_v42, %v1473_v42  ;;  %v1518_v43 = vadd.f32 %v1517_v18, %v1349_v38  ;;  %v1361_v18 = vadd.f32 %v2859_v12, %v2717_v41 }
 0x1d0   : > { %v1136_v44 = vpop.f32.mrf.mxu0 }
 0x1d1   : > { %1643 = vst.msk [vmem:[%s2618_s10 + $0x90] sm:$0xf] %vm1606_vm3, %v1578_v17  ;;  %v1596_v47 = vpack.c.bf16 %v1518_v43, %v1518_v43  ;;  %v1305_v48 = vpop.f32.mrf.mxu1 }
 0x1d2   : > { %v1306_v50 = vadd.f32 %v1305_v48, %v1136_v44 }
 0x1d3   : > { %1661 = vst.msk [vmem:[%s2618_s10 + $0xd8] sm:$0xf] %vm1606_vm3, %v1596_v47 }
 0x1d4   : > { %v1474_v51 = vpop.f32.mrf.mxu2 }
 0x1d5   : > { %v1475_v59 = vadd.f32 %v1474_v51, %v1306_v50 }
 0x1d6   : > { %v1519_v28 = vpop.f32.mrf.mxu3 }
 0x1d7   : > { %v1579_v33 = vpack.c.bf16 %v1475_v59, %v1475_v59  ;;  %v1520_v39 = vadd.f32 %v1519_v28, %v1351_v56  ;;  %v1364_v56 = vadd.f32 %v2865_v30, %v2722_v52 }
 0x1d8   : > { %v1139_v24 = vpop.f32.mrf.mxu0 }
 0x1d9   : > { %1644 = vst.msk [vmem:[%s2618_s10 + $0x94] sm:$0xf] %vm1606_vm3, %v1579_v33  ;;  %v1597_v61 = vpack.c.bf16 %v1520_v39, %v1520_v39  ;;  %v1308_v62 = vpop.f32.mrf.mxu1 }
 0x1da   : > { %v1309_v63 = vadd.f32 %v1308_v62, %v1139_v24 }
 0x1db   : > { %1662 = vst.msk [vmem:[%s2618_s10 + $0xdc] sm:$0xf] %vm1606_vm3, %v1597_v61 }
 0x1dc   : > { %v1477_v0 = vpop.f32.mrf.mxu2 }
 0x1dd   : > { %v1478_v3 = vadd.f32 %v1477_v0, %v1309_v63  ;;  %v1366_v63 = vadd.f32 %v2875_v54, %v2734_v7 }
 0x1de   : > { %v1522_v46 = vpop.f32.mrf.mxu3 }
 0x1df   : > { %v1580_v58 = vpack.c.bf16 %v1478_v3, %v1478_v3  ;;  %v1523_v5 = vadd.f32 %v1522_v46, %v1354_v2 }
 0x1e0   : > { %v1141_v8 = vpop.f32.mrf.mxu0 }
 0x1e1   : > { %1645 = vst.msk [vmem:[%s2618_s10 + $0x98] sm:$0xf] %vm1606_vm3, %v1580_v58  ;;  %v1598_v55 = vpack.c.bf16 %v1523_v5, %v1523_v5  ;;  %v1310_v45 = vpop.f32.mrf.mxu1 }
 0x1e2   : > { %v1311_v11 = vadd.f32 %v1310_v45, %v1141_v8 }
 0x1e3   : > { %1663 = vst.msk [vmem:[%s2618_s10 + $0xe0] sm:$0xf] %vm1606_vm3, %v1598_v55  ;;  %v1369_v55 = vadd.f32 %v2880_v4, %v2739_v20 }
 0x1e4   : > { %v1479_v14 = vpop.f32.mrf.mxu2 }
 0x1e5   : > { %v1480_v16 = vadd.f32 %v1479_v14, %v1311_v11 }
 0x1e6   : > { %v1524_v57 = vpop.f32.mrf.mxu3 }
 0x1e7   : > { %v1581_v6 = vpack.c.bf16 %v1480_v16, %v1480_v16  ;;  %v1525_v19 = vadd.f32 %v1524_v57, %v1356_v15 }
 0x1e8   : > { %v1144_v21 = vpop.f32.mrf.mxu0 }
 0x1e9   : > { %1646 = vst.msk [vmem:[%s2618_s10 + $0x9c] sm:$0xf] %vm1606_vm3, %v1581_v6  ;;  %v1599_v23 = vpack.c.bf16 %v1525_v19, %v1525_v19  ;;  %v1313_v26 = vpop.f32.mrf.mxu1  ;;  %v1371_v19 = vadd.f32 %v2886_v25, %v2751_v40 }
 0x1ea   : > { %v1314_v1 = vadd.f32 %v1313_v26, %v1144_v21 }
 0x1eb   : > { %1664 = vst.msk [vmem:[%s2618_s10 + $0xe4] sm:$0xf] %vm1606_vm3, %v1599_v23 }
 0x1ec   : > { %v1482_v60 = vpop.f32.mrf.mxu2 }
 0x1ed   : > { %v1483_v31 = vadd.f32 %v1482_v60, %v1314_v1 }
 0x1ee   : > { %v1527_v10 = vpop.f32.mrf.mxu3 }
 0x1ef   : > { %v1582_v34 = vpack.c.bf16 %v1483_v31, %v1483_v31  ;;  %v1528_v32 = vadd.f32 %v1527_v10, %v1359_v27 }
 0x1f0   : > { %v1146_v35 = vpop.f32.mrf.mxu0 }
 0x1f1   : > { %1647 = vst.msk [vmem:[%s2618_s10 + $0xa0] sm:$0xf] %vm1606_vm3, %v1582_v34  ;;  %v1600_v36 = vpack.c.bf16 %v1528_v32, %v1528_v32  ;;  %v1315_v37 = vpop.f32.mrf.mxu1 }
 0x1f2   : > { %v1316_v38 = vadd.f32 %v1315_v37, %v1146_v35 }
 0x1f3   : > { %1665 = vst.msk [vmem:[%s2618_s10 + $0xe8] sm:$0xf] %vm1606_vm3, %v1600_v36 }
 0x1f4   : > { %v1484_v42 = vpop.f32.mrf.mxu2 }
 0x1f5   : > { %v1485_v17 = vadd.f32 %v1484_v42, %v1316_v38  ;;  %v1334_v38 = vadd.f32 %v2757_v53, %v2620_v13 }
 0x1f6   : > { %v1529_v22 = vpop.f32.mrf.mxu3 }
 0x1f7   : > { %v1583_v49 = vpack.c.bf16 %v1485_v17, %v1485_v17  ;;  %v1530_v43 = vadd.f32 %v1529_v22, %v1361_v18  ;;  %v1336_v22 = vadd.f32 %v2769_v9, %v2632_v29 }
 0x1f8   : > { %v1149_v44 = vpop.f32.mrf.mxu0 }
 0x1f9   : > { %1648 = vst.msk [vmem:[%s2618_s10 + $0xa4] sm:$0xf] %vm1606_vm3, %v1583_v49  ;;  %v1601_v47 = vpack.c.bf16 %v1530_v43, %v1530_v43  ;;  %v1318_v48 = vpop.f32.mrf.mxu1 }
 0x1fa   : > { %v1319_v50 = vadd.f32 %v1318_v48, %v1149_v44 }
 0x1fb   : > { %1666 = vst.msk [vmem:[%s2618_s10 + $0xec] sm:$0xf] %vm1606_vm3, %v1601_v47 }
 0x1fc   : > { %v1487_v51 = vpop.f32.mrf.mxu2 }
 0x1fd   : > { %v1488_v59 = vadd.f32 %v1487_v51, %v1319_v50 }
 0x1fe   : > { %v1532_v41 = vpop.f32.mrf.mxu3 }
 0x1ff   : > { %v1584_v12 = vpack.c.bf16 %v1488_v59, %v1488_v59  ;;  %v1533_v28 = vadd.f32 %v1532_v41, %v1364_v56 }
 0x200   : > { %v1151_v33 = vpop.f32.mrf.mxu0 }
 0x201   : > { %1649 = vst.msk [vmem:[%s2618_s10 + $0xa8] sm:$0xf] %vm1606_vm3, %v1584_v12  ;;  %v1602_v39 = vpack.c.bf16 %v1533_v28, %v1533_v28  ;;  %v1320_v24 = vpop.f32.mrf.mxu1 }
 0x202   : > { %v1321_v61 = vadd.f32 %v1320_v24, %v1151_v33 }
 0x203   : > { %1667 = vst.msk [vmem:[%s2618_s10 + $0xf0] sm:$0xf] %vm1606_vm3, %v1602_v39 }
 0x204   : > { %v1489_v62 = vpop.f32.mrf.mxu2 }
 0x205   : > { %v1490_v0 = vadd.f32 %v1489_v62, %v1321_v61 }
 0x206   : > { %v1534_v52 = vpop.f32.mrf.mxu3 }
 0x207   : > { %v1585_v30 = vpack.c.bf16 %v1490_v0, %v1490_v0  ;;  %v1535_v2 = vadd.f32 %v1534_v52, %v1366_v63 }
 0x208   : > { %v1154_v3 = vpop.f32.mrf.mxu0 }
 0x209   : > { %1650 = vst.msk [vmem:[%s2618_s10 + $0xac] sm:$0xf] %vm1606_vm3, %v1585_v30  ;;  %v1603_v46 = vpack.c.bf16 %v1535_v2, %v1535_v2  ;;  %v1323_v58 = vpop.f32.mrf.mxu1 }
 0x20a   : > { %v1324_v5 = vadd.f32 %v1323_v58, %v1154_v3 }
 0x20b   : > { %1668 = vst.msk [vmem:[%s2618_s10 + $0xf4] sm:$0xf] %vm1606_vm3, %v1603_v46 }
 0x20c   : > { %v1492_v8 = vpop.f32.mrf.mxu2 }
 0x20d   : > { %v1493_v45 = vadd.f32 %v1492_v8, %v1324_v5 }
 0x20e   : > { %v1537_v7 = vpop.f32.mrf.mxu3 }
 0x20f   : > { %v1586_v54 = vpack.c.bf16 %v1493_v45, %v1493_v45  ;;  %v1538_v11 = vadd.f32 %v1537_v7, %v1369_v55 }
 0x210   : > { %v1156_v14 = vpop.f32.mrf.mxu0 }
 0x211   : > { %1651 = vst.msk [vmem:[%s2618_s10 + $0xb0] sm:$0xf] %vm1606_vm3, %v1586_v54  ;;  %v1604_v15 = vpack.c.bf16 %v1538_v11, %v1538_v11  ;;  %v1325_v16 = vpop.f32.mrf.mxu1 }
 0x212   : > { %v1326_v57 = vadd.f32 %v1325_v16, %v1156_v14 }
 0x213   : > { %1669 = vst.msk [vmem:[%s2618_s10 + $0xf8] sm:$0xf] %vm1606_vm3, %v1604_v15 }
 0x214   : > { %v1494_v6 = vpop.f32.mrf.mxu2 }
 0x215   : > { %v1495_v20 = vadd.f32 %v1494_v6, %v1326_v57 }
 0x216   : > { %v1539_v4 = vpop.f32.mrf.mxu3 }
 0x217   : > { %v1587_v21 = vpack.c.bf16 %v1495_v20, %v1495_v20  ;;  %v1540_v23 = vadd.f32 %v1539_v4, %v1371_v19 }
 0x218   : > { %v1159_v26 = vpop.f32.mrf.mxu0 }
 0x219   : > { %1652 = vst.msk [vmem:[%s2618_s10 + $0xb4] sm:$0xf] %vm1606_vm3, %v1587_v21  ;;  %v1605_v1 = vpack.c.bf16 %v1540_v23, %v1540_v23  ;;  %v1328_v60 = vpop.f32.mrf.mxu1 }
 0x21a   : > { %v1329_v27 = vadd.f32 %v1328_v60, %v1159_v26 }
 0x21b   : > { %1670 = vst.msk [vmem:[%s2618_s10 + $0xfc] sm:$0xf] %vm1606_vm3, %v1605_v1 }
 0x21c   : > { %v1497_v31 = vpop.f32.mrf.mxu2 }
 0x21d   : > { %v1498_v10 = vadd.f32 %v1497_v31, %v1329_v27 }
 0x21f   : > { %v1588_v34 = vpack.c.bf16 %v1498_v10, %v1498_v10 }
 0x220   : > { %v1161_v32 = vpop.f32.mrf.mxu0 }
 0x221   : > { %1653 = vst.msk [vmem:[%s2618_s10 + $0xb8] sm:$0xf] %vm1606_vm3, %v1588_v34  ;;  %v1330_v40 = vpop.f32.mrf.mxu1 }
 0x222   : > { %v1331_v25 = vadd.f32 %v1330_v40, %v1161_v32 }
 0x224   : > { %v1499_v35 = vpop.f32.mrf.mxu2 }
 0x225   : > { %v1500_v36 = vadd.f32 %v1499_v35, %v1331_v25 }
 0x227   : > { %v1589_v37 = vpack.c.bf16 %v1500_v36, %v1500_v36 }
 0x229   : > { %1654 = vst.msk [vmem:[%s2618_s10 + $0xbc] sm:$0xf] %vm1606_vm3, %v1589_v37 }
 0x22c   : > { %v1502_v42 = vpop.f32.mrf.mxu2 }
 0x22d   : > { %v1503_v18 = vadd.f32 %v1502_v42, %v1334_v38 }
 0x22f   : > { %v1590_v17 = vpack.c.bf16 %v1503_v18, %v1503_v18 }
 0x231   : > { %1655 = vst.msk [vmem:[%s2618_s10 + $0xc0] sm:$0xf] %vm1606_vm3, %v1590_v17 }
 0x234   : > { %v1504_v49 = vpop.f32.mrf.mxu2 }
 0x235   : > { %v1505_v43 = vadd.f32 %v1504_v49, %v1336_v22 }
 0x237   : > { %v1591_v44 = vpack.c.bf16 %v1505_v43, %v1505_v43 }
 0x239   : > { %1656 = vst.msk [vmem:[%s2618_s10 + $0xc4] sm:$0xf] %vm1606_vm3, %v1591_v44 }
 0x23a PF: > { %s12_s9 = sadd.s32 1, %s2393_s9  }
 0x23b   : > { %p9_p4 = scmp.ge.s32.totalorder %s12_s9, 5  }
 0x23d   :  { %11 = sbr.rel (!%p9_p4) target bundleno = 1 (0x1), region = 58 }

// kernel: _lambda_.23
= control target key start
LH: loop header
LB: loop body
LE: loop exit
PB: predicated region body
PF: predicated region fallthrough
CT: control target
= control target key end

     0   :  { %vm122_vm0 = vcmask 130048   ;;  %vm212_vm1 = vcmask 125952   ;;  %s456_s1 = inlined_call_operand.vmem [shape: bf16[16,16], index: 1, kind: input, shape index: {}]   ;;  %s457_s0 = inlined_call_operand.vmem [shape: bf16[128,16], index: 0, kind: input, shape index: {}]   ;;  %s458_s2 = inlined_call_operand.vmem [shape: f32[1,16], index: 2, kind: input, shape index: {}]   ;;  %s459_s3 = inlined_call_operand.vmem [shape: f32[1,16], index: 3, kind: input, shape index: {}]   ;;  %s460_s4 = inlined_call_operand.vmem [shape: bf16[128,16], index: 4, kind: output, shape index: {}]  }
   0x1   :  { %v245_v0 = vld [vmem:[%s456_s1] sm:$0xff]  ;;  %v279_v6 = vld [vmem:[%s457_s0 + $0x10] sm:$0xff]   ;;  %v278_v25 = vld [vmem:[%s457_s0 + $0x8] sm:$0xff]  }
   0x2   :  { %v247_v1 = vld [vmem:[%s457_s0] sm:$0xff]   ;;  %154 = vmatpush.bf16.msra.mxu0 %v245_v0  ;;  %285 = vmatpush.bf16.msra.mxu1 %v245_v0  ;;  %v283_v8 = vld [vmem:[%s457_s0 + $0x30] sm:$0xff]   ;;  %v256_v11 = vunpack.c.l.bf16 %v279_v6  ;;  %v257_v12 = vunpack.c.h.bf16 %v279_v6  ;;  %v280_v34 = vld [vmem:[%s457_s0 + $0x18] sm:$0xff]   ;;  %v252_v38 = vunpack.c.l.bf16 %v278_v25  ;;  %v253_v45 = vunpack.c.h.bf16 %v278_v25 }
   0x3   :  { %v248_v2 = vunpack.c.l.bf16 %v247_v1  ;;  %v249_v3 = vunpack.c.h.bf16 %v247_v1  ;;  %v324_v4 = vld [vmem:[%s458_s2] ss:$0 sm:$0xff]  ;;  %286 = vmatpush.bf16.msra.mxu2 %v245_v0  ;;  %287 = vmatpush.bf16.msra.mxu3 %v245_v0  ;;  %v272_v15 = vunpack.c.l.bf16 %v283_v8  ;;  %v273_v16 = vunpack.c.h.bf16 %v283_v8  ;;  %v282_v39 = vld [vmem:[%s457_s0 + $0x28] sm:$0xff]   ;;  %v284_v48 = vld [vmem:[%s457_s0 + $0x38] sm:$0xff]  }
   0x4   :  { %v329_v5 = vld [vmem:[%s459_s3] ss:$0 sm:$0xff]  ;;  %v58_v19 = vmul.f32 %v324_v4, %v256_v11  ;;  %v59_v20 = vmul.f32 %v324_v4, %v257_v12  ;;  %v56_v46 = vmul.f32 %v324_v4, %v252_v38  ;;  %v260_v47 = vunpack.c.l.bf16 %v280_v34 }
   0x5   :  { %v281_v7 = vld [vmem:[%s457_s0 + $0x20] sm:$0xff]   ;;  %v54_v9 = vmul.f32 %v324_v4, %v248_v2  ;;  %v55_v10 = vmul.f32 %v324_v4, %v249_v3  ;;  %v66_v23 = vmul.f32 %v324_v4, %v272_v15  ;;  %v67_v24 = vmul.f32 %v324_v4, %v273_v16 }
   0x6   :  { %v264_v13 = vunpack.c.l.bf16 %v281_v7  ;;  %v265_v14 = vunpack.c.h.bf16 %v281_v7  ;;  %v78_v28 = vadd.f32 %v329_v5, %v58_v19  ;;  %v79_v29 = vadd.f32 %v329_v5, %v59_v20 }
   0x7   :  { %v74_v17 = vadd.f32 %v329_v5, %v54_v9  ;;  %v75_v18 = vadd.f32 %v329_v5, %v55_v10  ;;  %v86_v32 = vadd.f32 %v329_v5, %v66_v23  ;;  %v87_v33 = vadd.f32 %v329_v5, %v67_v24 }
   0x8   :  { %v62_v21 = vmul.f32 %v324_v4, %v264_v13  ;;  %v63_v22 = vmul.f32 %v324_v4, %v265_v14  ;;  %v94_v36 = vmax.f32 %v78_v28, 0.0  ;;  %v95_v37 = vmax.f32 %v79_v29, 0.0 }
   0x9   :  { %v90_v26 = vmax.f32 %v74_v17, 0.0  ;;  %v91_v27 = vmax.f32 %v75_v18, 0.0  ;;  %v102_v42 = vmax.f32 %v86_v32, 0.0  ;;  %v103_v43 = vmax.f32 %v87_v33, 0.0 }
   0xa   :  { %v82_v30 = vadd.f32 %v329_v5, %v62_v21  ;;  %v83_v31 = vadd.f32 %v329_v5, %v63_v22  ;;  %v108_v44 = vpack.c.bf16 %v95_v37, %v94_v36  ;;  %v261_v51 = vunpack.c.h.bf16 %v280_v34 }
   0xb   :  { %v106_v35 = vpack.c.bf16 %v91_v27, %v90_v26  ;;  %v112_v50 = vpack.c.bf16 %v103_v43, %v102_v42  ;;  %v268_v52 = vunpack.c.l.bf16 %v282_v39  ;;  %v57_v53 = vmul.f32 %v324_v4, %v253_v45 }
   0xc   :  { %v98_v40 = vmax.f32 %v82_v30, 0.0  ;;  %v99_v41 = vmax.f32 %v83_v31, 0.0  ;;  %239 = vmatmul.msk.bf16.vlgmr.msra.gmra.mxu1 %vm122_vm0, %v108_v44  ;;  %v60_v54 = vmul.f32 %v324_v4, %v260_v47  ;;  %v269_v55 = vunpack.c.h.bf16 %v282_v39 }
   0xd   :  { %237 = vmatmul.msk.bf16.vlgmr.msra.gmra.mxu0 %vm122_vm0, %v106_v35  ;;  %243 = vmatmul.msk.bf16.vlgmr.msra.gmra.mxu3 %vm122_vm0, %v112_v50  ;;  %v61_v56 = vmul.f32 %v324_v4, %v261_v51  ;;  %v64_v57 = vmul.f32 %v324_v4, %v268_v52  ;;  %v276_v58 = vunpack.c.l.bf16 %v284_v48  ;;  %v277_v59 = vunpack.c.h.bf16 %v284_v48 }
   0xe   :  { %v110_v49 = vpack.c.bf16 %v99_v41, %v98_v40  ;;  %v76_v60 = vadd.f32 %v329_v5, %v56_v46  ;;  %v77_v61 = vadd.f32 %v329_v5, %v57_v53  ;;  %v65_v62 = vmul.f32 %v324_v4, %v269_v55 }
   0xf   :  { %v68_v63 = vmul.f32 %v324_v4, %v276_v58  ;;  %v69_v0 = vmul.f32 %v324_v4, %v277_v59  ;;  %v80_v1 = vadd.f32 %v329_v5, %v60_v54  ;;  %v81_v2 = vadd.f32 %v329_v5, %v61_v56 }
  0x10   :  { %241 = vmatmul.msk.bf16.vlgmr.msra.gmra.mxu2 %vm122_vm0, %v110_v49  ;;  %v84_v3 = vadd.f32 %v329_v5, %v64_v57  ;;  %v85_v6 = vadd.f32 %v329_v5, %v65_v62  ;;  %v92_v9 = vmax.f32 %v76_v60, 0.0  ;;  %v93_v10 = vmax.f32 %v77_v61, 0.0 }
  0x11   :  { %v88_v7 = vadd.f32 %v329_v5, %v68_v63  ;;  %v89_v8 = vadd.f32 %v329_v5, %v69_v0  ;;  %v96_v11 = vmax.f32 %v80_v1, 0.0  ;;  %v97_v12 = vmax.f32 %v81_v2, 0.0 }
  0x12   :  { %v100_v13 = vmax.f32 %v84_v3, 0.0  ;;  %v101_v14 = vmax.f32 %v85_v6, 0.0  ;;  %v107_v16 = vpack.c.bf16 %v93_v10, %v92_v9 }
  0x13   :  { %v104_v15 = vmax.f32 %v88_v7, 0.0  ;;  %v105_v4 = vmax.f32 %v89_v8, 0.0  ;;  %v109_v17 = vpack.c.bf16 %v97_v12, %v96_v11 }
  0x14   :  { %v111_v18 = vpack.c.bf16 %v101_v14, %v100_v13 }
  0x15   :  { %v113_v19 = vpack.c.bf16 %v105_v4, %v104_v15 }
  0x1c   :  { %240 = vmatmul.msk.bf16.gmra.mxu1 %vm122_vm0, %v109_v17 }
  0x1d   :  { %238 = vmatmul.msk.bf16.gmra.mxu0 %vm122_vm0, %v107_v16  ;;  %244 = vmatmul.msk.bf16.gmra.mxu3 %vm122_vm0, %v113_v19 }
  0x20   :  { %242 = vmatmul.msk.bf16.gmra.mxu2 %vm122_vm0, %v111_v18 }
  0x89   :  { %v166_v21 = vpop.f32.mrf.mxu1 }
  0x8a   :  { %v156_v5 = vpop.f32.mrf.mxu0  ;;  %v200_v22 = vpack.c.bf16 %v166_v21, %v166_v21 }
  0x8b   :  { %v196_v20 = vpack.c.bf16 %v156_v5, %v156_v5 }
  0x8c   :  { %217 = vst.msk [vmem:[%s460_s4 + $0x10] sm:$0xf] %vm212_vm1, %v200_v22 }
  0x8d   :  { %213 = vst.msk [vmem:[%s460_s4] sm:$0xf] %vm212_vm1, %v196_v20 }
  0x90   :  { %v186_v25 = vpop.f32.mrf.mxu3 }
  0x91   :  { %v208_v28 = vpack.c.bf16 %v186_v25, %v186_v25  ;;  %v168_v29 = vpop.f32.mrf.mxu1 }
  0x92   :  { %v158_v23 = vpop.f32.mrf.mxu0  ;;  %v201_v30 = vpack.c.bf16 %v168_v29, %v168_v29 }
  0x93   :  { %v176_v24 = vpop.f32.mrf.mxu2  ;;  %v197_v26 = vpack.c.bf16 %v158_v23, %v158_v23  ;;  %225 = vst.msk [vmem:[%s460_s4 + $0x30] sm:$0xf] %vm212_vm1, %v208_v28 }
  0x94   :  { %v204_v27 = vpack.c.bf16 %v176_v24, %v176_v24  ;;  %218 = vst.msk [vmem:[%s460_s4 + $0x14] sm:$0xf] %vm212_vm1, %v201_v30 }
  0x95   :  { %214 = vst.msk [vmem:[%s460_s4 + $0x4] sm:$0xf] %vm212_vm1, %v197_v26 }
  0x96   :  { %221 = vst.msk [vmem:[%s460_s4 + $0x20] sm:$0xf] %vm212_vm1, %v204_v27 }
  0x98   :  { %v188_v33 = vpop.f32.mrf.mxu3 }
  0x99   :  { %v209_v36 = vpack.c.bf16 %v188_v33, %v188_v33  ;;  %v171_v37 = vpop.f32.mrf.mxu1 }
  0x9a   :  { %v161_v31 = vpop.f32.mrf.mxu0  ;;  %v202_v38 = vpack.c.bf16 %v171_v37, %v171_v37 }
  0x9b   :  { %v178_v32 = vpop.f32.mrf.mxu2  ;;  %v198_v34 = vpack.c.bf16 %v161_v31, %v161_v31  ;;  %226 = vst.msk [vmem:[%s460_s4 + $0x34] sm:$0xf] %vm212_vm1, %v209_v36 }
  0x9c   :  { %v205_v35 = vpack.c.bf16 %v178_v32, %v178_v32  ;;  %219 = vst.msk [vmem:[%s460_s4 + $0x18] sm:$0xf] %vm212_vm1, %v202_v38 }
  0x9d   :  { %215 = vst.msk [vmem:[%s460_s4 + $0x8] sm:$0xf] %vm212_vm1, %v198_v34 }
  0x9e   :  { %222 = vst.msk [vmem:[%s460_s4 + $0x24] sm:$0xf] %vm212_vm1, %v205_v35 }
  0xa0   :  { %v191_v41 = vpop.f32.mrf.mxu3 }
  0xa1   :  { %v210_v44 = vpack.c.bf16 %v191_v41, %v191_v41  ;;  %v173_v45 = vpop.f32.mrf.mxu1 }
  0xa2   :  { %v163_v39 = vpop.f32.mrf.mxu0  ;;  %v203_v46 = vpack.c.bf16 %v173_v45, %v173_v45 }
  0xa3   :  { %v181_v40 = vpop.f32.mrf.mxu2  ;;  %v199_v42 = vpack.c.bf16 %v163_v39, %v163_v39  ;;  %227 = vst.msk [vmem:[%s460_s4 + $0x38] sm:$0xf] %vm212_vm1, %v210_v44 }
  0xa4   :  { %v206_v43 = vpack.c.bf16 %v181_v40, %v181_v40  ;;  %220 = vst.msk [vmem:[%s460_s4 + $0x1c] sm:$0xf] %vm212_vm1, %v203_v46 }
  0xa5   :  { %216 = vst.msk [vmem:[%s460_s4 + $0xc] sm:$0xf] %vm212_vm1, %v199_v42 }
  0xa6   :  { %223 = vst.msk [vmem:[%s460_s4 + $0x28] sm:$0xf] %vm212_vm1, %v206_v43 }
  0xa8   :  { %v193_v48 = vpop.f32.mrf.mxu3 }
  0xa9   :  { %v211_v50 = vpack.c.bf16 %v193_v48, %v193_v48 }
  0xab   :  { %v183_v47 = vpop.f32.mrf.mxu2  ;;  %228 = vst.msk [vmem:[%s460_s4 + $0x3c] sm:$0xf] %vm212_vm1, %v211_v50 }
  0xac   :  { %v207_v49 = vpack.c.bf16 %v183_v47, %v183_v47 }
  0xae   :  { %224 = vst.msk [vmem:[%s460_s4 + $0x2c] sm:$0xf] %vm212_vm1, %v207_v49 }

// kernel: _lambda_.24
= control target key start
LH: loop header
LB: loop body
LE: loop exit
PB: predicated region body
PF: predicated region fallthrough
CT: control target
= control target key end

     0   :  { %s1430_s18 = smov 0   ;;  %s1432_s19 = smov 0   ;;  %s1815_s0 = inlined_call_operand.vmem [shape: bf16[2,4,36,16], index: 0, kind: input, shape index: {}]   ;;  %s1816_s1 = inlined_call_operand.vmem [shape: bf16[3,9,16,8], index: 1, kind: input, shape index: {}]   ;;  %s1817_s2 = inlined_call_operand.vmem [shape: f32[36,1], index: 2, kind: input, shape index: {}]   ;;  %s1818_s3 = inlined_call_operand.vmem [shape: f32[1,16], index: 3, kind: input, shape index: {}]   ;;  %s1819_s4 = inlined_call_operand.vmem [shape: f32[1,16], index: 4, kind: input, shape index: {}]   ;;  %s1820_s5 = inlined_call_operand.vmem [shape: bf16[2,4,36,8], index: 5, kind: output, shape index: {}]  }
   0x1   :  { %s1434_s20 = smov 0   ;;  %s1436_s21 = smov 0  }
   0x2   :  { %s1438_s22 = smov 0   ;;  %s1440_s23 = smov 0  }
   0x3   :  { %s1442_s24 = smov 0  }
   0x4 LB: > { %s27_s25 = sadd.s32 1, %s1384_s21  ;;  %s30_s26 = sadd.s32 1, %s1388_s22  ;;  %s1396_s24 = sphi %s1442_s24, %s15_s24   ;;  %s1392_s23 = sphi %s1440_s23, %s1832_s23   ;;  %s1388_s22 = sphi %s1438_s22, %s1831_s22   ;;  %s1384_s21 = sphi %s1436_s21, %s1830_s21   ;;  %s1380_s20 = sphi %s1434_s20, %s1829_s20   ;;  %s1376_s19 = sphi %s1432_s19, %s1828_s19   ;;  %s1372_s18 = sphi %s1430_s18, %s1827_s18  }
   0x5   : > { %p28_p0 = scmp.ge.s32.totalorder %s27_s25, 3  ;;  %p1155_p1 = scmp.ge.s32.totalorder %s1396_s24, 1 }
   0x6   : > { %p248_p2 = scmp.lt.s32.totalorder %s1396_s24, 25  ;;  %s34_s27 = sadd.s32 1, %s1392_s23 }
   0x7   : > { %s1834_s25 = smov (%p28_p0, %s27_s25), 0  ;;  %s1836_s26 = smov (!%p28_p0, %s30_s26), %s1388_s22 }
   0x8   : > { %1821 = sst [smem:[#allocation3_spill]] %s1834_s25  ;;  %p249_p3 = pnand %p1155_p1, %p248_p2 }
   0x9   : > { %p32_p4 = scmp.ge.s32.totalorder %s1836_s26, 4  ;;  %s295_s28 = sadd.s32 (!%p249_p3), %s1372_s18, %s1376_s19 }
   0xa   : > { %p301_p6 = scmp.lt.s32.totalorder (!%p249_p3), %s1380_s20, 1  ;;  %s1478_s29 = sadd.s32 (!%p249_p3), 4294967295, %s295_s28 }
   0xb   : > { %s1838_s26 = smov (%p32_p4, %s1836_s26), 0  ;;  %s1840_s27 = smov (!%p32_p4, %s34_s27), %s1392_s23 }
   0xc   : > { %1822 = sst [smem:[#allocation4_spill]] %s1838_s26  ;;  %p36_p5 = scmp.ge.s32.totalorder %s1840_s27, 2 }
   0xd   : > { %252 = sbr.rel (%p249_p3) target bundleno = 425 (0x1a9), region = 40  ;;  %p316_p7 = scmp.lt.s32.totalorder (!%p249_p3), %s1372_s18, 2 }
   0xe   : > { %s1842_s27 = smov (%p36_p5, %s1840_s27), 0  ;;  %p297_p8 = scmp.lt.s32.totalorder (!%p249_p3), %s1478_s29, 3 }
   0xf   : > { %1823 = sst [smem:[#allocation5_spill]] %s1842_s27  ;;  %p1157_p9 = scmp.gt.s32.totalorder (!%p249_p3), %s1478_s29, 0 }
  0x10   : > { %p323_p11 = scmp.lt.s32.totalorder (!%p249_p3), %s1376_s19, 3  ;;  %p1165_p12 = scmp.ne.s32.totalorder (!%p249_p3), %s1372_s18, 0 }
  0x12   : > { %s1844_s20 = smov (!%p301_p6, %s1380_s20), 1  ;;  %s1850_s19 = smov (!%p323_p11, %s1376_s19), 3 }
  0x13   : > { %s298_s30 = scalar_select %p297_p8, %s1478_s29, 3 }
  0x14   : > { %s317_s6 = scalar_select %p316_p7, %s1372_s18, 2 }
  0x15   : > { %s1846_s30 = smov (!%p1157_p9, %s298_s30), 0  ;;  %s1276_s7 = smul.u32 20, %s1844_s20 }
  0x16   : > { %p303_p10 = scmp.lt.s32.totalorder %s1846_s30, 3  ;;  %s1277_s8 = smul.u32 72, %s317_s6 }
  0x17   : > { %s1278_s15 = smul.u32 5, %s1850_s19 }
  0x18   : > { %s1848_s30 = smov (!%p303_p10, %s1846_s30), 3  ;;  %s1489_s11 = scalar_lea.vmem %s1816_s1, %s1277_s8 }
  0x19   : > { %s1275_s12 = smul.u32 5, %s1848_s30  ;;  %s327_s27 = sadd.s32 %s1278_s15, %s1276_s7 }
  0x1a   : > { %s1164_s20 = sshll.u32 %s327_s27, 2  ;;  %334 = sbr.rel (%p1165_p12) target bundleno = 37 (0x25), region = 44 }
  0x1b   : > { %s307_s13 = sadd.s32 %s1276_s7, %s1275_s12  ;;  %s1500_s25 = scalar_lea.vmem %s1820_s5, %s1164_s20 }
  0x1c   : > { %s1162_s14 = sshll.u32 %s307_s13, 2 }
  0x1d   : > { %s1495_s28 = scalar_lea.vmem %s1815_s0, %s1162_s14 }
  0x1f   : > { %vm335_vm0 = vcmask 64512   ;;  %v1398_v0 = vmov 0.0   ;;  %vm340_vm1 = vcmask 60416  }
  0x20   : > { %336 = vst.msk [vmem:[#allocation2] sm:$0xff] %vm335_vm0, %v1398_v0 }
  0x21   : > { %337 = vst.msk [vmem:[#allocation2 + $0x8] sm:$0xff] %vm335_vm0, %v1398_v0 }
  0x22   : > { %338 = vst.msk [vmem:[#allocation2 + $0x10] sm:$0xff] %vm335_vm0, %v1398_v0 }
  0x23   : > { %339 = vst.msk [vmem:[#allocation2 + $0x18] sm:$0xff] %vm335_vm0, %v1398_v0 }
  0x24   : > { %341 = vst.msk [vmem:[#allocation2 + $0x20] sm:$0xf] %vm340_vm1, %v1398_v0 }
  0x25 PF: > { %p344_p13 = scmp.ge.s32.totalorder %s1478_s29, 0  ;;  %p345_p0 = scmp.le.s32.totalorder %s1478_s29, 3 }
  0x27   : > { %p346_p1 = pnand %p345_p0, %p344_p13 }
  0x29   : > { %349 = sbr.rel (%p346_p1) target bundleno = 410 (0x19a), region = 48 }
  0x2e   : > { %v387_v1 = vld [vmem:[%s1817_s2 + $0x20] sm:$0xf]  ;;  %v386_v2 = vld [vmem:[%s1817_s2 + $0x18] sm:$0xff]  ;;  %v1399_v3 = vmov 0   ;;  %v384_v4 = vld [vmem:[%s1817_s2 + $0x8] sm:$0xff]  ;;  %vm434_vm2 = vcmask 130048  }
  0x2f   : > { %1338 = vset.pattern.permute.xlu1 %v1399_v3  ;;  %1337 = vset.pattern.permute.xlu0 %v1399_v3  ;;  %v385_v5 = vld [vmem:[%s1817_s2 + $0x10] sm:$0xff]  ;;  %v383_v6 = vld [vmem:[%s1817_s2] sm:$0xff]  ;;  %v1258_v8 = vld [vmem:[%s1489_s11 + $0x18] sm:$0xff]  ;;  %vm467_vm3 = vcmask 1047556   ;;  %vm484_vm4 = vcmask 1042432   ;;  %vm554_vm5 = vcmask 1041408  }
  0x30   : > { %410 = vperm.xlu0 %1337, %v387_v1   ;;  %405 = vperm.xlu1 %1338, %v386_v2   ;;  %v1255_v7 = vld [vmem:[%s1489_s11] sm:$0xff]  ;;  %v1257_v9 = vld [vmem:[%s1489_s11 + $0x10] sm:$0xff]  ;;  %v1256_v10 = vld [vmem:[%s1489_s11 + $0x8] sm:$0xff]  ;;  %vm624_vm6 = vcmask 1040384   ;;  %vm693_vm7 = vcmask 1044480   ;;  %vm789_vm8 = vcmask 1046528  }
  0x31   : > { %1339 = vset.pattern.permute.xlu2 %v1399_v3  ;;  %1274 = vmatpush.bf16.msra.mxu2 %v1255_v7  ;;  %v354_v11 = vld [vmem:[%s1495_s28 + $0x10] sm:$0x3]  ;;  %v1259_v12 = vld [vmem:[%s1489_s11 + $0x20] sm:$0xff]  ;;  %v1262_v18 = vld [vmem:[%s1489_s11 + $0x38] sm:$0xff]  ;;  %vm998_vm9 = vcmask 64512   ;;  %vm1003_vm10 = vcmask 60416  }
  0x32   : > { %395 = vperm.xlu2 %1339, %v384_v4   ;;  %451 = vmatpush.bf16.msra.mxu0 %v1255_v7  ;;  %v359_v13 = vunpack.c.l.bf16 %v354_v11  ;;  %v1340_v14 = vld [vmem:[%s1818_s3] ss:$0 sm:$0xff]  ;;  %v1272_v19 = vld [vmem:[%s1495_s28 + $0x8] sm:$0xff]   ;;  %v1261_v37 = vld [vmem:[%s1489_s11 + $0x30] sm:$0xff] }
  0x33   : > { %1273 = vmatpush.bf16.msra.mxu1 %v1255_v7  ;;  %662 = vmatpush.bf16.msra.mxu3 %v1258_v8  ;;  %v1265_v15 = vld [vmem:[%s1495_s28] sm:$0xff]   ;;  %v1271_v22 = vunpack.c.h.bf16 %v1272_v19  ;;  %v1270_v23 = vunpack.c.l.bf16 %v1272_v19  ;;  %v1260_v50 = vld [vmem:[%s1489_s11 + $0x28] sm:$0xff] }
  0x34   : > { %v368_v16 = vmul.f32 %v1340_v14, %v359_v13  ;;  %v1341_v17 = vld [vmem:[%s1819_s4] ss:$0 sm:$0xff]  ;;  %v1267_v20 = vunpack.c.h.bf16 %v1265_v15  ;;  %v1266_v24 = vunpack.c.l.bf16 %v1265_v15 }
  0x35   : > { %592 = vmatpush.bf16.msrb.mxu2 %v1257_v9  ;;  %v367_v27 = vmul.f32 %v1340_v14, %v1271_v22  ;;  %v366_v28 = vmul.f32 %v1340_v14, %v1270_v23  ;;  %v1263_v53 = vld [vmem:[%s1489_s11 + $0x40] sm:$0xff] }
  0x36   : > { %729 = vmatpush.bf16.msrb.mxu0 %v1259_v12  ;;  %v377_v21 = vadd.f32 %v1341_v17, %v368_v16  ;;  %v365_v25 = vmul.f32 %v1340_v14, %v1267_v20  ;;  %v364_v29 = vmul.f32 %v1340_v14, %v1266_v24 }
  0x37   : > { %522 = vmatpush.bf16.msrb.mxu1 %v1256_v10  ;;  %888 = vmatpush.bf16.msrb.mxu3 %v1262_v18  ;;  %v376_v34 = vadd.f32 %v1341_v17, %v367_v27  ;;  %v375_v35 = vadd.f32 %v1341_v17, %v366_v28 }
  0x38   : > { %400 = vperm.xlu0 %1337, %v385_v5   ;;  %390 = vperm.xlu1 %1338, %v383_v6   ;;  %v382_v26 = vmax.f32 %v377_v21, 0.0  ;;  %v374_v30 = vadd.f32 %v1341_v17, %v365_v25  ;;  %v373_v36 = vadd.f32 %v1341_v17, %v364_v29 }
  0x39   : > { %v381_v41 = vmax.f32 %v376_v34, 0.0  ;;  %v380_v42 = vmax.f32 %v375_v35, 0.0 }
  0x3a   : > { %v379_v39 = vmax.f32 %v374_v30, 0.0  ;;  %v378_v43 = vmax.f32 %v373_v36, 0.0 }
  0x8c   : > { %v396_v40 = vpop.permute.xlu2 %395 }
  0x8d   : > { %v414_v44 = vmul.f32 %v396_v40, %v379_v39 }
  0xa2   : > { %v411_v31 = vpop.permute.xlu0 %410  ;;  %v406_v32 = vpop.permute.xlu1 %405 }
  0xa3   : > { %v417_v33 = vmul.f32 %v411_v31, %v382_v26  ;;  %v416_v47 = vmul.f32 %v406_v32, %v381_v41 }
  0xa5   : > { %v420_v38 = vpack.c.bf16 %v417_v33, %v417_v33 }
  0xa7   : > { %1173 = vmatmul.msk.bf16.vlgmr.msra.gmra.mxu2 %vm434_vm2, %v420_v38 }
  0xa8   : > { %825 = vmatpush.bf16.msra.mxu2 %v1261_v37 }
  0xaa   : > { %v401_v45 = vpop.permute.xlu0 %400  ;;  %v391_v46 = vpop.permute.xlu1 %390 }
  0xab   : > { %v415_v48 = vmul.f32 %v401_v45, %v380_v42  ;;  %v413_v49 = vmul.f32 %v391_v46, %v378_v43  ;;  %v421_v42 = vld [vmem:[#allocation2] sm:$0xff] }
  0xad   : > { %v419_v51 = vpack.c.bf16 %v416_v47, %v415_v48  ;;  %v418_v52 = vpack.c.bf16 %v414_v44, %v413_v49 }
  0xaf   : > { %1171 = vmatmul.msk.bf16.vlgmr.msra.gmra.mxu0 %vm434_vm2, %v418_v52  ;;  %1172 = vmatmul.msk.bf16.vlgmr.msra.gmra.mxu1 %vm434_vm2, %v419_v51 }
  0xb0   : > { %1198 = vmatmul.msk.bf16.vlgmr.msra.gmra.mxu3 %vm434_vm2, %v418_v52  ;;  %766 = vmatpush.bf16.msra.mxu1 %v1260_v50 }
  0xb1   : > { %951 = vmatpush.bf16.msra.mxu0 %v1263_v53 }
  0xb7   : > { %1189 = vmatmul.msk.bf16.vlgmr.msrb.gmra.mxu2 %vm434_vm2, %v418_v52 }
  0xbf   : > { %1180 = vmatmul.msk.bf16.vlgmr.msrb.gmra.mxu1 %vm434_vm2, %v418_v52  ;;  %1207 = vmatmul.msk.bf16.vlgmr.msrb.gmra.mxu0 %vm434_vm2, %v418_v52 }
  0xc0   : > { %1199 = vmatmul.msk.bf16.gmra.mxu3 %vm434_vm2, %v419_v51 }
  0xc7   : > { %1190 = vmatmul.msk.bf16.gmra.mxu2 %vm434_vm2, %v419_v51 }
  0xcf   : > { %1181 = vmatmul.msk.bf16.gmra.mxu1 %vm434_vm2, %v419_v51  ;;  %1208 = vmatmul.msk.bf16.gmra.mxu0 %vm434_vm2, %v419_v51 }
  0xd0   : > { %1200 = vmatmul.msk.bf16.gmra.mxu3 %vm434_vm2, %v420_v38 }
  0xd7   : > { %1191 = vmatmul.msk.bf16.gmra.mxu2 %vm434_vm2, %v420_v38 }
  0xdf   : > { %1182 = vmatmul.msk.bf16.gmra.mxu1 %vm434_vm2, %v420_v38  ;;  %1209 = vmatmul.msk.bf16.gmra.mxu0 %vm434_vm2, %v420_v38 }
  0xe0   : > { %1234 = vmatmul.msk.bf16.vlgmr.msrb.gmra.mxu3 %vm434_vm2, %v418_v52 }
  0xe7   : > { %1225 = vmatmul.msk.bf16.vlgmr.msra.gmra.mxu2 %vm434_vm2, %v418_v52 }
  0xef   : > { %1216 = vmatmul.msk.bf16.vlgmr.msra.gmra.mxu1 %vm434_vm2, %v418_v52  ;;  %1243 = vmatmul.msk.bf16.vlgmr.msra.gmra.mxu0 %vm434_vm2, %v418_v52 }
  0xf0   : > { %1235 = vmatmul.msk.bf16.gmra.mxu3 %vm434_vm2, %v419_v51 }
  0xf7   : > { %1226 = vmatmul.msk.bf16.gmra.mxu2 %vm434_vm2, %v419_v51 }
  0xff   : > { %1217 = vmatmul.msk.bf16.gmra.mxu1 %vm434_vm2, %v419_v51  ;;  %1244 = vmatmul.msk.bf16.gmra.mxu0 %vm434_vm2, %v419_v51 }
 0x100   : > { %1236 = vmatmul.msk.bf16.gmra.mxu3 %vm434_vm2, %v420_v38 }
 0x107   : > { %1227 = vmatmul.msk.bf16.gmra.mxu2 %vm434_vm2, %v420_v38 }
 0x10f   : > { %1218 = vmatmul.msk.bf16.gmra.mxu1 %vm434_vm2, %v420_v38  ;;  %1245 = vmatmul.msk.bf16.gmra.mxu0 %vm434_vm2, %v420_v38 }
 0x12a   : > { %v463_v54 = vpop.f32.mrf.mxu2 }
 0x12c   : > { %v453_v55 = vpop.f32.mrf.mxu0  ;;  %v458_v56 = vpop.f32.mrf.mxu1 }
 0x12d   : > { %v468_v57 = vrot.slane %v453_v55, 4  ;;  %v471_v0 = vrot.slane %v458_v56, 4 }
 0x12f   : > { %v1566_v58 = vsel %vm467_vm3, %v468_v57, %v463_v54 }
 0x130   : > { %v473_v63 = vrot.slane %v1566_v58, 4  ;;  %v486_v35 = vrot.slane %v1566_v58, 5 }
 0x132   : > { %v465_v59 = vpop.f32.mrf.mxu2 }
 0x133   : > { %v1568_v60 = vpop.f32.mrf.mxu3 }
 0x134   : > { %v455_v61 = vpop.f32.mrf.mxu0  ;;  %v460_v62 = vpop.f32.mrf.mxu1  ;;  %v678_v47 = vrot.slane %v1568_v60, 4 }
 0x135   : > { %v470_v1 = vrot.slane %v455_v61, 4  ;;  %v472_v2 = vrot.slane %v460_v62, 4  ;;  %v485_v33 = vrot.slane %v460_v62, 5 }
 0x137   : > { %v1572_v3 = vsel %vm467_vm3, %v471_v0, %v470_v1  ;;  %v476_v4 = vsel %vm467_vm3, %v472_v2, %v471_v0  ;;  %v477_v5 = vsel %vm467_vm3, %v473_v63, %v472_v2  ;;  %v474_v41 = vsel %vm467_vm3, %v470_v1, %v468_v57 }
 0x138   : > { %v490_v6 = vrot.slane %v1572_v3, 5  ;;  %v492_v7 = vrot.slane %v476_v4, 5  ;;  %v494_v8 = vrot.slane %v477_v5, 5  ;;  %v487_v43 = vsel %vm484_vm4, %v485_v33, %v486_v35 }
 0x139   : > { %v488_v49 = vrot.slane %v474_v41, 5  ;;  %v501_v50 = vadd.f32 %v487_v43, %v421_v42 }
 0x13a   : > { %v1577_v9 = vpop.f32.mrf.mxu2  ;;  %v1582_v10 = vsel %vm484_vm4, %v490_v6, %v492_v7  ;;  %v1587_v14 = vsel %vm484_vm4, %v492_v7, %v494_v8 }
 0x13b   : > { %v666_v11 = vpop.f32.mrf.mxu3  ;;  %v608_v38 = vrot.slane %v1577_v9, 4  ;;  %v489_v61 = vsel %vm484_vm4, %v486_v35, %v488_v49  ;;  %v422_v9 = vld [vmem:[#allocation2 + $0x8] sm:$0xff] }
 0x13c   : > { %v524_v12 = vpop.f32.mrf.mxu1  ;;  %v1584_v13 = vpop.f32.mrf.mxu0  ;;  %v680_v51 = vrot.slane %v666_v11, 4 }
 0x13d   : > { %v538_v31 = vrot.slane %v524_v12, 4 }
 0x13e   : > { %v684_v62 = vsel %vm467_vm3, %v680_v51, %v678_v47 }
 0x13f   : > { %v695_v12 = vrot.slane %v684_v62, 3 }
 0x142   : > { %v1589_v15 = vpop.f32.mrf.mxu2 }
 0x143   : > { %v1591_v16 = vpop.f32.mrf.mxu3  ;;  %v610_v63 = vrot.slane %v1589_v15, 4 }
 0x144   : > { %v526_v17 = vpop.f32.mrf.mxu1  ;;  %v1593_v18 = vpop.f32.mrf.mxu0  ;;  %v681_v52 = vrot.slane %v1591_v16, 4 }
 0x145   : > { %v540_v45 = vrot.slane %v526_v17, 4  ;;  %v614_v17 = vsel %vm467_vm3, %v610_v63, %v608_v38 }
 0x146   : > { %v1643_v0 = vsel %vm467_vm3, %v681_v52, %v680_v51  ;;  %v628_v3 = vrot.slane %v614_v17, 7 }
 0x147   : > { %v544_v54 = vsel %vm467_vm3, %v540_v45, %v538_v31 }
 0x148   : > { %v558_v4 = vrot.slane %v544_v54, 6 }
 0x14a   : > { %v1595_v19 = vpop.f32.mrf.mxu2 }
 0x14b   : > { %v1597_v20 = vpop.f32.mrf.mxu3  ;;  %v611_v5 = vrot.slane %v1595_v19, 4 }
 0x14c   : > { %v1599_v21 = vpop.f32.mrf.mxu1  ;;  %v1601_v22 = vpop.f32.mrf.mxu0 }
 0x14d   : > { %v541_v58 = vrot.slane %v1599_v21, 4  ;;  %v697_v21 = vrot.slane %v1643_v0, 3 }
 0x14f   : > { %v1653_v16 = vsel %vm467_vm3, %v541_v58, %v540_v45 }
 0x150   : > { %v560_v35 = vrot.slane %v1653_v16, 6 }
 0x152   : > { %v1603_v23 = vpop.f32.mrf.mxu2 }
 0x153   : > { %v674_v24 = vpop.f32.mrf.mxu3  ;;  %v625_v59 = vrot.slane %v1603_v23, 7 }
 0x154   : > { %v1605_v25 = vpop.f32.mrf.mxu1  ;;  %v1607_v26 = vpop.f32.mrf.mxu0  ;;  %v1631_v55 = vsel %vm467_vm3, %v678_v47, %v674_v24  ;;  %v423_v24 = vld [vmem:[#allocation2 + $0x10] sm:$0xff] }
 0x155   : > { %v555_v44 = vrot.slane %v1605_v25, 6  ;;  %v694_v7 = vrot.slane %v1631_v55, 3 }
 0x157   : > { %v696_v33 = vsel %vm693_vm7, %v694_v7, %v695_v12 }
 0x15a   : > { %v604_v27 = vpop.f32.mrf.mxu2 }
 0x15b   : > { %v676_v28 = vpop.f32.mrf.mxu3  ;;  %v1623_v46 = vsel %vm467_vm3, %v608_v38, %v604_v27  ;;  %v491_v27 = vsel %vm484_vm4, %v488_v49, %v490_v6 }
 0x15c   : > { %v534_v29 = vpop.f32.mrf.mxu1  ;;  %v1609_v30 = vpop.f32.mrf.mxu0  ;;  %v626_v53 = vrot.slane %v1623_v46, 7  ;;  %v424_v28 = vld [vmem:[#allocation2 + $0x18] sm:$0xff] }
 0x15d   : > { %v1612_v32 = vsel %vm467_vm3, %v538_v31, %v534_v29  ;;  %v502_v29 = vadd.f32 %v489_v61, %v422_v9  ;;  %v1664_v31 = vsel %vm467_vm3, %v611_v5, %v610_v63  ;;  %v1672_v6 = vadd.f32 %v1582_v10, %v424_v28 }
 0x15e   : > { %v556_v36 = vrot.slane %v1612_v32, 6  ;;  %v627_v8 = vsel %vm624_vm6, %v625_v59, %v626_v53  ;;  %v543_v41 = vrot.slane %v1612_v32, 4  ;;  %v630_v43 = vrot.slane %v1664_v31, 7 }
 0x15f   : > { %v629_v49 = vsel %vm624_vm6, %v626_v53, %v628_v3  ;;  %v612_v63 = vrot.slane %v1603_v23, 4 }
 0x160   : > { %v557_v48 = vsel %vm554_vm5, %v555_v44, %v556_v36  ;;  %v559_v15 = vsel %vm554_vm5, %v556_v36, %v558_v4  ;;  %v542_v44 = vrot.slane %v1605_v25, 4  ;;  %v561_v25 = vsel %vm554_vm5, %v558_v4, %v560_v35 }
 0x161   : > { %v571_v56 = vadd.f32 %v557_v48, %v501_v50  ;;  %v572_v36 = vadd.f32 %v559_v15, %v502_v29  ;;  %v698_v48 = vsel %vm693_vm7, %v695_v12, %v697_v21  ;;  %v631_v23 = vsel %vm624_vm6, %v628_v3, %v630_v43 }
 0x162   : > { %v606_v34 = vpop.f32.mrf.mxu2  ;;  %v547_v59 = vsel %vm467_vm3, %v543_v41, %v542_v44  ;;  %v546_v7 = vsel %vm467_vm3, %v542_v44, %v541_v58  ;;  %v616_v29 = vsel %vm467_vm3, %v612_v63, %v611_v5 }
 0x163   : > { %v1616_v37 = vpop.f32.mrf.mxu3  ;;  %v641_v11 = vadd.f32 %v627_v8, %v571_v56  ;;  %v682_v34 = vrot.slane %v1597_v20, 4  ;;  %v642_v54 = vadd.f32 %v629_v49, %v572_v36  ;;  %v564_v16 = vrot.slane %v547_v59, 6 }
 0x164   : > { %v536_v39 = vpop.f32.mrf.mxu1  ;;  %v743_v40 = vpop.f32.mrf.mxu0  ;;  %v914_v9 = vrot.slane %v1616_v37, 6 }
 0x165   : > { %v708_v39 = vadd.f32 %v696_v33, %v641_v11  ;;  %v503_v40 = vadd.f32 %v491_v27, %v423_v24  ;;  %v1690_v51 = vsel %vm467_vm3, %v682_v34, %v681_v52  ;;  %v613_v52 = vrot.slane %v1623_v46, 4 }
 0x166   : > { %v699_v4 = vrot.slane %v1690_v51, 3  ;;  %v709_v24 = vadd.f32 %v698_v48, %v642_v54  ;;  %v562_v46 = vrot.slane %v546_v7, 6  ;;  %v683_v33 = vrot.slane %v1631_v55, 4 }
 0x167   : > { %v745_v56 = vadd.f32 %v1584_v13, %v708_v39  ;;  %v573_v12 = vadd.f32 %v561_v25, %v503_v40  ;;  %v617_v36 = vsel %vm467_vm3, %v613_v52, %v612_v63  ;;  %v425_v39 = vld [vmem:[#allocation2 + $0x20] sm:$0xf] }
 0x168   : > { %v565_v19 = vsel %vm554_vm5, %v562_v46, %v564_v16  ;;  %v746_v5 = vadd.f32 %v1593_v18, %v709_v24  ;;  %v563_v55 = vsel %vm554_vm5, %v560_v35, %v562_v46  ;;  %v505_v25 = vadd.f32 %v1587_v14, %v425_v39 }
 0x169   : > { %v643_v49 = vadd.f32 %v631_v23, %v573_v12  ;;  %v700_v59 = vsel %vm693_vm7, %v697_v21, %v699_v4  ;;  %v687_v18 = vsel %vm467_vm3, %v683_v33, %v682_v34  ;;  %v574_v7 = vadd.f32 %v563_v55, %v1672_v6 }
 0x16a   : > { %v1633_v57 = vpop.f32.mrf.mxu2  ;;  %v575_v14 = vadd.f32 %v565_v19, %v505_v25 }
 0x16b   : > { %v1637_v60 = vpop.f32.mrf.mxu3  ;;  %v851_v61 = vrot.slane %v1633_v57, 5 }
 0x16c   : > { %v1645_v1 = vpop.f32.mrf.mxu1  ;;  %v1647_v2 = vpop.f32.mrf.mxu0  ;;  %v915_v53 = vrot.slane %v1637_v60, 6  ;;  %v905_v39 = vrot.slane %v1637_v60, 4 }
 0x16d   : > { %v790_v10 = vrot.slane %v1645_v1, 1  ;;  %v977_v27 = vrot.slane %v1647_v2, 7 }
 0x16e   : > { %v916_v58 = vsel %vm554_vm5, %v914_v9, %v915_v53  ;;  %v701_v9 = vrot.slane %v687_v18, 3 }
 0x170   : > { %v702_v46 = vsel %vm693_vm7, %v699_v4, %v701_v9  ;;  %v782_v4 = vrot.slane %v1645_v1, 4 }
 0x172   : > { %v1669_v38 = vpop.f32.mrf.mxu2 }
 0x173   : > { %v1675_v42 = vpop.f32.mrf.mxu3  ;;  %v852_v32 = vrot.slane %v1669_v38, 5 }
 0x174   : > { %v770_v45 = vpop.f32.mrf.mxu1  ;;  %v1679_v47 = vpop.f32.mrf.mxu0  ;;  %v917_v54 = vrot.slane %v1675_v42, 6 }
 0x175   : > { %v791_v50 = vrot.slane %v770_v45, 1  ;;  %v853_v13 = vsel %vm484_vm4, %v851_v61, %v852_v32  ;;  %v978_v11 = vrot.slane %v1679_v47, 7  ;;  %v632_v61 = vrot.slane %v616_v29, 7 }
 0x176   : > { %v918_v21 = vsel %vm554_vm5, %v915_v53, %v917_v54  ;;  %v841_v29 = vrot.slane %v1633_v57, 4 }
 0x177   : > { %v792_v62 = vsel %vm789_vm8, %v790_v10, %v791_v50  ;;  %v979_v3 = vsel %vm624_vm6, %v977_v27, %v978_v11  ;;  %v633_v20 = vsel %vm624_vm6, %v630_v43, %v632_v61 }
 0x178   : > { %v804_v8 = vadd.f32 %v792_v62, %v745_v56  ;;  %v634_v62 = vrot.slane %v617_v36, 7  ;;  %v644_v24 = vadd.f32 %v633_v20, %v574_v7 }
 0x17a   : > { %v867_v15 = vadd.f32 %v853_v13, %v804_v8  ;;  %v1705_v17 = vpop.f32.mrf.mxu2  ;;  %v635_v34 = vsel %vm624_vm6, %v632_v61, %v634_v62  ;;  %v711_v36 = vadd.f32 %v702_v46, %v644_v24 }
 0x17b   : > { %v1712_v28 = vpop.f32.mrf.mxu3  ;;  %v854_v45 = vrot.slane %v1705_v17, 5  ;;  %v645_v16 = vadd.f32 %v635_v34, %v575_v14 }
 0x17c   : > { %v930_v40 = vadd.f32 %v916_v58, %v867_v15  ;;  %v773_v41 = vpop.f32.mrf.mxu1  ;;  %v1719_v44 = vpop.f32.mrf.mxu0  ;;  %v919_v31 = vrot.slane %v1712_v28, 6  ;;  %v842_v58 = vrot.slane %v1669_v38, 4  ;;  %v904_v28 = vrot.slane %v1616_v37, 4 }
 0x17d   : > { %v793_v48 = vrot.slane %v773_v41, 1  ;;  %v855_v35 = vsel %vm484_vm4, %v852_v32, %v854_v45  ;;  %v980_v42 = vrot.slane %v1719_v44, 7  ;;  %v712_v27 = vadd.f32 %v701_v9, %v645_v16 }
 0x17e   : > { %v993_v10 = vadd.f32 %v979_v3, %v930_v40  ;;  %v967_v38 = vrot.slane %v1647_v2, 4  ;;  %v920_v41 = vsel %vm554_vm5, %v917_v54, %v919_v31  ;;  %v844_v3 = vsel %vm467_vm3, %v842_v58, %v841_v29 }
 0x17f   : > { %v794_v56 = vsel %vm789_vm8, %v791_v50, %v793_v48  ;;  %v710_v50 = vadd.f32 %v700_v59, %v643_v49  ;;  %v981_v6 = vsel %vm624_vm6, %v978_v11, %v980_v42  ;;  %v749_v19 = vadd.f32 %v1609_v30, %v712_v27 }
 0x180   : > { %999 = vst.msk [vmem:[#allocation2] sm:$0xff] %vm998_vm9, %v993_v10  ;;  %v805_v63 = vadd.f32 %v794_v56, %v746_v5  ;;  %v907_v5 = vsel %vm467_vm3, %v905_v39, %v904_v28  ;;  %v860_v56 = vrot.slane %v844_v3, 5 }
 0x181   : > { %v747_v53 = vadd.f32 %v1601_v22, %v710_v50 }
 0x182   : > { %v868_v0 = vadd.f32 %v855_v35, %v805_v63  ;;  %v1741_v52 = vpop.f32.mrf.mxu2  ;;  %v923_v63 = vrot.slane %v907_v5, 6 }
 0x183   : > { %v900_v8 = vpop.f32.mrf.mxu3  ;;  %v856_v15 = vrot.slane %v1741_v52, 5 }
 0x184   : > { %v931_v13 = vadd.f32 %v918_v21, %v868_v0  ;;  %v775_v32 = vpop.f32.mrf.mxu1  ;;  %v1748_v12 = vpop.f32.mrf.mxu0 }
 0x185   : > { %v795_v17 = vrot.slane %v775_v32, 1  ;;  %v857_v22 = vsel %vm484_vm4, %v854_v45, %v856_v15  ;;  %v982_v33 = vrot.slane %v1748_v12, 7  ;;  %v968_v45 = vrot.slane %v1679_v47, 4 }
 0x186   : > { %v994_v23 = vadd.f32 %v981_v6, %v931_v13  ;;  %v748_v47 = vadd.f32 %v1607_v26, %v711_v36 }
 0x187   : > { %v796_v43 = vsel %vm789_vm8, %v793_v48, %v795_v17  ;;  %v906_v48 = vsel %vm467_vm3, %v904_v28, %v900_v8  ;;  %v983_v1 = vsel %vm624_vm6, %v980_v42, %v982_v33  ;;  %v970_v61 = vsel %vm467_vm3, %v968_v45, %v967_v38 }
 0x188   : > { %1000 = vst.msk [vmem:[#allocation2 + $0x8] sm:$0xff] %vm998_vm9, %v994_v23  ;;  %v806_v11 = vadd.f32 %v796_v43, %v747_v53  ;;  %v921_v59 = vrot.slane %v906_v48, 6  ;;  %v986_v0 = vrot.slane %v970_v61, 7 }
 0x18a   : > { %v869_v51 = vadd.f32 %v857_v22, %v806_v11  ;;  %v837_v40 = vpop.f32.mrf.mxu2  ;;  %v924_v26 = vsel %vm554_vm5, %v921_v59, %v923_v63  ;;  %v922_v21 = vsel %vm554_vm5, %v919_v31, %v921_v59 }
 0x18b   : > { %v843_v44 = vsel %vm467_vm3, %v841_v29, %v837_v40  ;;  %v902_v57 = vpop.f32.mrf.mxu3 }
 0x18c   : > { %v932_v37 = vadd.f32 %v920_v41, %v869_v51  ;;  %v778_v49 = vpop.f32.mrf.mxu1  ;;  %v963_v60 = vpop.f32.mrf.mxu0  ;;  %v858_v10 = vrot.slane %v843_v44, 5 }
 0x18d   : > { %v783_v2 = vsel %vm467_vm3, %v782_v4, %v778_v49  ;;  %v969_v54 = vsel %vm467_vm3, %v967_v38, %v963_v60 }
 0x18e   : > { %v995_v55 = vadd.f32 %v983_v1, %v932_v37  ;;  %v797_v25 = vrot.slane %v783_v2, 1  ;;  %v861_v18 = vsel %vm484_vm4, %v858_v10, %v860_v56  ;;  %v984_v35 = vrot.slane %v969_v54, 7 }
 0x18f   : > { %v859_v42 = vsel %vm484_vm4, %v856_v15, %v858_v10 }
 0x190   : > { %1001 = vst.msk [vmem:[#allocation2 + $0x10] sm:$0xff] %vm998_vm9, %v995_v55  ;;  %v798_v30 = vsel %vm789_vm8, %v795_v17, %v797_v25  ;;  %v808_v62 = vadd.f32 %v797_v25, %v749_v19  ;;  %v987_v13 = vsel %vm624_vm6, %v984_v35, %v986_v0  ;;  %v985_v32 = vsel %vm624_vm6, %v982_v33, %v984_v35 }
 0x191   : > { %v807_v14 = vadd.f32 %v798_v30, %v748_v47 }
 0x192   : > { %v871_v50 = vadd.f32 %v861_v18, %v808_v62  ;;  %v839_v7 = vpop.f32.mrf.mxu2 }
 0x193   : > { %v870_v52 = vadd.f32 %v859_v42, %v807_v14 }
 0x194   : > { %v934_v8 = vadd.f32 %v924_v26, %v871_v50  ;;  %v780_v9 = vpop.f32.mrf.mxu1  ;;  %v965_v20 = vpop.f32.mrf.mxu0 }
 0x195   : > { %v933_v34 = vadd.f32 %v922_v21, %v870_v52 }
 0x196   : > { %v997_v12 = vadd.f32 %v987_v13, %v934_v8 }
 0x197   : > { %v996_v16 = vadd.f32 %v985_v32, %v933_v34 }
 0x198   : > { %1004 = vst.msk [vmem:[#allocation2 + $0x20] sm:$0xf] %vm1003_vm10, %v997_v12 }
 0x199   : > { %1002 = vst.msk [vmem:[#allocation2 + $0x18] sm:$0xff] %vm998_vm9, %v996_v16 }
 0x19a PF: > { %p1246_p2 = scmp.ne.s32.totalorder %s1372_s18, 2 }
 0x19c   : > { %1008 = sbr.rel (%p1246_p2) target bundleno = 425 (0x1a9), region = 52 }
 0x1a1   : > { %v1009_v6 = vld [vmem:[#allocation2] sm:$0xff]  ;;  %vm1019_vm11 = vcmask 60416   ;;  %v1010_v15 = vld [vmem:[#allocation2 + $0x8] sm:$0xff]  ;;  %v1011_v17 = vld [vmem:[#allocation2 + $0x10] sm:$0xff]  ;;  %vm1024_vm12 = vcmask 58368  }
 0x1a2   : > { %v1014_v53 = vpack.c.bf16 %v1009_v6, %v1009_v6  ;;  %v1015_v24 = vpack.c.bf16 %v1010_v15, %v1010_v15  ;;  %v1016_v23 = vpack.c.bf16 %v1011_v17, %v1011_v17  ;;  %v1012_v31 = vld [vmem:[#allocation2 + $0x18] sm:$0xff]  ;;  %v1013_v43 = vld [vmem:[#allocation2 + $0x20] sm:$0xf] }
 0x1a3   : > { %v1017_v46 = vpack.c.bf16 %v1012_v31, %v1012_v31  ;;  %v1018_v58 = vpack.c.bf16 %v1013_v43, %v1013_v43 }
 0x1a4   : > { %1020 = vst.msk [vmem:[%s1500_s25] sm:$0xf] %vm1019_vm11, %v1014_v53 }
 0x1a5   : > { %1021 = vst.msk [vmem:[%s1500_s25 + $0x4] sm:$0xf] %vm1019_vm11, %v1015_v24 }
 0x1a6   : > { %1022 = vst.msk [vmem:[%s1500_s25 + $0x8] sm:$0xf] %vm1019_vm11, %v1016_v23 }
 0x1a7   : > { %1023 = vst.msk [vmem:[%s1500_s25 + $0xc] sm:$0xf] %vm1019_vm11, %v1017_v46 }
 0x1a8   : > { %1025 = vst.msk [vmem:[%s1500_s25 + $0x10] sm:$0x3] %vm1024_vm12, %v1018_v58 }
 0x1a9 PF: > { %s15_s24 = sadd.s32 1, %s1396_s24   ;;  %s1824_s11 = sld [smem:[#allocation3_spill]] }
 0x1aa   : > { %p12_p3 = scmp.ge.s32.totalorder %s15_s24, 26   ;;  %s1825_s17 = sld [smem:[#allocation4_spill]] }
 0x1ab   : > { %s1826_s28 = sld [smem:[#allocation5_spill]]  ;;  %s1827_s18 = smov %s1384_s21 }
 0x1ac   : > { %s1828_s19 = smov %s1388_s22  ;;  %s1829_s20 = smov %s1392_s23 }
 0x1ad   :  { %14 = sbr.rel (!%p12_p3) target bundleno = 4 (0x4), region = 93 }
 0x1af   : > { %s1830_s21 = smov %s1824_s11 }
 0x1b0   : > { %s1831_s22 = smov %s1825_s17 }
 0x1b1   : > { %s1832_s23 = smov %s1826_s28 }

// kernel: _lambda_.22
= control target key start
LH: loop header
LB: loop body
LE: loop exit
PB: predicated region body
PF: predicated region fallthrough
CT: control target
= control target key end

     0   :  { %vm2640_vm0 = vcmask 125952   ;;  %s7100_s1 = inlined_call_operand.vmem [shape: f32[1,16], index: 1, kind: input, shape index: {}]   ;;  %s7101_s0 = inlined_call_operand.vmem [shape: bf16[27,128,16], index: 0, kind: input, shape index: {}]   ;;  %s7102_s2 = inlined_call_operand.vmem [shape: f32[1,16], index: 2, kind: input, shape index: {}]   ;;  %s7103_s3 = inlined_call_operand.vmem [shape: bf16[128,16], index: 3, kind: output, shape index: {}]  }
   0x1   :  { %v3078_v0 = vld [vmem:[%s7101_s0] sm:$0xff]   ;;  %v3941_v1 = vld [vmem:[%s7101_s0 + $0x8] sm:$0xff]   ;;  %v3942_v2 = vld [vmem:[%s7101_s0 + $0x10] sm:$0xff]  }
   0x2   :  { %v3943_v3 = vld [vmem:[%s7101_s0 + $0x18] sm:$0xff]   ;;  %v3944_v4 = vld [vmem:[%s7101_s0 + $0x20] sm:$0xff]   ;;  %v3079_v5 = vunpack.c.l.bf16 %v3078_v0  ;;  %v3945_v6 = vld [vmem:[%s7101_s0 + $0x28] sm:$0xff]   ;;  %v3080_v9 = vunpack.c.h.bf16 %v3078_v0  ;;  %v3083_v10 = vunpack.c.l.bf16 %v3941_v1  ;;  %v3084_v11 = vunpack.c.h.bf16 %v3941_v1 }
   0x3   :  { %v3946_v7 = vld [vmem:[%s7101_s0 + $0x30] sm:$0xff]   ;;  %v4210_v8 = vld [vmem:[%s7100_s1] ss:$0 sm:$0xff]  ;;  %v3087_v12 = vunpack.c.l.bf16 %v3942_v2  ;;  %v3947_v13 = vld [vmem:[%s7101_s0 + $0x38] sm:$0xff]   ;;  %v3088_v14 = vunpack.c.h.bf16 %v3942_v2  ;;  %v3091_v15 = vunpack.c.l.bf16 %v3943_v3  ;;  %v3092_v16 = vunpack.c.h.bf16 %v3943_v3 }
   0x4   :  { %v3095_v17 = vunpack.c.l.bf16 %v3944_v4  ;;  %v3096_v18 = vunpack.c.h.bf16 %v3944_v4  ;;  %v3099_v19 = vunpack.c.l.bf16 %v3945_v6  ;;  %v3100_v20 = vunpack.c.h.bf16 %v3945_v6  ;;  %v4219_v26 = vld [vmem:[%s7102_s2] ss:$0 sm:$0xff]  ;;  %v3949_v60 = vld [vmem:[%s7101_s0 + $0x48] sm:$0xff]   ;;  %v3950_v1 = vld [vmem:[%s7101_s0 + $0x50] sm:$0xff]  }
   0x5   :  { %v3103_v21 = vunpack.c.l.bf16 %v3946_v7  ;;  %v3104_v22 = vunpack.c.h.bf16 %v3946_v7  ;;  %v3107_v23 = vunpack.c.l.bf16 %v3947_v13  ;;  %v3108_v24 = vunpack.c.h.bf16 %v3947_v13  ;;  %v3948_v59 = vld [vmem:[%s7101_s0 + $0x40] sm:$0xff]   ;;  %v3951_v6 = vld [vmem:[%s7101_s0 + $0x58] sm:$0xff]  }
   0x6   :  { %v50_v25 = vmul.f32 %v4210_v8, %v3079_v5  ;;  %v51_v27 = vmul.f32 %v4210_v8, %v3080_v9  ;;  %v52_v28 = vmul.f32 %v4210_v8, %v3083_v10  ;;  %v53_v29 = vmul.f32 %v4210_v8, %v3084_v11 }
   0x7   :  { %v54_v30 = vmul.f32 %v4210_v8, %v3087_v12  ;;  %v55_v31 = vmul.f32 %v4210_v8, %v3088_v14  ;;  %v56_v32 = vmul.f32 %v4210_v8, %v3091_v15  ;;  %v57_v33 = vmul.f32 %v4210_v8, %v3092_v16  ;;  %v3952_v12 = vld [vmem:[%s7101_s0 + $0x60] sm:$0xff]  }
   0x8   :  { %v58_v34 = vmul.f32 %v4210_v8, %v3095_v17  ;;  %v59_v35 = vmul.f32 %v4210_v8, %v3096_v18  ;;  %v60_v36 = vmul.f32 %v4210_v8, %v3099_v19  ;;  %v61_v37 = vmul.f32 %v4210_v8, %v3100_v20 }
   0x9   :  { %v62_v38 = vmul.f32 %v4210_v8, %v3103_v21  ;;  %v63_v39 = vmul.f32 %v4210_v8, %v3104_v22  ;;  %v64_v40 = vmul.f32 %v4210_v8, %v3107_v23  ;;  %v65_v41 = vmul.f32 %v4210_v8, %v3108_v24  ;;  %v3953_v21 = vld [vmem:[%s7101_s0 + $0x68] sm:$0xff]  }
   0xa   :  { %v4237_v42 = vadd.f32 %v4219_v26, %v50_v25  ;;  %v4240_v43 = vadd.f32 %v4219_v26, %v51_v27  ;;  %v4243_v44 = vadd.f32 %v4219_v26, %v52_v28  ;;  %v4246_v45 = vadd.f32 %v4219_v26, %v53_v29  ;;  %v3954_v27 = vld [vmem:[%s7101_s0 + $0x70] sm:$0xff]   ;;  %v3955_v29 = vld [vmem:[%s7101_s0 + $0x78] sm:$0xff]  }
   0xb   :  { %v4249_v46 = vadd.f32 %v4219_v26, %v54_v30  ;;  %v4252_v47 = vadd.f32 %v4219_v26, %v55_v31  ;;  %v4255_v48 = vadd.f32 %v4219_v26, %v56_v32  ;;  %v4258_v49 = vadd.f32 %v4219_v26, %v57_v33 }
   0xc   :  { %v4261_v50 = vadd.f32 %v4219_v26, %v58_v34  ;;  %v4264_v51 = vadd.f32 %v4219_v26, %v59_v35  ;;  %v4267_v52 = vadd.f32 %v4219_v26, %v60_v36  ;;  %v4270_v53 = vadd.f32 %v4219_v26, %v61_v37 }
   0xd   :  { %v4273_v54 = vadd.f32 %v4219_v26, %v62_v38  ;;  %v4276_v55 = vadd.f32 %v4219_v26, %v63_v39  ;;  %v4279_v56 = vadd.f32 %v4219_v26, %v64_v40  ;;  %v4282_v57 = vadd.f32 %v4219_v26, %v65_v41 }
   0xe   :  { %v86_v58 = vmax.f32 %v4237_v42, 0.0  ;;  %v87_v61 = vmax.f32 %v4240_v43, 0.0  ;;  %v88_v62 = vmax.f32 %v4243_v44, 0.0  ;;  %v89_v63 = vmax.f32 %v4246_v45, 0.0  ;;  %v3956_v44 = vld [vmem:[%s7101_s0 + $0x80] sm:$0xff]  }
   0xf   :  { %v90_v0 = vmax.f32 %v4249_v46, 0.0  ;;  %v91_v2 = vmax.f32 %v4252_v47, 0.0  ;;  %v92_v3 = vmax.f32 %v4255_v48, 0.0  ;;  %v93_v4 = vmax.f32 %v4258_v49, 0.0  ;;  %v3959_v48 = vld [vmem:[%s7101_s0 + $0x98] sm:$0xff]  }
  0x10   :  { %v94_v5 = vmax.f32 %v4261_v50, 0.0  ;;  %v95_v7 = vmax.f32 %v4264_v51, 0.0  ;;  %v3111_v9 = vunpack.c.l.bf16 %v3948_v59  ;;  %v3112_v10 = vunpack.c.h.bf16 %v3948_v59  ;;  %v3960_v50 = vld [vmem:[%s7101_s0 + $0xa0] sm:$0xff]  }
  0x11   :  { %v3115_v11 = vunpack.c.l.bf16 %v3949_v60  ;;  %v96_v13 = vmax.f32 %v4267_v52, 0.0  ;;  %v3116_v14 = vunpack.c.h.bf16 %v3949_v60  ;;  %v3119_v15 = vunpack.c.l.bf16 %v3950_v1 }
  0x12   :  { %v3120_v16 = vunpack.c.h.bf16 %v3950_v1  ;;  %v97_v17 = vmax.f32 %v4270_v53, 0.0  ;;  %v98_v18 = vmax.f32 %v4273_v54, 0.0  ;;  %v3123_v19 = vunpack.c.l.bf16 %v3951_v6 }
  0x13   :  { %v3124_v20 = vunpack.c.h.bf16 %v3951_v6  ;;  %v99_v22 = vmax.f32 %v4276_v55, 0.0  ;;  %v100_v23 = vmax.f32 %v4279_v56, 0.0  ;;  %v101_v24 = vmax.f32 %v4282_v57, 0.0  ;;  %v3963_v55 = vld [vmem:[%s7101_s0 + $0xb8] sm:$0xff]  }
  0x14   :  { %v3127_v25 = vunpack.c.l.bf16 %v3952_v12  ;;  %v3128_v28 = vunpack.c.h.bf16 %v3952_v12  ;;  %v135_v30 = vmul.f32 %v4210_v8, %v3111_v9  ;;  %v136_v31 = vmul.f32 %v4210_v8, %v3112_v10 }
  0x15   :  { %v137_v32 = vmul.f32 %v4210_v8, %v3115_v11  ;;  %v3131_v33 = vunpack.c.l.bf16 %v3953_v21  ;;  %v138_v34 = vmul.f32 %v4210_v8, %v3116_v14  ;;  %v139_v35 = vmul.f32 %v4210_v8, %v3119_v15 }
  0x16   :  { %v140_v36 = vmul.f32 %v4210_v8, %v3120_v16  ;;  %v3132_v37 = vunpack.c.h.bf16 %v3953_v21  ;;  %v3135_v38 = vunpack.c.l.bf16 %v3954_v27  ;;  %v141_v39 = vmul.f32 %v4210_v8, %v3123_v19 }
  0x17   :  { %v142_v40 = vmul.f32 %v4210_v8, %v3124_v20  ;;  %v3136_v41 = vunpack.c.h.bf16 %v3954_v27  ;;  %v3139_v59 = vunpack.c.l.bf16 %v3955_v29  ;;  %v3140_v60 = vunpack.c.h.bf16 %v3955_v29 }
  0x18   :  { %v143_v1 = vmul.f32 %v4210_v8, %v3127_v25  ;;  %v144_v6 = vmul.f32 %v4210_v8, %v3128_v28  ;;  %v151_v9 = vadd.f32 %v4219_v26, %v135_v30  ;;  %v152_v10 = vadd.f32 %v4219_v26, %v136_v31 }
  0x19   :  { %v153_v11 = vadd.f32 %v4219_v26, %v137_v32  ;;  %v145_v12 = vmul.f32 %v4210_v8, %v3131_v33  ;;  %v154_v14 = vadd.f32 %v4219_v26, %v138_v34  ;;  %v155_v15 = vadd.f32 %v4219_v26, %v139_v35 }
  0x1a   :  { %v156_v16 = vadd.f32 %v4219_v26, %v140_v36  ;;  %v146_v19 = vmul.f32 %v4210_v8, %v3132_v37  ;;  %v147_v20 = vmul.f32 %v4210_v8, %v3135_v38  ;;  %v157_v21 = vadd.f32 %v4219_v26, %v141_v39 }
  0x1b   :  { %v158_v25 = vadd.f32 %v4219_v26, %v142_v40  ;;  %v148_v27 = vmul.f32 %v4210_v8, %v3136_v41  ;;  %v149_v28 = vmul.f32 %v4210_v8, %v3139_v59  ;;  %v150_v29 = vmul.f32 %v4210_v8, %v3140_v60 }
  0x1c   :  { %v159_v30 = vadd.f32 %v4219_v26, %v143_v1  ;;  %v160_v31 = vadd.f32 %v4219_v26, %v144_v6  ;;  %v167_v32 = vmax.f32 %v151_v9, 0.0  ;;  %v168_v33 = vmax.f32 %v152_v10, 0.0 }
  0x1d   :  { %v169_v34 = vmax.f32 %v153_v11, 0.0  ;;  %v161_v35 = vadd.f32 %v4219_v26, %v145_v12  ;;  %v170_v36 = vmax.f32 %v154_v14, 0.0  ;;  %v171_v37 = vmax.f32 %v155_v15, 0.0 }
  0x1e   :  { %v172_v38 = vmax.f32 %v156_v16, 0.0  ;;  %v162_v39 = vadd.f32 %v4219_v26, %v146_v19  ;;  %v163_v40 = vadd.f32 %v4219_v26, %v147_v20  ;;  %v173_v41 = vmax.f32 %v157_v21, 0.0 }
  0x1f   :  { %v174_v59 = vmax.f32 %v158_v25, 0.0  ;;  %v164_v60 = vadd.f32 %v4219_v26, %v148_v27  ;;  %v165_v1 = vadd.f32 %v4219_v26, %v149_v28  ;;  %v166_v6 = vadd.f32 %v4219_v26, %v150_v29 }
  0x20   :  { %v175_v9 = vmax.f32 %v159_v30, 0.0  ;;  %v4358_v10 = vmax.f32 %v86_v58, %v167_v32  ;;  %v4362_v11 = vmax.f32 %v87_v61, %v168_v33  ;;  %v4366_v12 = vmax.f32 %v88_v62, %v169_v34  ;;  %v3957_v58 = vld [vmem:[%s7101_s0 + $0x88] sm:$0xff]   ;;  %v3958_v62 = vld [vmem:[%s7101_s0 + $0x90] sm:$0xff]  }
  0x21   :  { %v176_v14 = vmax.f32 %v160_v31, 0.0  ;;  %v4370_v15 = vmax.f32 %v89_v63, %v170_v36  ;;  %v4374_v16 = vmax.f32 %v90_v0, %v171_v37  ;;  %v4378_v42 = vmax.f32 %v91_v2, %v172_v38  ;;  %v3961_v30 = vld [vmem:[%s7101_s0 + $0xa8] sm:$0xff]  }
  0x22   :  { %v177_v43 = vmax.f32 %v161_v35, 0.0  ;;  %v4388_v45 = vmax.f32 %v92_v3, %v173_v41  ;;  %v4392_v46 = vmax.f32 %v93_v4, %v174_v59  ;;  %v178_v47 = vmax.f32 %v162_v39, 0.0 }
  0x23   :  { %v179_v61 = vmax.f32 %v163_v40, 0.0  ;;  %v4399_v63 = vmax.f32 %v94_v5, %v175_v9  ;;  %v180_v0 = vmax.f32 %v164_v60, 0.0  ;;  %v181_v2 = vmax.f32 %v165_v1, 0.0 }
  0x24   :  { %v182_v19 = vmax.f32 %v166_v6, 0.0  ;;  %v4406_v49 = vmax.f32 %v95_v7, %v176_v14  ;;  %v3143_v3 = vunpack.c.l.bf16 %v3956_v44  ;;  %v3144_v4 = vunpack.c.h.bf16 %v3956_v44 }
  0x25   :  { %v3147_v20 = vunpack.c.l.bf16 %v3957_v58  ;;  %v4413_v5 = vmax.f32 %v96_v13, %v177_v43  ;;  %v3148_v21 = vunpack.c.h.bf16 %v3957_v58  ;;  %v3151_v25 = vunpack.c.l.bf16 %v3958_v62 }
  0x26   :  { %v3152_v27 = vunpack.c.h.bf16 %v3958_v62  ;;  %v4417_v28 = vmax.f32 %v97_v17, %v178_v47  ;;  %v4421_v51 = vmax.f32 %v98_v18, %v179_v61  ;;  %v3155_v7 = vunpack.c.l.bf16 %v3959_v48  ;;  %v3962_v17 = vld [vmem:[%s7101_s0 + $0xb0] sm:$0xff]  }
  0x27   :  { %v3156_v29 = vunpack.c.h.bf16 %v3959_v48  ;;  %v4428_v52 = vmax.f32 %v99_v22, %v180_v0  ;;  %v4432_v13 = vmax.f32 %v100_v23, %v181_v2  ;;  %v4436_v53 = vmax.f32 %v101_v24, %v182_v19 }
  0x28   :  { %v3159_v54 = vunpack.c.l.bf16 %v3960_v50  ;;  %v3160_v18 = vunpack.c.h.bf16 %v3960_v50  ;;  %v232_v22 = vmul.f32 %v4210_v8, %v3143_v3  ;;  %v233_v56 = vmul.f32 %v4210_v8, %v3144_v4 }
  0x29   :  { %v234_v23 = vmul.f32 %v4210_v8, %v3147_v20  ;;  %v3163_v31 = vunpack.c.l.bf16 %v3961_v30  ;;  %v235_v57 = vmul.f32 %v4210_v8, %v3148_v21  ;;  %v236_v24 = vmul.f32 %v4210_v8, %v3151_v25 }
  0x2a   :  { %v237_v32 = vmul.f32 %v4210_v8, %v3152_v27  ;;  %v3164_v33 = vunpack.c.h.bf16 %v3961_v30  ;;  %v3167_v34 = vunpack.c.l.bf16 %v3962_v17  ;;  %v238_v35 = vmul.f32 %v4210_v8, %v3155_v7 }
  0x2b   :  { %v239_v36 = vmul.f32 %v4210_v8, %v3156_v29  ;;  %v3168_v37 = vunpack.c.h.bf16 %v3962_v17  ;;  %v3171_v38 = vunpack.c.l.bf16 %v3963_v55  ;;  %v3172_v39 = vunpack.c.h.bf16 %v3963_v55 }
  0x2c   :  { %v240_v40 = vmul.f32 %v4210_v8, %v3159_v54  ;;  %v241_v41 = vmul.f32 %v4210_v8, %v3160_v18  ;;  %v248_v59 = vadd.f32 %v4219_v26, %v232_v22  ;;  %v249_v60 = vadd.f32 %v4219_v26, %v233_v56 }
  0x2d   :  { %v250_v1 = vadd.f32 %v4219_v26, %v234_v23  ;;  %v242_v6 = vmul.f32 %v4210_v8, %v3163_v31  ;;  %v251_v9 = vadd.f32 %v4219_v26, %v235_v57  ;;  %v252_v14 = vadd.f32 %v4219_v26, %v236_v24 }
  0x2e   :  { %v253_v43 = vadd.f32 %v4219_v26, %v237_v32  ;;  %v243_v44 = vmul.f32 %v4210_v8, %v3164_v33  ;;  %v244_v58 = vmul.f32 %v4210_v8, %v3167_v34  ;;  %v254_v47 = vadd.f32 %v4219_v26, %v238_v35 }
  0x2f   :  { %v255_v61 = vadd.f32 %v4219_v26, %v239_v36  ;;  %v245_v62 = vmul.f32 %v4210_v8, %v3168_v37  ;;  %v246_v0 = vmul.f32 %v4210_v8, %v3171_v38  ;;  %v247_v2 = vmul.f32 %v4210_v8, %v3172_v39 }
  0x30   :  { %v256_v19 = vadd.f32 %v4219_v26, %v240_v40  ;;  %v257_v48 = vadd.f32 %v4219_v26, %v241_v41  ;;  %v264_v3 = vmax.f32 %v248_v59, 0.0  ;;  %v265_v4 = vmax.f32 %v249_v60, 0.0  ;;  %v3968_v60 = vld [vmem:[%s7101_s0 + $0xe0] sm:$0xff]  }
  0x31   :  { %v266_v20 = vmax.f32 %v250_v1, 0.0  ;;  %v258_v50 = vadd.f32 %v4219_v26, %v242_v6  ;;  %v267_v21 = vmax.f32 %v251_v9, 0.0  ;;  %v268_v25 = vmax.f32 %v252_v14, 0.0 }
  0x32   :  { %v269_v27 = vmax.f32 %v253_v43, 0.0  ;;  %v259_v7 = vadd.f32 %v4219_v26, %v243_v44  ;;  %v260_v29 = vadd.f32 %v4219_v26, %v244_v58  ;;  %v270_v30 = vmax.f32 %v254_v47, 0.0  ;;  %v3969_v58 = vld [vmem:[%s7101_s0 + $0xe8] sm:$0xff]  }
  0x33   :  { %v271_v54 = vmax.f32 %v255_v61, 0.0  ;;  %v261_v17 = vadd.f32 %v4219_v26, %v245_v62  ;;  %v262_v18 = vadd.f32 %v4219_v26, %v246_v0  ;;  %v263_v55 = vadd.f32 %v4219_v26, %v247_v2  ;;  %v3971_v0 = vld [vmem:[%s7101_s0 + $0xf8] sm:$0xff]  }
  0x34   :  { %v272_v22 = vmax.f32 %v256_v19, 0.0  ;;  %v4477_v56 = vmax.f32 %v4358_v10, %v264_v3  ;;  %v4480_v23 = vmax.f32 %v4362_v11, %v265_v4  ;;  %v4483_v31 = vmax.f32 %v4366_v12, %v266_v20  ;;  %v3964_v10 = vld [vmem:[%s7101_s0 + $0xc0] sm:$0xff]   ;;  %v3965_v11 = vld [vmem:[%s7101_s0 + $0xc8] sm:$0xff]  }
  0x35   :  { %v273_v57 = vmax.f32 %v257_v48, 0.0  ;;  %v4486_v24 = vmax.f32 %v4370_v15, %v267_v21  ;;  %v4489_v32 = vmax.f32 %v4374_v16, %v268_v25  ;;  %v4492_v33 = vmax.f32 %v4378_v42, %v269_v27  ;;  %v3966_v42 = vld [vmem:[%s7101_s0 + $0xd0] sm:$0xff]  }
  0x36   :  { %v274_v34 = vmax.f32 %v258_v50, 0.0  ;;  %v4501_v12 = vmax.f32 %v4388_v45, %v270_v30  ;;  %v4504_v15 = vmax.f32 %v4392_v46, %v271_v54  ;;  %v275_v16 = vmax.f32 %v259_v7, 0.0  ;;  %v3967_v45 = vld [vmem:[%s7101_s0 + $0xd8] sm:$0xff]  }
  0x37   :  { %v276_v35 = vmax.f32 %v260_v29, 0.0  ;;  %v4510_v36 = vmax.f32 %v4399_v63, %v272_v22  ;;  %v277_v37 = vmax.f32 %v261_v17, 0.0  ;;  %v278_v38 = vmax.f32 %v262_v18, 0.0 }
  0x38   :  { %v279_v39 = vmax.f32 %v263_v55, 0.0  ;;  %v4516_v40 = vmax.f32 %v4406_v49, %v273_v57  ;;  %v3175_v46 = vunpack.c.l.bf16 %v3964_v10  ;;  %v3176_v41 = vunpack.c.h.bf16 %v3964_v10 }
  0x39   :  { %v3179_v59 = vunpack.c.l.bf16 %v3965_v11  ;;  %v4522_v63 = vmax.f32 %v4413_v5, %v274_v34  ;;  %v3180_v1 = vunpack.c.h.bf16 %v3965_v11  ;;  %v3183_v6 = vunpack.c.l.bf16 %v3966_v42 }
  0x3a   :  { %v3184_v9 = vunpack.c.h.bf16 %v3966_v42  ;;  %v4525_v14 = vmax.f32 %v4417_v28, %v275_v16  ;;  %v4528_v43 = vmax.f32 %v4421_v51, %v276_v35  ;;  %v3187_v49 = vunpack.c.l.bf16 %v3967_v45  ;;  %v3970_v51 = vld [vmem:[%s7101_s0 + $0xf0] sm:$0xff]  }
  0x3b   :  { %v3188_v44 = vunpack.c.h.bf16 %v3967_v45  ;;  %v4534_v47 = vmax.f32 %v4428_v52, %v277_v37  ;;  %v4537_v5 = vmax.f32 %v4432_v13, %v278_v38  ;;  %v4540_v61 = vmax.f32 %v4436_v53, %v279_v39 }
  0x3c   :  { %v3191_v28 = vunpack.c.l.bf16 %v3968_v60  ;;  %v3192_v62 = vunpack.c.h.bf16 %v3968_v60  ;;  %v329_v2 = vmul.f32 %v4210_v8, %v3175_v46  ;;  %v330_v52 = vmul.f32 %v4210_v8, %v3176_v41 }
  0x3d   :  { %v331_v13 = vmul.f32 %v4210_v8, %v3179_v59  ;;  %v3195_v19 = vunpack.c.l.bf16 %v3969_v58  ;;  %v332_v53 = vmul.f32 %v4210_v8, %v3180_v1  ;;  %v333_v48 = vmul.f32 %v4210_v8, %v3183_v6 }
  0x3e   :  { %v334_v3 = vmul.f32 %v4210_v8, %v3184_v9  ;;  %v3196_v4 = vunpack.c.h.bf16 %v3969_v58  ;;  %v3199_v20 = vunpack.c.l.bf16 %v3970_v51  ;;  %v335_v50 = vmul.f32 %v4210_v8, %v3187_v49 }
  0x3f   :  { %v336_v21 = vmul.f32 %v4210_v8, %v3188_v44  ;;  %v3200_v25 = vunpack.c.h.bf16 %v3970_v51  ;;  %v3203_v27 = vunpack.c.l.bf16 %v3971_v0  ;;  %v3204_v7 = vunpack.c.h.bf16 %v3971_v0 }
  0x40   :  { %v337_v29 = vmul.f32 %v4210_v8, %v3191_v28  ;;  %v338_v30 = vmul.f32 %v4210_v8, %v3192_v62  ;;  %v345_v54 = vadd.f32 %v4219_v26, %v329_v2  ;;  %v346_v17 = vadd.f32 %v4219_v26, %v330_v52 }
  0x41   :  { %v347_v18 = vadd.f32 %v4219_v26, %v331_v13  ;;  %v339_v55 = vmul.f32 %v4210_v8, %v3195_v19  ;;  %v348_v22 = vadd.f32 %v4219_v26, %v332_v53  ;;  %v349_v57 = vadd.f32 %v4219_v26, %v333_v48 }
  0x42   :  { %v350_v34 = vadd.f32 %v4219_v26, %v334_v3  ;;  %v340_v10 = vmul.f32 %v4210_v8, %v3196_v4  ;;  %v341_v11 = vmul.f32 %v4210_v8, %v3199_v20  ;;  %v351_v16 = vadd.f32 %v4219_v26, %v335_v50 }
  0x43   :  { %v352_v35 = vadd.f32 %v4219_v26, %v336_v21  ;;  %v342_v42 = vmul.f32 %v4210_v8, %v3200_v25  ;;  %v343_v37 = vmul.f32 %v4210_v8, %v3203_v27  ;;  %v344_v38 = vmul.f32 %v4210_v8, %v3204_v7 }
  0x44   :  { %v353_v39 = vadd.f32 %v4219_v26, %v337_v29  ;;  %v354_v45 = vadd.f32 %v4219_v26, %v338_v30  ;;  %v361_v46 = vmax.f32 %v345_v54, 0.0  ;;  %v362_v41 = vmax.f32 %v346_v17, 0.0  ;;  %v3976_v17 = vld [vmem:[%s7101_s0 + $0x120] sm:$0xff]  }
  0x45   :  { %v363_v59 = vmax.f32 %v347_v18, 0.0  ;;  %v355_v60 = vadd.f32 %v4219_v26, %v339_v55  ;;  %v364_v1 = vmax.f32 %v348_v22, 0.0  ;;  %v365_v6 = vmax.f32 %v349_v57, 0.0 }
  0x46   :  { %v366_v9 = vmax.f32 %v350_v34, 0.0  ;;  %v356_v49 = vadd.f32 %v4219_v26, %v340_v10  ;;  %v357_v44 = vadd.f32 %v4219_v26, %v341_v11  ;;  %v367_v58 = vmax.f32 %v351_v16, 0.0  ;;  %v3977_v11 = vld [vmem:[%s7101_s0 + $0x128] sm:$0xff]  }
  0x47   :  { %v368_v28 = vmax.f32 %v352_v35, 0.0  ;;  %v358_v51 = vadd.f32 %v4219_v26, %v342_v42  ;;  %v359_v62 = vadd.f32 %v4219_v26, %v343_v37  ;;  %v360_v0 = vadd.f32 %v4219_v26, %v344_v38  ;;  %v3979_v37 = vld [vmem:[%s7101_s0 + $0x138] sm:$0xff]  }
  0x48   :  { %v369_v2 = vmax.f32 %v353_v39, 0.0  ;;  %v4581_v52 = vmax.f32 %v4477_v56, %v361_v46  ;;  %v4584_v13 = vmax.f32 %v4480_v23, %v362_v41  ;;  %v4587_v19 = vmax.f32 %v4483_v31, %v363_v59  ;;  %v3972_v56 = vld [vmem:[%s7101_s0 + $0x100] sm:$0xff]   ;;  %v3973_v23 = vld [vmem:[%s7101_s0 + $0x108] sm:$0xff]  }
  0x49   :  { %v370_v53 = vmax.f32 %v354_v45, 0.0  ;;  %v4590_v48 = vmax.f32 %v4486_v24, %v364_v1  ;;  %v4593_v3 = vmax.f32 %v4489_v32, %v365_v6  ;;  %v4596_v4 = vmax.f32 %v4492_v33, %v366_v9  ;;  %v3974_v33 = vld [vmem:[%s7101_s0 + $0x110] sm:$0xff]  }
  0x4a   :  { %v371_v20 = vmax.f32 %v355_v60, 0.0  ;;  %v4605_v31 = vmax.f32 %v4501_v12, %v367_v58  ;;  %v4608_v24 = vmax.f32 %v4504_v15, %v368_v28  ;;  %v372_v32 = vmax.f32 %v356_v49, 0.0  ;;  %v3975_v12 = vld [vmem:[%s7101_s0 + $0x118] sm:$0xff]  }
  0x4b   :  { %v373_v50 = vmax.f32 %v357_v44, 0.0  ;;  %v4614_v21 = vmax.f32 %v4510_v36, %v369_v2  ;;  %v374_v25 = vmax.f32 %v358_v51, 0.0  ;;  %v375_v27 = vmax.f32 %v359_v62, 0.0 }
  0x4c   :  { %v376_v7 = vmax.f32 %v360_v0, 0.0  ;;  %v4620_v29 = vmax.f32 %v4516_v40, %v370_v53  ;;  %v3207_v15 = vunpack.c.l.bf16 %v3972_v56  ;;  %v3208_v30 = vunpack.c.h.bf16 %v3972_v56 }
  0x4d   :  { %v3211_v54 = vunpack.c.l.bf16 %v3973_v23  ;;  %v4626_v36 = vmax.f32 %v4522_v63, %v371_v20  ;;  %v3212_v18 = vunpack.c.h.bf16 %v3973_v23  ;;  %v3215_v55 = vunpack.c.l.bf16 %v3974_v33 }
  0x4e   :  { %v3216_v22 = vunpack.c.h.bf16 %v3974_v33  ;;  %v4629_v57 = vmax.f32 %v4525_v14, %v372_v32  ;;  %v4632_v34 = vmax.f32 %v4528_v43, %v373_v50  ;;  %v3219_v40 = vunpack.c.l.bf16 %v3975_v12  ;;  %v3978_v43 = vld [vmem:[%s7101_s0 + $0x130] sm:$0xff]  }
  0x4f   :  { %v3220_v10 = vunpack.c.h.bf16 %v3975_v12  ;;  %v4638_v16 = vmax.f32 %v4534_v47, %v374_v25  ;;  %v4641_v63 = vmax.f32 %v4537_v5, %v375_v27  ;;  %v4644_v35 = vmax.f32 %v4540_v61, %v376_v7 }
  0x50   :  { %v3223_v14 = vunpack.c.l.bf16 %v3976_v17  ;;  %v3224_v42 = vunpack.c.h.bf16 %v3976_v17  ;;  %v426_v38 = vmul.f32 %v4210_v8, %v3207_v15  ;;  %v427_v47 = vmul.f32 %v4210_v8, %v3208_v30 }
  0x51   :  { %v428_v5 = vmul.f32 %v4210_v8, %v3211_v54  ;;  %v3227_v39 = vunpack.c.l.bf16 %v3977_v11  ;;  %v429_v61 = vmul.f32 %v4210_v8, %v3212_v18  ;;  %v430_v45 = vmul.f32 %v4210_v8, %v3215_v55 }
  0x52   :  { %v431_v46 = vmul.f32 %v4210_v8, %v3216_v22  ;;  %v3228_v41 = vunpack.c.h.bf16 %v3977_v11  ;;  %v3231_v59 = vunpack.c.l.bf16 %v3978_v43  ;;  %v432_v60 = vmul.f32 %v4210_v8, %v3219_v40 }
  0x53   :  { %v433_v1 = vmul.f32 %v4210_v8, %v3220_v10  ;;  %v3232_v6 = vunpack.c.h.bf16 %v3978_v43  ;;  %v3235_v9 = vunpack.c.l.bf16 %v3979_v37  ;;  %v3236_v49 = vunpack.c.h.bf16 %v3979_v37 }
  0x54   :  { %v434_v44 = vmul.f32 %v4210_v8, %v3223_v14  ;;  %v435_v58 = vmul.f32 %v4210_v8, %v3224_v42  ;;  %v442_v28 = vadd.f32 %v4219_v26, %v426_v38  ;;  %v443_v51 = vadd.f32 %v4219_v26, %v427_v47 }
  0x55   :  { %v444_v62 = vadd.f32 %v4219_v26, %v428_v5  ;;  %v436_v0 = vmul.f32 %v4210_v8, %v3227_v39  ;;  %v445_v2 = vadd.f32 %v4219_v26, %v429_v61  ;;  %v446_v53 = vadd.f32 %v4219_v26, %v430_v45 }
  0x56   :  { %v447_v20 = vadd.f32 %v4219_v26, %v431_v46  ;;  %v437_v56 = vmul.f32 %v4210_v8, %v3228_v41  ;;  %v438_v23 = vmul.f32 %v4210_v8, %v3231_v59  ;;  %v448_v32 = vadd.f32 %v4219_v26, %v432_v60 }
  0x57   :  { %v449_v50 = vadd.f32 %v4219_v26, %v433_v1  ;;  %v439_v33 = vmul.f32 %v4210_v8, %v3232_v6  ;;  %v440_v25 = vmul.f32 %v4210_v8, %v3235_v9  ;;  %v441_v27 = vmul.f32 %v4210_v8, %v3236_v49 }
  0x58   :  { %v450_v7 = vadd.f32 %v4219_v26, %v434_v44  ;;  %v451_v12 = vadd.f32 %v4219_v26, %v435_v58  ;;  %v458_v15 = vmax.f32 %v442_v28, 0.0  ;;  %v459_v30 = vmax.f32 %v443_v51, 0.0  ;;  %v3984_v51 = vld [vmem:[%s7101_s0 + $0x160] sm:$0xff]  }
  0x59   :  { %v460_v54 = vmax.f32 %v444_v62, 0.0  ;;  %v452_v17 = vadd.f32 %v4219_v26, %v436_v0  ;;  %v461_v18 = vmax.f32 %v445_v2, 0.0  ;;  %v462_v55 = vmax.f32 %v446_v53, 0.0 }
  0x5a   :  { %v463_v22 = vmax.f32 %v447_v20, 0.0  ;;  %v453_v40 = vadd.f32 %v4219_v26, %v437_v56  ;;  %v454_v10 = vadd.f32 %v4219_v26, %v438_v23  ;;  %v464_v11 = vmax.f32 %v448_v32, 0.0  ;;  %v3985_v23 = vld [vmem:[%s7101_s0 + $0x168] sm:$0xff]  }
  0x5b   :  { %v465_v14 = vmax.f32 %v449_v50, 0.0  ;;  %v455_v43 = vadd.f32 %v4219_v26, %v439_v33  ;;  %v456_v42 = vadd.f32 %v4219_v26, %v440_v25  ;;  %v457_v37 = vadd.f32 %v4219_v26, %v441_v27  ;;  %v3987_v25 = vld [vmem:[%s7101_s0 + $0x178] sm:$0xff]  }
  0x5c   :  { %v466_v38 = vmax.f32 %v450_v7, 0.0  ;;  %v4685_v47 = vmax.f32 %v4581_v52, %v458_v15  ;;  %v4688_v5 = vmax.f32 %v4584_v13, %v459_v30  ;;  %v4691_v39 = vmax.f32 %v4587_v19, %v460_v54  ;;  %v3980_v52 = vld [vmem:[%s7101_s0 + $0x140] sm:$0xff]   ;;  %v3981_v13 = vld [vmem:[%s7101_s0 + $0x148] sm:$0xff]  }
  0x5d   :  { %v467_v61 = vmax.f32 %v451_v12, 0.0  ;;  %v4694_v45 = vmax.f32 %v4590_v48, %v461_v18  ;;  %v4697_v46 = vmax.f32 %v4593_v3, %v462_v55  ;;  %v4700_v41 = vmax.f32 %v4596_v4, %v463_v22  ;;  %v3982_v4 = vld [vmem:[%s7101_s0 + $0x150] sm:$0xff]  }
  0x5e   :  { %v468_v59 = vmax.f32 %v452_v17, 0.0  ;;  %v4709_v19 = vmax.f32 %v4605_v31, %v464_v11  ;;  %v4712_v48 = vmax.f32 %v4608_v24, %v465_v14  ;;  %v469_v3 = vmax.f32 %v453_v40, 0.0  ;;  %v3983_v31 = vld [vmem:[%s7101_s0 + $0x158] sm:$0xff]  }
  0x5f   :  { %v470_v60 = vmax.f32 %v454_v10, 0.0  ;;  %v4718_v1 = vmax.f32 %v4614_v21, %v466_v38  ;;  %v471_v6 = vmax.f32 %v455_v43, 0.0  ;;  %v472_v9 = vmax.f32 %v456_v42, 0.0 }
  0x60   :  { %v473_v49 = vmax.f32 %v457_v37, 0.0  ;;  %v4724_v44 = vmax.f32 %v4620_v29, %v467_v61  ;;  %v3239_v24 = vunpack.c.l.bf16 %v3980_v52  ;;  %v3240_v58 = vunpack.c.h.bf16 %v3980_v52 }
  0x61   :  { %v3243_v28 = vunpack.c.l.bf16 %v3981_v13  ;;  %v4730_v21 = vmax.f32 %v4626_v36, %v468_v59  ;;  %v3244_v62 = vunpack.c.h.bf16 %v3981_v13  ;;  %v3247_v0 = vunpack.c.l.bf16 %v3982_v4 }
  0x62   :  { %v3248_v2 = vunpack.c.h.bf16 %v3982_v4  ;;  %v4733_v53 = vmax.f32 %v4629_v57, %v469_v3  ;;  %v4736_v20 = vmax.f32 %v4632_v34, %v470_v60  ;;  %v3251_v29 = vunpack.c.l.bf16 %v3983_v31  ;;  %v3986_v34 = vld [vmem:[%s7101_s0 + $0x170] sm:$0xff]  }
  0x63   :  { %v3252_v56 = vunpack.c.h.bf16 %v3983_v31  ;;  %v4742_v32 = vmax.f32 %v4638_v16, %v471_v6  ;;  %v4745_v36 = vmax.f32 %v4641_v63, %v472_v9  ;;  %v4748_v50 = vmax.f32 %v4644_v35, %v473_v49 }
  0x64   :  { %v3255_v57 = vunpack.c.l.bf16 %v3984_v51  ;;  %v3256_v33 = vunpack.c.h.bf16 %v3984_v51  ;;  %v523_v27 = vmul.f32 %v4210_v8, %v3239_v24  ;;  %v524_v16 = vmul.f32 %v4210_v8, %v3240_v58 }
  0x65   :  { %v525_v63 = vmul.f32 %v4210_v8, %v3243_v28  ;;  %v3259_v7 = vunpack.c.l.bf16 %v3985_v23  ;;  %v526_v35 = vmul.f32 %v4210_v8, %v3244_v62  ;;  %v527_v12 = vmul.f32 %v4210_v8, %v3247_v0 }
  0x66   :  { %v528_v15 = vmul.f32 %v4210_v8, %v3248_v2  ;;  %v3260_v30 = vunpack.c.h.bf16 %v3985_v23  ;;  %v3263_v54 = vunpack.c.l.bf16 %v3986_v34  ;;  %v529_v17 = vmul.f32 %v4210_v8, %v3251_v29 }
  0x67   :  { %v530_v18 = vmul.f32 %v4210_v8, %v3252_v56  ;;  %v3264_v55 = vunpack.c.h.bf16 %v3986_v34  ;;  %v3267_v22 = vunpack.c.l.bf16 %v3987_v25  ;;  %v3268_v40 = vunpack.c.h.bf16 %v3987_v25 }
  0x68   :  { %v531_v10 = vmul.f32 %v4210_v8, %v3255_v57  ;;  %v532_v11 = vmul.f32 %v4210_v8, %v3256_v33  ;;  %v539_v14 = vadd.f32 %v4219_v26, %v523_v27  ;;  %v540_v43 = vadd.f32 %v4219_v26, %v524_v16 }
  0x69   :  { %v541_v42 = vadd.f32 %v4219_v26, %v525_v63  ;;  %v533_v37 = vmul.f32 %v4210_v8, %v3259_v7  ;;  %v542_v38 = vadd.f32 %v4219_v26, %v526_v35  ;;  %v543_v61 = vadd.f32 %v4219_v26, %v527_v12 }
  0x6a   :  { %v544_v59 = vadd.f32 %v4219_v26, %v528_v15  ;;  %v534_v52 = vmul.f32 %v4210_v8, %v3260_v30  ;;  %v535_v13 = vmul.f32 %v4210_v8, %v3263_v54  ;;  %v545_v3 = vadd.f32 %v4219_v26, %v529_v17 }
  0x6b   :  { %v546_v60 = vadd.f32 %v4219_v26, %v530_v18  ;;  %v536_v4 = vmul.f32 %v4210_v8, %v3264_v55  ;;  %v537_v6 = vmul.f32 %v4210_v8, %v3267_v22  ;;  %v538_v9 = vmul.f32 %v4210_v8, %v3268_v40 }
  0x6c   :  { %v547_v49 = vadd.f32 %v4219_v26, %v531_v10  ;;  %v548_v31 = vadd.f32 %v4219_v26, %v532_v11  ;;  %v555_v24 = vmax.f32 %v539_v14, 0.0  ;;  %v556_v58 = vmax.f32 %v540_v43, 0.0  ;;  %v3992_v11 = vld [vmem:[%s7101_s0 + $0x1a0] sm:$0xff]  }
  0x6d   :  { %v557_v28 = vmax.f32 %v541_v42, 0.0  ;;  %v549_v51 = vadd.f32 %v4219_v26, %v533_v37  ;;  %v558_v62 = vmax.f32 %v542_v38, 0.0  ;;  %v559_v0 = vmax.f32 %v543_v61, 0.0 }
  0x6e   :  { %v560_v2 = vmax.f32 %v544_v59, 0.0  ;;  %v550_v29 = vadd.f32 %v4219_v26, %v534_v52  ;;  %v551_v56 = vadd.f32 %v4219_v26, %v535_v13  ;;  %v561_v23 = vmax.f32 %v545_v3, 0.0  ;;  %v3993_v59 = vld [vmem:[%s7101_s0 + $0x1a8] sm:$0xff]  }
  0x6f   :  { %v562_v57 = vmax.f32 %v546_v60, 0.0  ;;  %v552_v8 = vadd.f32 %v4219_v26, %v536_v4  ;;  %v553_v34 = vadd.f32 %v4219_v26, %v537_v6  ;;  %v554_v33 = vadd.f32 %v4219_v26, %v538_v9  ;;  %v3995_v60 = vld [vmem:[%s7101_s0 + $0x1b8] sm:$0xff]  }
  0x70   :  { %v563_v25 = vmax.f32 %v547_v49, 0.0  ;;  %v4789_v27 = vmax.f32 %v4685_v47, %v555_v24  ;;  %v4792_v16 = vmax.f32 %v4688_v5, %v556_v58  ;;  %v4795_v63 = vmax.f32 %v4691_v39, %v557_v28  ;;  %v3988_v47 = vld [vmem:[%s7101_s0 + $0x180] sm:$0xff]   ;;  %v3989_v5 = vld [vmem:[%s7101_s0 + $0x188] sm:$0xff]  }
  0x71   :  { %v564_v7 = vmax.f32 %v548_v31, 0.0  ;;  %v4798_v35 = vmax.f32 %v4694_v45, %v558_v62  ;;  %v4801_v12 = vmax.f32 %v4697_v46, %v559_v0  ;;  %v4804_v15 = vmax.f32 %v4700_v41, %v560_v2  ;;  %v3990_v41 = vld [vmem:[%s7101_s0 + $0x190] sm:$0xff]  }
  0x72   :  { %v565_v26 = vmax.f32 %v549_v51, 0.0  ;;  %v4813_v39 = vmax.f32 %v4709_v19, %v561_v23  ;;  %v4816_v45 = vmax.f32 %v4712_v48, %v562_v57  ;;  %v566_v46 = vmax.f32 %v550_v29, 0.0  ;;  %v3991_v19 = vld [vmem:[%s7101_s0 + $0x198] sm:$0xff]   ;;  %v4878_v23 = vld [vmem:[%s7102_s2] ss:$0 sm:$0xff] }
  0x73   :  { %v567_v30 = vmax.f32 %v551_v56, 0.0  ;;  %v4822_v54 = vmax.f32 %v4718_v1, %v563_v25  ;;  %v568_v17 = vmax.f32 %v552_v8, 0.0  ;;  %v569_v18 = vmax.f32 %v553_v34, 0.0 }
  0x74   :  { %v570_v55 = vmax.f32 %v554_v33, 0.0  ;;  %v4828_v22 = vmax.f32 %v4724_v44, %v564_v7  ;;  %v3271_v48 = vunpack.c.l.bf16 %v3988_v47  ;;  %v3272_v40 = vunpack.c.h.bf16 %v3988_v47 }
  0x75   :  { %v3275_v10 = vunpack.c.l.bf16 %v3989_v5  ;;  %v4834_v1 = vmax.f32 %v4730_v21, %v565_v26  ;;  %v3276_v14 = vunpack.c.h.bf16 %v3989_v5  ;;  %v3279_v43 = vunpack.c.l.bf16 %v3990_v41 }
  0x76   :  { %v3280_v42 = vunpack.c.h.bf16 %v3990_v41  ;;  %v4837_v37 = vmax.f32 %v4733_v53, %v566_v46  ;;  %v4840_v38 = vmax.f32 %v4736_v20, %v567_v30  ;;  %v3283_v44 = vunpack.c.l.bf16 %v3991_v19  ;;  %v3994_v20 = vld [vmem:[%s7101_s0 + $0x1b0] sm:$0xff]  }
  0x77   :  { %v3284_v61 = vunpack.c.h.bf16 %v3991_v19  ;;  %v4846_v52 = vmax.f32 %v4742_v32, %v568_v17  ;;  %v4849_v21 = vmax.f32 %v4745_v36, %v569_v18  ;;  %v4852_v13 = vmax.f32 %v4748_v50, %v570_v55  ;;  %v4863_v32 = vld [vmem:[%s7100_s1] ss:$0 sm:$0xff] }
  0x78   :  { %v3287_v53 = vunpack.c.l.bf16 %v3992_v11  ;;  %v3288_v3 = vunpack.c.h.bf16 %v3992_v11  ;;  %v620_v36 = vmul.f32 %v4863_v32, %v3271_v48  ;;  %v621_v50 = vmul.f32 %v4863_v32, %v3272_v40 }
  0x79   :  { %v622_v4 = vmul.f32 %v4863_v32, %v3275_v10  ;;  %v3291_v6 = vunpack.c.l.bf16 %v3993_v59  ;;  %v623_v9 = vmul.f32 %v4863_v32, %v3276_v14  ;;  %v624_v49 = vmul.f32 %v4863_v32, %v3279_v43 }
  0x7a   :  { %v625_v31 = vmul.f32 %v4863_v32, %v3280_v42  ;;  %v3292_v24 = vunpack.c.h.bf16 %v3993_v59  ;;  %v3295_v58 = vunpack.c.l.bf16 %v3994_v20  ;;  %v626_v28 = vmul.f32 %v4863_v32, %v3283_v44 }
  0x7b   :  { %v627_v51 = vmul.f32 %v4863_v32, %v3284_v61  ;;  %v3296_v62 = vunpack.c.h.bf16 %v3994_v20  ;;  %v3299_v0 = vunpack.c.l.bf16 %v3995_v60  ;;  %v3300_v2 = vunpack.c.h.bf16 %v3995_v60 }
  0x7c   :  { %v628_v29 = vmul.f32 %v4863_v32, %v3287_v53  ;;  %v629_v56 = vmul.f32 %v4863_v32, %v3288_v3  ;;  %v636_v57 = vadd.f32 %v4878_v23, %v620_v36  ;;  %v637_v8 = vadd.f32 %v4878_v23, %v621_v50 }
  0x7d   :  { %v638_v34 = vadd.f32 %v4878_v23, %v622_v4  ;;  %v630_v33 = vmul.f32 %v4863_v32, %v3291_v6  ;;  %v639_v25 = vadd.f32 %v4878_v23, %v623_v9  ;;  %v640_v7 = vadd.f32 %v4878_v23, %v624_v49 }
  0x7e   :  { %v641_v26 = vadd.f32 %v4878_v23, %v625_v31  ;;  %v631_v47 = vmul.f32 %v4863_v32, %v3292_v24  ;;  %v632_v5 = vmul.f32 %v4863_v32, %v3295_v58  ;;  %v642_v46 = vadd.f32 %v4878_v23, %v626_v28 }
  0x7f   :  { %v643_v30 = vadd.f32 %v4878_v23, %v627_v51  ;;  %v633_v41 = vmul.f32 %v4863_v32, %v3296_v62  ;;  %v634_v17 = vmul.f32 %v4863_v32, %v3299_v0  ;;  %v635_v18 = vmul.f32 %v4863_v32, %v3300_v2 }
  0x80   :  { %v644_v55 = vadd.f32 %v4878_v23, %v628_v29  ;;  %v645_v19 = vadd.f32 %v4878_v23, %v629_v56  ;;  %v652_v48 = vmax.f32 %v636_v57, 0.0  ;;  %v653_v40 = vmax.f32 %v637_v8, 0.0  ;;  %v4000_v8 = vld [vmem:[%s7101_s0 + $0x1e0] sm:$0xff]  }
  0x81   :  { %v654_v10 = vmax.f32 %v638_v34, 0.0  ;;  %v646_v11 = vadd.f32 %v4878_v23, %v630_v33  ;;  %v655_v14 = vmax.f32 %v639_v25, 0.0  ;;  %v656_v43 = vmax.f32 %v640_v7, 0.0 }
  0x82   :  { %v657_v42 = vmax.f32 %v641_v26, 0.0  ;;  %v647_v44 = vadd.f32 %v4878_v23, %v631_v47  ;;  %v648_v61 = vadd.f32 %v4878_v23, %v632_v5  ;;  %v658_v59 = vmax.f32 %v642_v46, 0.0  ;;  %v4001_v5 = vld [vmem:[%s7101_s0 + $0x1e8] sm:$0xff]  }
  0x83   :  { %v659_v53 = vmax.f32 %v643_v30, 0.0  ;;  %v649_v20 = vadd.f32 %v4878_v23, %v633_v41  ;;  %v650_v3 = vadd.f32 %v4878_v23, %v634_v17  ;;  %v651_v60 = vadd.f32 %v4878_v23, %v635_v18  ;;  %v4003_v17 = vld [vmem:[%s7101_s0 + $0x1f8] sm:$0xff]  }
  0x84   :  { %v660_v36 = vmax.f32 %v644_v55, 0.0  ;;  %v4903_v50 = vmax.f32 %v4789_v27, %v652_v48  ;;  %v4906_v4 = vmax.f32 %v4792_v16, %v653_v40  ;;  %v4909_v6 = vmax.f32 %v4795_v63, %v654_v10  ;;  %v3996_v27 = vld [vmem:[%s7101_s0 + $0x1c0] sm:$0xff]   ;;  %v3997_v16 = vld [vmem:[%s7101_s0 + $0x1c8] sm:$0xff]  }
  0x85   :  { %v661_v9 = vmax.f32 %v645_v19, 0.0  ;;  %v4912_v49 = vmax.f32 %v4798_v35, %v655_v14  ;;  %v4915_v31 = vmax.f32 %v4801_v12, %v656_v43  ;;  %v4918_v24 = vmax.f32 %v4804_v15, %v657_v42  ;;  %v3998_v15 = vld [vmem:[%s7101_s0 + $0x1d0] sm:$0xff]  }
  0x86   :  { %v662_v58 = vmax.f32 %v646_v11, 0.0  ;;  %v4927_v63 = vmax.f32 %v4813_v39, %v658_v59  ;;  %v4930_v35 = vmax.f32 %v4816_v45, %v659_v53  ;;  %v663_v12 = vmax.f32 %v647_v44, 0.0  ;;  %v3999_v39 = vld [vmem:[%s7101_s0 + $0x1d8] sm:$0xff]  }
  0x87   :  { %v664_v28 = vmax.f32 %v648_v61, 0.0  ;;  %v4936_v51 = vmax.f32 %v4822_v54, %v660_v36  ;;  %v665_v62 = vmax.f32 %v649_v20, 0.0  ;;  %v666_v0 = vmax.f32 %v650_v3, 0.0 }
  0x88   :  { %v667_v2 = vmax.f32 %v651_v60, 0.0  ;;  %v4942_v29 = vmax.f32 %v4828_v22, %v661_v9  ;;  %v3303_v45 = vunpack.c.l.bf16 %v3996_v27  ;;  %v3304_v56 = vunpack.c.h.bf16 %v3996_v27 }
  0x89   :  { %v3307_v57 = vunpack.c.l.bf16 %v3997_v16  ;;  %v4948_v54 = vmax.f32 %v4834_v1, %v662_v58  ;;  %v3308_v34 = vunpack.c.h.bf16 %v3997_v16  ;;  %v3311_v33 = vunpack.c.l.bf16 %v3998_v15 }
  0x8a   :  { %v3312_v25 = vunpack.c.h.bf16 %v3998_v15  ;;  %v4951_v7 = vmax.f32 %v4837_v37, %v663_v12  ;;  %v4954_v26 = vmax.f32 %v4840_v38, %v664_v28  ;;  %v3315_v22 = vunpack.c.l.bf16 %v3999_v39  ;;  %v4002_v38 = vld [vmem:[%s7101_s0 + $0x1f0] sm:$0xff]  }
  0x8b   :  { %v3316_v47 = vunpack.c.h.bf16 %v3999_v39  ;;  %v4960_v46 = vmax.f32 %v4846_v52, %v665_v62  ;;  %v4963_v1 = vmax.f32 %v4849_v21, %v666_v0  ;;  %v4966_v30 = vmax.f32 %v4852_v13, %v667_v2 }
  0x8c   :  { %v3319_v37 = vunpack.c.l.bf16 %v4000_v8  ;;  %v3320_v41 = vunpack.c.h.bf16 %v4000_v8  ;;  %v717_v18 = vmul.f32 %v4863_v32, %v3303_v45  ;;  %v718_v52 = vmul.f32 %v4863_v32, %v3304_v56 }
  0x8d   :  { %v719_v21 = vmul.f32 %v4863_v32, %v3307_v57  ;;  %v3323_v55 = vunpack.c.l.bf16 %v4001_v5  ;;  %v720_v13 = vmul.f32 %v4863_v32, %v3308_v34  ;;  %v721_v19 = vmul.f32 %v4863_v32, %v3311_v33 }
  0x8e   :  { %v722_v48 = vmul.f32 %v4863_v32, %v3312_v25  ;;  %v3324_v40 = vunpack.c.h.bf16 %v4001_v5  ;;  %v3327_v10 = vunpack.c.l.bf16 %v4002_v38  ;;  %v723_v11 = vmul.f32 %v4863_v32, %v3315_v22 }
  0x8f   :  { %v724_v14 = vmul.f32 %v4863_v32, %v3316_v47  ;;  %v3328_v43 = vunpack.c.h.bf16 %v4002_v38  ;;  %v3331_v42 = vunpack.c.l.bf16 %v4003_v17  ;;  %v3332_v44 = vunpack.c.h.bf16 %v4003_v17 }
  0x90   :  { %v725_v61 = vmul.f32 %v4863_v32, %v3319_v37  ;;  %v726_v59 = vmul.f32 %v4863_v32, %v3320_v41  ;;  %v733_v53 = vadd.f32 %v4878_v23, %v717_v18  ;;  %v734_v20 = vadd.f32 %v4878_v23, %v718_v52 }
  0x91   :  { %v735_v3 = vadd.f32 %v4878_v23, %v719_v21  ;;  %v727_v60 = vmul.f32 %v4863_v32, %v3323_v55  ;;  %v736_v36 = vadd.f32 %v4878_v23, %v720_v13  ;;  %v737_v9 = vadd.f32 %v4878_v23, %v721_v19 }
  0x92   :  { %v738_v58 = vadd.f32 %v4878_v23, %v722_v48  ;;  %v728_v27 = vmul.f32 %v4863_v32, %v3324_v40  ;;  %v729_v16 = vmul.f32 %v4863_v32, %v3327_v10  ;;  %v739_v12 = vadd.f32 %v4878_v23, %v723_v11 }
  0x93   :  { %v740_v28 = vadd.f32 %v4878_v23, %v724_v14  ;;  %v730_v15 = vmul.f32 %v4863_v32, %v3328_v43  ;;  %v731_v62 = vmul.f32 %v4863_v32, %v3331_v42  ;;  %v732_v0 = vmul.f32 %v4863_v32, %v3332_v44 }
  0x94   :  { %v741_v2 = vadd.f32 %v4878_v23, %v725_v61  ;;  %v742_v39 = vadd.f32 %v4878_v23, %v726_v59  ;;  %v749_v45 = vmax.f32 %v733_v53, 0.0  ;;  %v750_v56 = vmax.f32 %v734_v20, 0.0  ;;  %v4008_v20 = vld [vmem:[%s7101_s0 + $0x220] sm:$0xff]  }
  0x95   :  { %v751_v57 = vmax.f32 %v735_v3, 0.0  ;;  %v743_v8 = vadd.f32 %v4878_v23, %v727_v60  ;;  %v752_v34 = vmax.f32 %v736_v36, 0.0  ;;  %v753_v33 = vmax.f32 %v737_v9, 0.0 }
  0x96   :  { %v754_v25 = vmax.f32 %v738_v58, 0.0  ;;  %v744_v22 = vadd.f32 %v4878_v23, %v728_v27  ;;  %v745_v47 = vadd.f32 %v4878_v23, %v729_v16  ;;  %v755_v5 = vmax.f32 %v739_v12, 0.0  ;;  %v4009_v16 = vld [vmem:[%s7101_s0 + $0x228] sm:$0xff]  }
  0x97   :  { %v756_v37 = vmax.f32 %v740_v28, 0.0  ;;  %v746_v38 = vadd.f32 %v4878_v23, %v730_v15  ;;  %v747_v41 = vadd.f32 %v4878_v23, %v731_v62  ;;  %v748_v17 = vadd.f32 %v4878_v23, %v732_v0  ;;  %v4011_v62 = vld [vmem:[%s7101_s0 + $0x238] sm:$0xff]  }
  0x98   :  { %v757_v18 = vmax.f32 %v741_v2, 0.0  ;;  %v5007_v52 = vmax.f32 %v4903_v50, %v749_v45  ;;  %v5010_v21 = vmax.f32 %v4906_v4, %v750_v56  ;;  %v5013_v55 = vmax.f32 %v4909_v6, %v751_v57  ;;  %v4004_v50 = vld [vmem:[%s7101_s0 + $0x200] sm:$0xff]   ;;  %v4005_v4 = vld [vmem:[%s7101_s0 + $0x208] sm:$0xff]  }
  0x99   :  { %v758_v13 = vmax.f32 %v742_v39, 0.0  ;;  %v5016_v19 = vmax.f32 %v4912_v49, %v752_v34  ;;  %v5019_v48 = vmax.f32 %v4915_v31, %v753_v33  ;;  %v5022_v40 = vmax.f32 %v4918_v24, %v754_v25  ;;  %v4006_v24 = vld [vmem:[%s7101_s0 + $0x210] sm:$0xff]  }
  0x9a   :  { %v759_v10 = vmax.f32 %v743_v8, 0.0  ;;  %v5031_v6 = vmax.f32 %v4927_v63, %v755_v5  ;;  %v5034_v49 = vmax.f32 %v4930_v35, %v756_v37  ;;  %v760_v31 = vmax.f32 %v744_v22, 0.0  ;;  %v4007_v63 = vld [vmem:[%s7101_s0 + $0x218] sm:$0xff]  }
  0x9b   :  { %v761_v11 = vmax.f32 %v745_v47, 0.0  ;;  %v5040_v14 = vmax.f32 %v4936_v51, %v757_v18  ;;  %v762_v43 = vmax.f32 %v746_v38, 0.0  ;;  %v763_v42 = vmax.f32 %v747_v41, 0.0 }
  0x9c   :  { %v764_v44 = vmax.f32 %v748_v17, 0.0  ;;  %v5046_v61 = vmax.f32 %v4942_v29, %v758_v13  ;;  %v3335_v35 = vunpack.c.l.bf16 %v4004_v50  ;;  %v3336_v59 = vunpack.c.h.bf16 %v4004_v50 }
  0x9d   :  { %v3339_v53 = vunpack.c.l.bf16 %v4005_v4  ;;  %v5052_v51 = vmax.f32 %v4948_v54, %v759_v10  ;;  %v3340_v3 = vunpack.c.h.bf16 %v4005_v4  ;;  %v3343_v60 = vunpack.c.l.bf16 %v4006_v24 }
  0x9e   :  { %v3344_v36 = vunpack.c.h.bf16 %v4006_v24  ;;  %v5055_v9 = vmax.f32 %v4951_v7, %v760_v31  ;;  %v5058_v58 = vmax.f32 %v4954_v26, %v761_v11  ;;  %v3347_v29 = vunpack.c.l.bf16 %v4007_v63  ;;  %v4010_v26 = vld [vmem:[%s7101_s0 + $0x230] sm:$0xff]  }
  0x9f   :  { %v3348_v27 = vunpack.c.h.bf16 %v4007_v63  ;;  %v5064_v12 = vmax.f32 %v4960_v46, %v762_v43  ;;  %v5067_v54 = vmax.f32 %v4963_v1, %v763_v42  ;;  %v5070_v28 = vmax.f32 %v4966_v30, %v764_v44 }
  0xa0   :  { %v3351_v7 = vunpack.c.l.bf16 %v4008_v20  ;;  %v3352_v15 = vunpack.c.h.bf16 %v4008_v20  ;;  %v814_v0 = vmul.f32 %v4863_v32, %v3335_v35  ;;  %v815_v46 = vmul.f32 %v4863_v32, %v3336_v59 }
  0xa1   :  { %v816_v1 = vmul.f32 %v4863_v32, %v3339_v53  ;;  %v3355_v2 = vunpack.c.l.bf16 %v4009_v16  ;;  %v817_v30 = vmul.f32 %v4863_v32, %v3340_v3  ;;  %v818_v39 = vmul.f32 %v4863_v32, %v3343_v60 }
  0xa2   :  { %v819_v45 = vmul.f32 %v4863_v32, %v3344_v36  ;;  %v3356_v56 = vunpack.c.h.bf16 %v4009_v16  ;;  %v3359_v57 = vunpack.c.l.bf16 %v4010_v26  ;;  %v820_v8 = vmul.f32 %v4863_v32, %v3347_v29 }
  0xa3   :  { %v821_v34 = vmul.f32 %v4863_v32, %v3348_v27  ;;  %v3360_v33 = vunpack.c.h.bf16 %v4010_v26  ;;  %v3363_v25 = vunpack.c.l.bf16 %v4011_v62  ;;  %v3364_v22 = vunpack.c.h.bf16 %v4011_v62 }
  0xa4   :  { %v822_v47 = vmul.f32 %v4863_v32, %v3351_v7  ;;  %v823_v5 = vmul.f32 %v4863_v32, %v3352_v15  ;;  %v830_v37 = vadd.f32 %v4878_v23, %v814_v0  ;;  %v831_v38 = vadd.f32 %v4878_v23, %v815_v46 }
  0xa5   :  { %v832_v41 = vadd.f32 %v4878_v23, %v816_v1  ;;  %v824_v17 = vmul.f32 %v4863_v32, %v3355_v2  ;;  %v833_v18 = vadd.f32 %v4878_v23, %v817_v30  ;;  %v834_v13 = vadd.f32 %v4878_v23, %v818_v39 }
  0xa6   :  { %v835_v10 = vadd.f32 %v4878_v23, %v819_v45  ;;  %v825_v50 = vmul.f32 %v4863_v32, %v3356_v56  ;;  %v826_v4 = vmul.f32 %v4863_v32, %v3359_v57  ;;  %v836_v31 = vadd.f32 %v4878_v23, %v820_v8 }
  0xa7   :  { %v837_v11 = vadd.f32 %v4878_v23, %v821_v34  ;;  %v827_v24 = vmul.f32 %v4863_v32, %v3360_v33  ;;  %v828_v43 = vmul.f32 %v4863_v32, %v3363_v25  ;;  %v829_v42 = vmul.f32 %v4863_v32, %v3364_v22 }
  0xa8   :  { %v838_v44 = vadd.f32 %v4878_v23, %v822_v47  ;;  %v839_v63 = vadd.f32 %v4878_v23, %v823_v5  ;;  %v846_v35 = vmax.f32 %v830_v37, 0.0  ;;  %v847_v59 = vmax.f32 %v831_v38, 0.0  ;;  %v4016_v38 = vld [vmem:[%s7101_s0 + $0x260] sm:$0xff]  }
  0xa9   :  { %v848_v53 = vmax.f32 %v832_v41, 0.0  ;;  %v840_v20 = vadd.f32 %v4878_v23, %v824_v17  ;;  %v849_v3 = vmax.f32 %v833_v18, 0.0  ;;  %v850_v60 = vmax.f32 %v834_v13, 0.0 }
  0xaa   :  { %v851_v36 = vmax.f32 %v835_v10, 0.0  ;;  %v841_v29 = vadd.f32 %v4878_v23, %v825_v50  ;;  %v842_v27 = vadd.f32 %v4878_v23, %v826_v4  ;;  %v852_v16 = vmax.f32 %v836_v31, 0.0  ;;  %v4017_v4 = vld [vmem:[%s7101_s0 + $0x268] sm:$0xff]  }
  0xab   :  { %v853_v7 = vmax.f32 %v837_v11, 0.0  ;;  %v843_v26 = vadd.f32 %v4878_v23, %v827_v24  ;;  %v844_v15 = vadd.f32 %v4878_v23, %v828_v43  ;;  %v845_v62 = vadd.f32 %v4878_v23, %v829_v42  ;;  %v4019_v43 = vld [vmem:[%s7101_s0 + $0x278] sm:$0xff]  }
  0xac   :  { %v854_v0 = vmax.f32 %v838_v44, 0.0  ;;  %v5111_v46 = vmax.f32 %v5007_v52, %v846_v35  ;;  %v5114_v1 = vmax.f32 %v5010_v21, %v847_v59  ;;  %v5117_v2 = vmax.f32 %v5013_v55, %v848_v53  ;;  %v4012_v52 = vld [vmem:[%s7101_s0 + $0x240] sm:$0xff]   ;;  %v4013_v21 = vld [vmem:[%s7101_s0 + $0x248] sm:$0xff]  }
  0xad   :  { %v855_v30 = vmax.f32 %v839_v63, 0.0  ;;  %v5120_v39 = vmax.f32 %v5016_v19, %v849_v3  ;;  %v5123_v45 = vmax.f32 %v5019_v48, %v850_v60  ;;  %v5126_v56 = vmax.f32 %v5022_v40, %v851_v36  ;;  %v4014_v40 = vld [vmem:[%s7101_s0 + $0x250] sm:$0xff]  }
  0xae   :  { %v856_v57 = vmax.f32 %v840_v20, 0.0  ;;  %v5135_v55 = vmax.f32 %v5031_v6, %v852_v16  ;;  %v5138_v19 = vmax.f32 %v5034_v49, %v853_v7  ;;  %v857_v48 = vmax.f32 %v841_v29, 0.0  ;;  %v4015_v6 = vld [vmem:[%s7101_s0 + $0x258] sm:$0xff]  }
  0xaf   :  { %v858_v8 = vmax.f32 %v842_v27, 0.0  ;;  %v5144_v34 = vmax.f32 %v5040_v14, %v854_v0  ;;  %v859_v33 = vmax.f32 %v843_v26, 0.0  ;;  %v860_v25 = vmax.f32 %v844_v15, 0.0 }
  0xb0   :  { %v861_v22 = vmax.f32 %v845_v62, 0.0  ;;  %v5150_v47 = vmax.f32 %v5046_v61, %v855_v30  ;;  %v3367_v49 = vunpack.c.l.bf16 %v4012_v52  ;;  %v3368_v5 = vunpack.c.h.bf16 %v4012_v52 }
  0xb1   :  { %v3371_v37 = vunpack.c.l.bf16 %v4013_v21  ;;  %v5156_v14 = vmax.f32 %v5052_v51, %v856_v57  ;;  %v3372_v41 = vunpack.c.h.bf16 %v4013_v21  ;;  %v3375_v17 = vunpack.c.l.bf16 %v4014_v40 }
  0xb2   :  { %v3376_v18 = vunpack.c.h.bf16 %v4014_v40  ;;  %v5159_v13 = vmax.f32 %v5055_v9, %v857_v48  ;;  %v5162_v10 = vmax.f32 %v5058_v58, %v858_v8  ;;  %v3379_v61 = vunpack.c.l.bf16 %v4015_v6  ;;  %v4018_v58 = vld [vmem:[%s7101_s0 + $0x270] sm:$0xff]  }
  0xb3   :  { %v3380_v50 = vunpack.c.h.bf16 %v4015_v6  ;;  %v5168_v31 = vmax.f32 %v5064_v12, %v859_v33  ;;  %v5171_v51 = vmax.f32 %v5067_v54, %v860_v25  ;;  %v5174_v11 = vmax.f32 %v5070_v28, %v861_v22 }
  0xb4   :  { %v3383_v9 = vunpack.c.l.bf16 %v4016_v38  ;;  %v3384_v24 = vunpack.c.h.bf16 %v4016_v38  ;;  %v911_v42 = vmul.f32 %v4863_v32, %v3367_v49  ;;  %v912_v12 = vmul.f32 %v4863_v32, %v3368_v5 }
  0xb5   :  { %v913_v54 = vmul.f32 %v4863_v32, %v3371_v37  ;;  %v3387_v44 = vunpack.c.l.bf16 %v4017_v4  ;;  %v914_v28 = vmul.f32 %v4863_v32, %v3372_v41  ;;  %v915_v63 = vmul.f32 %v4863_v32, %v3375_v17 }
  0xb6   :  { %v916_v35 = vmul.f32 %v4863_v32, %v3376_v18  ;;  %v3388_v59 = vunpack.c.h.bf16 %v4017_v4  ;;  %v3391_v53 = vunpack.c.l.bf16 %v4018_v58  ;;  %v917_v20 = vmul.f32 %v4863_v32, %v3379_v61 }
  0xb7   :  { %v918_v3 = vmul.f32 %v4863_v32, %v3380_v50  ;;  %v3392_v60 = vunpack.c.h.bf16 %v4018_v58  ;;  %v3395_v36 = vunpack.c.l.bf16 %v4019_v43  ;;  %v3396_v29 = vunpack.c.h.bf16 %v4019_v43 }
  0xb8   :  { %v919_v27 = vmul.f32 %v4863_v32, %v3383_v9  ;;  %v920_v16 = vmul.f32 %v4863_v32, %v3384_v24  ;;  %v927_v7 = vadd.f32 %v4878_v23, %v911_v42  ;;  %v928_v26 = vadd.f32 %v4878_v23, %v912_v12 }
  0xb9   :  { %v929_v15 = vadd.f32 %v4878_v23, %v913_v54  ;;  %v921_v62 = vmul.f32 %v4863_v32, %v3387_v44  ;;  %v930_v0 = vadd.f32 %v4878_v23, %v914_v28  ;;  %v931_v30 = vadd.f32 %v4878_v23, %v915_v63 }
  0xba   :  { %v932_v57 = vadd.f32 %v4878_v23, %v916_v35  ;;  %v922_v52 = vmul.f32 %v4863_v32, %v3388_v59  ;;  %v923_v21 = vmul.f32 %v4863_v32, %v3391_v53  ;;  %v933_v48 = vadd.f32 %v4878_v23, %v917_v20 }
  0xbb   :  { %v934_v8 = vadd.f32 %v4878_v23, %v918_v3  ;;  %v924_v40 = vmul.f32 %v4863_v32, %v3392_v60  ;;  %v925_v33 = vmul.f32 %v4863_v32, %v3395_v36  ;;  %v926_v25 = vmul.f32 %v4863_v32, %v3396_v29 }
  0xbc   :  { %v935_v22 = vadd.f32 %v4878_v23, %v919_v27  ;;  %v936_v6 = vadd.f32 %v4878_v23, %v920_v16  ;;  %v943_v49 = vmax.f32 %v927_v7, 0.0  ;;  %v944_v5 = vmax.f32 %v928_v26, 0.0  ;;  %v4024_v26 = vld [vmem:[%s7101_s0 + $0x2a0] sm:$0xff]  }
  0xbd   :  { %v945_v37 = vmax.f32 %v929_v15, 0.0  ;;  %v937_v38 = vadd.f32 %v4878_v23, %v921_v62  ;;  %v946_v41 = vmax.f32 %v930_v0, 0.0  ;;  %v947_v17 = vmax.f32 %v931_v30, 0.0 }
  0xbe   :  { %v948_v18 = vmax.f32 %v932_v57, 0.0  ;;  %v938_v61 = vadd.f32 %v4878_v23, %v922_v52  ;;  %v939_v50 = vadd.f32 %v4878_v23, %v923_v21  ;;  %v949_v4 = vmax.f32 %v933_v48, 0.0  ;;  %v4025_v21 = vld [vmem:[%s7101_s0 + $0x2a8] sm:$0xff]  }
  0xbf   :  { %v950_v9 = vmax.f32 %v934_v8, 0.0  ;;  %v940_v58 = vadd.f32 %v4878_v23, %v924_v40  ;;  %v941_v24 = vadd.f32 %v4878_v23, %v925_v33  ;;  %v942_v43 = vadd.f32 %v4878_v23, %v926_v25  ;;  %v4027_v33 = vld [vmem:[%s7101_s0 + $0x2b8] sm:$0xff]  }
  0xc0   :  { %v951_v42 = vmax.f32 %v935_v22, 0.0  ;;  %v5215_v12 = vmax.f32 %v5111_v46, %v943_v49  ;;  %v5218_v54 = vmax.f32 %v5114_v1, %v944_v5  ;;  %v5221_v44 = vmax.f32 %v5117_v2, %v945_v37  ;;  %v4020_v46 = vld [vmem:[%s7101_s0 + $0x280] sm:$0xff]   ;;  %v4021_v1 = vld [vmem:[%s7101_s0 + $0x288] sm:$0xff]  }
  0xc1   :  { %v952_v28 = vmax.f32 %v936_v6, 0.0  ;;  %v5224_v63 = vmax.f32 %v5120_v39, %v946_v41  ;;  %v5227_v35 = vmax.f32 %v5123_v45, %v947_v17  ;;  %v5230_v59 = vmax.f32 %v5126_v56, %v948_v18  ;;  %v4022_v56 = vld [vmem:[%s7101_s0 + $0x290] sm:$0xff]  }
  0xc2   :  { %v953_v53 = vmax.f32 %v937_v38, 0.0  ;;  %v5239_v2 = vmax.f32 %v5135_v55, %v949_v4  ;;  %v5242_v39 = vmax.f32 %v5138_v19, %v950_v9  ;;  %v954_v45 = vmax.f32 %v938_v61, 0.0  ;;  %v4023_v55 = vld [vmem:[%s7101_s0 + $0x298] sm:$0xff]  }
  0xc3   :  { %v955_v20 = vmax.f32 %v939_v50, 0.0  ;;  %v5248_v3 = vmax.f32 %v5144_v34, %v951_v42  ;;  %v956_v60 = vmax.f32 %v940_v58, 0.0  ;;  %v957_v36 = vmax.f32 %v941_v24, 0.0 }
  0xc4   :  { %v958_v29 = vmax.f32 %v942_v43, 0.0  ;;  %v5254_v27 = vmax.f32 %v5150_v47, %v952_v28  ;;  %v3399_v19 = vunpack.c.l.bf16 %v4020_v46  ;;  %v3400_v16 = vunpack.c.h.bf16 %v4020_v46 }
  0xc5   :  { %v3403_v7 = vunpack.c.l.bf16 %v4021_v1  ;;  %v5260_v34 = vmax.f32 %v5156_v14, %v953_v53  ;;  %v3404_v15 = vunpack.c.h.bf16 %v4021_v1  ;;  %v3407_v62 = vunpack.c.l.bf16 %v4022_v56 }
  0xc6   :  { %v3408_v0 = vunpack.c.h.bf16 %v4022_v56  ;;  %v5263_v30 = vmax.f32 %v5159_v13, %v954_v45  ;;  %v5266_v57 = vmax.f32 %v5162_v10, %v955_v20  ;;  %v3411_v47 = vunpack.c.l.bf16 %v4023_v55  ;;  %v4026_v10 = vld [vmem:[%s7101_s0 + $0x2b0] sm:$0xff]  }
  0xc7   :  { %v3412_v52 = vunpack.c.h.bf16 %v4023_v55  ;;  %v5272_v48 = vmax.f32 %v5168_v31, %v956_v60  ;;  %v5275_v14 = vmax.f32 %v5171_v51, %v957_v36  ;;  %v5278_v8 = vmax.f32 %v5174_v11, %v958_v29 }
  0xc8   :  { %v3415_v13 = vunpack.c.l.bf16 %v4024_v26  ;;  %v3416_v40 = vunpack.c.h.bf16 %v4024_v26  ;;  %v1008_v25 = vmul.f32 %v4863_v32, %v3399_v19  ;;  %v1009_v31 = vmul.f32 %v4863_v32, %v3400_v16 }
  0xc9   :  { %v1010_v51 = vmul.f32 %v4863_v32, %v3403_v7  ;;  %v3419_v22 = vunpack.c.l.bf16 %v4025_v21  ;;  %v1011_v11 = vmul.f32 %v4863_v32, %v3404_v15  ;;  %v1012_v6 = vmul.f32 %v4863_v32, %v3407_v62 }
  0xca   :  { %v1013_v49 = vmul.f32 %v4863_v32, %v3408_v0  ;;  %v3420_v5 = vunpack.c.h.bf16 %v4025_v21  ;;  %v3423_v37 = vunpack.c.l.bf16 %v4026_v10  ;;  %v1014_v38 = vmul.f32 %v4863_v32, %v3411_v47 }
  0xcb   :  { %v1015_v41 = vmul.f32 %v4863_v32, %v3412_v52  ;;  %v3424_v17 = vunpack.c.h.bf16 %v4026_v10  ;;  %v3427_v18 = vunpack.c.l.bf16 %v4027_v33  ;;  %v3428_v61 = vunpack.c.h.bf16 %v4027_v33 }
  0xcc   :  { %v1016_v50 = vmul.f32 %v4863_v32, %v3415_v13  ;;  %v1017_v4 = vmul.f32 %v4863_v32, %v3416_v40  ;;  %v1024_v9 = vadd.f32 %v4878_v23, %v1008_v25  ;;  %v1025_v58 = vadd.f32 %v4878_v23, %v1009_v31 }
  0xcd   :  { %v1026_v24 = vadd.f32 %v4878_v23, %v1010_v51  ;;  %v1018_v43 = vmul.f32 %v4863_v32, %v3419_v22  ;;  %v1027_v42 = vadd.f32 %v4878_v23, %v1011_v11  ;;  %v1028_v28 = vadd.f32 %v4878_v23, %v1012_v6 }
  0xce   :  { %v1029_v53 = vadd.f32 %v4878_v23, %v1013_v49  ;;  %v1019_v46 = vmul.f32 %v4863_v32, %v3420_v5  ;;  %v1020_v1 = vmul.f32 %v4863_v32, %v3423_v37  ;;  %v1030_v45 = vadd.f32 %v4878_v23, %v1014_v38 }
  0xcf   :  { %v1031_v20 = vadd.f32 %v4878_v23, %v1015_v41  ;;  %v1021_v56 = vmul.f32 %v4863_v32, %v3424_v17  ;;  %v1022_v60 = vmul.f32 %v4863_v32, %v3427_v18  ;;  %v1023_v36 = vmul.f32 %v4863_v32, %v3428_v61 }
  0xd0   :  { %v1032_v29 = vadd.f32 %v4878_v23, %v1016_v50  ;;  %v1033_v55 = vadd.f32 %v4878_v23, %v1017_v4  ;;  %v1040_v19 = vmax.f32 %v1024_v9, 0.0  ;;  %v1041_v16 = vmax.f32 %v1025_v58, 0.0  ;;  %v4032_v58 = vld [vmem:[%s7101_s0 + $0x2e0] sm:$0xff]  }
  0xd1   :  { %v1042_v7 = vmax.f32 %v1026_v24, 0.0  ;;  %v1034_v26 = vadd.f32 %v4878_v23, %v1018_v43  ;;  %v1043_v15 = vmax.f32 %v1027_v42, 0.0  ;;  %v1044_v62 = vmax.f32 %v1028_v28, 0.0 }
  0xd2   :  { %v1045_v0 = vmax.f32 %v1029_v53, 0.0  ;;  %v1035_v47 = vadd.f32 %v4878_v23, %v1019_v46  ;;  %v1036_v52 = vadd.f32 %v4878_v23, %v1020_v1  ;;  %v1046_v21 = vmax.f32 %v1030_v45, 0.0  ;;  %v4033_v1 = vld [vmem:[%s7101_s0 + $0x2e8] sm:$0xff]  }
  0xd3   :  { %v1047_v13 = vmax.f32 %v1031_v20, 0.0  ;;  %v1037_v10 = vadd.f32 %v4878_v23, %v1021_v56  ;;  %v1038_v40 = vadd.f32 %v4878_v23, %v1022_v60  ;;  %v1039_v33 = vadd.f32 %v4878_v23, %v1023_v36  ;;  %v4035_v60 = vld [vmem:[%s7101_s0 + $0x2f8] sm:$0xff]  }
  0xd4   :  { %v1048_v25 = vmax.f32 %v1032_v29, 0.0  ;;  %v5319_v31 = vmax.f32 %v5215_v12, %v1040_v19  ;;  %v5322_v51 = vmax.f32 %v5218_v54, %v1041_v16  ;;  %v5325_v22 = vmax.f32 %v5221_v44, %v1042_v7  ;;  %v4028_v12 = vld [vmem:[%s7101_s0 + $0x2c0] sm:$0xff]   ;;  %v4029_v54 = vld [vmem:[%s7101_s0 + $0x2c8] sm:$0xff]  }
  0xd5   :  { %v1049_v11 = vmax.f32 %v1033_v55, 0.0  ;;  %v5328_v6 = vmax.f32 %v5224_v63, %v1043_v15  ;;  %v5331_v49 = vmax.f32 %v5227_v35, %v1044_v62  ;;  %v5334_v5 = vmax.f32 %v5230_v59, %v1045_v0  ;;  %v4030_v59 = vld [vmem:[%s7101_s0 + $0x2d0] sm:$0xff]  }
  0xd6   :  { %v1050_v37 = vmax.f32 %v1034_v26, 0.0  ;;  %v5343_v44 = vmax.f32 %v5239_v2, %v1046_v21  ;;  %v5346_v63 = vmax.f32 %v5242_v39, %v1047_v13  ;;  %v1051_v35 = vmax.f32 %v1035_v47, 0.0  ;;  %v4031_v2 = vld [vmem:[%s7101_s0 + $0x2d8] sm:$0xff]  }
  0xd7   :  { %v1052_v38 = vmax.f32 %v1036_v52, 0.0  ;;  %v5352_v41 = vmax.f32 %v5248_v3, %v1048_v25  ;;  %v1053_v17 = vmax.f32 %v1037_v10, 0.0  ;;  %v1054_v18 = vmax.f32 %v1038_v40, 0.0 }
  0xd8   :  { %v1055_v61 = vmax.f32 %v1039_v33, 0.0  ;;  %v5358_v50 = vmax.f32 %v5254_v27, %v1049_v11  ;;  %v3431_v39 = vunpack.c.l.bf16 %v4028_v12  ;;  %v3432_v4 = vunpack.c.h.bf16 %v4028_v12 }
  0xd9   :  { %v3435_v9 = vunpack.c.l.bf16 %v4029_v54  ;;  %v5364_v3 = vmax.f32 %v5260_v34, %v1050_v37  ;;  %v3436_v24 = vunpack.c.h.bf16 %v4029_v54  ;;  %v3439_v43 = vunpack.c.l.bf16 %v4030_v59 }
  0xda   :  { %v3440_v42 = vunpack.c.h.bf16 %v4030_v59  ;;  %v5367_v28 = vmax.f32 %v5263_v30, %v1051_v35  ;;  %v5370_v53 = vmax.f32 %v5266_v57, %v1052_v38  ;;  %v3443_v27 = vunpack.c.l.bf16 %v4031_v2  ;;  %v4034_v57 = vld [vmem:[%s7101_s0 + $0x2f0] sm:$0xff]  }
  0xdb   :  { %v3444_v46 = vunpack.c.h.bf16 %v4031_v2  ;;  %v5376_v45 = vmax.f32 %v5272_v48, %v1053_v17  ;;  %v5379_v34 = vmax.f32 %v5275_v14, %v1054_v18  ;;  %v5382_v20 = vmax.f32 %v5278_v8, %v1055_v61 }
  0xdc   :  { %v3447_v30 = vunpack.c.l.bf16 %v4032_v58  ;;  %v3448_v56 = vunpack.c.h.bf16 %v4032_v58  ;;  %v1105_v36 = vmul.f32 %v4863_v32, %v3431_v39  ;;  %v1106_v48 = vmul.f32 %v4863_v32, %v3432_v4 }
  0xdd   :  { %v1107_v14 = vmul.f32 %v4863_v32, %v3435_v9  ;;  %v3451_v29 = vunpack.c.l.bf16 %v4033_v1  ;;  %v1108_v8 = vmul.f32 %v4863_v32, %v3436_v24  ;;  %v1109_v55 = vmul.f32 %v4863_v32, %v3439_v43 }
  0xde   :  { %v1110_v19 = vmul.f32 %v4863_v32, %v3440_v42  ;;  %v3452_v16 = vunpack.c.h.bf16 %v4033_v1  ;;  %v3455_v7 = vunpack.c.l.bf16 %v4034_v57  ;;  %v1111_v26 = vmul.f32 %v4863_v32, %v3443_v27 }
  0xdf   :  { %v1112_v15 = vmul.f32 %v4863_v32, %v3444_v46  ;;  %v3456_v62 = vunpack.c.h.bf16 %v4034_v57  ;;  %v3459_v0 = vunpack.c.l.bf16 %v4035_v60  ;;  %v3460_v47 = vunpack.c.h.bf16 %v4035_v60 }
  0xe0   :  { %v1113_v52 = vmul.f32 %v4863_v32, %v3447_v30  ;;  %v1114_v21 = vmul.f32 %v4863_v32, %v3448_v56  ;;  %v1121_v13 = vadd.f32 %v4878_v23, %v1105_v36  ;;  %v1122_v10 = vadd.f32 %v4878_v23, %v1106_v48 }
  0xe1   :  { %v1123_v40 = vadd.f32 %v4878_v23, %v1107_v14  ;;  %v1115_v33 = vmul.f32 %v4863_v32, %v3451_v29  ;;  %v1124_v25 = vadd.f32 %v4878_v23, %v1108_v8  ;;  %v1125_v11 = vadd.f32 %v4878_v23, %v1109_v55 }
  0xe2   :  { %v1126_v37 = vadd.f32 %v4878_v23, %v1110_v19  ;;  %v1116_v12 = vmul.f32 %v4863_v32, %v3452_v16  ;;  %v1117_v54 = vmul.f32 %v4863_v32, %v3455_v7  ;;  %v1127_v35 = vadd.f32 %v4878_v23, %v1111_v26 }
  0xe3   :  { %v1128_v38 = vadd.f32 %v4878_v23, %v1112_v15  ;;  %v1118_v59 = vmul.f32 %v4863_v32, %v3456_v62  ;;  %v1119_v17 = vmul.f32 %v4863_v32, %v3459_v0  ;;  %v1120_v18 = vmul.f32 %v4863_v32, %v3460_v47 }
  0xe4   :  { %v1129_v61 = vadd.f32 %v4878_v23, %v1113_v52  ;;  %v1130_v2 = vadd.f32 %v4878_v23, %v1114_v21  ;;  %v1137_v39 = vmax.f32 %v1121_v13, 0.0  ;;  %v1138_v4 = vmax.f32 %v1122_v10, 0.0  ;;  %v4040_v21 = vld [vmem:[%s7101_s0 + $0x320] sm:$0xff]  }
  0xe5   :  { %v1139_v9 = vmax.f32 %v1123_v40, 0.0  ;;  %v1131_v58 = vadd.f32 %v4878_v23, %v1115_v33  ;;  %v1140_v24 = vmax.f32 %v1124_v25, 0.0  ;;  %v1141_v43 = vmax.f32 %v1125_v11, 0.0 }
  0xe6   :  { %v1142_v42 = vmax.f32 %v1126_v37, 0.0  ;;  %v1132_v27 = vadd.f32 %v4878_v23, %v1116_v12  ;;  %v1133_v46 = vadd.f32 %v4878_v23, %v1117_v54  ;;  %v1143_v1 = vmax.f32 %v1127_v35, 0.0  ;;  %v4041_v37 = vld [vmem:[%s7101_s0 + $0x328] sm:$0xff]  }
  0xe7   :  { %v1144_v30 = vmax.f32 %v1128_v38, 0.0  ;;  %v1134_v32 = vadd.f32 %v4878_v23, %v1118_v59  ;;  %v1135_v57 = vadd.f32 %v4878_v23, %v1119_v17  ;;  %v1136_v56 = vadd.f32 %v4878_v23, %v1120_v18  ;;  %v4043_v38 = vld [vmem:[%s7101_s0 + $0x338] sm:$0xff]  }
  0xe8   :  { %v1145_v60 = vmax.f32 %v1129_v61, 0.0  ;;  %v5423_v36 = vmax.f32 %v5319_v31, %v1137_v39  ;;  %v5426_v48 = vmax.f32 %v5322_v51, %v1138_v4  ;;  %v5429_v14 = vmax.f32 %v5325_v22, %v1139_v9  ;;  %v4036_v31 = vld [vmem:[%s7101_s0 + $0x300] sm:$0xff]   ;;  %v4037_v51 = vld [vmem:[%s7101_s0 + $0x308] sm:$0xff]  }
  0xe9   :  { %v1146_v29 = vmax.f32 %v1130_v2, 0.0  ;;  %v5432_v8 = vmax.f32 %v5328_v6, %v1140_v24  ;;  %v5435_v55 = vmax.f32 %v5331_v49, %v1141_v43  ;;  %v5438_v19 = vmax.f32 %v5334_v5, %v1142_v42  ;;  %v4038_v5 = vld [vmem:[%s7101_s0 + $0x310] sm:$0xff]  }
  0xea   :  { %v1147_v23 = vmax.f32 %v1131_v58, 0.0  ;;  %v5447_v22 = vmax.f32 %v5343_v44, %v1143_v1  ;;  %v5450_v6 = vmax.f32 %v5346_v63, %v1144_v30  ;;  %v1148_v49 = vmax.f32 %v1132_v27, 0.0  ;;  %v4039_v44 = vld [vmem:[%s7101_s0 + $0x318] sm:$0xff]   ;;  %v5512_v1 = vld [vmem:[%s7102_s2] ss:$0 sm:$0xff] }
  0xeb   :  { %v1149_v16 = vmax.f32 %v1133_v46, 0.0  ;;  %v5456_v7 = vmax.f32 %v5352_v41, %v1145_v60  ;;  %v1150_v26 = vmax.f32 %v1134_v32, 0.0  ;;  %v1151_v15 = vmax.f32 %v1135_v57, 0.0 }
  0xec   :  { %v1152_v62 = vmax.f32 %v1136_v56, 0.0  ;;  %v5462_v0 = vmax.f32 %v5358_v50, %v1146_v29  ;;  %v3463_v63 = vunpack.c.l.bf16 %v4036_v31  ;;  %v3464_v47 = vunpack.c.h.bf16 %v4036_v31 }
  0xed   :  { %v3467_v52 = vunpack.c.l.bf16 %v4037_v51  ;;  %v5468_v41 = vmax.f32 %v5364_v3, %v1147_v23  ;;  %v3468_v13 = vunpack.c.h.bf16 %v4037_v51  ;;  %v3471_v10 = vunpack.c.l.bf16 %v4038_v5 }
  0xee   :  { %v3472_v40 = vunpack.c.h.bf16 %v4038_v5  ;;  %v5471_v33 = vmax.f32 %v5367_v28, %v1148_v49  ;;  %v5474_v25 = vmax.f32 %v5370_v53, %v1149_v16  ;;  %v3475_v50 = vunpack.c.l.bf16 %v4039_v44  ;;  %v4042_v53 = vld [vmem:[%s7101_s0 + $0x330] sm:$0xff]  }
  0xef   :  { %v3476_v11 = vunpack.c.h.bf16 %v4039_v44  ;;  %v5480_v12 = vmax.f32 %v5376_v45, %v1150_v26  ;;  %v5483_v3 = vmax.f32 %v5379_v34, %v1151_v15  ;;  %v5486_v54 = vmax.f32 %v5382_v20, %v1152_v62  ;;  %v5497_v45 = vld [vmem:[%s7100_s1] ss:$0 sm:$0xff] }
  0xf0   :  { %v3479_v28 = vunpack.c.l.bf16 %v4040_v21  ;;  %v3480_v35 = vunpack.c.h.bf16 %v4040_v21  ;;  %v1202_v34 = vmul.f32 %v5497_v45, %v3463_v63  ;;  %v1203_v20 = vmul.f32 %v5497_v45, %v3464_v47 }
  0xf1   :  { %v1204_v59 = vmul.f32 %v5497_v45, %v3467_v52  ;;  %v3483_v17 = vunpack.c.l.bf16 %v4041_v37  ;;  %v1205_v18 = vmul.f32 %v5497_v45, %v3468_v13  ;;  %v1206_v61 = vmul.f32 %v5497_v45, %v3471_v10 }
  0xf2   :  { %v1207_v2 = vmul.f32 %v5497_v45, %v3472_v40  ;;  %v3484_v39 = vunpack.c.h.bf16 %v4041_v37  ;;  %v3487_v4 = vunpack.c.l.bf16 %v4042_v53  ;;  %v1208_v9 = vmul.f32 %v5497_v45, %v3475_v50 }
  0xf3   :  { %v1209_v58 = vmul.f32 %v5497_v45, %v3476_v11  ;;  %v3488_v24 = vunpack.c.h.bf16 %v4042_v53  ;;  %v3491_v43 = vunpack.c.l.bf16 %v4043_v38  ;;  %v3492_v42 = vunpack.c.h.bf16 %v4043_v38 }
  0xf4   :  { %v1210_v27 = vmul.f32 %v5497_v45, %v3479_v28  ;;  %v1211_v46 = vmul.f32 %v5497_v45, %v3480_v35  ;;  %v1218_v30 = vadd.f32 %v5512_v1, %v1202_v34  ;;  %v1219_v32 = vadd.f32 %v5512_v1, %v1203_v20 }
  0xf5   :  { %v1220_v57 = vadd.f32 %v5512_v1, %v1204_v59  ;;  %v1212_v56 = vmul.f32 %v5497_v45, %v3483_v17  ;;  %v1221_v60 = vadd.f32 %v5512_v1, %v1205_v18  ;;  %v1222_v29 = vadd.f32 %v5512_v1, %v1206_v61 }
  0xf6   :  { %v1223_v23 = vadd.f32 %v5512_v1, %v1207_v2  ;;  %v1213_v31 = vmul.f32 %v5497_v45, %v3484_v39  ;;  %v1214_v51 = vmul.f32 %v5497_v45, %v3487_v4  ;;  %v1224_v49 = vadd.f32 %v5512_v1, %v1208_v9 }
  0xf7   :  { %v1225_v16 = vadd.f32 %v5512_v1, %v1209_v58  ;;  %v1215_v5 = vmul.f32 %v5497_v45, %v3488_v24  ;;  %v1216_v26 = vmul.f32 %v5497_v45, %v3491_v43  ;;  %v1217_v15 = vmul.f32 %v5497_v45, %v3492_v42 }
  0xf8   :  { %v1226_v62 = vadd.f32 %v5512_v1, %v1210_v27  ;;  %v1227_v44 = vadd.f32 %v5512_v1, %v1211_v46  ;;  %v1234_v63 = vmax.f32 %v1218_v30, 0.0  ;;  %v1235_v47 = vmax.f32 %v1219_v32, 0.0  ;;  %v4048_v32 = vld [vmem:[%s7101_s0 + $0x360] sm:$0xff]  }
  0xf9   :  { %v1236_v52 = vmax.f32 %v1220_v57, 0.0  ;;  %v1228_v21 = vadd.f32 %v5512_v1, %v1212_v56  ;;  %v1237_v13 = vmax.f32 %v1221_v60, 0.0  ;;  %v1238_v10 = vmax.f32 %v1222_v29, 0.0 }
  0xfa   :  { %v1239_v40 = vmax.f32 %v1223_v23, 0.0  ;;  %v1229_v50 = vadd.f32 %v5512_v1, %v1213_v31  ;;  %v1230_v11 = vadd.f32 %v5512_v1, %v1214_v51  ;;  %v1240_v37 = vmax.f32 %v1224_v49, 0.0  ;;  %v4049_v51 = vld [vmem:[%s7101_s0 + $0x368] sm:$0xff]  }
  0xfb   :  { %v1241_v28 = vmax.f32 %v1225_v16, 0.0  ;;  %v1231_v53 = vadd.f32 %v5512_v1, %v1215_v5  ;;  %v1232_v35 = vadd.f32 %v5512_v1, %v1216_v26  ;;  %v1233_v38 = vadd.f32 %v5512_v1, %v1217_v15  ;;  %v4051_v26 = vld [vmem:[%s7101_s0 + $0x378] sm:$0xff]  }
  0xfc   :  { %v1242_v34 = vmax.f32 %v1226_v62, 0.0  ;;  %v5537_v20 = vmax.f32 %v5423_v36, %v1234_v63  ;;  %v5540_v59 = vmax.f32 %v5426_v48, %v1235_v47  ;;  %v5543_v17 = vmax.f32 %v5429_v14, %v1236_v52  ;;  %v4044_v36 = vld [vmem:[%s7101_s0 + $0x340] sm:$0xff]   ;;  %v4045_v48 = vld [vmem:[%s7101_s0 + $0x348] sm:$0xff]  }
  0xfd   :  { %v1243_v18 = vmax.f32 %v1227_v44, 0.0  ;;  %v5546_v61 = vmax.f32 %v5432_v8, %v1237_v13  ;;  %v5549_v2 = vmax.f32 %v5435_v55, %v1238_v10  ;;  %v5552_v39 = vmax.f32 %v5438_v19, %v1239_v40  ;;  %v4046_v19 = vld [vmem:[%s7101_s0 + $0x350] sm:$0xff]  }
  0xfe   :  { %v1244_v4 = vmax.f32 %v1228_v21, 0.0  ;;  %v5561_v14 = vmax.f32 %v5447_v22, %v1240_v37  ;;  %v5564_v8 = vmax.f32 %v5450_v6, %v1241_v28  ;;  %v1245_v55 = vmax.f32 %v1229_v50, 0.0  ;;  %v4047_v22 = vld [vmem:[%s7101_s0 + $0x358] sm:$0xff]  }
  0xff   :  { %v1246_v9 = vmax.f32 %v1230_v11, 0.0  ;;  %v5570_v58 = vmax.f32 %v5456_v7, %v1242_v34  ;;  %v1247_v24 = vmax.f32 %v1231_v53, 0.0  ;;  %v1248_v43 = vmax.f32 %v1232_v35, 0.0 }
 0x100   :  { %v1249_v42 = vmax.f32 %v1233_v38, 0.0  ;;  %v5576_v27 = vmax.f32 %v5462_v0, %v1243_v18  ;;  %v3495_v6 = vunpack.c.l.bf16 %v4044_v36  ;;  %v3496_v46 = vunpack.c.h.bf16 %v4044_v36 }
 0x101   :  { %v3499_v30 = vunpack.c.l.bf16 %v4045_v48  ;;  %v5582_v7 = vmax.f32 %v5468_v41, %v1244_v4  ;;  %v3500_v57 = vunpack.c.h.bf16 %v4045_v48  ;;  %v3503_v56 = vunpack.c.l.bf16 %v4046_v19 }
 0x102   :  { %v3504_v60 = vunpack.c.h.bf16 %v4046_v19  ;;  %v5585_v29 = vmax.f32 %v5471_v33, %v1245_v55  ;;  %v5588_v23 = vmax.f32 %v5474_v25, %v1246_v9  ;;  %v3507_v0 = vunpack.c.l.bf16 %v4047_v22  ;;  %v4050_v25 = vld [vmem:[%s7101_s0 + $0x370] sm:$0xff]  }
 0x103   :  { %v3508_v31 = vunpack.c.h.bf16 %v4047_v22  ;;  %v5594_v49 = vmax.f32 %v5480_v12, %v1247_v24  ;;  %v5597_v41 = vmax.f32 %v5483_v3, %v1248_v43  ;;  %v5600_v16 = vmax.f32 %v5486_v54, %v1249_v42 }
 0x104   :  { %v3511_v33 = vunpack.c.l.bf16 %v4048_v32  ;;  %v3512_v5 = vunpack.c.h.bf16 %v4048_v32  ;;  %v1299_v15 = vmul.f32 %v5497_v45, %v3495_v6  ;;  %v1300_v12 = vmul.f32 %v5497_v45, %v3496_v46 }
 0x105   :  { %v1301_v3 = vmul.f32 %v5497_v45, %v3499_v30  ;;  %v3515_v62 = vunpack.c.l.bf16 %v4049_v51  ;;  %v1302_v54 = vmul.f32 %v5497_v45, %v3500_v57  ;;  %v1303_v44 = vmul.f32 %v5497_v45, %v3503_v56 }
 0x106   :  { %v1304_v63 = vmul.f32 %v5497_v45, %v3504_v60  ;;  %v3516_v47 = vunpack.c.h.bf16 %v4049_v51  ;;  %v3519_v52 = vunpack.c.l.bf16 %v4050_v25  ;;  %v1305_v21 = vmul.f32 %v5497_v45, %v3507_v0 }
 0x107   :  { %v1306_v13 = vmul.f32 %v5497_v45, %v3508_v31  ;;  %v3520_v10 = vunpack.c.h.bf16 %v4050_v25  ;;  %v3523_v40 = vunpack.c.l.bf16 %v4051_v26  ;;  %v3524_v50 = vunpack.c.h.bf16 %v4051_v26 }
 0x108   :  { %v1307_v11 = vmul.f32 %v5497_v45, %v3511_v33  ;;  %v1308_v37 = vmul.f32 %v5497_v45, %v3512_v5  ;;  %v1315_v28 = vadd.f32 %v5512_v1, %v1299_v15  ;;  %v1316_v53 = vadd.f32 %v5512_v1, %v1300_v12 }
 0x109   :  { %v1317_v35 = vadd.f32 %v5512_v1, %v1301_v3  ;;  %v1309_v38 = vmul.f32 %v5497_v45, %v3515_v62  ;;  %v1318_v34 = vadd.f32 %v5512_v1, %v1302_v54  ;;  %v1319_v18 = vadd.f32 %v5512_v1, %v1303_v44 }
 0x10a   :  { %v1320_v4 = vadd.f32 %v5512_v1, %v1304_v63  ;;  %v1310_v36 = vmul.f32 %v5497_v45, %v3516_v47  ;;  %v1311_v48 = vmul.f32 %v5497_v45, %v3519_v52  ;;  %v1321_v55 = vadd.f32 %v5512_v1, %v1305_v21 }
 0x10b   :  { %v1322_v9 = vadd.f32 %v5512_v1, %v1306_v13  ;;  %v1312_v19 = vmul.f32 %v5497_v45, %v3520_v10  ;;  %v1313_v24 = vmul.f32 %v5497_v45, %v3523_v40  ;;  %v1314_v43 = vmul.f32 %v5497_v45, %v3524_v50 }
 0x10c   :  { %v1323_v42 = vadd.f32 %v5512_v1, %v1307_v11  ;;  %v1324_v22 = vadd.f32 %v5512_v1, %v1308_v37  ;;  %v1331_v6 = vmax.f32 %v1315_v28, 0.0  ;;  %v1332_v46 = vmax.f32 %v1316_v53, 0.0  ;;  %v4056_v53 = vld [vmem:[%s7101_s0 + $0x3a0] sm:$0xff]  }
 0x10d   :  { %v1333_v30 = vmax.f32 %v1317_v35, 0.0  ;;  %v1325_v32 = vadd.f32 %v5512_v1, %v1309_v38  ;;  %v1334_v57 = vmax.f32 %v1318_v34, 0.0  ;;  %v1335_v56 = vmax.f32 %v1319_v18, 0.0 }
 0x10e   :  { %v1336_v60 = vmax.f32 %v1320_v4, 0.0  ;;  %v1326_v0 = vadd.f32 %v5512_v1, %v1310_v36  ;;  %v1327_v31 = vadd.f32 %v5512_v1, %v1311_v48  ;;  %v1337_v51 = vmax.f32 %v1321_v55, 0.0  ;;  %v4057_v48 = vld [vmem:[%s7101_s0 + $0x3a8] sm:$0xff]  }
 0x10f   :  { %v1338_v33 = vmax.f32 %v1322_v9, 0.0  ;;  %v1328_v25 = vadd.f32 %v5512_v1, %v1312_v19  ;;  %v1329_v5 = vadd.f32 %v5512_v1, %v1313_v24  ;;  %v1330_v26 = vadd.f32 %v5512_v1, %v1314_v43  ;;  %v4059_v24 = vld [vmem:[%s7101_s0 + $0x3b8] sm:$0xff]  }
 0x110   :  { %v1339_v15 = vmax.f32 %v1323_v42, 0.0  ;;  %v5641_v12 = vmax.f32 %v5537_v20, %v1331_v6  ;;  %v5644_v3 = vmax.f32 %v5540_v59, %v1332_v46  ;;  %v5647_v62 = vmax.f32 %v5543_v17, %v1333_v30  ;;  %v4052_v20 = vld [vmem:[%s7101_s0 + $0x380] sm:$0xff]   ;;  %v4053_v59 = vld [vmem:[%s7101_s0 + $0x388] sm:$0xff]  }
 0x111   :  { %v1340_v54 = vmax.f32 %v1324_v22, 0.0  ;;  %v5650_v44 = vmax.f32 %v5546_v61, %v1334_v57  ;;  %v5653_v63 = vmax.f32 %v5549_v2, %v1335_v56  ;;  %v5656_v47 = vmax.f32 %v5552_v39, %v1336_v60  ;;  %v4054_v39 = vld [vmem:[%s7101_s0 + $0x390] sm:$0xff]  }
 0x112   :  { %v1341_v52 = vmax.f32 %v1325_v32, 0.0  ;;  %v5665_v17 = vmax.f32 %v5561_v14, %v1337_v51  ;;  %v5668_v61 = vmax.f32 %v5564_v8, %v1338_v33  ;;  %v1342_v2 = vmax.f32 %v1326_v0, 0.0  ;;  %v4055_v14 = vld [vmem:[%s7101_s0 + $0x398] sm:$0xff]  }
 0x113   :  { %v1343_v21 = vmax.f32 %v1327_v31, 0.0  ;;  %v5674_v13 = vmax.f32 %v5570_v58, %v1339_v15  ;;  %v1344_v10 = vmax.f32 %v1328_v25, 0.0  ;;  %v1345_v40 = vmax.f32 %v1329_v5, 0.0 }
 0x114   :  { %v1346_v50 = vmax.f32 %v1330_v26, 0.0  ;;  %v5680_v11 = vmax.f32 %v5576_v27, %v1340_v54  ;;  %v3527_v8 = vunpack.c.l.bf16 %v4052_v20  ;;  %v3528_v37 = vunpack.c.h.bf16 %v4052_v20 }
 0x115   :  { %v3531_v28 = vunpack.c.l.bf16 %v4053_v59  ;;  %v5686_v58 = vmax.f32 %v5582_v7, %v1341_v52  ;;  %v3532_v35 = vunpack.c.h.bf16 %v4053_v59  ;;  %v3535_v38 = vunpack.c.l.bf16 %v4054_v39 }
 0x116   :  { %v3536_v34 = vunpack.c.h.bf16 %v4054_v39  ;;  %v5689_v18 = vmax.f32 %v5585_v29, %v1342_v2  ;;  %v5692_v4 = vmax.f32 %v5588_v23, %v1343_v21  ;;  %v3539_v27 = vunpack.c.l.bf16 %v4055_v14  ;;  %v4058_v23 = vld [vmem:[%s7101_s0 + $0x3b0] sm:$0xff]  }
 0x117   :  { %v3540_v36 = vunpack.c.h.bf16 %v4055_v14  ;;  %v5698_v55 = vmax.f32 %v5594_v49, %v1344_v10  ;;  %v5701_v7 = vmax.f32 %v5597_v41, %v1345_v40  ;;  %v5704_v9 = vmax.f32 %v5600_v16, %v1346_v50 }
 0x118   :  { %v3543_v29 = vunpack.c.l.bf16 %v4056_v53  ;;  %v3544_v19 = vunpack.c.h.bf16 %v4056_v53  ;;  %v1396_v43 = vmul.f32 %v5497_v45, %v3527_v8  ;;  %v1397_v49 = vmul.f32 %v5497_v45, %v3528_v37 }
 0x119   :  { %v1398_v41 = vmul.f32 %v5497_v45, %v3531_v28  ;;  %v3547_v42 = vunpack.c.l.bf16 %v4057_v48  ;;  %v1399_v16 = vmul.f32 %v5497_v45, %v3532_v35  ;;  %v1400_v22 = vmul.f32 %v5497_v45, %v3535_v38 }
 0x11a   :  { %v1401_v6 = vmul.f32 %v5497_v45, %v3536_v34  ;;  %v3548_v46 = vunpack.c.h.bf16 %v4057_v48  ;;  %v3551_v30 = vunpack.c.l.bf16 %v4058_v23  ;;  %v1402_v32 = vmul.f32 %v5497_v45, %v3539_v27 }
 0x11b   :  { %v1403_v57 = vmul.f32 %v5497_v45, %v3540_v36  ;;  %v3552_v56 = vunpack.c.h.bf16 %v4058_v23  ;;  %v3555_v60 = vunpack.c.l.bf16 %v4059_v24  ;;  %v3556_v0 = vunpack.c.h.bf16 %v4059_v24 }
 0x11c   :  { %v1404_v31 = vmul.f32 %v5497_v45, %v3543_v29  ;;  %v1405_v51 = vmul.f32 %v5497_v45, %v3544_v19  ;;  %v1412_v33 = vadd.f32 %v5512_v1, %v1396_v43  ;;  %v1413_v25 = vadd.f32 %v5512_v1, %v1397_v49 }
 0x11d   :  { %v1414_v5 = vadd.f32 %v5512_v1, %v1398_v41  ;;  %v1406_v26 = vmul.f32 %v5497_v45, %v3547_v42  ;;  %v1415_v15 = vadd.f32 %v5512_v1, %v1399_v16  ;;  %v1416_v54 = vadd.f32 %v5512_v1, %v1400_v22 }
 0x11e   :  { %v1417_v52 = vadd.f32 %v5512_v1, %v1401_v6  ;;  %v1407_v20 = vmul.f32 %v5497_v45, %v3548_v46  ;;  %v1408_v59 = vmul.f32 %v5497_v45, %v3551_v30  ;;  %v1418_v2 = vadd.f32 %v5512_v1, %v1402_v32 }
 0x11f   :  { %v1419_v21 = vadd.f32 %v5512_v1, %v1403_v57  ;;  %v1409_v39 = vmul.f32 %v5497_v45, %v3552_v56  ;;  %v1410_v10 = vmul.f32 %v5497_v45, %v3555_v60  ;;  %v1411_v40 = vmul.f32 %v5497_v45, %v3556_v0 }
 0x120   :  { %v1420_v50 = vadd.f32 %v5512_v1, %v1404_v31  ;;  %v1421_v14 = vadd.f32 %v5512_v1, %v1405_v51  ;;  %v1428_v8 = vmax.f32 %v1412_v33, 0.0  ;;  %v1429_v37 = vmax.f32 %v1413_v25, 0.0  ;;  %v4064_v25 = vld [vmem:[%s7101_s0 + $0x3e0] sm:$0xff]  }
 0x121   :  { %v1430_v28 = vmax.f32 %v1414_v5, 0.0  ;;  %v1422_v53 = vadd.f32 %v5512_v1, %v1406_v26  ;;  %v1431_v35 = vmax.f32 %v1415_v15, 0.0  ;;  %v1432_v38 = vmax.f32 %v1416_v54, 0.0 }
 0x122   :  { %v1433_v34 = vmax.f32 %v1417_v52, 0.0  ;;  %v1423_v27 = vadd.f32 %v5512_v1, %v1407_v20  ;;  %v1424_v36 = vadd.f32 %v5512_v1, %v1408_v59  ;;  %v1434_v48 = vmax.f32 %v1418_v2, 0.0  ;;  %v4065_v59 = vld [vmem:[%s7101_s0 + $0x3e8] sm:$0xff]  }
 0x123   :  { %v1435_v29 = vmax.f32 %v1419_v21, 0.0  ;;  %v1425_v23 = vadd.f32 %v5512_v1, %v1409_v39  ;;  %v1426_v19 = vadd.f32 %v5512_v1, %v1410_v10  ;;  %v1427_v24 = vadd.f32 %v5512_v1, %v1411_v40  ;;  %v4067_v10 = vld [vmem:[%s7101_s0 + $0x3f8] sm:$0xff]  }
 0x124   :  { %v1436_v43 = vmax.f32 %v1420_v50, 0.0  ;;  %v5745_v49 = vmax.f32 %v5641_v12, %v1428_v8  ;;  %v5748_v41 = vmax.f32 %v5644_v3, %v1429_v37  ;;  %v5751_v42 = vmax.f32 %v5647_v62, %v1430_v28  ;;  %v4060_v12 = vld [vmem:[%s7101_s0 + $0x3c0] sm:$0xff]   ;;  %v4061_v3 = vld [vmem:[%s7101_s0 + $0x3c8] sm:$0xff]  }
 0x125   :  { %v1437_v16 = vmax.f32 %v1421_v14, 0.0  ;;  %v5754_v22 = vmax.f32 %v5650_v44, %v1431_v35  ;;  %v5757_v6 = vmax.f32 %v5653_v63, %v1432_v38  ;;  %v5760_v46 = vmax.f32 %v5656_v47, %v1433_v34  ;;  %v4062_v47 = vld [vmem:[%s7101_s0 + $0x3d0] sm:$0xff]  }
 0x126   :  { %v1438_v30 = vmax.f32 %v1422_v53, 0.0  ;;  %v5769_v62 = vmax.f32 %v5665_v17, %v1434_v48  ;;  %v5772_v44 = vmax.f32 %v5668_v61, %v1435_v29  ;;  %v1439_v63 = vmax.f32 %v1423_v27, 0.0  ;;  %v4063_v17 = vld [vmem:[%s7101_s0 + $0x3d8] sm:$0xff]  }
 0x127   :  { %v1440_v32 = vmax.f32 %v1424_v36, 0.0  ;;  %v5778_v57 = vmax.f32 %v5674_v13, %v1436_v43  ;;  %v1441_v56 = vmax.f32 %v1425_v23, 0.0  ;;  %v1442_v60 = vmax.f32 %v1426_v19, 0.0 }
 0x128   :  { %v1443_v0 = vmax.f32 %v1427_v24, 0.0  ;;  %v5784_v31 = vmax.f32 %v5680_v11, %v1437_v16  ;;  %v3559_v61 = vunpack.c.l.bf16 %v4060_v12  ;;  %v3560_v51 = vunpack.c.h.bf16 %v4060_v12 }
 0x129   :  { %v3563_v33 = vunpack.c.l.bf16 %v4061_v3  ;;  %v5790_v13 = vmax.f32 %v5686_v58, %v1438_v30  ;;  %v3564_v5 = vunpack.c.h.bf16 %v4061_v3  ;;  %v3567_v26 = vunpack.c.l.bf16 %v4062_v47 }
 0x12a   :  { %v3568_v15 = vunpack.c.h.bf16 %v4062_v47  ;;  %v5793_v54 = vmax.f32 %v5689_v18, %v1439_v63  ;;  %v5796_v52 = vmax.f32 %v5692_v4, %v1440_v32  ;;  %v3571_v11 = vunpack.c.l.bf16 %v4063_v17  ;;  %v4066_v4 = vld [vmem:[%s7101_s0 + $0x3f0] sm:$0xff]  }
 0x12b   :  { %v3572_v20 = vunpack.c.h.bf16 %v4063_v17  ;;  %v5802_v2 = vmax.f32 %v5698_v55, %v1441_v56  ;;  %v5805_v58 = vmax.f32 %v5701_v7, %v1442_v60  ;;  %v5808_v21 = vmax.f32 %v5704_v9, %v1443_v0 }
 0x12c   :  { %v3575_v18 = vunpack.c.l.bf16 %v4064_v25  ;;  %v3576_v39 = vunpack.c.h.bf16 %v4064_v25  ;;  %v1493_v40 = vmul.f32 %v5497_v45, %v3559_v61  ;;  %v1494_v55 = vmul.f32 %v5497_v45, %v3560_v51 }
 0x12d   :  { %v1495_v7 = vmul.f32 %v5497_v45, %v3563_v33  ;;  %v3579_v50 = vunpack.c.l.bf16 %v4065_v59  ;;  %v1496_v9 = vmul.f32 %v5497_v45, %v3564_v5  ;;  %v1497_v14 = vmul.f32 %v5497_v45, %v3567_v26 }
 0x12e   :  { %v1498_v8 = vmul.f32 %v5497_v45, %v3568_v15  ;;  %v3580_v37 = vunpack.c.h.bf16 %v4065_v59  ;;  %v3583_v28 = vunpack.c.l.bf16 %v4066_v4  ;;  %v1499_v53 = vmul.f32 %v5497_v45, %v3571_v11 }
 0x12f   :  { %v1500_v35 = vmul.f32 %v5497_v45, %v3572_v20  ;;  %v3584_v38 = vunpack.c.h.bf16 %v4066_v4  ;;  %v3587_v34 = vunpack.c.l.bf16 %v4067_v10  ;;  %v3588_v27 = vunpack.c.h.bf16 %v4067_v10 }
 0x130   :  { %v1501_v36 = vmul.f32 %v5497_v45, %v3575_v18  ;;  %v1502_v48 = vmul.f32 %v5497_v45, %v3576_v39  ;;  %v1509_v29 = vadd.f32 %v5512_v1, %v1493_v40  ;;  %v1510_v23 = vadd.f32 %v5512_v1, %v1494_v55 }
 0x131   :  { %v1511_v19 = vadd.f32 %v5512_v1, %v1495_v7  ;;  %v1503_v24 = vmul.f32 %v5497_v45, %v3579_v50  ;;  %v1512_v43 = vadd.f32 %v5512_v1, %v1496_v9  ;;  %v1513_v16 = vadd.f32 %v5512_v1, %v1497_v14 }
 0x132   :  { %v1514_v30 = vadd.f32 %v5512_v1, %v1498_v8  ;;  %v1504_v12 = vmul.f32 %v5497_v45, %v3580_v37  ;;  %v1505_v3 = vmul.f32 %v5497_v45, %v3583_v28  ;;  %v1515_v63 = vadd.f32 %v5512_v1, %v1499_v53 }
 0x133   :  { %v1516_v32 = vadd.f32 %v5512_v1, %v1500_v35  ;;  %v1506_v47 = vmul.f32 %v5497_v45, %v3584_v38  ;;  %v1507_v56 = vmul.f32 %v5497_v45, %v3587_v34  ;;  %v1508_v60 = vmul.f32 %v5497_v45, %v3588_v27 }
 0x134   :  { %v1517_v0 = vadd.f32 %v5512_v1, %v1501_v36  ;;  %v1518_v17 = vadd.f32 %v5512_v1, %v1502_v48  ;;  %v1525_v61 = vmax.f32 %v1509_v29, 0.0  ;;  %v1526_v51 = vmax.f32 %v1510_v23, 0.0  ;;  %v4072_v23 = vld [vmem:[%s7101_s0 + $0x420] sm:$0xff]  }
 0x135   :  { %v1527_v33 = vmax.f32 %v1511_v19, 0.0  ;;  %v1519_v25 = vadd.f32 %v5512_v1, %v1503_v24  ;;  %v1528_v5 = vmax.f32 %v1512_v43, 0.0  ;;  %v1529_v26 = vmax.f32 %v1513_v16, 0.0 }
 0x136   :  { %v1530_v15 = vmax.f32 %v1514_v30, 0.0  ;;  %v1520_v11 = vadd.f32 %v5512_v1, %v1504_v12  ;;  %v1521_v20 = vadd.f32 %v5512_v1, %v1505_v3  ;;  %v1531_v59 = vmax.f32 %v1515_v63, 0.0  ;;  %v4073_v3 = vld [vmem:[%s7101_s0 + $0x428] sm:$0xff]  }
 0x137   :  { %v1532_v18 = vmax.f32 %v1516_v32, 0.0  ;;  %v1522_v4 = vadd.f32 %v5512_v1, %v1506_v47  ;;  %v1523_v39 = vadd.f32 %v5512_v1, %v1507_v56  ;;  %v1524_v10 = vadd.f32 %v5512_v1, %v1508_v60  ;;  %v4075_v56 = vld [vmem:[%s7101_s0 + $0x438] sm:$0xff]  }
 0x138   :  { %v1533_v40 = vmax.f32 %v1517_v0, 0.0  ;;  %v5849_v55 = vmax.f32 %v5745_v49, %v1525_v61  ;;  %v5852_v7 = vmax.f32 %v5748_v41, %v1526_v51  ;;  %v5855_v50 = vmax.f32 %v5751_v42, %v1527_v33  ;;  %v4068_v49 = vld [vmem:[%s7101_s0 + $0x400] sm:$0xff]   ;;  %v4069_v41 = vld [vmem:[%s7101_s0 + $0x408] sm:$0xff]  }
 0x139   :  { %v1534_v9 = vmax.f32 %v1518_v17, 0.0  ;;  %v5858_v14 = vmax.f32 %v5754_v22, %v1528_v5  ;;  %v5861_v8 = vmax.f32 %v5757_v6, %v1529_v26  ;;  %v5864_v37 = vmax.f32 %v5760_v46, %v1530_v15  ;;  %v4070_v46 = vld [vmem:[%s7101_s0 + $0x410] sm:$0xff]  }
 0x13a   :  { %v1535_v28 = vmax.f32 %v1519_v25, 0.0  ;;  %v5873_v42 = vmax.f32 %v5769_v62, %v1531_v59  ;;  %v5876_v22 = vmax.f32 %v5772_v44, %v1532_v18  ;;  %v1536_v6 = vmax.f32 %v1520_v11, 0.0  ;;  %v4071_v62 = vld [vmem:[%s7101_s0 + $0x418] sm:$0xff]  }
 0x13b   :  { %v1537_v53 = vmax.f32 %v1521_v20, 0.0  ;;  %v5882_v35 = vmax.f32 %v5778_v57, %v1533_v40  ;;  %v1538_v38 = vmax.f32 %v1522_v4, 0.0  ;;  %v1539_v34 = vmax.f32 %v1523_v39, 0.0 }
 0x13c   :  { %v1540_v27 = vmax.f32 %v1524_v10, 0.0  ;;  %v5888_v36 = vmax.f32 %v5784_v31, %v1534_v9  ;;  %v3591_v44 = vunpack.c.l.bf16 %v4068_v49  ;;  %v3592_v48 = vunpack.c.h.bf16 %v4068_v49 }
 0x13d   :  { %v3595_v29 = vunpack.c.l.bf16 %v4069_v41  ;;  %v5894_v57 = vmax.f32 %v5790_v13, %v1535_v28  ;;  %v3596_v19 = vunpack.c.h.bf16 %v4069_v41  ;;  %v3599_v24 = vunpack.c.l.bf16 %v4070_v46 }
 0x13e   :  { %v3600_v43 = vunpack.c.h.bf16 %v4070_v46  ;;  %v5897_v16 = vmax.f32 %v5793_v54, %v1536_v6  ;;  %v5900_v30 = vmax.f32 %v5796_v52, %v1537_v53  ;;  %v3603_v31 = vunpack.c.l.bf16 %v4071_v62  ;;  %v4074_v52 = vld [vmem:[%s7101_s0 + $0x430] sm:$0xff]  }
 0x13f   :  { %v3604_v12 = vunpack.c.h.bf16 %v4071_v62  ;;  %v5906_v63 = vmax.f32 %v5802_v2, %v1538_v38  ;;  %v5909_v13 = vmax.f32 %v5805_v58, %v1539_v34  ;;  %v5912_v32 = vmax.f32 %v5808_v21, %v1540_v27 }
 0x140   :  { %v3607_v54 = vunpack.c.l.bf16 %v4072_v23  ;;  %v3608_v47 = vunpack.c.h.bf16 %v4072_v23  ;;  %v1590_v60 = vmul.f32 %v5497_v45, %v3591_v44  ;;  %v1591_v2 = vmul.f32 %v5497_v45, %v3592_v48 }
 0x141   :  { %v1592_v58 = vmul.f32 %v5497_v45, %v3595_v29  ;;  %v3611_v0 = vunpack.c.l.bf16 %v4073_v3  ;;  %v1593_v21 = vmul.f32 %v5497_v45, %v3596_v19  ;;  %v1594_v17 = vmul.f32 %v5497_v45, %v3599_v24 }
 0x142   :  { %v1595_v61 = vmul.f32 %v5497_v45, %v3600_v43  ;;  %v3612_v51 = vunpack.c.h.bf16 %v4073_v3  ;;  %v3615_v33 = vunpack.c.l.bf16 %v4074_v52  ;;  %v1596_v25 = vmul.f32 %v5497_v45, %v3603_v31 }
 0x143   :  { %v1597_v5 = vmul.f32 %v5497_v45, %v3604_v12  ;;  %v3616_v26 = vunpack.c.h.bf16 %v4074_v52  ;;  %v3619_v15 = vunpack.c.l.bf16 %v4075_v56  ;;  %v3620_v11 = vunpack.c.h.bf16 %v4075_v56 }
 0x144   :  { %v1598_v20 = vmul.f32 %v5497_v45, %v3607_v54  ;;  %v1599_v59 = vmul.f32 %v5497_v45, %v3608_v47  ;;  %v1606_v18 = vadd.f32 %v5512_v1, %v1590_v60  ;;  %v1607_v4 = vadd.f32 %v5512_v1, %v1591_v2 }
 0x145   :  { %v1608_v39 = vadd.f32 %v5512_v1, %v1592_v58  ;;  %v1600_v10 = vmul.f32 %v5497_v45, %v3611_v0  ;;  %v1609_v40 = vadd.f32 %v5512_v1, %v1593_v21  ;;  %v1610_v9 = vadd.f32 %v5512_v1, %v1594_v17 }
 0x146   :  { %v1611_v28 = vadd.f32 %v5512_v1, %v1595_v61  ;;  %v1601_v49 = vmul.f32 %v5497_v45, %v3612_v51  ;;  %v1602_v41 = vmul.f32 %v5497_v45, %v3615_v33  ;;  %v1612_v6 = vadd.f32 %v5512_v1, %v1596_v25 }
 0x147   :  { %v1613_v53 = vadd.f32 %v5512_v1, %v1597_v5  ;;  %v1603_v46 = vmul.f32 %v5497_v45, %v3616_v26  ;;  %v1604_v38 = vmul.f32 %v5497_v45, %v3619_v15  ;;  %v1605_v34 = vmul.f32 %v5497_v45, %v3620_v11 }
 0x148   :  { %v1614_v27 = vadd.f32 %v5512_v1, %v1598_v20  ;;  %v1615_v62 = vadd.f32 %v5512_v1, %v1599_v59  ;;  %v1622_v44 = vmax.f32 %v1606_v18, 0.0  ;;  %v1623_v48 = vmax.f32 %v1607_v4, 0.0  ;;  %v4080_v4 = vld [vmem:[%s7101_s0 + $0x460] sm:$0xff]  }
 0x149   :  { %v1624_v29 = vmax.f32 %v1608_v39, 0.0  ;;  %v1616_v23 = vadd.f32 %v5512_v1, %v1600_v10  ;;  %v1625_v19 = vmax.f32 %v1609_v40, 0.0  ;;  %v1626_v24 = vmax.f32 %v1610_v9, 0.0 }
 0x14a   :  { %v1627_v43 = vmax.f32 %v1611_v28, 0.0  ;;  %v1617_v31 = vadd.f32 %v5512_v1, %v1601_v49  ;;  %v1618_v12 = vadd.f32 %v5512_v1, %v1602_v41  ;;  %v1628_v3 = vmax.f32 %v1612_v6, 0.0  ;;  %v4081_v41 = vld [vmem:[%s7101_s0 + $0x468] sm:$0xff]  }
 0x14b   :  { %v1629_v54 = vmax.f32 %v1613_v53, 0.0  ;;  %v1619_v52 = vadd.f32 %v5512_v1, %v1603_v46  ;;  %v1620_v47 = vadd.f32 %v5512_v1, %v1604_v38  ;;  %v1621_v56 = vadd.f32 %v5512_v1, %v1605_v34  ;;  %v4083_v38 = vld [vmem:[%s7101_s0 + $0x478] sm:$0xff]  }
 0x14c   :  { %v1630_v60 = vmax.f32 %v1614_v27, 0.0  ;;  %v5953_v2 = vmax.f32 %v5849_v55, %v1622_v44  ;;  %v5956_v58 = vmax.f32 %v5852_v7, %v1623_v48  ;;  %v5959_v0 = vmax.f32 %v5855_v50, %v1624_v29  ;;  %v4076_v55 = vld [vmem:[%s7101_s0 + $0x440] sm:$0xff]   ;;  %v4077_v7 = vld [vmem:[%s7101_s0 + $0x448] sm:$0xff]  }
 0x14d   :  { %v1631_v21 = vmax.f32 %v1615_v62, 0.0  ;;  %v5962_v17 = vmax.f32 %v5858_v14, %v1625_v19  ;;  %v5965_v61 = vmax.f32 %v5861_v8, %v1626_v24  ;;  %v5968_v51 = vmax.f32 %v5864_v37, %v1627_v43  ;;  %v4078_v37 = vld [vmem:[%s7101_s0 + $0x450] sm:$0xff]  }
 0x14e   :  { %v1632_v33 = vmax.f32 %v1616_v23, 0.0  ;;  %v5977_v50 = vmax.f32 %v5873_v42, %v1628_v3  ;;  %v5980_v14 = vmax.f32 %v5876_v22, %v1629_v54  ;;  %v1633_v8 = vmax.f32 %v1617_v31, 0.0  ;;  %v4079_v42 = vld [vmem:[%s7101_s0 + $0x458] sm:$0xff]  }
 0x14f   :  { %v1634_v25 = vmax.f32 %v1618_v12, 0.0  ;;  %v5986_v5 = vmax.f32 %v5882_v35, %v1630_v60  ;;  %v1635_v26 = vmax.f32 %v1619_v52, 0.0  ;;  %v1636_v15 = vmax.f32 %v1620_v47, 0.0 }
 0x150   :  { %v1637_v11 = vmax.f32 %v1621_v56, 0.0  ;;  %v5992_v20 = vmax.f32 %v5888_v36, %v1631_v21  ;;  %v3623_v22 = vunpack.c.l.bf16 %v4076_v55  ;;  %v3624_v59 = vunpack.c.h.bf16 %v4076_v55 }
 0x151   :  { %v3627_v18 = vunpack.c.l.bf16 %v4077_v7  ;;  %v5998_v35 = vmax.f32 %v5894_v57, %v1632_v33  ;;  %v3628_v39 = vunpack.c.h.bf16 %v4077_v7  ;;  %v3631_v10 = vunpack.c.l.bf16 %v4078_v37 }
 0x152   :  { %v3632_v40 = vunpack.c.h.bf16 %v4078_v37  ;;  %v6001_v9 = vmax.f32 %v5897_v16, %v1633_v8  ;;  %v6004_v28 = vmax.f32 %v5900_v30, %v1634_v25  ;;  %v3635_v36 = vunpack.c.l.bf16 %v4079_v42  ;;  %v4082_v30 = vld [vmem:[%s7101_s0 + $0x470] sm:$0xff]  }
 0x153   :  { %v3636_v49 = vunpack.c.h.bf16 %v4079_v42  ;;  %v6010_v6 = vmax.f32 %v5906_v63, %v1635_v26  ;;  %v6013_v57 = vmax.f32 %v5909_v13, %v1636_v15  ;;  %v6016_v53 = vmax.f32 %v5912_v32, %v1637_v11 }
 0x154   :  { %v3639_v16 = vunpack.c.l.bf16 %v4080_v4  ;;  %v3640_v46 = vunpack.c.h.bf16 %v4080_v4  ;;  %v1687_v34 = vmul.f32 %v5497_v45, %v3623_v22  ;;  %v1688_v63 = vmul.f32 %v5497_v45, %v3624_v59 }
 0x155   :  { %v1689_v13 = vmul.f32 %v5497_v45, %v3627_v18  ;;  %v3643_v27 = vunpack.c.l.bf16 %v4081_v41  ;;  %v1690_v32 = vmul.f32 %v5497_v45, %v3628_v39  ;;  %v1691_v62 = vmul.f32 %v5497_v45, %v3631_v10 }
 0x156   :  { %v1692_v44 = vmul.f32 %v5497_v45, %v3632_v40  ;;  %v3644_v48 = vunpack.c.h.bf16 %v4081_v41  ;;  %v3647_v29 = vunpack.c.l.bf16 %v4082_v30  ;;  %v1693_v23 = vmul.f32 %v5497_v45, %v3635_v36 }
 0x157   :  { %v1694_v19 = vmul.f32 %v5497_v45, %v3636_v49  ;;  %v3648_v24 = vunpack.c.h.bf16 %v4082_v30  ;;  %v3651_v43 = vunpack.c.l.bf16 %v4083_v38  ;;  %v3652_v31 = vunpack.c.h.bf16 %v4083_v38 }
 0x158   :  { %v1695_v12 = vmul.f32 %v5497_v45, %v3639_v16  ;;  %v1696_v3 = vmul.f32 %v5497_v45, %v3640_v46  ;;  %v1703_v54 = vadd.f32 %v5512_v1, %v1687_v34  ;;  %v1704_v52 = vadd.f32 %v5512_v1, %v1688_v63 }
 0x159   :  { %v1705_v47 = vadd.f32 %v5512_v1, %v1689_v13  ;;  %v1697_v56 = vmul.f32 %v5497_v45, %v3643_v27  ;;  %v1706_v60 = vadd.f32 %v5512_v1, %v1690_v32  ;;  %v1707_v21 = vadd.f32 %v5512_v1, %v1691_v62 }
 0x15a   :  { %v1708_v33 = vadd.f32 %v5512_v1, %v1692_v44  ;;  %v1698_v55 = vmul.f32 %v5497_v45, %v3644_v48  ;;  %v1699_v7 = vmul.f32 %v5497_v45, %v3647_v29  ;;  %v1709_v8 = vadd.f32 %v5512_v1, %v1693_v23 }
 0x15b   :  { %v1710_v25 = vadd.f32 %v5512_v1, %v1694_v19  ;;  %v1700_v37 = vmul.f32 %v5497_v45, %v3648_v24  ;;  %v1701_v26 = vmul.f32 %v5497_v45, %v3651_v43  ;;  %v1702_v15 = vmul.f32 %v5497_v45, %v3652_v31 }
 0x15c   :  { %v1711_v11 = vadd.f32 %v5512_v1, %v1695_v12  ;;  %v1712_v42 = vadd.f32 %v5512_v1, %v1696_v3  ;;  %v1719_v22 = vmax.f32 %v1703_v54, 0.0  ;;  %v1720_v59 = vmax.f32 %v1704_v52, 0.0  ;;  %v4088_v3 = vld [vmem:[%s7101_s0 + $0x4a0] sm:$0xff]  }
 0x15d   :  { %v1721_v18 = vmax.f32 %v1705_v47, 0.0  ;;  %v1713_v4 = vadd.f32 %v5512_v1, %v1697_v56  ;;  %v1722_v39 = vmax.f32 %v1706_v60, 0.0  ;;  %v1723_v10 = vmax.f32 %v1707_v21, 0.0 }
 0x15e   :  { %v1724_v40 = vmax.f32 %v1708_v33, 0.0  ;;  %v1714_v36 = vadd.f32 %v5512_v1, %v1698_v55  ;;  %v1715_v49 = vadd.f32 %v5512_v1, %v1699_v7  ;;  %v1725_v41 = vmax.f32 %v1709_v8, 0.0  ;;  %v4089_v33 = vld [vmem:[%s7101_s0 + $0x4a8] sm:$0xff]  }
 0x15f   :  { %v1726_v16 = vmax.f32 %v1710_v25, 0.0  ;;  %v1716_v45 = vadd.f32 %v5512_v1, %v1700_v37  ;;  %v1717_v30 = vadd.f32 %v5512_v1, %v1701_v26  ;;  %v1718_v46 = vadd.f32 %v5512_v1, %v1702_v15  ;;  %v4091_v25 = vld [vmem:[%s7101_s0 + $0x4b8] sm:$0xff]  }
 0x160   :  { %v1727_v38 = vmax.f32 %v1711_v11, 0.0  ;;  %v6057_v34 = vmax.f32 %v5953_v2, %v1719_v22  ;;  %v6060_v63 = vmax.f32 %v5956_v58, %v1720_v59  ;;  %v6063_v13 = vmax.f32 %v5959_v0, %v1721_v18  ;;  %v4084_v2 = vld [vmem:[%s7101_s0 + $0x480] sm:$0xff]   ;;  %v4085_v58 = vld [vmem:[%s7101_s0 + $0x488] sm:$0xff]  }
 0x161   :  { %v1728_v27 = vmax.f32 %v1712_v42, 0.0  ;;  %v6066_v32 = vmax.f32 %v5962_v17, %v1722_v39  ;;  %v6069_v62 = vmax.f32 %v5965_v61, %v1723_v10  ;;  %v6072_v44 = vmax.f32 %v5968_v51, %v1724_v40  ;;  %v4086_v51 = vld [vmem:[%s7101_s0 + $0x490] sm:$0xff]  }
 0x162   :  { %v1729_v1 = vmax.f32 %v1713_v4, 0.0  ;;  %v6081_v0 = vmax.f32 %v5977_v50, %v1725_v41  ;;  %v6084_v17 = vmax.f32 %v5980_v14, %v1726_v16  ;;  %v1730_v61 = vmax.f32 %v1714_v36, 0.0  ;;  %v4087_v50 = vld [vmem:[%s7101_s0 + $0x498] sm:$0xff]   ;;  %v6146_v41 = vld [vmem:[%s7102_s2] ss:$0 sm:$0xff] }
 0x163   :  { %v1731_v48 = vmax.f32 %v1715_v49, 0.0  ;;  %v6090_v29 = vmax.f32 %v5986_v5, %v1727_v38  ;;  %v1732_v23 = vmax.f32 %v1716_v45, 0.0  ;;  %v1733_v19 = vmax.f32 %v1717_v30, 0.0 }
 0x164   :  { %v1734_v24 = vmax.f32 %v1718_v46, 0.0  ;;  %v6096_v43 = vmax.f32 %v5992_v20, %v1728_v27  ;;  %v3655_v14 = vunpack.c.l.bf16 %v4084_v2  ;;  %v3656_v31 = vunpack.c.h.bf16 %v4084_v2 }
 0x165   :  { %v3659_v12 = vunpack.c.l.bf16 %v4085_v58  ;;  %v6102_v5 = vmax.f32 %v5998_v35, %v1729_v1  ;;  %v3660_v54 = vunpack.c.h.bf16 %v4085_v58  ;;  %v3663_v52 = vunpack.c.l.bf16 %v4086_v51 }
 0x166   :  { %v3664_v47 = vunpack.c.h.bf16 %v4086_v51  ;;  %v6105_v56 = vmax.f32 %v6001_v9, %v1730_v61  ;;  %v6108_v60 = vmax.f32 %v6004_v28, %v1731_v48  ;;  %v3667_v20 = vunpack.c.l.bf16 %v4087_v50  ;;  %v4090_v28 = vld [vmem:[%s7101_s0 + $0x4b0] sm:$0xff]  }
 0x167   :  { %v3668_v21 = vunpack.c.h.bf16 %v4087_v50  ;;  %v6114_v55 = vmax.f32 %v6010_v6, %v1732_v23  ;;  %v6117_v35 = vmax.f32 %v6013_v57, %v1733_v19  ;;  %v6120_v7 = vmax.f32 %v6016_v53, %v1734_v24  ;;  %v6131_v6 = vld [vmem:[%s7100_s1] ss:$0 sm:$0xff] }
 0x168   :  { %v3671_v9 = vunpack.c.l.bf16 %v4088_v3  ;;  %v3672_v8 = vunpack.c.h.bf16 %v4088_v3  ;;  %v1784_v57 = vmul.f32 %v6131_v6, %v3655_v14  ;;  %v1785_v53 = vmul.f32 %v6131_v6, %v3656_v31 }
 0x169   :  { %v1786_v37 = vmul.f32 %v6131_v6, %v3659_v12  ;;  %v3675_v26 = vunpack.c.l.bf16 %v4089_v33  ;;  %v1787_v15 = vmul.f32 %v6131_v6, %v3660_v54  ;;  %v1788_v11 = vmul.f32 %v6131_v6, %v3663_v52 }
 0x16a   :  { %v1789_v42 = vmul.f32 %v6131_v6, %v3664_v47  ;;  %v3676_v22 = vunpack.c.h.bf16 %v4089_v33  ;;  %v3679_v59 = vunpack.c.l.bf16 %v4090_v28  ;;  %v1790_v18 = vmul.f32 %v6131_v6, %v3667_v20 }
 0x16b   :  { %v1791_v4 = vmul.f32 %v6131_v6, %v3668_v21  ;;  %v3680_v39 = vunpack.c.h.bf16 %v4090_v28  ;;  %v3683_v10 = vunpack.c.l.bf16 %v4091_v25  ;;  %v3684_v40 = vunpack.c.h.bf16 %v4091_v25 }
 0x16c   :  { %v1792_v36 = vmul.f32 %v6131_v6, %v3671_v9  ;;  %v1793_v49 = vmul.f32 %v6131_v6, %v3672_v8  ;;  %v1800_v16 = vadd.f32 %v6146_v41, %v1784_v57  ;;  %v1801_v45 = vadd.f32 %v6146_v41, %v1785_v53 }
 0x16d   :  { %v1802_v30 = vadd.f32 %v6146_v41, %v1786_v37  ;;  %v1794_v46 = vmul.f32 %v6131_v6, %v3675_v26  ;;  %v1803_v38 = vadd.f32 %v6146_v41, %v1787_v15  ;;  %v1804_v27 = vadd.f32 %v6146_v41, %v1788_v11 }
 0x16e   :  { %v1805_v1 = vadd.f32 %v6146_v41, %v1789_v42  ;;  %v1795_v2 = vmul.f32 %v6131_v6, %v3676_v22  ;;  %v1796_v58 = vmul.f32 %v6131_v6, %v3679_v59  ;;  %v1806_v61 = vadd.f32 %v6146_v41, %v1790_v18 }
 0x16f   :  { %v1807_v48 = vadd.f32 %v6146_v41, %v1791_v4  ;;  %v1797_v51 = vmul.f32 %v6131_v6, %v3680_v39  ;;  %v1798_v23 = vmul.f32 %v6131_v6, %v3683_v10  ;;  %v1799_v19 = vmul.f32 %v6131_v6, %v3684_v40 }
 0x170   :  { %v1808_v24 = vadd.f32 %v6146_v41, %v1792_v36  ;;  %v1809_v50 = vadd.f32 %v6146_v41, %v1793_v49  ;;  %v1816_v14 = vmax.f32 %v1800_v16, 0.0  ;;  %v1817_v31 = vmax.f32 %v1801_v45, 0.0  ;;  %v4096_v45 = vld [vmem:[%s7101_s0 + $0x4e0] sm:$0xff]  }
 0x171   :  { %v1818_v12 = vmax.f32 %v1802_v30, 0.0  ;;  %v1810_v3 = vadd.f32 %v6146_v41, %v1794_v46  ;;  %v1819_v54 = vmax.f32 %v1803_v38, 0.0  ;;  %v1820_v52 = vmax.f32 %v1804_v27, 0.0 }
 0x172   :  { %v1821_v47 = vmax.f32 %v1805_v1, 0.0  ;;  %v1811_v20 = vadd.f32 %v6146_v41, %v1795_v2  ;;  %v1812_v21 = vadd.f32 %v6146_v41, %v1796_v58  ;;  %v1822_v33 = vmax.f32 %v1806_v61, 0.0  ;;  %v4097_v58 = vld [vmem:[%s7101_s0 + $0x4e8] sm:$0xff]  }
 0x173   :  { %v1823_v9 = vmax.f32 %v1807_v48, 0.0  ;;  %v1813_v28 = vadd.f32 %v6146_v41, %v1797_v51  ;;  %v1814_v8 = vadd.f32 %v6146_v41, %v1798_v23  ;;  %v1815_v25 = vadd.f32 %v6146_v41, %v1799_v19  ;;  %v4099_v23 = vld [vmem:[%s7101_s0 + $0x4f8] sm:$0xff]  }
 0x174   :  { %v1824_v57 = vmax.f32 %v1808_v24, 0.0  ;;  %v6171_v53 = vmax.f32 %v6057_v34, %v1816_v14  ;;  %v6174_v37 = vmax.f32 %v6060_v63, %v1817_v31  ;;  %v6177_v26 = vmax.f32 %v6063_v13, %v1818_v12  ;;  %v4092_v34 = vld [vmem:[%s7101_s0 + $0x4c0] sm:$0xff]   ;;  %v4093_v63 = vld [vmem:[%s7101_s0 + $0x4c8] sm:$0xff]  }
 0x175   :  { %v1825_v15 = vmax.f32 %v1809_v50, 0.0  ;;  %v6180_v11 = vmax.f32 %v6066_v32, %v1819_v54  ;;  %v6183_v42 = vmax.f32 %v6069_v62, %v1820_v52  ;;  %v6186_v22 = vmax.f32 %v6072_v44, %v1821_v47  ;;  %v4094_v44 = vld [vmem:[%s7101_s0 + $0x4d0] sm:$0xff]  }
 0x176   :  { %v1826_v59 = vmax.f32 %v1810_v3, 0.0  ;;  %v6195_v13 = vmax.f32 %v6081_v0, %v1822_v33  ;;  %v6198_v32 = vmax.f32 %v6084_v17, %v1823_v9  ;;  %v1827_v62 = vmax.f32 %v1811_v20, 0.0  ;;  %v4095_v0 = vld [vmem:[%s7101_s0 + $0x4d8] sm:$0xff]  }
 0x177   :  { %v1828_v18 = vmax.f32 %v1812_v21, 0.0  ;;  %v6204_v4 = vmax.f32 %v6090_v29, %v1824_v57  ;;  %v1829_v39 = vmax.f32 %v1813_v28, 0.0  ;;  %v1830_v10 = vmax.f32 %v1814_v8, 0.0 }
 0x178   :  { %v1831_v40 = vmax.f32 %v1815_v25, 0.0  ;;  %v6210_v36 = vmax.f32 %v6096_v43, %v1825_v15  ;;  %v3687_v17 = vunpack.c.l.bf16 %v4092_v34  ;;  %v3688_v49 = vunpack.c.h.bf16 %v4092_v34 }
 0x179   :  { %v3691_v16 = vunpack.c.l.bf16 %v4093_v63  ;;  %v6216_v29 = vmax.f32 %v6102_v5, %v1826_v59  ;;  %v3692_v30 = vunpack.c.h.bf16 %v4093_v63  ;;  %v3695_v46 = vunpack.c.l.bf16 %v4094_v44 }
 0x17a   :  { %v3696_v38 = vunpack.c.h.bf16 %v4094_v44  ;;  %v6219_v27 = vmax.f32 %v6105_v56, %v1827_v62  ;;  %v6222_v1 = vmax.f32 %v6108_v60, %v1828_v18  ;;  %v3699_v43 = vunpack.c.l.bf16 %v4095_v0  ;;  %v4098_v60 = vld [vmem:[%s7101_s0 + $0x4f0] sm:$0xff]  }
 0x17b   :  { %v3700_v2 = vunpack.c.h.bf16 %v4095_v0  ;;  %v6228_v61 = vmax.f32 %v6114_v55, %v1829_v39  ;;  %v6231_v5 = vmax.f32 %v6117_v35, %v1830_v10  ;;  %v6234_v48 = vmax.f32 %v6120_v7, %v1831_v40 }
 0x17c   :  { %v3703_v56 = vunpack.c.l.bf16 %v4096_v45  ;;  %v3704_v51 = vunpack.c.h.bf16 %v4096_v45  ;;  %v1881_v19 = vmul.f32 %v6131_v6, %v3687_v17  ;;  %v1882_v55 = vmul.f32 %v6131_v6, %v3688_v49 }
 0x17d   :  { %v1883_v35 = vmul.f32 %v6131_v6, %v3691_v16  ;;  %v3707_v24 = vunpack.c.l.bf16 %v4097_v58  ;;  %v1884_v7 = vmul.f32 %v6131_v6, %v3692_v30  ;;  %v1885_v50 = vmul.f32 %v6131_v6, %v3695_v46 }
 0x17e   :  { %v1886_v14 = vmul.f32 %v6131_v6, %v3696_v38  ;;  %v3708_v31 = vunpack.c.h.bf16 %v4097_v58  ;;  %v3711_v12 = vunpack.c.l.bf16 %v4098_v60  ;;  %v1887_v3 = vmul.f32 %v6131_v6, %v3699_v43 }
 0x17f   :  { %v1888_v54 = vmul.f32 %v6131_v6, %v3700_v2  ;;  %v3712_v52 = vunpack.c.h.bf16 %v4098_v60  ;;  %v3715_v47 = vunpack.c.l.bf16 %v4099_v23  ;;  %v3716_v20 = vunpack.c.h.bf16 %v4099_v23 }
 0x180   :  { %v1889_v21 = vmul.f32 %v6131_v6, %v3703_v56  ;;  %v1890_v33 = vmul.f32 %v6131_v6, %v3704_v51  ;;  %v1897_v9 = vadd.f32 %v6146_v41, %v1881_v19  ;;  %v1898_v28 = vadd.f32 %v6146_v41, %v1882_v55 }
 0x181   :  { %v1899_v8 = vadd.f32 %v6146_v41, %v1883_v35  ;;  %v1891_v25 = vmul.f32 %v6131_v6, %v3707_v24  ;;  %v1900_v57 = vadd.f32 %v6146_v41, %v1884_v7  ;;  %v1901_v15 = vadd.f32 %v6146_v41, %v1885_v50 }
 0x182   :  { %v1902_v59 = vadd.f32 %v6146_v41, %v1886_v14  ;;  %v1892_v34 = vmul.f32 %v6131_v6, %v3708_v31  ;;  %v1893_v63 = vmul.f32 %v6131_v6, %v3711_v12  ;;  %v1903_v62 = vadd.f32 %v6146_v41, %v1887_v3 }
 0x183   :  { %v1904_v18 = vadd.f32 %v6146_v41, %v1888_v54  ;;  %v1894_v44 = vmul.f32 %v6131_v6, %v3712_v52  ;;  %v1895_v39 = vmul.f32 %v6131_v6, %v3715_v47  ;;  %v1896_v10 = vmul.f32 %v6131_v6, %v3716_v20 }
 0x184   :  { %v1905_v40 = vadd.f32 %v6146_v41, %v1889_v21  ;;  %v1906_v0 = vadd.f32 %v6146_v41, %v1890_v33  ;;  %v1913_v17 = vmax.f32 %v1897_v9, 0.0  ;;  %v1914_v49 = vmax.f32 %v1898_v28, 0.0  ;;  %v4104_v28 = vld [vmem:[%s7101_s0 + $0x520] sm:$0xff]  }
 0x185   :  { %v1915_v16 = vmax.f32 %v1899_v8, 0.0  ;;  %v1907_v45 = vadd.f32 %v6146_v41, %v1891_v25  ;;  %v1916_v30 = vmax.f32 %v1900_v57, 0.0  ;;  %v1917_v46 = vmax.f32 %v1901_v15, 0.0 }
 0x186   :  { %v1918_v38 = vmax.f32 %v1902_v59, 0.0  ;;  %v1908_v43 = vadd.f32 %v6146_v41, %v1892_v34  ;;  %v1909_v2 = vadd.f32 %v6146_v41, %v1893_v63  ;;  %v1919_v58 = vmax.f32 %v1903_v62, 0.0  ;;  %v4105_v63 = vld [vmem:[%s7101_s0 + $0x528] sm:$0xff]  }
 0x187   :  { %v1920_v56 = vmax.f32 %v1904_v18, 0.0  ;;  %v1910_v60 = vadd.f32 %v6146_v41, %v1894_v44  ;;  %v1911_v51 = vadd.f32 %v6146_v41, %v1895_v39  ;;  %v1912_v23 = vadd.f32 %v6146_v41, %v1896_v10  ;;  %v4107_v39 = vld [vmem:[%s7101_s0 + $0x538] sm:$0xff]  }
 0x188   :  { %v1921_v19 = vmax.f32 %v1905_v40, 0.0  ;;  %v6275_v55 = vmax.f32 %v6171_v53, %v1913_v17  ;;  %v6278_v35 = vmax.f32 %v6174_v37, %v1914_v49  ;;  %v6281_v24 = vmax.f32 %v6177_v26, %v1915_v16  ;;  %v4100_v53 = vld [vmem:[%s7101_s0 + $0x500] sm:$0xff]   ;;  %v4101_v37 = vld [vmem:[%s7101_s0 + $0x508] sm:$0xff]  }
 0x189   :  { %v1922_v7 = vmax.f32 %v1906_v0, 0.0  ;;  %v6284_v50 = vmax.f32 %v6180_v11, %v1916_v30  ;;  %v6287_v14 = vmax.f32 %v6183_v42, %v1917_v46  ;;  %v6290_v31 = vmax.f32 %v6186_v22, %v1918_v38  ;;  %v4102_v22 = vld [vmem:[%s7101_s0 + $0x510] sm:$0xff]  }
 0x18a   :  { %v1923_v12 = vmax.f32 %v1907_v45, 0.0  ;;  %v6299_v26 = vmax.f32 %v6195_v13, %v1919_v58  ;;  %v6302_v11 = vmax.f32 %v6198_v32, %v1920_v56  ;;  %v1924_v42 = vmax.f32 %v1908_v43, 0.0  ;;  %v4103_v13 = vld [vmem:[%s7101_s0 + $0x518] sm:$0xff]  }
 0x18b   :  { %v1925_v3 = vmax.f32 %v1909_v2, 0.0  ;;  %v6308_v54 = vmax.f32 %v6204_v4, %v1921_v19  ;;  %v1926_v52 = vmax.f32 %v1910_v60, 0.0  ;;  %v1927_v47 = vmax.f32 %v1911_v51, 0.0 }
 0x18c   :  { %v1928_v20 = vmax.f32 %v1912_v23, 0.0  ;;  %v6314_v21 = vmax.f32 %v6210_v36, %v1922_v7  ;;  %v3719_v32 = vunpack.c.l.bf16 %v4100_v53  ;;  %v3720_v33 = vunpack.c.h.bf16 %v4100_v53 }
 0x18d   :  { %v3723_v9 = vunpack.c.l.bf16 %v4101_v37  ;;  %v6320_v4 = vmax.f32 %v6216_v29, %v1923_v12  ;;  %v3724_v8 = vunpack.c.h.bf16 %v4101_v37  ;;  %v3727_v25 = vunpack.c.l.bf16 %v4102_v22 }
 0x18e   :  { %v3728_v57 = vunpack.c.h.bf16 %v4102_v22  ;;  %v6323_v15 = vmax.f32 %v6219_v27, %v1924_v42  ;;  %v6326_v59 = vmax.f32 %v6222_v1, %v1925_v3  ;;  %v3731_v36 = vunpack.c.l.bf16 %v4103_v13  ;;  %v4106_v1 = vld [vmem:[%s7101_s0 + $0x530] sm:$0xff]  }
 0x18f   :  { %v3732_v34 = vunpack.c.h.bf16 %v4103_v13  ;;  %v6332_v62 = vmax.f32 %v6228_v61, %v1926_v52  ;;  %v6335_v29 = vmax.f32 %v6231_v5, %v1927_v47  ;;  %v6338_v18 = vmax.f32 %v6234_v48, %v1928_v20 }
 0x190   :  { %v3735_v27 = vunpack.c.l.bf16 %v4104_v28  ;;  %v3736_v44 = vunpack.c.h.bf16 %v4104_v28  ;;  %v1978_v10 = vmul.f32 %v6131_v6, %v3719_v32  ;;  %v1979_v61 = vmul.f32 %v6131_v6, %v3720_v33 }
 0x191   :  { %v1980_v5 = vmul.f32 %v6131_v6, %v3723_v9  ;;  %v3739_v40 = vunpack.c.l.bf16 %v4105_v63  ;;  %v1981_v48 = vmul.f32 %v6131_v6, %v3724_v8  ;;  %v1982_v0 = vmul.f32 %v6131_v6, %v3727_v25 }
 0x192   :  { %v1983_v17 = vmul.f32 %v6131_v6, %v3728_v57  ;;  %v3740_v49 = vunpack.c.h.bf16 %v4105_v63  ;;  %v3743_v16 = vunpack.c.l.bf16 %v4106_v1  ;;  %v1984_v45 = vmul.f32 %v6131_v6, %v3731_v36 }
 0x193   :  { %v1985_v30 = vmul.f32 %v6131_v6, %v3732_v34  ;;  %v3744_v46 = vunpack.c.h.bf16 %v4106_v1  ;;  %v3747_v38 = vunpack.c.l.bf16 %v4107_v39  ;;  %v3748_v43 = vunpack.c.h.bf16 %v4107_v39 }
 0x194   :  { %v1986_v2 = vmul.f32 %v6131_v6, %v3735_v27  ;;  %v1987_v58 = vmul.f32 %v6131_v6, %v3736_v44  ;;  %v1994_v56 = vadd.f32 %v6146_v41, %v1978_v10  ;;  %v1995_v60 = vadd.f32 %v6146_v41, %v1979_v61 }
 0x195   :  { %v1996_v51 = vadd.f32 %v6146_v41, %v1980_v5  ;;  %v1988_v23 = vmul.f32 %v6131_v6, %v3739_v40  ;;  %v1997_v19 = vadd.f32 %v6146_v41, %v1981_v48  ;;  %v1998_v7 = vadd.f32 %v6146_v41, %v1982_v0 }
 0x196   :  { %v1999_v12 = vadd.f32 %v6146_v41, %v1983_v17  ;;  %v1989_v53 = vmul.f32 %v6131_v6, %v3740_v49  ;;  %v1990_v37 = vmul.f32 %v6131_v6, %v3743_v16  ;;  %v2000_v42 = vadd.f32 %v6146_v41, %v1984_v45 }
 0x197   :  { %v2001_v3 = vadd.f32 %v6146_v41, %v1985_v30  ;;  %v1991_v22 = vmul.f32 %v6131_v6, %v3744_v46  ;;  %v1992_v52 = vmul.f32 %v6131_v6, %v3747_v38  ;;  %v1993_v47 = vmul.f32 %v6131_v6, %v3748_v43 }
 0x198   :  { %v2002_v20 = vadd.f32 %v6146_v41, %v1986_v2  ;;  %v2003_v13 = vadd.f32 %v6146_v41, %v1987_v58  ;;  %v2010_v32 = vmax.f32 %v1994_v56, 0.0  ;;  %v2011_v33 = vmax.f32 %v1995_v60, 0.0  ;;  %v4112_v60 = vld [vmem:[%s7101_s0 + $0x560] sm:$0xff]  }
 0x199   :  { %v2012_v9 = vmax.f32 %v1996_v51, 0.0  ;;  %v2004_v28 = vadd.f32 %v6146_v41, %v1988_v23  ;;  %v2013_v8 = vmax.f32 %v1997_v19, 0.0  ;;  %v2014_v25 = vmax.f32 %v1998_v7, 0.0 }
 0x19a   :  { %v2015_v57 = vmax.f32 %v1999_v12, 0.0  ;;  %v2005_v36 = vadd.f32 %v6146_v41, %v1989_v53  ;;  %v2006_v34 = vadd.f32 %v6146_v41, %v1990_v37  ;;  %v2016_v63 = vmax.f32 %v2000_v42, 0.0  ;;  %v4113_v37 = vld [vmem:[%s7101_s0 + $0x568] sm:$0xff]  }
 0x19b   :  { %v2017_v27 = vmax.f32 %v2001_v3, 0.0  ;;  %v2007_v1 = vadd.f32 %v6146_v41, %v1991_v22  ;;  %v2008_v44 = vadd.f32 %v6146_v41, %v1992_v52  ;;  %v2009_v39 = vadd.f32 %v6146_v41, %v1993_v47  ;;  %v4115_v52 = vld [vmem:[%s7101_s0 + $0x578] sm:$0xff]  }
 0x19c   :  { %v2018_v10 = vmax.f32 %v2002_v20, 0.0  ;;  %v6379_v61 = vmax.f32 %v6275_v55, %v2010_v32  ;;  %v6382_v5 = vmax.f32 %v6278_v35, %v2011_v33  ;;  %v6385_v40 = vmax.f32 %v6281_v24, %v2012_v9  ;;  %v4108_v55 = vld [vmem:[%s7101_s0 + $0x540] sm:$0xff]   ;;  %v4109_v35 = vld [vmem:[%s7101_s0 + $0x548] sm:$0xff]  }
 0x19d   :  { %v2019_v48 = vmax.f32 %v2003_v13, 0.0  ;;  %v6388_v0 = vmax.f32 %v6284_v50, %v2013_v8  ;;  %v6391_v17 = vmax.f32 %v6287_v14, %v2014_v25  ;;  %v6394_v49 = vmax.f32 %v6290_v31, %v2015_v57  ;;  %v4110_v31 = vld [vmem:[%s7101_s0 + $0x550] sm:$0xff]  }
 0x19e   :  { %v2020_v16 = vmax.f32 %v2004_v28, 0.0  ;;  %v6403_v24 = vmax.f32 %v6299_v26, %v2016_v63  ;;  %v6406_v50 = vmax.f32 %v6302_v11, %v2017_v27  ;;  %v2021_v14 = vmax.f32 %v2005_v36, 0.0  ;;  %v4111_v26 = vld [vmem:[%s7101_s0 + $0x558] sm:$0xff]  }
 0x19f   :  { %v2022_v45 = vmax.f32 %v2006_v34, 0.0  ;;  %v6412_v30 = vmax.f32 %v6308_v54, %v2018_v10  ;;  %v2023_v46 = vmax.f32 %v2007_v1, 0.0  ;;  %v2024_v38 = vmax.f32 %v2008_v44, 0.0 }
 0x1a0   :  { %v2025_v43 = vmax.f32 %v2009_v39, 0.0  ;;  %v6418_v2 = vmax.f32 %v6314_v21, %v2019_v48  ;;  %v3751_v11 = vunpack.c.l.bf16 %v4108_v55  ;;  %v3752_v58 = vunpack.c.h.bf16 %v4108_v55 }
 0x1a1   :  { %v3755_v56 = vunpack.c.l.bf16 %v4109_v35  ;;  %v6424_v54 = vmax.f32 %v6320_v4, %v2020_v16  ;;  %v3756_v51 = vunpack.c.h.bf16 %v4109_v35  ;;  %v3759_v23 = vunpack.c.l.bf16 %v4110_v31 }
 0x1a2   :  { %v3760_v19 = vunpack.c.h.bf16 %v4110_v31  ;;  %v6427_v7 = vmax.f32 %v6323_v15, %v2021_v14  ;;  %v6430_v12 = vmax.f32 %v6326_v59, %v2022_v45  ;;  %v3763_v21 = vunpack.c.l.bf16 %v4111_v26  ;;  %v4114_v59 = vld [vmem:[%s7101_s0 + $0x570] sm:$0xff]  }
 0x1a3   :  { %v3764_v53 = vunpack.c.h.bf16 %v4111_v26  ;;  %v6436_v42 = vmax.f32 %v6332_v62, %v2023_v46  ;;  %v6439_v4 = vmax.f32 %v6335_v29, %v2024_v38  ;;  %v6442_v3 = vmax.f32 %v6338_v18, %v2025_v43 }
 0x1a4   :  { %v3767_v15 = vunpack.c.l.bf16 %v4112_v60  ;;  %v3768_v22 = vunpack.c.h.bf16 %v4112_v60  ;;  %v2075_v47 = vmul.f32 %v6131_v6, %v3751_v11  ;;  %v2076_v62 = vmul.f32 %v6131_v6, %v3752_v58 }
 0x1a5   :  { %v2077_v29 = vmul.f32 %v6131_v6, %v3755_v56  ;;  %v3771_v20 = vunpack.c.l.bf16 %v4113_v37  ;;  %v2078_v18 = vmul.f32 %v6131_v6, %v3756_v51  ;;  %v2079_v13 = vmul.f32 %v6131_v6, %v3759_v23 }
 0x1a6   :  { %v2080_v32 = vmul.f32 %v6131_v6, %v3760_v19  ;;  %v3772_v33 = vunpack.c.h.bf16 %v4113_v37  ;;  %v3775_v9 = vunpack.c.l.bf16 %v4114_v59  ;;  %v2081_v28 = vmul.f32 %v6131_v6, %v3763_v21 }
 0x1a7   :  { %v2082_v8 = vmul.f32 %v6131_v6, %v3764_v53  ;;  %v3776_v25 = vunpack.c.h.bf16 %v4114_v59  ;;  %v3779_v57 = vunpack.c.l.bf16 %v4115_v52  ;;  %v3780_v36 = vunpack.c.h.bf16 %v4115_v52 }
 0x1a8   :  { %v2083_v34 = vmul.f32 %v6131_v6, %v3767_v15  ;;  %v2084_v63 = vmul.f32 %v6131_v6, %v3768_v22  ;;  %v2091_v27 = vadd.f32 %v6146_v41, %v2075_v47  ;;  %v2092_v1 = vadd.f32 %v6146_v41, %v2076_v62 }
 0x1a9   :  { %v2093_v44 = vadd.f32 %v6146_v41, %v2077_v29  ;;  %v2085_v39 = vmul.f32 %v6131_v6, %v3771_v20  ;;  %v2094_v10 = vadd.f32 %v6146_v41, %v2078_v18  ;;  %v2095_v48 = vadd.f32 %v6146_v41, %v2079_v13 }
 0x1aa   :  { %v2096_v16 = vadd.f32 %v6146_v41, %v2080_v32  ;;  %v2086_v55 = vmul.f32 %v6131_v6, %v3772_v33  ;;  %v2087_v35 = vmul.f32 %v6131_v6, %v3775_v9  ;;  %v2097_v14 = vadd.f32 %v6146_v41, %v2081_v28 }
 0x1ab   :  { %v2098_v45 = vadd.f32 %v6146_v41, %v2082_v8  ;;  %v2088_v31 = vmul.f32 %v6131_v6, %v3776_v25  ;;  %v2089_v46 = vmul.f32 %v6131_v6, %v3779_v57  ;;  %v2090_v38 = vmul.f32 %v6131_v6, %v3780_v36 }
 0x1ac   :  { %v2099_v43 = vadd.f32 %v6146_v41, %v2083_v34  ;;  %v2100_v26 = vadd.f32 %v6146_v41, %v2084_v63  ;;  %v2107_v11 = vmax.f32 %v2091_v27, 0.0  ;;  %v2108_v58 = vmax.f32 %v2092_v1, 0.0  ;;  %v4120_v1 = vld [vmem:[%s7101_s0 + $0x5a0] sm:$0xff]  }
 0x1ad   :  { %v2109_v56 = vmax.f32 %v2093_v44, 0.0  ;;  %v2101_v60 = vadd.f32 %v6146_v41, %v2085_v39  ;;  %v2110_v51 = vmax.f32 %v2094_v10, 0.0  ;;  %v2111_v23 = vmax.f32 %v2095_v48, 0.0 }
 0x1ae   :  { %v2112_v19 = vmax.f32 %v2096_v16, 0.0  ;;  %v2102_v21 = vadd.f32 %v6146_v41, %v2086_v55  ;;  %v2103_v53 = vadd.f32 %v6146_v41, %v2087_v35  ;;  %v2113_v37 = vmax.f32 %v2097_v14, 0.0  ;;  %v4121_v35 = vld [vmem:[%s7101_s0 + $0x5a8] sm:$0xff]  }
 0x1af   :  { %v2114_v15 = vmax.f32 %v2098_v45, 0.0  ;;  %v2104_v59 = vadd.f32 %v6146_v41, %v2088_v31  ;;  %v2105_v22 = vadd.f32 %v6146_v41, %v2089_v46  ;;  %v2106_v52 = vadd.f32 %v6146_v41, %v2090_v38  ;;  %v4123_v46 = vld [vmem:[%s7101_s0 + $0x5b8] sm:$0xff]  }
 0x1b0   :  { %v2115_v47 = vmax.f32 %v2099_v43, 0.0  ;;  %v6483_v62 = vmax.f32 %v6379_v61, %v2107_v11  ;;  %v6486_v29 = vmax.f32 %v6382_v5, %v2108_v58  ;;  %v6489_v20 = vmax.f32 %v6385_v40, %v2109_v56  ;;  %v4116_v61 = vld [vmem:[%s7101_s0 + $0x580] sm:$0xff]   ;;  %v4117_v5 = vld [vmem:[%s7101_s0 + $0x588] sm:$0xff]  }
 0x1b1   :  { %v2116_v18 = vmax.f32 %v2100_v26, 0.0  ;;  %v6492_v13 = vmax.f32 %v6388_v0, %v2110_v51  ;;  %v6495_v32 = vmax.f32 %v6391_v17, %v2111_v23  ;;  %v6498_v33 = vmax.f32 %v6394_v49, %v2112_v19  ;;  %v4118_v49 = vld [vmem:[%s7101_s0 + $0x590] sm:$0xff]  }
 0x1b2   :  { %v2117_v9 = vmax.f32 %v2101_v60, 0.0  ;;  %v6507_v40 = vmax.f32 %v6403_v24, %v2113_v37  ;;  %v6510_v0 = vmax.f32 %v6406_v50, %v2114_v15  ;;  %v2118_v17 = vmax.f32 %v2102_v21, 0.0  ;;  %v4119_v24 = vld [vmem:[%s7101_s0 + $0x598] sm:$0xff]  }
 0x1b3   :  { %v2119_v28 = vmax.f32 %v2103_v53, 0.0  ;;  %v6516_v8 = vmax.f32 %v6412_v30, %v2115_v47  ;;  %v2120_v25 = vmax.f32 %v2104_v59, 0.0  ;;  %v2121_v57 = vmax.f32 %v2105_v22, 0.0 }
 0x1b4   :  { %v2122_v36 = vmax.f32 %v2106_v52, 0.0  ;;  %v6522_v34 = vmax.f32 %v6418_v2, %v2116_v18  ;;  %v3783_v50 = vunpack.c.l.bf16 %v4116_v61  ;;  %v3784_v63 = vunpack.c.h.bf16 %v4116_v61 }
 0x1b5   :  { %v3787_v27 = vunpack.c.l.bf16 %v4117_v5  ;;  %v6528_v30 = vmax.f32 %v6424_v54, %v2117_v9  ;;  %v3788_v44 = vunpack.c.h.bf16 %v4117_v5  ;;  %v3791_v39 = vunpack.c.l.bf16 %v4118_v49 }
 0x1b6   :  { %v3792_v10 = vunpack.c.h.bf16 %v4118_v49  ;;  %v6531_v48 = vmax.f32 %v6427_v7, %v2118_v17  ;;  %v6534_v16 = vmax.f32 %v6430_v12, %v2119_v28  ;;  %v3795_v2 = vunpack.c.l.bf16 %v4119_v24  ;;  %v4122_v12 = vld [vmem:[%s7101_s0 + $0x5b0] sm:$0xff]  }
 0x1b7   :  { %v3796_v55 = vunpack.c.h.bf16 %v4119_v24  ;;  %v6540_v14 = vmax.f32 %v6436_v42, %v2120_v25  ;;  %v6543_v54 = vmax.f32 %v6439_v4, %v2121_v57  ;;  %v6546_v45 = vmax.f32 %v6442_v3, %v2122_v36 }
 0x1b8   :  { %v3799_v7 = vunpack.c.l.bf16 %v4120_v1  ;;  %v3800_v31 = vunpack.c.h.bf16 %v4120_v1  ;;  %v2172_v38 = vmul.f32 %v6131_v6, %v3783_v50  ;;  %v2173_v42 = vmul.f32 %v6131_v6, %v3784_v63 }
 0x1b9   :  { %v2174_v4 = vmul.f32 %v6131_v6, %v3787_v27  ;;  %v3803_v43 = vunpack.c.l.bf16 %v4121_v35  ;;  %v2175_v3 = vmul.f32 %v6131_v6, %v3788_v44  ;;  %v2176_v26 = vmul.f32 %v6131_v6, %v3791_v39 }
 0x1ba   :  { %v2177_v11 = vmul.f32 %v6131_v6, %v3792_v10  ;;  %v3804_v58 = vunpack.c.h.bf16 %v4121_v35  ;;  %v3807_v56 = vunpack.c.l.bf16 %v4122_v12  ;;  %v2178_v60 = vmul.f32 %v6131_v6, %v3795_v2 }
 0x1bb   :  { %v2179_v51 = vmul.f32 %v6131_v6, %v3796_v55  ;;  %v3808_v23 = vunpack.c.h.bf16 %v4122_v12  ;;  %v3811_v19 = vunpack.c.l.bf16 %v4123_v46  ;;  %v3812_v21 = vunpack.c.h.bf16 %v4123_v46 }
 0x1bc   :  { %v2180_v53 = vmul.f32 %v6131_v6, %v3799_v7  ;;  %v2181_v37 = vmul.f32 %v6131_v6, %v3800_v31  ;;  %v2188_v15 = vadd.f32 %v6146_v41, %v2172_v38  ;;  %v2189_v59 = vadd.f32 %v6146_v41, %v2173_v42 }
 0x1bd   :  { %v2190_v22 = vadd.f32 %v6146_v41, %v2174_v4  ;;  %v2182_v52 = vmul.f32 %v6131_v6, %v3803_v43  ;;  %v2191_v47 = vadd.f32 %v6146_v41, %v2175_v3  ;;  %v2192_v18 = vadd.f32 %v6146_v41, %v2176_v26 }
 0x1be   :  { %v2193_v9 = vadd.f32 %v6146_v41, %v2177_v11  ;;  %v2183_v61 = vmul.f32 %v6131_v6, %v3804_v58  ;;  %v2184_v5 = vmul.f32 %v6131_v6, %v3807_v56  ;;  %v2194_v17 = vadd.f32 %v6146_v41, %v2178_v60 }
 0x1bf   :  { %v2195_v28 = vadd.f32 %v6146_v41, %v2179_v51  ;;  %v2185_v49 = vmul.f32 %v6131_v6, %v3808_v23  ;;  %v2186_v25 = vmul.f32 %v6131_v6, %v3811_v19  ;;  %v2187_v57 = vmul.f32 %v6131_v6, %v3812_v21 }
 0x1c0   :  { %v2196_v36 = vadd.f32 %v6146_v41, %v2180_v53  ;;  %v2197_v24 = vadd.f32 %v6146_v41, %v2181_v37  ;;  %v2204_v50 = vmax.f32 %v2188_v15, 0.0  ;;  %v2205_v63 = vmax.f32 %v2189_v59, 0.0  ;;  %v4128_v59 = vld [vmem:[%s7101_s0 + $0x5e0] sm:$0xff]  }
 0x1c1   :  { %v2206_v27 = vmax.f32 %v2190_v22, 0.0  ;;  %v2198_v1 = vadd.f32 %v6146_v41, %v2182_v52  ;;  %v2207_v44 = vmax.f32 %v2191_v47, 0.0  ;;  %v2208_v39 = vmax.f32 %v2192_v18, 0.0 }
 0x1c2   :  { %v2209_v10 = vmax.f32 %v2193_v9, 0.0  ;;  %v2199_v2 = vadd.f32 %v6146_v41, %v2183_v61  ;;  %v2200_v55 = vadd.f32 %v6146_v41, %v2184_v5  ;;  %v2210_v35 = vmax.f32 %v2194_v17, 0.0  ;;  %v4129_v5 = vld [vmem:[%s7101_s0 + $0x5e8] sm:$0xff]  }
 0x1c3   :  { %v2211_v7 = vmax.f32 %v2195_v28, 0.0  ;;  %v2201_v12 = vadd.f32 %v6146_v41, %v2185_v49  ;;  %v2202_v31 = vadd.f32 %v6146_v41, %v2186_v25  ;;  %v2203_v46 = vadd.f32 %v6146_v41, %v2187_v57  ;;  %v4131_v25 = vld [vmem:[%s7101_s0 + $0x5f8] sm:$0xff]  }
 0x1c4   :  { %v2212_v38 = vmax.f32 %v2196_v36, 0.0  ;;  %v6587_v42 = vmax.f32 %v6483_v62, %v2204_v50  ;;  %v6590_v4 = vmax.f32 %v6486_v29, %v2205_v63  ;;  %v6593_v43 = vmax.f32 %v6489_v20, %v2206_v27  ;;  %v4124_v62 = vld [vmem:[%s7101_s0 + $0x5c0] sm:$0xff]   ;;  %v4125_v29 = vld [vmem:[%s7101_s0 + $0x5c8] sm:$0xff]  }
 0x1c5   :  { %v2213_v3 = vmax.f32 %v2197_v24, 0.0  ;;  %v6596_v26 = vmax.f32 %v6492_v13, %v2207_v44  ;;  %v6599_v11 = vmax.f32 %v6495_v32, %v2208_v39  ;;  %v6602_v58 = vmax.f32 %v6498_v33, %v2209_v10  ;;  %v4126_v33 = vld [vmem:[%s7101_s0 + $0x5d0] sm:$0xff]  }
 0x1c6   :  { %v2214_v56 = vmax.f32 %v2198_v1, 0.0  ;;  %v6611_v20 = vmax.f32 %v6507_v40, %v2210_v35  ;;  %v6614_v13 = vmax.f32 %v6510_v0, %v2211_v7  ;;  %v2215_v32 = vmax.f32 %v2199_v2, 0.0  ;;  %v4127_v40 = vld [vmem:[%s7101_s0 + $0x5d8] sm:$0xff]  }
 0x1c7   :  { %v2216_v60 = vmax.f32 %v2200_v55, 0.0  ;;  %v6620_v51 = vmax.f32 %v6516_v8, %v2212_v38  ;;  %v2217_v23 = vmax.f32 %v2201_v12, 0.0  ;;  %v2218_v19 = vmax.f32 %v2202_v31, 0.0 }
 0x1c8   :  { %v2219_v21 = vmax.f32 %v2203_v46, 0.0  ;;  %v6626_v53 = vmax.f32 %v6522_v34, %v2213_v3  ;;  %v3815_v0 = vunpack.c.l.bf16 %v4124_v62  ;;  %v3816_v37 = vunpack.c.h.bf16 %v4124_v62 }
 0x1c9   :  { %v3819_v15 = vunpack.c.l.bf16 %v4125_v29  ;;  %v6632_v8 = vmax.f32 %v6528_v30, %v2214_v56  ;;  %v3820_v22 = vunpack.c.h.bf16 %v4125_v29  ;;  %v3823_v52 = vunpack.c.l.bf16 %v4126_v33 }
 0x1ca   :  { %v3824_v47 = vunpack.c.h.bf16 %v4126_v33  ;;  %v6635_v18 = vmax.f32 %v6531_v48, %v2215_v32  ;;  %v6638_v9 = vmax.f32 %v6534_v16, %v2216_v60  ;;  %v3827_v34 = vunpack.c.l.bf16 %v4127_v40  ;;  %v4130_v16 = vld [vmem:[%s7101_s0 + $0x5f0] sm:$0xff]  }
 0x1cb   :  { %v3828_v61 = vunpack.c.h.bf16 %v4127_v40  ;;  %v6644_v17 = vmax.f32 %v6540_v14, %v2217_v23  ;;  %v6647_v30 = vmax.f32 %v6543_v54, %v2218_v19  ;;  %v6650_v28 = vmax.f32 %v6546_v45, %v2219_v21 }
 0x1cc   :  { %v3831_v48 = vunpack.c.l.bf16 %v4128_v59  ;;  %v3832_v49 = vunpack.c.h.bf16 %v4128_v59  ;;  %v2269_v57 = vmul.f32 %v6131_v6, %v3815_v0  ;;  %v2270_v14 = vmul.f32 %v6131_v6, %v3816_v37 }
 0x1cd   :  { %v2271_v54 = vmul.f32 %v6131_v6, %v3819_v15  ;;  %v3835_v36 = vunpack.c.l.bf16 %v4129_v5  ;;  %v2272_v45 = vmul.f32 %v6131_v6, %v3820_v22  ;;  %v2273_v24 = vmul.f32 %v6131_v6, %v3823_v52 }
 0x1ce   :  { %v2274_v50 = vmul.f32 %v6131_v6, %v3824_v47  ;;  %v3836_v63 = vunpack.c.h.bf16 %v4129_v5  ;;  %v3839_v27 = vunpack.c.l.bf16 %v4130_v16  ;;  %v2275_v1 = vmul.f32 %v6131_v6, %v3827_v34 }
 0x1cf   :  { %v2276_v44 = vmul.f32 %v6131_v6, %v3828_v61  ;;  %v3840_v39 = vunpack.c.h.bf16 %v4130_v16  ;;  %v3843_v10 = vunpack.c.l.bf16 %v4131_v25  ;;  %v3844_v2 = vunpack.c.h.bf16 %v4131_v25 }
 0x1d0   :  { %v2277_v55 = vmul.f32 %v6131_v6, %v3831_v48  ;;  %v2278_v35 = vmul.f32 %v6131_v6, %v3832_v49  ;;  %v2285_v7 = vadd.f32 %v6146_v41, %v2269_v57  ;;  %v2286_v12 = vadd.f32 %v6146_v41, %v2270_v14 }
 0x1d1   :  { %v2287_v31 = vadd.f32 %v6146_v41, %v2271_v54  ;;  %v2279_v46 = vmul.f32 %v6131_v6, %v3835_v36  ;;  %v2288_v38 = vadd.f32 %v6146_v41, %v2272_v45  ;;  %v2289_v3 = vadd.f32 %v6146_v41, %v2273_v24 }
 0x1d2   :  { %v2290_v56 = vadd.f32 %v6146_v41, %v2274_v50  ;;  %v2280_v62 = vmul.f32 %v6131_v6, %v3836_v63  ;;  %v2281_v29 = vmul.f32 %v6131_v6, %v3839_v27  ;;  %v2291_v32 = vadd.f32 %v6146_v41, %v2275_v1 }
 0x1d3   :  { %v2292_v60 = vadd.f32 %v6146_v41, %v2276_v44  ;;  %v2282_v33 = vmul.f32 %v6131_v6, %v3840_v39  ;;  %v2283_v23 = vmul.f32 %v6131_v6, %v3843_v10  ;;  %v2284_v19 = vmul.f32 %v6131_v6, %v3844_v2 }
 0x1d4   :  { %v2293_v21 = vadd.f32 %v6146_v41, %v2277_v55  ;;  %v2294_v40 = vadd.f32 %v6146_v41, %v2278_v35  ;;  %v2301_v0 = vmax.f32 %v2285_v7, 0.0  ;;  %v2302_v37 = vmax.f32 %v2286_v12, 0.0  ;;  %v4136_v35 = vld [vmem:[%s7101_s0 + $0x620] sm:$0xff]  }
 0x1d5   :  { %v2303_v15 = vmax.f32 %v2287_v31, 0.0  ;;  %v2295_v59 = vadd.f32 %v6146_v41, %v2279_v46  ;;  %v2304_v22 = vmax.f32 %v2288_v38, 0.0  ;;  %v2305_v52 = vmax.f32 %v2289_v3, 0.0 }
 0x1d6   :  { %v2306_v47 = vmax.f32 %v2290_v56, 0.0  ;;  %v2296_v34 = vadd.f32 %v6146_v41, %v2280_v62  ;;  %v2297_v61 = vadd.f32 %v6146_v41, %v2281_v29  ;;  %v2307_v5 = vmax.f32 %v2291_v32, 0.0  ;;  %v4137_v56 = vld [vmem:[%s7101_s0 + $0x628] sm:$0xff]  }
 0x1d7   :  { %v2308_v48 = vmax.f32 %v2292_v60, 0.0  ;;  %v2298_v6 = vadd.f32 %v6146_v41, %v2282_v33  ;;  %v2299_v16 = vadd.f32 %v6146_v41, %v2283_v23  ;;  %v2300_v49 = vadd.f32 %v6146_v41, %v2284_v19  ;;  %v4139_v60 = vld [vmem:[%s7101_s0 + $0x638] sm:$0xff]  }
 0x1d8   :  { %v2309_v25 = vmax.f32 %v2293_v21, 0.0  ;;  %v6691_v57 = vmax.f32 %v6587_v42, %v2301_v0  ;;  %v6694_v14 = vmax.f32 %v6590_v4, %v2302_v37  ;;  %v6697_v54 = vmax.f32 %v6593_v43, %v2303_v15  ;;  %v4132_v42 = vld [vmem:[%s7101_s0 + $0x600] sm:$0xff]   ;;  %v4133_v4 = vld [vmem:[%s7101_s0 + $0x608] sm:$0xff]  }
 0x1d9   :  { %v2310_v36 = vmax.f32 %v2294_v40, 0.0  ;;  %v6700_v45 = vmax.f32 %v6596_v26, %v2304_v22  ;;  %v6703_v24 = vmax.f32 %v6599_v11, %v2305_v52  ;;  %v6706_v50 = vmax.f32 %v6602_v58, %v2306_v47  ;;  %v4134_v58 = vld [vmem:[%s7101_s0 + $0x610] sm:$0xff]  }
 0x1da   :  { %v2311_v41 = vmax.f32 %v2295_v59, 0.0  ;;  %v6715_v43 = vmax.f32 %v6611_v20, %v2307_v5  ;;  %v6718_v26 = vmax.f32 %v6614_v13, %v2308_v48  ;;  %v2312_v11 = vmax.f32 %v2296_v34, 0.0  ;;  %v4135_v20 = vld [vmem:[%s7101_s0 + $0x618] sm:$0xff]   ;;  %v6780_v5 = vld [vmem:[%s7102_s2] ss:$0 sm:$0xff] }
 0x1db   :  { %v2313_v63 = vmax.f32 %v2297_v61, 0.0  ;;  %v6724_v27 = vmax.f32 %v6620_v51, %v2309_v25  ;;  %v2314_v1 = vmax.f32 %v2298_v6, 0.0  ;;  %v2315_v44 = vmax.f32 %v2299_v16, 0.0 }
 0x1dc   :  { %v2316_v39 = vmax.f32 %v2300_v49, 0.0  ;;  %v6730_v10 = vmax.f32 %v6626_v53, %v2310_v36  ;;  %v3847_v13 = vunpack.c.l.bf16 %v4132_v42  ;;  %v3848_v2 = vunpack.c.h.bf16 %v4132_v42 }
 0x1dd   :  { %v3851_v55 = vunpack.c.l.bf16 %v4133_v4  ;;  %v6736_v51 = vmax.f32 %v6632_v8, %v2311_v41  ;;  %v3852_v7 = vunpack.c.h.bf16 %v4133_v4  ;;  %v3855_v12 = vunpack.c.l.bf16 %v4134_v58 }
 0x1de   :  { %v3856_v31 = vunpack.c.h.bf16 %v4134_v58  ;;  %v6739_v46 = vmax.f32 %v6635_v18, %v2312_v11  ;;  %v6742_v38 = vmax.f32 %v6638_v9, %v2313_v63  ;;  %v3859_v53 = vunpack.c.l.bf16 %v4135_v20  ;;  %v4138_v9 = vld [vmem:[%s7101_s0 + $0x630] sm:$0xff]  }
 0x1df   :  { %v3860_v3 = vunpack.c.h.bf16 %v4135_v20  ;;  %v6748_v62 = vmax.f32 %v6644_v17, %v2314_v1  ;;  %v6751_v8 = vmax.f32 %v6647_v30, %v2315_v44  ;;  %v6754_v29 = vmax.f32 %v6650_v28, %v2316_v39  ;;  %v6765_v17 = vld [vmem:[%s7100_s1] ss:$0 sm:$0xff] }
 0x1e0   :  { %v3863_v18 = vunpack.c.l.bf16 %v4136_v35  ;;  %v3864_v32 = vunpack.c.h.bf16 %v4136_v35  ;;  %v2366_v30 = vmul.f32 %v6765_v17, %v3847_v13  ;;  %v2367_v28 = vmul.f32 %v6765_v17, %v3848_v2 }
 0x1e1   :  { %v2368_v33 = vmul.f32 %v6765_v17, %v3851_v55  ;;  %v3867_v23 = vunpack.c.l.bf16 %v4137_v56  ;;  %v2369_v19 = vmul.f32 %v6765_v17, %v3852_v7  ;;  %v2370_v21 = vmul.f32 %v6765_v17, %v3855_v12 }
 0x1e2   :  { %v2371_v40 = vmul.f32 %v6765_v17, %v3856_v31  ;;  %v3868_v0 = vunpack.c.h.bf16 %v4137_v56  ;;  %v3871_v37 = vunpack.c.l.bf16 %v4138_v9  ;;  %v2372_v15 = vmul.f32 %v6765_v17, %v3859_v53 }
 0x1e3   :  { %v2373_v59 = vmul.f32 %v6765_v17, %v3860_v3  ;;  %v3872_v22 = vunpack.c.h.bf16 %v4138_v9  ;;  %v3875_v52 = vunpack.c.l.bf16 %v4139_v60  ;;  %v3876_v47 = vunpack.c.h.bf16 %v4139_v60 }
 0x1e4   :  { %v2374_v34 = vmul.f32 %v6765_v17, %v3863_v18  ;;  %v2375_v61 = vmul.f32 %v6765_v17, %v3864_v32  ;;  %v2382_v48 = vadd.f32 %v6780_v5, %v2366_v30  ;;  %v2383_v6 = vadd.f32 %v6780_v5, %v2367_v28 }
 0x1e5   :  { %v2384_v16 = vadd.f32 %v6780_v5, %v2368_v33  ;;  %v2376_v49 = vmul.f32 %v6765_v17, %v3867_v23  ;;  %v2385_v25 = vadd.f32 %v6780_v5, %v2369_v19  ;;  %v2386_v36 = vadd.f32 %v6780_v5, %v2370_v21 }
 0x1e6   :  { %v2387_v41 = vadd.f32 %v6780_v5, %v2371_v40  ;;  %v2377_v42 = vmul.f32 %v6765_v17, %v3868_v0  ;;  %v2378_v4 = vmul.f32 %v6765_v17, %v3871_v37  ;;  %v2388_v11 = vadd.f32 %v6780_v5, %v2372_v15 }
 0x1e7   :  { %v2389_v63 = vadd.f32 %v6780_v5, %v2373_v59  ;;  %v2379_v58 = vmul.f32 %v6765_v17, %v3872_v22  ;;  %v2380_v1 = vmul.f32 %v6765_v17, %v3875_v52  ;;  %v2381_v44 = vmul.f32 %v6765_v17, %v3876_v47 }
 0x1e8   :  { %v2390_v39 = vadd.f32 %v6780_v5, %v2374_v34  ;;  %v2391_v20 = vadd.f32 %v6780_v5, %v2375_v61  ;;  %v2398_v13 = vmax.f32 %v2382_v48, 0.0  ;;  %v2399_v2 = vmax.f32 %v2383_v6, 0.0  ;;  %v4144_v6 = vld [vmem:[%s7101_s0 + $0x660] sm:$0xff]  }
 0x1e9   :  { %v2400_v55 = vmax.f32 %v2384_v16, 0.0  ;;  %v2392_v35 = vadd.f32 %v6780_v5, %v2376_v49  ;;  %v2401_v7 = vmax.f32 %v2385_v25, 0.0  ;;  %v2402_v12 = vmax.f32 %v2386_v36, 0.0 }
 0x1ea   :  { %v2403_v31 = vmax.f32 %v2387_v41, 0.0  ;;  %v2393_v53 = vadd.f32 %v6780_v5, %v2377_v42  ;;  %v2394_v3 = vadd.f32 %v6780_v5, %v2378_v4  ;;  %v2404_v56 = vmax.f32 %v2388_v11, 0.0  ;;  %v4145_v4 = vld [vmem:[%s7101_s0 + $0x668] sm:$0xff]  }
 0x1eb   :  { %v2405_v18 = vmax.f32 %v2389_v63, 0.0  ;;  %v2395_v9 = vadd.f32 %v6780_v5, %v2379_v58  ;;  %v2396_v32 = vadd.f32 %v6780_v5, %v2380_v1  ;;  %v2397_v60 = vadd.f32 %v6780_v5, %v2381_v44  ;;  %v4147_v1 = vld [vmem:[%s7101_s0 + $0x678] sm:$0xff]  }
 0x1ec   :  { %v2406_v30 = vmax.f32 %v2390_v39, 0.0  ;;  %v6805_v28 = vmax.f32 %v6691_v57, %v2398_v13  ;;  %v6808_v33 = vmax.f32 %v6694_v14, %v2399_v2  ;;  %v6811_v23 = vmax.f32 %v6697_v54, %v2400_v55  ;;  %v4140_v57 = vld [vmem:[%s7101_s0 + $0x640] sm:$0xff]   ;;  %v4141_v14 = vld [vmem:[%s7101_s0 + $0x648] sm:$0xff]  }
 0x1ed   :  { %v2407_v19 = vmax.f32 %v2391_v20, 0.0  ;;  %v6814_v21 = vmax.f32 %v6700_v45, %v2401_v7  ;;  %v6817_v40 = vmax.f32 %v6703_v24, %v2402_v12  ;;  %v6820_v0 = vmax.f32 %v6706_v50, %v2403_v31  ;;  %v4142_v50 = vld [vmem:[%s7101_s0 + $0x650] sm:$0xff]  }
 0x1ee   :  { %v2408_v37 = vmax.f32 %v2392_v35, 0.0  ;;  %v6829_v54 = vmax.f32 %v6715_v43, %v2404_v56  ;;  %v6832_v45 = vmax.f32 %v6718_v26, %v2405_v18  ;;  %v2409_v24 = vmax.f32 %v2393_v53, 0.0  ;;  %v4143_v43 = vld [vmem:[%s7101_s0 + $0x658] sm:$0xff]  }
 0x1ef   :  { %v2410_v15 = vmax.f32 %v2394_v3, 0.0  ;;  %v6838_v59 = vmax.f32 %v6724_v27, %v2406_v30  ;;  %v2411_v22 = vmax.f32 %v2395_v9, 0.0  ;;  %v2412_v52 = vmax.f32 %v2396_v32, 0.0 }
 0x1f0   :  { %v2413_v47 = vmax.f32 %v2397_v60, 0.0  ;;  %v6844_v34 = vmax.f32 %v6730_v10, %v2407_v19  ;;  %v3879_v26 = vunpack.c.l.bf16 %v4140_v57  ;;  %v3880_v61 = vunpack.c.h.bf16 %v4140_v57 }
 0x1f1   :  { %v3883_v48 = vunpack.c.l.bf16 %v4141_v14  ;;  %v6850_v27 = vmax.f32 %v6736_v51, %v2408_v37  ;;  %v3884_v16 = vunpack.c.h.bf16 %v4141_v14  ;;  %v3887_v49 = vunpack.c.l.bf16 %v4142_v50 }
 0x1f2   :  { %v3888_v25 = vunpack.c.h.bf16 %v4142_v50  ;;  %v6853_v36 = vmax.f32 %v6739_v46, %v2409_v24  ;;  %v6856_v41 = vmax.f32 %v6742_v38, %v2410_v15  ;;  %v3891_v10 = vunpack.c.l.bf16 %v4143_v43  ;;  %v4146_v38 = vld [vmem:[%s7101_s0 + $0x670] sm:$0xff]  }
 0x1f3   :  { %v3892_v42 = vunpack.c.h.bf16 %v4143_v43  ;;  %v6862_v11 = vmax.f32 %v6748_v62, %v2411_v22  ;;  %v6865_v51 = vmax.f32 %v6751_v8, %v2412_v52  ;;  %v6868_v63 = vmax.f32 %v6754_v29, %v2413_v47 }
 0x1f4   :  { %v3895_v46 = vunpack.c.l.bf16 %v4144_v6  ;;  %v3896_v58 = vunpack.c.h.bf16 %v4144_v6  ;;  %v2463_v44 = vmul.f32 %v6765_v17, %v3879_v26  ;;  %v2464_v62 = vmul.f32 %v6765_v17, %v3880_v61  ;;  %v4148_v6 = vld [vmem:[%s7101_s0 + $0x680] sm:$0xff]  }
 0x1f5   :  { %v2465_v8 = vmul.f32 %v6765_v17, %v3883_v48  ;;  %v3899_v39 = vunpack.c.l.bf16 %v4145_v4  ;;  %v2466_v29 = vmul.f32 %v6765_v17, %v3884_v16  ;;  %v2467_v20 = vmul.f32 %v6765_v17, %v3887_v49 }
 0x1f6   :  { %v2468_v13 = vmul.f32 %v6765_v17, %v3888_v25  ;;  %v3900_v2 = vunpack.c.h.bf16 %v4145_v4  ;;  %v3903_v55 = vunpack.c.l.bf16 %v4146_v38  ;;  %v2469_v35 = vmul.f32 %v6765_v17, %v3891_v10 }
 0x1f7   :  { %v2470_v7 = vmul.f32 %v6765_v17, %v3892_v42  ;;  %v3904_v12 = vunpack.c.h.bf16 %v4146_v38  ;;  %v3907_v31 = vunpack.c.l.bf16 %v4147_v1  ;;  %v3908_v53 = vunpack.c.h.bf16 %v4147_v1 }
 0x1f8   :  { %v2471_v3 = vmul.f32 %v6765_v17, %v3895_v46  ;;  %v2472_v56 = vmul.f32 %v6765_v17, %v3896_v58  ;;  %v2479_v18 = vadd.f32 %v6780_v5, %v2463_v44  ;;  %v2480_v9 = vadd.f32 %v6780_v5, %v2464_v62  ;;  %v4149_v58 = vld [vmem:[%s7101_s0 + $0x688] sm:$0xff]  }
 0x1f9   :  { %v2481_v32 = vadd.f32 %v6780_v5, %v2465_v8  ;;  %v2473_v60 = vmul.f32 %v6765_v17, %v3899_v39  ;;  %v2482_v30 = vadd.f32 %v6780_v5, %v2466_v29  ;;  %v2483_v19 = vadd.f32 %v6780_v5, %v2467_v20 }
 0x1fa   :  { %v2484_v37 = vadd.f32 %v6780_v5, %v2468_v13  ;;  %v2474_v57 = vmul.f32 %v6765_v17, %v3900_v2  ;;  %v2475_v14 = vmul.f32 %v6765_v17, %v3903_v55  ;;  %v2485_v24 = vadd.f32 %v6780_v5, %v2469_v35  ;;  %v4150_v2 = vld [vmem:[%s7101_s0 + $0x690] sm:$0xff]  }
 0x1fb   :  { %v2486_v15 = vadd.f32 %v6780_v5, %v2470_v7  ;;  %v2476_v50 = vmul.f32 %v6765_v17, %v3904_v12  ;;  %v2477_v22 = vmul.f32 %v6765_v17, %v3907_v31  ;;  %v2478_v52 = vmul.f32 %v6765_v17, %v3908_v53 }
 0x1fc   :  { %v2487_v47 = vadd.f32 %v6780_v5, %v2471_v3  ;;  %v2488_v43 = vadd.f32 %v6780_v5, %v2472_v56  ;;  %v2495_v26 = vmax.f32 %v2479_v18, 0.0  ;;  %v2496_v61 = vmax.f32 %v2480_v9, 0.0 }
 0x1fd   :  { %v2497_v48 = vmax.f32 %v2481_v32, 0.0  ;;  %v2489_v16 = vadd.f32 %v6780_v5, %v2473_v60  ;;  %v2498_v49 = vmax.f32 %v2482_v30, 0.0  ;;  %v2499_v25 = vmax.f32 %v2483_v19, 0.0 }
 0x1fe   :  { %v2500_v10 = vmax.f32 %v2484_v37, 0.0  ;;  %v2490_v42 = vadd.f32 %v6780_v5, %v2474_v57  ;;  %v6908_v4 = vadd.f32 %v6780_v5, %v2475_v14  ;;  %v2501_v46 = vmax.f32 %v2485_v24, 0.0  ;;  %v4153_v24 = vld [vmem:[%s7101_s0 + $0x6a8] sm:$0xff]  }
 0x1ff   :  { %v2502_v38 = vmax.f32 %v2486_v15, 0.0  ;;  %v6914_v1 = vadd.f32 %v6780_v5, %v2476_v50  ;;  %v6917_v44 = vadd.f32 %v6780_v5, %v2477_v22  ;;  %v6920_v62 = vadd.f32 %v6780_v5, %v2478_v52  ;;  %v4154_v52 = vld [vmem:[%s7101_s0 + $0x6b0] sm:$0xff]  }
 0x200   :  { %v3911_v8 = vunpack.c.l.bf16 %v4148_v6  ;;  %v6923_v39 = vmax.f32 %v6805_v28, %v2495_v26  ;;  %v6926_v29 = vmax.f32 %v6808_v33, %v2496_v61  ;;  %v6929_v20 = vmax.f32 %v6811_v23, %v2497_v48 }
 0x201   :  { %v3912_v13 = vunpack.c.h.bf16 %v4148_v6  ;;  %v6935_v55 = vmax.f32 %v6814_v21, %v2498_v49  ;;  %v6938_v35 = vmax.f32 %v6817_v40, %v2499_v25  ;;  %v6941_v28 = vmax.f32 %v6820_v0, %v2500_v10  ;;  %v4151_v21 = vld [vmem:[%s7101_s0 + $0x698] sm:$0xff]  }
 0x202   :  { %v3915_v7 = vunpack.c.l.bf16 %v4149_v58  ;;  %v6944_v33 = vmax.f32 %v6829_v54, %v2501_v46  ;;  %v6947_v23 = vmax.f32 %v6832_v45, %v2502_v38  ;;  %v2503_v12 = vmax.f32 %v2487_v47, 0.0  ;;  %v4152_v54 = vld [vmem:[%s7101_s0 + $0x6a0] sm:$0xff]  }
 0x203   :  { %v3916_v31 = vunpack.c.h.bf16 %v4149_v58  ;;  %v2504_v53 = vmax.f32 %v2488_v43, 0.0  ;;  %v2505_v3 = vmax.f32 %v2489_v16, 0.0  ;;  %v3919_v40 = vunpack.c.l.bf16 %v4150_v2  ;;  %v4155_v16 = vld [vmem:[%s7101_s0 + $0x6b8] sm:$0xff]  }
 0x204   :  { %v2560_v56 = vmul.f32 %v6765_v17, %v3911_v8  ;;  %v2506_v0 = vmax.f32 %v2490_v42, 0.0  ;;  %v2507_v18 = vmax.f32 %v6908_v4, 0.0  ;;  %v3920_v9 = vunpack.c.h.bf16 %v4150_v2 }
 0x205   :  { %v2561_v45 = vmul.f32 %v6765_v17, %v3912_v13  ;;  %v2508_v32 = vmax.f32 %v6914_v1, 0.0  ;;  %v2509_v60 = vmax.f32 %v6917_v44, 0.0  ;;  %v3923_v30 = vunpack.c.l.bf16 %v4151_v21 }
 0x206   :  { %v2562_v19 = vmul.f32 %v6765_v17, %v3915_v7  ;;  %v6962_v37 = vmax.f32 %v6838_v59, %v2503_v12  ;;  %v2510_v57 = vmax.f32 %v6920_v62, 0.0  ;;  %v3924_v14 = vunpack.c.h.bf16 %v4151_v21 }
 0x207   :  { %v2563_v15 = vmul.f32 %v6765_v17, %v3916_v31  ;;  %v6970_v50 = vmax.f32 %v6844_v34, %v2504_v53  ;;  %v3927_v22 = vunpack.c.l.bf16 %v4152_v54  ;;  %v2564_v59 = vmul.f32 %v6765_v17, %v3919_v40 }
 0x208   :  { %v2576_v47 = vadd.f32 %v6780_v5, %v2560_v56  ;;  %v6978_v43 = vmax.f32 %v6850_v27, %v2505_v3  ;;  %v3928_v26 = vunpack.c.h.bf16 %v4152_v54  ;;  %v2565_v61 = vmul.f32 %v6765_v17, %v3920_v9 }
 0x209   :  { %v2577_v48 = vadd.f32 %v6780_v5, %v2561_v45  ;;  %v6983_v34 = vmax.f32 %v6853_v36, %v2506_v0  ;;  %v3931_v6 = vunpack.c.l.bf16 %v4153_v24  ;;  %v2566_v49 = vmul.f32 %v6765_v17, %v3923_v30 }
 0x20a   :  { %v2578_v25 = vadd.f32 %v6780_v5, %v2562_v19  ;;  %v3932_v10 = vunpack.c.h.bf16 %v4153_v24  ;;  %v3935_v27 = vunpack.c.l.bf16 %v4154_v52  ;;  %v2567_v42 = vmul.f32 %v6765_v17, %v3924_v14 }
 0x20b   :  { %v2579_v46 = vadd.f32 %v6780_v5, %v2563_v15  ;;  %v3936_v38 = vunpack.c.h.bf16 %v4154_v52  ;;  %v2568_v58 = vmul.f32 %v6765_v17, %v3927_v22  ;;  %v2580_v36 = vadd.f32 %v6780_v5, %v2564_v59 }
 0x20c   :  { %v2592_v8 = vmax.f32 %v2576_v47, 0.0  ;;  %v3939_v13 = vunpack.c.l.bf16 %v4155_v16  ;;  %v2569_v2 = vmul.f32 %v6765_v17, %v3928_v26  ;;  %v2581_v7 = vadd.f32 %v6780_v5, %v2565_v61 }
 0x20d   :  { %v2593_v12 = vmax.f32 %v2577_v48, 0.0  ;;  %v3940_v31 = vunpack.c.h.bf16 %v4155_v16  ;;  %v2570_v21 = vmul.f32 %v6765_v17, %v3931_v6  ;;  %v2582_v53 = vadd.f32 %v6780_v5, %v2566_v49 }
 0x20e   :  { %v2594_v3 = vmax.f32 %v2578_v25, 0.0  ;;  %v2571_v40 = vmul.f32 %v6765_v17, %v3932_v10  ;;  %v2572_v56 = vmul.f32 %v6765_v17, %v3935_v27  ;;  %v2583_v0 = vadd.f32 %v6780_v5, %v2567_v42 }
 0x20f   :  { %v2595_v9 = vmax.f32 %v2579_v46, 0.0  ;;  %v2573_v54 = vmul.f32 %v6765_v17, %v3936_v38  ;;  %v2584_v45 = vadd.f32 %v6780_v5, %v2568_v58  ;;  %v2608_v30 = vmax.f32 %v6923_v39, %v2592_v8 }
 0x210   :  { %v2596_v19 = vmax.f32 %v2580_v36, 0.0  ;;  %v2574_v14 = vmul.f32 %v6765_v17, %v3939_v13  ;;  %v2585_v24 = vadd.f32 %v6780_v5, %v2569_v2  ;;  %v2609_v15 = vmax.f32 %v6926_v29, %v2593_v12 }
 0x211   :  { %v2597_v22 = vmax.f32 %v2581_v7, 0.0  ;;  %v2575_v52 = vmul.f32 %v6765_v17, %v3940_v31  ;;  %v2586_v59 = vadd.f32 %v6780_v5, %v2570_v21  ;;  %v2610_v47 = vmax.f32 %v6929_v20, %v2594_v3 }
 0x212   :  { %v2598_v26 = vmax.f32 %v2582_v53, 0.0  ;;  %v2587_v61 = vadd.f32 %v6780_v5, %v2571_v40  ;;  %v2588_v48 = vadd.f32 %v6780_v5, %v2572_v56  ;;  %v2611_v39 = vmax.f32 %v6935_v55, %v2595_v9 }
 0x213   :  { %v2599_v6 = vmax.f32 %v2583_v0, 0.0  ;;  %v2589_v16 = vadd.f32 %v6780_v5, %v2573_v54  ;;  %v2612_v49 = vmax.f32 %v6938_v35, %v2596_v19  ;;  %v2600_v29 = vmax.f32 %v2584_v45, 0.0 }
 0x214   :  { %v2624_v25 = vpack.c.bf16 %v2608_v30, %v2608_v30  ;;  %v2590_v17 = vadd.f32 %v6780_v5, %v2574_v14  ;;  %v2613_v10 = vmax.f32 %v6941_v28, %v2597_v22  ;;  %v2601_v27 = vmax.f32 %v2585_v24, 0.0 }
 0x215   :  { %v2625_v20 = vpack.c.bf16 %v2609_v15, %v2609_v15  ;;  %v2591_v42 = vadd.f32 %v6780_v5, %v2575_v52  ;;  %v2614_v46 = vmax.f32 %v6944_v33, %v2598_v26  ;;  %v2602_v38 = vmax.f32 %v2586_v59, 0.0 }
 0x216   :  { %v2626_v58 = vpack.c.bf16 %v2610_v47, %v2610_v47  ;;  %v2615_v55 = vmax.f32 %v6947_v23, %v2599_v6  ;;  %v2603_v36 = vmax.f32 %v2587_v61, 0.0  ;;  %v2627_v8 = vpack.c.bf16 %v2611_v39, %v2611_v39  ;;  %2641 = vst.msk [vmem:[%s7103_s3] sm:$0xf] %vm2640_vm0, %v2624_v25 }
 0x217   :  { %v2523_v35 = vmax.f32 %v6856_v41, %v2507_v18  ;;  %v2616_v13 = vmax.f32 %v6962_v37, %v2600_v29  ;;  %v2604_v28 = vmax.f32 %v2588_v48, 0.0  ;;  %v2628_v2 = vpack.c.bf16 %v2612_v49, %v2612_v49  ;;  %2642 = vst.msk [vmem:[%s7103_s3 + $0x4] sm:$0xf] %vm2640_vm0, %v2625_v20 }
 0x218   :  { %v2524_v5 = vmax.f32 %v6862_v11, %v2508_v32  ;;  %v2617_v33 = vmax.f32 %v6970_v50, %v2601_v27  ;;  %v2605_v23 = vmax.f32 %v2589_v16, 0.0  ;;  %v2629_v7 = vpack.c.bf16 %v2613_v10, %v2613_v10  ;;  %2643 = vst.msk [vmem:[%s7103_s3 + $0x8] sm:$0xf] %vm2640_vm0, %v2626_v58 }
 0x219   :  { %v2525_v41 = vmax.f32 %v6865_v51, %v2509_v60  ;;  %v2618_v4 = vmax.f32 %v6978_v43, %v2602_v38  ;;  %v2606_v18 = vmax.f32 %v2590_v17, 0.0  ;;  %v2630_v37 = vpack.c.bf16 %v2614_v46, %v2614_v46  ;;  %2644 = vst.msk [vmem:[%s7103_s3 + $0xc] sm:$0xf] %vm2640_vm0, %v2627_v8 }
 0x21a   :  { %v2526_v11 = vmax.f32 %v6868_v63, %v2510_v57  ;;  %v2619_v1 = vmax.f32 %v6983_v34, %v2603_v36  ;;  %v2607_v32 = vmax.f32 %v2591_v42, 0.0  ;;  %v2631_v50 = vpack.c.bf16 %v2615_v55, %v2615_v55  ;;  %2645 = vst.msk [vmem:[%s7103_s3 + $0x10] sm:$0xf] %vm2640_vm0, %v2628_v2 }
 0x21b   :  { %v2620_v51 = vmax.f32 %v2523_v35, %v2604_v28  ;;  %v2632_v44 = vpack.c.bf16 %v2616_v13, %v2616_v13  ;;  %v2621_v60 = vmax.f32 %v2524_v5, %v2605_v23  ;;  %v2633_v62 = vpack.c.bf16 %v2617_v33, %v2617_v33  ;;  %2646 = vst.msk [vmem:[%s7103_s3 + $0x14] sm:$0xf] %vm2640_vm0, %v2629_v7 }
 0x21c   :  { %v2622_v63 = vmax.f32 %v2525_v41, %v2606_v18  ;;  %v2634_v57 = vpack.c.bf16 %v2618_v4, %v2618_v4  ;;  %2647 = vst.msk [vmem:[%s7103_s3 + $0x18] sm:$0xf] %vm2640_vm0, %v2630_v37  ;;  %v2623_v43 = vmax.f32 %v2526_v11, %v2607_v32  ;;  %v2635_v34 = vpack.c.bf16 %v2619_v1, %v2619_v1 }
 0x21d   :  { %2648 = vst.msk [vmem:[%s7103_s3 + $0x1c] sm:$0xf] %vm2640_vm0, %v2631_v50  ;;  %v2636_v12 = vpack.c.bf16 %v2620_v51, %v2620_v51  ;;  %v2637_v31 = vpack.c.bf16 %v2621_v60, %v2621_v60 }
 0x21e   :  { %2649 = vst.msk [vmem:[%s7103_s3 + $0x20] sm:$0xf] %vm2640_vm0, %v2632_v44  ;;  %v2638_v21 = vpack.c.bf16 %v2622_v63, %v2622_v63  ;;  %v2639_v53 = vpack.c.bf16 %v2623_v43, %v2623_v43 }
 0x21f   :  { %2650 = vst.msk [vmem:[%s7103_s3 + $0x24] sm:$0xf] %vm2640_vm0, %v2633_v62 }
 0x220   :  { %2651 = vst.msk [vmem:[%s7103_s3 + $0x28] sm:$0xf] %vm2640_vm0, %v2634_v57 }
 0x221   :  { %2652 = vst.msk [vmem:[%s7103_s3 + $0x2c] sm:$0xf] %vm2640_vm0, %v2635_v34 }
 0x222   :  { %2653 = vst.msk [vmem:[%s7103_s3 + $0x30] sm:$0xf] %vm2640_vm0, %v2636_v12 }
 0x223   :  { %2654 = vst.msk [vmem:[%s7103_s3 + $0x34] sm:$0xf] %vm2640_vm0, %v2637_v31 }
 0x224   :  { %2655 = vst.msk [vmem:[%s7103_s3 + $0x38] sm:$0xf] %vm2640_vm0, %v2638_v21 }
 0x225   :  { %2656 = vst.msk [vmem:[%s7103_s3 + $0x3c] sm:$0xf] %vm2640_vm0, %v2639_v53 }

// kernel: _lambda_.25
= control target key start
LH: loop header
LB: loop body
LE: loop exit
PB: predicated region body
PF: predicated region fallthrough
CT: control target
= control target key end

     0   :  { %vm151_vm0 = vcmask 1043456   ;;  %vm126_vm1 = vcmask 195584   ;;  %vm220_vm2 = vcmask 125952   ;;  %s470_s1 = inlined_call_operand.vmem [shape: bf16[24,16], index: 1, kind: input, shape index: {}]   ;;  %s471_s0 = inlined_call_operand.vmem [shape: bf16[128,24], index: 0, kind: input, shape index: {}]   ;;  %s472_s2 = inlined_call_operand.vmem [shape: f32[1,24], index: 2, kind: input, shape index: {}]   ;;  %s473_s3 = inlined_call_operand.vmem [shape: f32[1,24], index: 3, kind: input, shape index: {}]   ;;  %s474_s4 = inlined_call_operand.vmem [shape: bf16[128,16], index: 4, kind: output, shape index: {}]  }
   0x1   :  { %v116_v0 = vld [vmem:[%s470_s1 + $0x8] sm:$0xf]  ;;  %v255_v1 = vld [vmem:[%s471_s0] sm:$0xff]   ;;  %v287_v7 = vld [vmem:[%s471_s0 + $0x10] sm:$0xff]  }
   0x2   :  { %v122_v2 = vunpack.c.l.b16 %v116_v0  ;;  %v256_v3 = vunpack.c.l.bf16 %v255_v1  ;;  %v257_v4 = vunpack.c.h.bf16 %v255_v1  ;;  %v335_v5 = vld [vmem:[%s472_s2] ss:$0 sm:$0xff]  ;;  %v264_v12 = vunpack.c.l.bf16 %v287_v7  ;;  %v291_v13 = vld [vmem:[%s471_s0 + $0x30] sm:$0xff]   ;;  %v286_v27 = vld [vmem:[%s471_s0 + $0x8] sm:$0xff]  }
   0x3   :  { %v340_v6 = vld [vmem:[%s473_s3] ss:$0 sm:$0xff]  ;;  %v265_v14 = vunpack.c.h.bf16 %v287_v7  ;;  %v280_v17 = vunpack.c.l.bf16 %v291_v13  ;;  %v281_v26 = vunpack.c.h.bf16 %v291_v13  ;;  %v288_v36 = vld [vmem:[%s471_s0 + $0x18] sm:$0xff]   ;;  %v260_v40 = vunpack.c.l.bf16 %v286_v27  ;;  %v290_v45 = vld [vmem:[%s471_s0 + $0x28] sm:$0xff]  }
   0x4   :  { %v289_v8 = vld [vmem:[%s471_s0 + $0x20] sm:$0xff]   ;;  %v124_v9 = vpack.c.b16 %v122_v2, %v122_v2  ;;  %v54_v10 = vmul.f32 %v335_v5, %v256_v3  ;;  %v55_v11 = vmul.f32 %v335_v5, %v257_v4  ;;  %v58_v21 = vmul.f32 %v335_v5, %v264_v12  ;;  %v292_v49 = vld [vmem:[%s471_s0 + $0x38] sm:$0xff]  }
   0x5   :  { %v272_v15 = vunpack.c.l.bf16 %v289_v8  ;;  %v273_v16 = vunpack.c.h.bf16 %v289_v8  ;;  %v253_v22 = vld [vmem:[%s470_s1] sm:$0xff]  ;;  %v59_v23 = vmul.f32 %v335_v5, %v265_v14  ;;  %v66_v31 = vmul.f32 %v335_v5, %v280_v17 }
   0x6   :  { %v153_v18 = vsel %vm151_vm0, %v124_v9, 0  ;;  %v74_v19 = vadd.f32 %v340_v6, %v54_v10  ;;  %v75_v20 = vadd.f32 %v340_v6, %v55_v11  ;;  %v78_v30 = vadd.f32 %v340_v6, %v58_v21 }
   0x7   :  { %161 = vmatpush.bf16.msra.mxu0 %v153_v18  ;;  %293 = vmatpush.bf16.msra.mxu1 %v153_v18  ;;  %v62_v24 = vmul.f32 %v335_v5, %v272_v15  ;;  %v63_v25 = vmul.f32 %v335_v5, %v273_v16  ;;  %v79_v32 = vadd.f32 %v340_v6, %v59_v23  ;;  %v261_v47 = vunpack.c.h.bf16 %v286_v27 }
   0x8   :  { %294 = vmatpush.bf16.msra.mxu2 %v153_v18  ;;  %295 = vmatpush.bf16.msra.mxu3 %v153_v18  ;;  %v90_v28 = vmax.f32 %v74_v19, 0.0  ;;  %v91_v29 = vmax.f32 %v75_v20, 0.0  ;;  %v67_v35 = vmul.f32 %v335_v5, %v281_v26  ;;  %v94_v38 = vmax.f32 %v78_v30, 0.0 }
   0x9   :  { %v82_v33 = vadd.f32 %v340_v6, %v62_v24  ;;  %v83_v34 = vadd.f32 %v340_v6, %v63_v25  ;;  %v86_v39 = vadd.f32 %v340_v6, %v66_v31  ;;  %v95_v41 = vmax.f32 %v79_v32, 0.0 }
   0xa   :  { %v106_v37 = vpack.c.bf16 %v91_v29, %v90_v28  ;;  %v87_v44 = vadd.f32 %v340_v6, %v67_v35  ;;  %v268_v48 = vunpack.c.l.bf16 %v288_v36  ;;  %v269_v53 = vunpack.c.h.bf16 %v288_v36 }
   0xb   :  { %162 = vmatpush.bf16.msra.mxu0 %v253_v22  ;;  %296 = vmatpush.bf16.msra.mxu1 %v253_v22  ;;  %v98_v42 = vmax.f32 %v82_v33, 0.0  ;;  %v99_v43 = vmax.f32 %v83_v34, 0.0  ;;  %v102_v46 = vmax.f32 %v86_v39, 0.0  ;;  %v108_v50 = vpack.c.bf16 %v95_v41, %v94_v38 }
   0xc   :  { %297 = vmatpush.bf16.msra.mxu2 %v253_v22  ;;  %298 = vmatpush.bf16.msra.mxu3 %v253_v22  ;;  %v103_v52 = vmax.f32 %v87_v44, 0.0  ;;  %v56_v54 = vmul.f32 %v335_v5, %v260_v40  ;;  %v57_v55 = vmul.f32 %v335_v5, %v261_v47  ;;  %v60_v56 = vmul.f32 %v335_v5, %v268_v48 }
   0xd   :  { %v110_v51 = vpack.c.bf16 %v99_v43, %v98_v42  ;;  %v276_v57 = vunpack.c.l.bf16 %v290_v45  ;;  %v61_v59 = vmul.f32 %v335_v5, %v269_v53  ;;  %v277_v60 = vunpack.c.h.bf16 %v290_v45 }
   0xe   :  { %245 = vmatmul.msk.bf16.vlgmr.msra.gmra.mxu0 %vm126_vm1, %v106_v37  ;;  %247 = vmatmul.msk.bf16.vlgmr.msra.gmra.mxu1 %vm126_vm1, %v108_v50  ;;  %v112_v58 = vpack.c.bf16 %v103_v52, %v102_v46  ;;  %v284_v61 = vunpack.c.l.bf16 %v292_v49  ;;  %v285_v0 = vunpack.c.h.bf16 %v292_v49  ;;  %v76_v2 = vadd.f32 %v340_v6, %v56_v54 }
   0xf   :  { %249 = vmatmul.msk.bf16.vlgmr.msra.gmra.mxu2 %vm126_vm1, %v110_v51  ;;  %v64_v62 = vmul.f32 %v335_v5, %v276_v57  ;;  %v65_v63 = vmul.f32 %v335_v5, %v277_v60  ;;  %v77_v3 = vadd.f32 %v340_v6, %v57_v55  ;;  %v80_v4 = vadd.f32 %v340_v6, %v60_v56 }
  0x10   :  { %251 = vmatmul.msk.bf16.vlgmr.msra.gmra.mxu3 %vm126_vm1, %v112_v58  ;;  %v68_v1 = vmul.f32 %v335_v5, %v284_v61  ;;  %v81_v7 = vadd.f32 %v340_v6, %v61_v59  ;;  %v69_v10 = vmul.f32 %v335_v5, %v285_v0  ;;  %v92_v13 = vmax.f32 %v76_v2, 0.0 }
  0x11   :  { %v84_v8 = vadd.f32 %v340_v6, %v64_v62  ;;  %v85_v9 = vadd.f32 %v340_v6, %v65_v63  ;;  %v93_v14 = vmax.f32 %v77_v3, 0.0  ;;  %v96_v15 = vmax.f32 %v80_v4, 0.0 }
  0x12   :  { %v88_v11 = vadd.f32 %v340_v6, %v68_v1  ;;  %v89_v12 = vadd.f32 %v340_v6, %v69_v10  ;;  %v97_v16 = vmax.f32 %v81_v7, 0.0 }
  0x13   :  { %v100_v17 = vmax.f32 %v84_v8, 0.0  ;;  %v101_v18 = vmax.f32 %v85_v9, 0.0  ;;  %v107_v21 = vpack.c.bf16 %v93_v14, %v92_v13 }
  0x14   :  { %v104_v19 = vmax.f32 %v88_v11, 0.0  ;;  %v105_v20 = vmax.f32 %v89_v12, 0.0  ;;  %v109_v22 = vpack.c.bf16 %v97_v16, %v96_v15 }
  0x15   :  { %v111_v23 = vpack.c.bf16 %v101_v18, %v100_v17 }
  0x16   :  { %v113_v24 = vpack.c.bf16 %v105_v20, %v104_v19 }
  0x1e   :  { %246 = vmatmul.msk.bf16.gmra.mxu0 %vm126_vm1, %v107_v21  ;;  %248 = vmatmul.msk.bf16.gmra.mxu1 %vm126_vm1, %v109_v22 }
  0x1f   :  { %250 = vmatmul.msk.bf16.gmra.mxu2 %vm126_vm1, %v111_v23 }
  0x20   :  { %252 = vmatmul.msk.bf16.gmra.mxu3 %vm126_vm1, %v113_v24 }
  0x8b   :  { %v164_v5 = vpop.f32.mrf.mxu0  ;;  %v174_v25 = vpop.f32.mrf.mxu1 }
  0x8c   :  { %v204_v6 = vpack.c.bf16 %v164_v5, %v164_v5  ;;  %v208_v26 = vpack.c.bf16 %v174_v25, %v174_v25 }
  0x8e   :  { %221 = vst.msk [vmem:[%s474_s4] sm:$0xf] %vm220_vm2, %v204_v6 }
  0x8f   :  { %225 = vst.msk [vmem:[%s474_s4 + $0x10] sm:$0xf] %vm220_vm2, %v208_v26 }
  0x92   :  { %v184_v27 = vpop.f32.mrf.mxu2 }
  0x93   :  { %v212_v28 = vpack.c.bf16 %v184_v27, %v184_v27  ;;  %v166_v29 = vpop.f32.mrf.mxu0  ;;  %v194_v30 = vpop.f32.mrf.mxu3 }
  0x94   :  { %v205_v31 = vpack.c.bf16 %v166_v29, %v166_v29  ;;  %v176_v32 = vpop.f32.mrf.mxu1  ;;  %v216_v33 = vpack.c.bf16 %v194_v30, %v194_v30 }
  0x95   :  { %229 = vst.msk [vmem:[%s474_s4 + $0x20] sm:$0xf] %vm220_vm2, %v212_v28  ;;  %v209_v34 = vpack.c.bf16 %v176_v32, %v176_v32 }
  0x96   :  { %222 = vst.msk [vmem:[%s474_s4 + $0x4] sm:$0xf] %vm220_vm2, %v205_v31 }
  0x97   :  { %233 = vst.msk [vmem:[%s474_s4 + $0x30] sm:$0xf] %vm220_vm2, %v216_v33 }
  0x98   :  { %226 = vst.msk [vmem:[%s474_s4 + $0x14] sm:$0xf] %vm220_vm2, %v209_v34 }
  0x9a   :  { %v186_v35 = vpop.f32.mrf.mxu2 }
  0x9b   :  { %v213_v36 = vpack.c.bf16 %v186_v35, %v186_v35  ;;  %v169_v37 = vpop.f32.mrf.mxu0  ;;  %v196_v38 = vpop.f32.mrf.mxu3 }
  0x9c   :  { %v206_v39 = vpack.c.bf16 %v169_v37, %v169_v37  ;;  %v179_v40 = vpop.f32.mrf.mxu1  ;;  %v217_v41 = vpack.c.bf16 %v196_v38, %v196_v38 }
  0x9d   :  { %230 = vst.msk [vmem:[%s474_s4 + $0x24] sm:$0xf] %vm220_vm2, %v213_v36  ;;  %v210_v42 = vpack.c.bf16 %v179_v40, %v179_v40 }
  0x9e   :  { %223 = vst.msk [vmem:[%s474_s4 + $0x8] sm:$0xf] %vm220_vm2, %v206_v39 }
  0x9f   :  { %234 = vst.msk [vmem:[%s474_s4 + $0x34] sm:$0xf] %vm220_vm2, %v217_v41 }
  0xa0   :  { %227 = vst.msk [vmem:[%s474_s4 + $0x18] sm:$0xf] %vm220_vm2, %v210_v42 }
  0xa2   :  { %v189_v43 = vpop.f32.mrf.mxu2 }
  0xa3   :  { %v214_v44 = vpack.c.bf16 %v189_v43, %v189_v43  ;;  %v171_v45 = vpop.f32.mrf.mxu0  ;;  %v199_v46 = vpop.f32.mrf.mxu3 }
  0xa4   :  { %v207_v47 = vpack.c.bf16 %v171_v45, %v171_v45  ;;  %v181_v48 = vpop.f32.mrf.mxu1  ;;  %v218_v49 = vpack.c.bf16 %v199_v46, %v199_v46 }
  0xa5   :  { %231 = vst.msk [vmem:[%s474_s4 + $0x28] sm:$0xf] %vm220_vm2, %v214_v44  ;;  %v211_v50 = vpack.c.bf16 %v181_v48, %v181_v48 }
  0xa6   :  { %224 = vst.msk [vmem:[%s474_s4 + $0xc] sm:$0xf] %vm220_vm2, %v207_v47 }
  0xa7   :  { %235 = vst.msk [vmem:[%s474_s4 + $0x38] sm:$0xf] %vm220_vm2, %v218_v49 }
  0xa8   :  { %228 = vst.msk [vmem:[%s474_s4 + $0x1c] sm:$0xf] %vm220_vm2, %v211_v50 }
  0xaa   :  { %v191_v51 = vpop.f32.mrf.mxu2 }
  0xab   :  { %v215_v52 = vpack.c.bf16 %v191_v51, %v191_v51  ;;  %v201_v53 = vpop.f32.mrf.mxu3 }
  0xac   :  { %v219_v54 = vpack.c.bf16 %v201_v53, %v201_v53 }
  0xad   :  { %232 = vst.msk [vmem:[%s474_s4 + $0x2c] sm:$0xf] %vm220_vm2, %v215_v52 }
  0xae   :  { %236 = vst.msk [vmem:[%s474_s4 + $0x3c] sm:$0xf] %vm220_vm2, %v219_v54 }

// kernel: _lambda_.28
= control target key start
LH: loop header
LB: loop body
LE: loop exit
PB: predicated region body
PF: predicated region fallthrough
CT: control target
= control target key end

     0   :  { %vm35_vm0 = vcmask 261120   ;;  %vm55_vm1 = vcmask 125952   ;;  %s108_s1 = inlined_call_operand.vmem [shape: bf16[32,16], index: 1, kind: input, shape index: {}]   ;;  %s109_s0 = inlined_call_operand.vmem [shape: bf16[16,32], index: 0, kind: input, shape index: {}]   ;;  %s110_s2 = inlined_call_operand.vmem [shape: bf16[16,16], index: 2, kind: output, shape index: {}]  }
   0x1   :  { %v77_v0 = vld [vmem:[%s108_s1 + $0x8] sm:$0xff]  ;;  %v76_v1 = vld [vmem:[%s108_s1] sm:$0xff] }
   0x2   :  { %45 = vmatpush.bf16.msra.mxu0 %v77_v0  ;;  %v75_v2 = vld [vmem:[%s109_s0] sm:$0xff] }
   0x6   :  { %46 = vmatpush.bf16.msra.mxu0 %v76_v1 }
   0x9   :  { %74 = vmatmul.msk.bf16.vlgmr.msra.gmra.mxu0 %vm35_vm0, %v75_v2 }
  0x86   :  { %v48_v3 = vpop.f32.mrf.mxu0 }
  0x87   :  { %v53_v4 = vpack.c.bf16 %v48_v3, %v48_v3 }
  0x89   :  { %56 = vst.msk [vmem:[%s110_s2] sm:$0xf] %vm55_vm1, %v53_v4 }
  0x8e   :  { %v50_v5 = vpop.f32.mrf.mxu0 }
  0x8f   :  { %v54_v6 = vpack.c.bf16 %v50_v5, %v50_v5 }
  0x91   :  { %57 = vst.msk [vmem:[%s110_s2 + $0x4] sm:$0xf] %vm55_vm1, %v54_v6 }

// kernel: _lambda_.27
= control target key start
LH: loop header
LB: loop body
LE: loop exit
PB: predicated region body
PF: predicated region fallthrough
CT: control target
= control target key end

     0   :  { %vm127_vm0 = vcmask 257024   ;;  %s281_s0 = inlined_call_operand.vmem [shape: bf16[8,16,32], index: 0, kind: input, shape index: {}]   ;;  %s282_s1 = inlined_call_operand.vmem [shape: f32[1,32], index: 1, kind: input, shape index: {}]   ;;  %s283_s2 = inlined_call_operand.vmem [shape: f32[1,32], index: 2, kind: input, shape index: {}]   ;;  %s284_s3 = inlined_call_operand.vmem [shape: bf16[16,32], index: 3, kind: output, shape index: {}]  }
   0x1   :  { %v149_v0 = vld [vmem:[%s281_s0] sm:$0xff]   ;;  %v180_v4 = vld [vmem:[%s281_s0 + $0x8] sm:$0xff]   ;;  %v181_v6 = vld [vmem:[%s281_s0 + $0x10] sm:$0xff]  }
   0x2   :  { %v215_v1 = vld [vmem:[%s282_s1] ss:$0 sm:$0xff]  ;;  %v150_v2 = vunpack.c.l.bf16 %v149_v0  ;;  %v154_v5 = vunpack.c.l.bf16 %v180_v4  ;;  %v182_v7 = vld [vmem:[%s281_s0 + $0x18] sm:$0xff]   ;;  %v151_v9 = vunpack.c.h.bf16 %v149_v0  ;;  %v155_v10 = vunpack.c.h.bf16 %v180_v4  ;;  %v184_v15 = vld [vmem:[%s281_s0 + $0x28] sm:$0xff]  }
   0x3   :  { %v220_v3 = vld [vmem:[%s283_s2] ss:$0 sm:$0xff]  ;;  %v158_v12 = vunpack.c.l.bf16 %v181_v6  ;;  %v162_v13 = vunpack.c.l.bf16 %v182_v7  ;;  %v185_v16 = vld [vmem:[%s281_s0 + $0x30] sm:$0xff]   ;;  %v186_v17 = vld [vmem:[%s281_s0 + $0x38] sm:$0xff]   ;;  %v170_v19 = vunpack.c.l.bf16 %v184_v15  ;;  %v159_v46 = vunpack.c.h.bf16 %v181_v6 }
   0x4   :  { %v183_v8 = vld [vmem:[%s281_s0 + $0x20] sm:$0xff]   ;;  %v22_v11 = vmul.f32 %v215_v1, %v150_v2  ;;  %v37_v18 = vmul.f32 %v215_v1, %v154_v5  ;;  %v174_v20 = vunpack.c.l.bf16 %v185_v16  ;;  %v178_v21 = vunpack.c.l.bf16 %v186_v17 }
   0x5   :  { %v166_v14 = vunpack.c.l.bf16 %v183_v8  ;;  %v50_v23 = vmul.f32 %v215_v1, %v158_v12  ;;  %v63_v24 = vmul.f32 %v215_v1, %v162_v13  ;;  %v89_v27 = vmul.f32 %v215_v1, %v170_v19 }
   0x6   :  { %v28_v22 = vadd.f32 %v220_v3, %v22_v11  ;;  %v39_v26 = vadd.f32 %v220_v3, %v37_v18  ;;  %v102_v28 = vmul.f32 %v215_v1, %v174_v20  ;;  %v115_v29 = vmul.f32 %v215_v1, %v178_v21 }
   0x7   :  { %v76_v25 = vmul.f32 %v215_v1, %v166_v14  ;;  %v52_v31 = vadd.f32 %v220_v3, %v50_v23  ;;  %v65_v32 = vadd.f32 %v220_v3, %v63_v24  ;;  %v91_v35 = vadd.f32 %v220_v3, %v89_v27 }
   0x8   :  { %v30_v30 = vmax.f32 %v28_v22, 0.0  ;;  %v41_v34 = vmax.f32 %v39_v26, 0.0  ;;  %v104_v37 = vadd.f32 %v220_v3, %v102_v28  ;;  %v117_v38 = vadd.f32 %v220_v3, %v115_v29 }
   0x9   :  { %v78_v33 = vadd.f32 %v220_v3, %v76_v25  ;;  %v54_v36 = vmax.f32 %v52_v31, 0.0  ;;  %v23_v39 = vmul.f32 %v215_v1, %v151_v9  ;;  %v67_v41 = vmax.f32 %v65_v32, 0.0 }
   0xa   :  { %v43_v40 = vadd.f32 %v41_v34, %v30_v30  ;;  %v93_v43 = vmax.f32 %v91_v35, 0.0  ;;  %v38_v45 = vmul.f32 %v215_v1, %v155_v10  ;;  %v163_v47 = vunpack.c.h.bf16 %v182_v7 }
   0xb   :  { %v80_v42 = vmax.f32 %v78_v33, 0.0  ;;  %v29_v44 = vadd.f32 %v220_v3, %v23_v39  ;;  %v167_v49 = vunpack.c.h.bf16 %v183_v8  ;;  %v171_v50 = vunpack.c.h.bf16 %v184_v15 }
   0xc   :  { %v56_v48 = vadd.f32 %v54_v36, %v43_v40  ;;  %v175_v51 = vunpack.c.h.bf16 %v185_v16  ;;  %v40_v53 = vadd.f32 %v220_v3, %v38_v45  ;;  %v51_v54 = vmul.f32 %v215_v1, %v159_v46 }
   0xd   :  { %v31_v52 = vmax.f32 %v29_v44, 0.0  ;;  %v64_v55 = vmul.f32 %v215_v1, %v163_v47  ;;  %v77_v57 = vmul.f32 %v215_v1, %v167_v49  ;;  %v90_v58 = vmul.f32 %v215_v1, %v171_v50 }
   0xe   :  { %v69_v56 = vadd.f32 %v67_v41, %v56_v48  ;;  %v103_v59 = vmul.f32 %v215_v1, %v175_v51  ;;  %v42_v60 = vmax.f32 %v40_v53, 0.0  ;;  %v53_v61 = vadd.f32 %v220_v3, %v51_v54 }
   0xf   :  { %v66_v62 = vadd.f32 %v220_v3, %v64_v55  ;;  %v179_v63 = vunpack.c.h.bf16 %v186_v17  ;;  %v106_v2 = vmax.f32 %v104_v37, 0.0  ;;  %v79_v4 = vadd.f32 %v220_v3, %v77_v57 }
  0x10   :  { %v82_v0 = vadd.f32 %v80_v42, %v69_v56  ;;  %v92_v5 = vadd.f32 %v220_v3, %v90_v58  ;;  %v44_v6 = vadd.f32 %v42_v60, %v31_v52  ;;  %v55_v7 = vmax.f32 %v53_v61, 0.0 }
  0x11   :  { %v68_v8 = vmax.f32 %v66_v62, 0.0  ;;  %v116_v9 = vmul.f32 %v215_v1, %v179_v63  ;;  %v119_v11 = vmax.f32 %v117_v38, 0.0  ;;  %v81_v13 = vmax.f32 %v79_v4, 0.0 }
  0x12   :  { %v95_v10 = vadd.f32 %v93_v43, %v82_v0  ;;  %v57_v12 = vadd.f32 %v55_v7, %v44_v6  ;;  %v105_v14 = vadd.f32 %v220_v3, %v103_v59  ;;  %v94_v17 = vmax.f32 %v92_v5, 0.0 }
  0x13   :  { %v118_v18 = vadd.f32 %v220_v3, %v116_v9 }
  0x14   :  { %v108_v15 = vadd.f32 %v106_v2, %v95_v10  ;;  %v70_v16 = vadd.f32 %v68_v8, %v57_v12  ;;  %v107_v21 = vmax.f32 %v105_v14, 0.0 }
  0x15   :  { %v120_v24 = vmax.f32 %v118_v18, 0.0 }
  0x16   :  { %v121_v19 = vadd.f32 %v119_v11, %v108_v15  ;;  %v83_v20 = vadd.f32 %v81_v13, %v70_v16 }
  0x18   :  { %v123_v22 = vmul.f32 0.125, %v121_v19  ;;  %v96_v23 = vadd.f32 %v94_v17, %v83_v20 }
  0x1a   :  { %v125_v25 = vpack.c.bf16 %v123_v22, %v123_v22  ;;  %v109_v1 = vadd.f32 %v107_v21, %v96_v23 }
  0x1c   :  { %128 = vst.msk [vmem:[%s284_s3] sm:$0xf] %vm127_vm0, %v125_v25  ;;  %v122_v26 = vadd.f32 %v120_v24, %v109_v1 }
  0x1e   :  { %v124_v27 = vmul.f32 0.125, %v122_v26 }
  0x20   :  { %v126_v28 = vpack.c.bf16 %v124_v27, %v124_v27 }
  0x22   :  { %129 = vst.msk [vmem:[%s284_s3 + $0x4] sm:$0xf] %vm127_vm0, %v126_v28 }

// kernel: _lambda_.29
= control target key start
LH: loop header
LB: loop body
LE: loop exit
PB: predicated region body
PF: predicated region fallthrough
CT: control target
= control target key end

     0   :  { %vm45_vm0 = vcmask 130048   ;;  %vm65_vm1 = vcmask 125952   ;;  %s127_s1 = inlined_call_operand.vmem [shape: bf16[16,16], index: 1, kind: input, shape index: {}]   ;;  %s128_s0 = inlined_call_operand.vmem [shape: bf16[16,16], index: 0, kind: input, shape index: {}]   ;;  %s129_s2 = inlined_call_operand.vmem [shape: f32[1,16], index: 2, kind: input, shape index: {}]   ;;  %s130_s3 = inlined_call_operand.vmem [shape: f32[1,16], index: 3, kind: input, shape index: {}]   ;;  %s131_s4 = inlined_call_operand.vmem [shape: bf16[16,16], index: 4, kind: output, shape index: {}]  }
   0x1   :  { %v77_v0 = vld [vmem:[%s127_s1] sm:$0xff] }
   0x2   :  { %v79_v1 = vld [vmem:[%s128_s0] sm:$0xff]   ;;  %56 = vmatpush.bf16.msra.mxu0 %v77_v0 }
   0x3   :  { %v80_v2 = vunpack.c.l.bf16 %v79_v1  ;;  %v81_v3 = vunpack.c.h.bf16 %v79_v1  ;;  %v82_v4 = vld [vmem:[%s129_s2] ss:$0 sm:$0xff] }
   0x4   :  { %v83_v5 = vld [vmem:[%s130_s3] ss:$0 sm:$0xff] }
   0x5   :  { %v26_v6 = vmul.f32 %v82_v4, %v80_v2  ;;  %v27_v7 = vmul.f32 %v82_v4, %v81_v3 }
   0x7   :  { %v32_v8 = vadd.f32 %v83_v5, %v26_v6  ;;  %v33_v9 = vadd.f32 %v83_v5, %v27_v7 }
   0x9   :  { %v34_v10 = vmax.f32 %v32_v8, 0.0  ;;  %v35_v11 = vmax.f32 %v33_v9, 0.0 }
   0xb   :  { %v36_v12 = vpack.c.bf16 %v35_v11, %v34_v10 }
   0xd   :  { %76 = vmatmul.msk.bf16.vlgmr.msra.gmra.mxu0 %vm45_vm0, %v36_v12 }
  0x8a   :  { %v58_v13 = vpop.f32.mrf.mxu0 }
  0x8b   :  { %v63_v14 = vpack.c.bf16 %v58_v13, %v58_v13 }
  0x8d   :  { %66 = vst.msk [vmem:[%s131_s4] sm:$0xf] %vm65_vm1, %v63_v14 }
  0x92   :  { %v60_v15 = vpop.f32.mrf.mxu0 }
  0x93   :  { %v64_v16 = vpack.c.bf16 %v60_v15, %v60_v15 }
  0x95   :  { %67 = vst.msk [vmem:[%s131_s4 + $0x4] sm:$0xf] %vm65_vm1, %v64_v16 }

// kernel: _lambda_.30
= control target key start
LH: loop header
LB: loop body
LE: loop exit
PB: predicated region body
PF: predicated region fallthrough
CT: control target
= control target key end

     0   :  { %s1040_s18 = smov 0   ;;  %s1042_s19 = smov 0   ;;  %s1192_s0 = inlined_call_operand.vmem [shape: bf16[2,2,16,16], index: 0, kind: input, shape index: {}]   ;;  %s1193_s1 = inlined_call_operand.vmem [shape: bf16[3,9,16,8], index: 1, kind: input, shape index: {}]   ;;  %s1194_s2 = inlined_call_operand.vmem [shape: f32[16,1], index: 2, kind: input, shape index: {}]   ;;  %s1195_s3 = inlined_call_operand.vmem [shape: f32[1,16], index: 3, kind: input, shape index: {}]   ;;  %s1196_s4 = inlined_call_operand.vmem [shape: f32[1,16], index: 4, kind: input, shape index: {}]   ;;  %s1197_s5 = inlined_call_operand.vmem [shape: bf16[2,2,16,8], index: 5, kind: output, shape index: {}]  }
   0x1   :  { %s1044_s20 = smov 0   ;;  %s1046_s21 = smov 0  }
   0x2   :  { %s1048_s22 = smov 0   ;;  %s1050_s23 = smov 0  }
   0x3   :  { %s1052_s24 = smov 0  }
   0x4 LB: > { %s27_s25 = sadd.s32 1, %s994_s21  ;;  %s30_s26 = sadd.s32 1, %s998_s22  ;;  %s1006_s24 = sphi %s1052_s24, %s15_s24   ;;  %s1002_s23 = sphi %s1050_s23, %s1209_s23   ;;  %s998_s22 = sphi %s1048_s22, %s1208_s22   ;;  %s994_s21 = sphi %s1046_s21, %s1207_s21   ;;  %s990_s20 = sphi %s1044_s20, %s1206_s20   ;;  %s986_s19 = sphi %s1042_s19, %s1205_s19   ;;  %s982_s18 = sphi %s1040_s18, %s1204_s18  }
   0x5   : > { %p28_p0 = scmp.ge.s32.totalorder %s27_s25, 3  ;;  %p791_p1 = scmp.ge.s32.totalorder %s1006_s24, 1 }
   0x6   : > { %p248_p2 = scmp.lt.s32.totalorder %s1006_s24, 13  ;;  %s34_s27 = sadd.s32 1, %s1002_s23 }
   0x7   : > { %s1211_s25 = smov (%p28_p0, %s27_s25), 0  ;;  %s1213_s26 = smov (!%p28_p0, %s30_s26), %s998_s22 }
   0x8   : > { %1198 = sst [smem:[#allocation3_spill]] %s1211_s25  ;;  %p249_p3 = pnand %p791_p1, %p248_p2 }
   0x9   : > { %p32_p4 = scmp.ge.s32.totalorder %s1213_s26, 2  ;;  %s295_s28 = sadd.s32 (!%p249_p3), %s982_s18, %s986_s19 }
   0xa   : > { %s1088_s29 = sadd.s32 (!%p249_p3), 4294967295, %s295_s28  ;;  %p301_p6 = scmp.lt.s32.totalorder (!%p249_p3), %s990_s20, 1 }
   0xb   : > { %s1215_s26 = smov (%p32_p4, %s1213_s26), 0  ;;  %s1217_s27 = smov (!%p32_p4, %s34_s27), %s1002_s23 }
   0xc   : > { %1199 = sst [smem:[#allocation4_spill]] %s1215_s26  ;;  %p36_p5 = scmp.ge.s32.totalorder %s1217_s27, 2 }
   0xd   : > { %252 = sbr.rel (%p249_p3) target bundleno = 358 (0x166), region = 40  ;;  %p297_p7 = scmp.lt.s32.totalorder (!%p249_p3), %s1088_s29, 1 }
   0xe   : > { %s1219_s27 = smov (%p36_p5, %s1217_s27), 0  ;;  %p793_p8 = scmp.gt.s32.totalorder (!%p249_p3), %s1088_s29, 0 }
   0xf   : > { %1200 = sst [smem:[#allocation5_spill]] %s1219_s27  ;;  %p316_p9 = scmp.lt.s32.totalorder (!%p249_p3), %s982_s18, 2 }
  0x10   : > { %p323_p11 = scmp.lt.s32.totalorder (!%p249_p3), %s986_s19, 1  ;;  %p805_p12 = scmp.ne.s32.totalorder (!%p249_p3), %s982_s18, 0 }
  0x12   : > { %s298_s30 = scalar_select %p297_p7, %s1088_s29, 1 }
  0x13   : > { %s1221_s20 = smov (!%p301_p6, %s990_s20), 1  ;;  %s1227_s19 = smov (!%p323_p11, %s986_s19), 1 }
  0x14   : > { %s1223_s30 = smov (!%p793_p8, %s298_s30), 0  ;;  %s799_s7 = sshll.u32 %s1221_s20, 2 }
  0x15   : > { %s317_s6 = scalar_select %p316_p9, %s982_s18, 2 }
  0x16   : > { %p303_p10 = scmp.lt.s32.totalorder %s1223_s30, 1  ;;  %s802_s28 = sshll.u32 %s1227_s19, 1 }
  0x17   : > { %s890_s8 = smul.u32 72, %s317_s6  ;;  %s327_s27 = sadd.s32 %s802_s28, %s799_s7 }
  0x18   : > { %s1225_s30 = smov (!%p303_p10, %s1223_s30), 1  ;;  %s804_s20 = sshll.u32 %s327_s27, 2 }
  0x19   : > { %s1098_s11 = scalar_lea.vmem %s1193_s1, %s890_s8  ;;  %s798_s12 = sshll.u32 %s1225_s30, 1 }
  0x1a   : > { %s307_s13 = sadd.s32 %s799_s7, %s798_s12  ;;  %s1110_s25 = scalar_lea.vmem %s1197_s5, %s804_s20 }
  0x1b   : > { %s800_s14 = sshll.u32 %s307_s13, 2  ;;  %334 = sbr.rel (%p805_p12) target bundleno = 35 (0x23), region = 44 }
  0x1c   : > { %s1104_s17 = scalar_lea.vmem %s1192_s0, %s800_s14 }
  0x20   : > { %vm335_vm0 = vcmask 64512   ;;  %v1008_v0 = vmov 0.0  }
  0x21   : > { %336 = vst.msk [vmem:[#allocation2] sm:$0xff] %vm335_vm0, %v1008_v0 }
  0x22   : > { %337 = vst.msk [vmem:[#allocation2 + $0x8] sm:$0xff] %vm335_vm0, %v1008_v0 }
  0x23 PF: > { %p340_p13 = scmp.ge.s32.totalorder %s1088_s29, 0  ;;  %p341_p0 = scmp.le.s32.totalorder %s1088_s29, 1 }
  0x25   : > { %p342_p1 = pnand %p341_p0, %p340_p13 }
  0x27   : > { %345 = sbr.rel (%p342_p1) target bundleno = 346 (0x15a), region = 48 }
  0x2c   : > { %v364_v1 = vld [vmem:[%s1194_s2] sm:$0xff]  ;;  %v1009_v2 = vmov 0   ;;  %v365_v3 = vld [vmem:[%s1194_s2 + $0x8] sm:$0xff]  ;;  %v879_v6 = vld [vmem:[%s1098_s11 + $0x10] sm:$0xff]  ;;  %vm389_vm1 = vcmask 130048   ;;  %v409_v31 = vlaneseq  ;;  %vm648_vm7 = vcmask 64512  }
  0x2d   : > { %949 = vset.pattern.permute.xlu0 %v1009_v2  ;;  %v877_v4 = vld [vmem:[%s1098_s11] sm:$0xff]  ;;  %v878_v5 = vld [vmem:[%s1098_s11 + $0x8] sm:$0xff]  ;;  %v880_v7 = vld [vmem:[%s1098_s11 + $0x18] sm:$0xff]  ;;  %462 = vmatpush.bf16.msra.mxu2 %v879_v6 }
  0x2e   : > { %368 = vperm.xlu0 %949, %v364_v1   ;;  %400 = vmatpush.bf16.msra.mxu0 %v877_v4  ;;  %v881_v8 = vld [vmem:[%s1098_s11 + $0x20] sm:$0xff]  ;;  %v883_v9 = vld [vmem:[%s1098_s11 + $0x30] sm:$0xff]  ;;  %v884_v10 = vld [vmem:[%s1098_s11 + $0x38] sm:$0xff]  ;;  %v1137_v36 = vshrl.u32 %v409_v31, 7 }
  0x2f   : > { %432 = vmatpush.bf16.msra.mxu1 %v878_v5  ;;  %492 = vmatpush.bf16.msra.mxu3 %v880_v7  ;;  %v882_v11 = vld [vmem:[%s1098_s11 + $0x28] sm:$0xff]  ;;  %v887_v12 = vld [vmem:[%s1104_s17] sm:$0xff]  }
  0x30   : > { %v888_v13 = vunpack.c.l.bf16 %v887_v12  ;;  %v950_v14 = vld [vmem:[%s1195_s3] ss:$0 sm:$0xff]  ;;  %v889_v15 = vunpack.c.h.bf16 %v887_v12  ;;  %vm411_vm2 = vcmp.lt.s32.totalorder %v1137_v36, 5  ;;  %v380_v44 = vld [vmem:[#allocation2 + $0x8] sm:$0xff]  ;;  %vm441_vm3 = vcmp.lt.s32.totalorder %v1137_v36, 4 }
  0x31   : > { %577 = vmatpush.bf16.msrb.mxu2 %v883_v9  ;;  %v951_v17 = vld [vmem:[%s1196_s4] ss:$0 sm:$0xff]  ;;  %vm471_vm4 = vcmp.lt.s32.totalorder %v1137_v36, 3  ;;  %vm501_vm5 = vcmp.lt.s32.totalorder %v1137_v36, 1  ;;  %vm556_vm6 = vcmp.lt.s32.totalorder %v1137_v36, 7 }
  0x32   : > { %522 = vmatpush.bf16.msrb.mxu0 %v881_v8  ;;  %v354_v16 = vmul.f32 %v950_v14, %v888_v13  ;;  %v355_v18 = vmul.f32 %v950_v14, %v889_v15  ;;  %v885_v28 = vld [vmem:[%s1098_s11 + $0x40] sm:$0xff] }
  0x33   : > { %606 = vmatpush.bf16.msrb.mxu3 %v884_v10  ;;  %547 = vmatpush.bf16.msrb.mxu1 %v882_v11  ;;  %v379_v43 = vld [vmem:[#allocation2] sm:$0xff] }
  0x34   : > { %v360_v20 = vadd.f32 %v951_v17, %v354_v16  ;;  %v361_v21 = vadd.f32 %v951_v17, %v355_v18 }
  0x36   : > { %373 = vperm.xlu0 %949, %v365_v3   ;;  %v362_v22 = vmax.f32 %v360_v20, 0.0  ;;  %v363_v23 = vmax.f32 %v361_v21, 0.0 }
  0xa0   : > { %v369_v19 = vpop.permute.xlu0 %368 }
  0xa1   : > { %v376_v25 = vmul.f32 %v369_v19, %v362_v22 }
  0xa8   : > { %v374_v24 = vpop.permute.xlu0 %373 }
  0xa9   : > { %v377_v26 = vmul.f32 %v374_v24, %v363_v23 }
  0xab   : > { %v378_v27 = vpack.c.bf16 %v377_v26, %v376_v25 }
  0xad   : > { %811 = vmatmul.msk.bf16.vlgmr.msra.gmra.mxu0 %vm389_vm1, %v378_v27  ;;  %818 = vmatmul.msk.bf16.vlgmr.msra.gmra.mxu1 %vm389_vm1, %v378_v27 }
  0xae   : > { %825 = vmatmul.msk.bf16.vlgmr.msra.gmra.mxu2 %vm389_vm1, %v378_v27  ;;  %832 = vmatmul.msk.bf16.vlgmr.msra.gmra.mxu3 %vm389_vm1, %v378_v27 }
  0xaf   : > { %635 = vmatpush.bf16.msra.mxu0 %v885_v28 }
  0xbd   : > { %839 = vmatmul.msk.bf16.vlgmr.msrb.gmra.mxu0 %vm389_vm1, %v378_v27  ;;  %846 = vmatmul.msk.bf16.vlgmr.msrb.gmra.mxu1 %vm389_vm1, %v378_v27 }
  0xbe   : > { %853 = vmatmul.msk.bf16.vlgmr.msrb.gmra.mxu2 %vm389_vm1, %v378_v27  ;;  %860 = vmatmul.msk.bf16.vlgmr.msrb.gmra.mxu3 %vm389_vm1, %v378_v27 }
  0xcd   : > { %867 = vmatmul.msk.bf16.vlgmr.msra.gmra.mxu0 %vm389_vm1, %v378_v27 }
 0x12a   : > { %v402_v29 = vpop.f32.mrf.mxu0  ;;  %v434_v30 = vpop.f32.mrf.mxu1 }
 0x12b   : > { %v407_v38 = vrot.slane %v402_v29, 3  ;;  %v439_v51 = vrot.slane %v434_v30, 4 }
 0x131   : > { %v464_v32 = vpop.f32.mrf.mxu2  ;;  %v494_v33 = vpop.f32.mrf.mxu3 }
 0x132   : > { %v404_v34 = vpop.f32.mrf.mxu0  ;;  %v436_v35 = vpop.f32.mrf.mxu1  ;;  %v469_v52 = vrot.slane %v464_v32, 5  ;;  %v499_v2 = vrot.slane %v494_v33, 7 }
 0x133   : > { %v408_v37 = vrot.slane %v404_v34, 3  ;;  %v440_v47 = vrot.slane %v436_v35, 4 }
 0x135   : > { %v412_v45 = vsel %vm411_vm2, %v407_v38, %v408_v37  ;;  %v413_v46 = vsel %vm411_vm2, %v408_v37, %v407_v38  ;;  %v442_v53 = vsel %vm441_vm3, %v439_v51, %v440_v47  ;;  %v443_v54 = vsel %vm441_vm3, %v440_v47, %v439_v51 }
 0x136   : > { %v414_v49 = vadd.f32 %v413_v46, %v379_v43  ;;  %v415_v50 = vadd.f32 %v412_v45, %v380_v44 }
 0x138   : > { %v444_v58 = vadd.f32 %v443_v54, %v414_v49  ;;  %v445_v59 = vadd.f32 %v442_v53, %v415_v50 }
 0x139   : > { %v466_v39 = vpop.f32.mrf.mxu2  ;;  %v496_v40 = vpop.f32.mrf.mxu3 }
 0x13a   : > { %v524_v41 = vpop.f32.mrf.mxu0  ;;  %v549_v42 = vpop.f32.mrf.mxu1  ;;  %v470_v48 = vrot.slane %v466_v39, 5  ;;  %v500_v62 = vrot.slane %v496_v40, 7 }
 0x13b   : > { %v554_v8 = vrot.slane %v549_v42, 1 }
 0x13c   : > { %v472_v55 = vsel %vm471_vm4, %v469_v52, %v470_v48  ;;  %v473_v56 = vsel %vm471_vm4, %v470_v48, %v469_v52  ;;  %v503_v3 = vsel %vm501_vm5, %v500_v62, %v499_v2  ;;  %v502_v4 = vsel %vm501_vm5, %v499_v2, %v500_v62 }
 0x13d   : > { %v474_v63 = vadd.f32 %v473_v56, %v444_v58  ;;  %v475_v0 = vadd.f32 %v472_v55, %v445_v59 }
 0x13f   : > { %v504_v6 = vadd.f32 %v503_v3, %v474_v63  ;;  %v505_v7 = vadd.f32 %v502_v4, %v475_v0 }
 0x141   : > { %v579_v57 = vpop.f32.mrf.mxu2  ;;  %v608_v60 = vpop.f32.mrf.mxu3  ;;  %v529_v16 = vadd.f32 %v524_v41, %v504_v6 }
 0x142   : > { %v526_v61 = vpop.f32.mrf.mxu0  ;;  %v551_v1 = vpop.f32.mrf.mxu1  ;;  %v584_v13 = vrot.slane %v579_v57, 3  ;;  %v613_v25 = vrot.slane %v608_v60, 4 }
 0x143   : > { %v555_v5 = vrot.slane %v551_v1, 1  ;;  %v530_v10 = vadd.f32 %v526_v61, %v505_v7 }
 0x145   : > { %v557_v14 = vsel %vm556_vm6, %v554_v8, %v555_v5  ;;  %v558_v15 = vsel %vm556_vm6, %v555_v5, %v554_v8 }
 0x146   : > { %v559_v20 = vadd.f32 %v557_v14, %v529_v16  ;;  %v560_v21 = vadd.f32 %v558_v15, %v530_v10 }
 0x149   : > { %v581_v9 = vpop.f32.mrf.mxu2  ;;  %v610_v17 = vpop.f32.mrf.mxu3 }
 0x14a   : > { %v585_v11 = vrot.slane %v581_v9, 3  ;;  %v637_v12 = vpop.f32.mrf.mxu0  ;;  %v614_v22 = vrot.slane %v610_v17, 4 }
 0x14b   : > { %v642_v29 = vrot.slane %v637_v12, 5 }
 0x14c   : > { %v586_v18 = vsel %vm411_vm2, %v584_v13, %v585_v11  ;;  %v587_v19 = vsel %vm411_vm2, %v585_v11, %v584_v13  ;;  %v615_v27 = vsel %vm441_vm3, %v613_v25, %v614_v22  ;;  %v616_v28 = vsel %vm441_vm3, %v614_v22, %v613_v25 }
 0x14d   : > { %v588_v23 = vadd.f32 %v586_v18, %v559_v20  ;;  %v589_v24 = vadd.f32 %v587_v19, %v560_v21 }
 0x14f   : > { %v617_v31 = vadd.f32 %v615_v27, %v588_v23  ;;  %v618_v32 = vadd.f32 %v616_v28, %v589_v24 }
 0x152   : > { %v639_v26 = vpop.f32.mrf.mxu0 }
 0x153   : > { %v643_v30 = vrot.slane %v639_v26, 5 }
 0x155   : > { %v644_v33 = vsel %vm471_vm4, %v642_v29, %v643_v30  ;;  %v645_v34 = vsel %vm471_vm4, %v643_v30, %v642_v29 }
 0x156   : > { %v646_v35 = vadd.f32 %v644_v33, %v617_v31  ;;  %v647_v37 = vadd.f32 %v645_v34, %v618_v32 }
 0x158   : > { %649 = vst.msk [vmem:[#allocation2] sm:$0xff] %vm648_vm7, %v646_v35 }
 0x159   : > { %650 = vst.msk [vmem:[#allocation2 + $0x8] sm:$0xff] %vm648_vm7, %v647_v37 }
 0x15a PF: > { %p868_p2 = scmp.ne.s32.totalorder %s982_s18, 2 }
 0x15c   : > { %654 = sbr.rel (%p868_p2) target bundleno = 358 (0x166), region = 52 }
 0x161   : > { %v655_v38 = vld [vmem:[#allocation2] sm:$0xff]  ;;  %vm659_vm8 = vcmask 60416   ;;  %v656_v39 = vld [vmem:[#allocation2 + $0x8] sm:$0xff] }
 0x162   : > { %v657_v40 = vpack.c.bf16 %v655_v38, %v655_v38  ;;  %v658_v41 = vpack.c.bf16 %v656_v39, %v656_v39 }
 0x164   : > { %660 = vst.msk [vmem:[%s1110_s25] sm:$0xf] %vm659_vm8, %v657_v40 }
 0x165   : > { %661 = vst.msk [vmem:[%s1110_s25 + $0x4] sm:$0xf] %vm659_vm8, %v658_v41 }
 0x166 PF: > { %s15_s24 = sadd.s32 1, %s1006_s24   ;;  %s1201_s10 = sld [smem:[#allocation3_spill]] }
 0x167   : > { %p12_p3 = scmp.ge.s32.totalorder %s15_s24, 14   ;;  %s1202_s11 = sld [smem:[#allocation4_spill]] }
 0x168   : > { %s1203_s12 = sld [smem:[#allocation5_spill]]  ;;  %s1204_s18 = smov %s994_s21 }
 0x169   : > { %s1205_s19 = smov %s998_s22  ;;  %s1206_s20 = smov %s1002_s23 }
 0x16a   :  { %14 = sbr.rel (!%p12_p3) target bundleno = 4 (0x4), region = 93 }
 0x16c   : > { %s1207_s21 = smov %s1201_s10 }
 0x16d   : > { %s1208_s22 = smov %s1202_s11 }
 0x16e   : > { %s1209_s23 = smov %s1203_s12 }

// kernel: _lambda_.31
= control target key start
LH: loop header
LB: loop body
LE: loop exit
PB: predicated region body
PF: predicated region fallthrough
CT: control target
= control target key end

     0   :  { %vm53_vm0 = vcmask 1043456   ;;  %vm49_vm1 = vcmask 195584   ;;  %vm73_vm2 = vcmask 125952   ;;  %s138_s1 = inlined_call_operand.vmem [shape: bf16[24,16], index: 1, kind: input, shape index: {}]   ;;  %s139_s0 = inlined_call_operand.vmem [shape: bf16[16,24], index: 0, kind: input, shape index: {}]   ;;  %s140_s2 = inlined_call_operand.vmem [shape: f32[1,24], index: 2, kind: input, shape index: {}]   ;;  %s141_s3 = inlined_call_operand.vmem [shape: f32[1,24], index: 3, kind: input, shape index: {}]   ;;  %s142_s4 = inlined_call_operand.vmem [shape: bf16[16,16], index: 4, kind: output, shape index: {}]  }
   0x1   :  { %v39_v0 = vld [vmem:[%s138_s1 + $0x8] sm:$0xf]  ;;  %v87_v1 = vld [vmem:[%s139_s0] sm:$0xff]  }
   0x2   :  { %v45_v2 = vunpack.c.l.b16 %v39_v0  ;;  %v88_v3 = vunpack.c.l.bf16 %v87_v1  ;;  %v89_v4 = vunpack.c.h.bf16 %v87_v1  ;;  %v90_v5 = vld [vmem:[%s140_s2] ss:$0 sm:$0xff] }
   0x3   :  { %v91_v6 = vld [vmem:[%s141_s3] ss:$0 sm:$0xff] }
   0x4   :  { %v47_v7 = vpack.c.b16 %v45_v2, %v45_v2  ;;  %v26_v8 = vmul.f32 %v90_v5, %v88_v3  ;;  %v27_v9 = vmul.f32 %v90_v5, %v89_v4  ;;  %v85_v13 = vld [vmem:[%s138_s1] sm:$0xff] }
   0x6   :  { %v55_v10 = vsel %vm53_vm0, %v47_v7, 0  ;;  %v32_v11 = vadd.f32 %v91_v6, %v26_v8  ;;  %v33_v12 = vadd.f32 %v91_v6, %v27_v9 }
   0x7   :  { %63 = vmatpush.bf16.msra.mxu0 %v55_v10 }
   0x8   :  { %v34_v14 = vmax.f32 %v32_v11, 0.0  ;;  %v35_v15 = vmax.f32 %v33_v12, 0.0 }
   0xa   :  { %v36_v16 = vpack.c.bf16 %v35_v15, %v34_v14 }
   0xb   :  { %64 = vmatpush.bf16.msra.mxu0 %v85_v13 }
   0xe   :  { %84 = vmatmul.msk.bf16.vlgmr.msra.gmra.mxu0 %vm49_vm1, %v36_v16 }
  0x8b   :  { %v66_v17 = vpop.f32.mrf.mxu0 }
  0x8c   :  { %v71_v18 = vpack.c.bf16 %v66_v17, %v66_v17 }
  0x8e   :  { %74 = vst.msk [vmem:[%s142_s4] sm:$0xf] %vm73_vm2, %v71_v18 }
  0x93   :  { %v68_v19 = vpop.f32.mrf.mxu0 }
  0x94   :  { %v72_v20 = vpack.c.bf16 %v68_v19, %v68_v19 }
  0x96   :  { %75 = vst.msk [vmem:[%s142_s4 + $0x4] sm:$0xf] %vm73_vm2, %v72_v20 }

// kernel: tile.13
= control target key start
LH: loop header
LB: loop body
LE: loop exit
PB: predicated region body
PF: predicated region fallthrough
CT: control target
= control target key end

     0   :  { %s22_s0 = inlined_call_operand.vmem [shape: f32[16], index: 0, kind: input, shape index: {}]   ;;  %s23_s1 = inlined_call_operand.vmem [shape: f32[2,16], index: 1, kind: output, shape index: {}]  }
   0x1   :  { %v4_v0 = vld [vmem:[%s22_s0] ss:$0 sm:$0xff] }
   0x2   :  { %5 = vst [vmem:[%s23_s1] sm:$0x3] %v4_v0 }

// kernel: tile.14
= control target key start
LH: loop header
LB: loop body
LE: loop exit
PB: predicated region body
PF: predicated region fallthrough
CT: control target
= control target key end

     0   :  { %vm7_vm0 = vcmask 130048   ;;  %vm13_vm1 = vcmask 261248   ;;  %s39_s0 = inlined_call_operand.vmem [shape: f32[2,16], index: 0, kind: input, shape index: {}]   ;;  %s40_s1 = inlined_call_operand.vmem [shape: f32[1,32], index: 1, kind: output, shape index: {}]  }
   0x1   :  { %v4_v0 = vld [vmem:[%s39_s0] sm:$0x3]  ;;  %s22_s0 = smov 16  }
   0x2   :  { %5 = vst [vmem:[#allocation1] sm:$0x3] %v4_v0 }
   0x9   :  { %v10_v1 = vld [vmem:[#allocation1 + $0x1] sm:$0x1]   ;;  %v6_v2 = vld [vmem:[#allocation1] sm:$0x1]  }
   0xa   :  { %11 = vrot.lane.b32.xlu0 %v10_v1, %s22_s0  ;;  %8 = vst.msk [vmem:[#allocation0] sm:$0x1] %vm7_vm0, %v6_v2  }
  0x7c   :  { %v12_v3 = vpop.permute.xlu0 %11  }
  0x7d   :  { %14 = vst.msk [vmem:[#allocation0] sm:$0x1] %vm13_vm1, %v12_v3  }
  0x84   :  { %v17_v4 = vld [vmem:[#allocation0] sm:$0x1] }
  0x85   :  { %20 = vst [vmem:[%s40_s1] sm:$0x1] %v17_v4 }

// kernel: _lambda_.35
= control target key start
LH: loop header
LB: loop body
LE: loop exit
PB: predicated region body
PF: predicated region fallthrough
CT: control target
= control target key end

     0   :  { %vm34_vm0 = vcmask 257024   ;;  %s82_s0 = inlined_call_operand.vmem [shape: bf16[16,32], index: 0, kind: input, shape index: {}]   ;;  %s83_s1 = inlined_call_operand.vmem [shape: f32[1,32], index: 1, kind: input, shape index: {}]   ;;  %s84_s2 = inlined_call_operand.vmem [shape: f32[1,32], index: 2, kind: input, shape index: {}]   ;;  %s85_s3 = inlined_call_operand.vmem [shape: bf16[16,32], index: 3, kind: output, shape index: {}]  }
   0x1   :  { %v42_v0 = vld [vmem:[%s82_s0] sm:$0xff]  }
   0x2   :  { %v45_v1 = vld [vmem:[%s83_s1] ss:$0 sm:$0xff]  ;;  %v43_v2 = vunpack.c.l.bf16 %v42_v0  ;;  %v44_v4 = vunpack.c.h.bf16 %v42_v0 }
   0x3   :  { %v46_v3 = vld [vmem:[%s84_s2] ss:$0 sm:$0xff] }
   0x4   :  { %v22_v5 = vmul.f32 %v45_v1, %v43_v2  ;;  %v23_v6 = vmul.f32 %v45_v1, %v44_v4 }
   0x6   :  { %v28_v7 = vadd.f32 %v46_v3, %v22_v5  ;;  %v29_v8 = vadd.f32 %v46_v3, %v23_v6 }
   0x8   :  { %v30_v9 = vmax.f32 %v28_v7, 0.0  ;;  %v31_v10 = vmax.f32 %v29_v8, 0.0 }
   0xa   :  { %v32_v11 = vpack.c.bf16 %v30_v9, %v30_v9  ;;  %v33_v12 = vpack.c.bf16 %v31_v10, %v31_v10 }
   0xc   :  { %35 = vst.msk [vmem:[%s85_s3] sm:$0xf] %vm34_vm0, %v32_v11 }
   0xd   :  { %36 = vst.msk [vmem:[%s85_s3 + $0x4] sm:$0xf] %vm34_vm0, %v33_v12 }

// kernel: _lambda_.36
= control target key start
LH: loop header
LB: loop body
LE: loop exit
PB: predicated region body
PF: predicated region fallthrough
CT: control target
= control target key end

     0   :  { %vm40_vm0 = vcmask 130048   ;;  %s151_s1 = inlined_call_operand.vmem [shape: bf16[16,256], index: 1, kind: input, shape index: {}]   ;;  %s152_s0 = inlined_call_operand.vmem [shape: bf16[16,16], index: 0, kind: input, shape index: {}]   ;;  %s153_s2 = inlined_call_operand.vmem [shape: f32[1,256], index: 2, kind: input, shape index: {}]   ;;  %s154_s3 = inlined_call_operand.vmem [shape: f32[16,256], index: 3, kind: output, shape index: {}]  }
   0x1   :  { %v90_v0 = vld [vmem:[%s151_s1] sm:$0xf]  ;;  %v100_v1 = vld [vmem:[%s151_s1 + $0x4] sm:$0xf0]  ;;  %v99_v2 = vld [vmem:[%s151_s1 + $0x4] sm:$0xf] }
   0x2   :  { %v91_v3 = vor.u32 %v100_v1, %v90_v0  ;;  %v92_v4 = vld [vmem:[%s151_s1 + $0x8] sm:$0xf0]  ;;  %v98_v6 = vld [vmem:[%s152_s0] sm:$0xff] }
   0x3   :  { %v95_v5 = vor.u32 %v99_v2, %v92_v4  ;;  %v19_v7 = vld [vmem:[%s153_s2] sm:$0x3] }
   0x4   :  { %51 = vmatpush.bf16.msra.mxu0 %v91_v3  ;;  %v21_v8 = vperm.slane %v19_v7, 0  ;;  %v22_v9 = vperm.slane %v19_v7, 1 }
   0x5   :  { %65 = vmatpush.bf16.msra.mxu1 %v95_v5 }
   0x7   :  { %96 = vmatmul.msk.bf16.vlgmr.msra.gmra.mxu0 %vm40_vm0, %v98_v6 }
   0x8   :  { %97 = vmatmul.msk.bf16.vlgmr.msra.gmra.mxu1 %vm40_vm0, %v98_v6 }
  0x84   :  { %v53_v10 = vpop.f32.mrf.mxu0 }
  0x85   :  { %v54_v11 = vadd.f32 %v53_v10, %v21_v8  ;;  %v67_v12 = vpop.f32.mrf.mxu1 }
  0x86   :  { %v68_v13 = vadd.f32 %v67_v12, %v22_v9 }
  0x87   :  { %v72_v14 = vmax.f32 %v54_v11, 0.0 }
  0x88   :  { %v73_v15 = vmax.f32 %v68_v13, 0.0 }
  0x89   :  { %76 = vst [vmem:[%s154_s3] sm:$0xff] %v72_v14 }
  0x8a   :  { %77 = vst [vmem:[%s154_s3 + $0x8] sm:$0xff] %v73_v15 }
  0x8c   :  { %v55_v16 = vpop.f32.mrf.mxu0 }
  0x8d   :  { %v56_v17 = vadd.f32 %v55_v16, %v21_v8  ;;  %v69_v18 = vpop.f32.mrf.mxu1 }
  0x8e   :  { %v70_v19 = vadd.f32 %v69_v18, %v22_v9 }
  0x8f   :  { %v74_v20 = vmax.f32 %v56_v17, 0.0 }
  0x90   :  { %v75_v21 = vmax.f32 %v70_v19, 0.0 }
  0x91   :  { %78 = vst [vmem:[%s154_s3 + $0x10] sm:$0xff] %v74_v20 }
  0x92   :  { %79 = vst [vmem:[%s154_s3 + $0x18] sm:$0xff] %v75_v21 }

// kernel: _lambda_.37
= control target key start
LH: loop header
LB: loop body
LE: loop exit
PB: predicated region body
PF: predicated region fallthrough
CT: control target
= control target key end

     0   :  { %vm182_vm0 = vcmask 7168   ;;  %s359_s1 = inlined_call_operand.vmem [shape: bf16[256,1], index: 1, kind: input, shape index: {}]   ;;  %s360_s2 = inlined_call_operand.<no memory space> [shape: f32[1,1], index: 2, kind: input, shape index: {}]   ;;  %s361_s0 = inlined_call_operand.vmem [shape: f32[16,256], index: 0, kind: input, shape index: {}]   ;;  %s362_s3 = inlined_call_operand.vmem [shape: f32[16,1], index: 3, kind: output, shape index: {}]  }
   0x1   :  { %v260_v0 = vld [vmem:[%s359_s1 + $0x38] sm:$0xff]  ;;  %v8_v2 = vstv %s360_s2  ;;  %v259_v3 = vld [vmem:[%s359_s1 + $0x30] sm:$0xff]  ;;  %v258_v5 = vld [vmem:[%s359_s1 + $0x28] sm:$0xff] }
   0x2   :  { %v268_v1 = vld [vmem:[%s359_s1 + $0x78] sm:$0xff]  ;;  %154 = vmatpush.bf16.msra.mxu0 %v260_v0  ;;  %v267_v4 = vld [vmem:[%s359_s1 + $0x70] sm:$0xff]  ;;  %9 = vst [vmem:[#allocation2] sm:$0x1] %v8_v2  ;;  %v266_v6 = vld [vmem:[%s359_s1 + $0x68] sm:$0xff] }
   0x3   :  { %168 = vmatpush.bf16.msra.mxu1 %v268_v1  ;;  %v257_v7 = vld [vmem:[%s359_s1 + $0x20] sm:$0xff]  ;;  %v256_v9 = vld [vmem:[%s359_s1 + $0x18] sm:$0xff]  ;;  %v255_v11 = vld [vmem:[%s359_s1 + $0x10] sm:$0xff] }
   0x4   :  { %v265_v8 = vld [vmem:[%s359_s1 + $0x60] sm:$0xff]  ;;  %v264_v10 = vld [vmem:[%s359_s1 + $0x58] sm:$0xff]  ;;  %v263_v12 = vld [vmem:[%s359_s1 + $0x50] sm:$0xff] }
   0x5   :  { %v254_v13 = vld [vmem:[%s359_s1 + $0x8] sm:$0xff]  ;;  %v253_v15 = vld [vmem:[%s359_s1] sm:$0xff]  ;;  %v18_v18 = vld [vmem:[%s361_s0 + $0x10] sm:$0xff] }
   0x6   :  { %155 = vmatpush.bf16.msra.mxu0 %v259_v3  ;;  %v262_v14 = vld [vmem:[%s359_s1 + $0x48] sm:$0xff]  ;;  %v261_v16 = vld [vmem:[%s359_s1 + $0x40] sm:$0xff]  ;;  %v19_v20 = vld [vmem:[%s361_s0 + $0x18] sm:$0xff] }
   0x7   :  { %169 = vmatpush.bf16.msra.mxu1 %v267_v4  ;;  %v16_v17 = vld [vmem:[%s361_s0] sm:$0xff]  ;;  %v17_v19 = vld [vmem:[%s361_s0 + $0x8] sm:$0xff] }
   0x8   :  { %v20_v21 = vpack.c.bf16 %v18_v18, %v16_v17  ;;  %v21_v22 = vpack.c.bf16 %v19_v20, %v17_v19 }
   0x9   :  { %v269_v23 = vld [vmem:[#allocation2] ss:$0 sm:$0xff] }
   0xa   :  { %156 = vmatpush.bf16.msra.mxu0 %v258_v5 }
   0xb   :  { %170 = vmatpush.bf16.msra.mxu1 %v266_v6 }
   0xe   :  { %157 = vmatpush.bf16.msra.mxu0 %v257_v7 }
   0xf   :  { %171 = vmatpush.bf16.msra.mxu1 %v265_v8 }
  0x12   :  { %158 = vmatpush.bf16.msra.mxu0 %v256_v9 }
  0x13   :  { %172 = vmatpush.bf16.msra.mxu1 %v264_v10 }
  0x16   :  { %159 = vmatpush.bf16.msra.mxu0 %v255_v11 }
  0x17   :  { %173 = vmatpush.bf16.msra.mxu1 %v263_v12 }
  0x1a   :  { %160 = vmatpush.bf16.msra.mxu0 %v254_v13 }
  0x1b   :  { %174 = vmatpush.bf16.msra.mxu1 %v262_v14 }
  0x1e   :  { %161 = vmatpush.bf16.msra.mxu0 %v253_v15 }
  0x1f   :  { %175 = vmatpush.bf16.msra.mxu1 %v261_v16 }
  0x21   :  { %162 = vmatmul.bf16.vlgmr.msra.gmra.mxu0 %v20_v21 }
  0x22   :  { %176 = vmatmul.bf16.vlgmr.msra.gmra.mxu1 %v21_v22 }
  0x9e   :  { %v163_v24 = vpop.f32.mrf.mxu0 }
  0x9f   :  { %v177_v25 = vpop.f32.mrf.mxu1  ;;  %v164_v26 = vadd.f32 %v269_v23, %v163_v24 }
  0xa1   :  { %v178_v27 = vadd.f32 %v177_v25, %v164_v26 }
  0xa3   :  { %183 = vst.msk [vmem:[%s362_s3] sm:$0xff] %vm182_vm0, %v178_v27 }
  0xa6   :  { %v165_v28 = vpop.f32.mrf.mxu0 }
  0xa7   :  { %v166_v29 = vadd.f32 %v269_v23, %v165_v28  ;;  %v179_v30 = vpop.f32.mrf.mxu1 }
  0xa9   :  { %v180_v31 = vadd.f32 %v179_v30, %v166_v29 }
  0xab   :  { %184 = vst.msk [vmem:[%s362_s3 + $0x8] sm:$0xff] %vm182_vm0, %v180_v31 }

</bundles_post_ra>
